<compile_context>
chip_gen: v7x
topology: tpu7x:2x2x1
jax: 0.10.0
libtpu: 0.0.40
codegen_flags: <defaults>
</compile_context>

<pallas_src>
import math

import jax
import jax.numpy as jnp
from jax.experimental import pallas as pl
from jax.experimental.pallas import tpu as pltpu


_VMEM_SPEC = pl.BlockSpec(memory_space=pltpu.MemorySpace.VMEM)


def _sigmoid(x):
    # exp on EUP; divide replaced by approx reciprocal (also EUP slot).
    return pl.reciprocal(1.0 + jnp.exp(-x), approx=True)


# ----------------------------------------------------------------------------
# Fused Pallas kernel: num_layers x LSTM + shared FC/ReLU + merged heads
# ----------------------------------------------------------------------------
def _make_fused_kernel(num_layers, T, B, H, C):
    def kernel(x_ref, *refs):
        layer_refs = refs[: 3 * num_layers]
        w1_ref, b1_ref, wh_ref, bh_ref = refs[3 * num_layers: 3 * num_layers + 4]
        logits_ref, mass_ref = refs[3 * num_layers + 4:]

        seq = x_ref[...]                                   # (B, T, D0), batch-first
        h = jnp.zeros((B, H), jnp.float32)

        for layer in range(num_layers):
            wih_ref, whh_ref, b_ref = layer_refs[3 * layer: 3 * layer + 3]
            d_in = wih_ref.shape[1]
            x2d = seq.reshape(B * T, d_in)

            # Hoisted input projection: one (B*T, d_in) x (d_in, H) matmul per
            # gate (bias folded in), instead of T tiny matmuls inside the loop.
            xp = [
                jnp.dot(x2d, wih_ref[k],
                        preferred_element_type=jnp.float32).reshape(B, T, H)
                + b_ref[k]
                for k in range(4)
            ]
            whh = [whh_ref[k] for k in range(4)]

            h = jnp.zeros((B, H), jnp.float32)
            c = jnp.zeros((B, H), jnp.float32)
            last_layer = layer == num_layers - 1
            outs = []
            for t in range(T):                             # statically unrolled
                gi = xp[0][:, t, :] + jnp.dot(h, whh[0], preferred_element_type=jnp.float32)
                gf = xp[1][:, t, :] + jnp.dot(h, whh[1], preferred_element_type=jnp.float32)
                gg = xp[2][:, t, :] + jnp.dot(h, whh[2], preferred_element_type=jnp.float32)
                go = xp[3][:, t, :] + jnp.dot(h, whh[3], preferred_element_type=jnp.float32)
                c = _sigmoid(gf) * c + _sigmoid(gi) * jnp.tanh(gg)
                h = _sigmoid(go) * jnp.tanh(c)
                if not last_layer:
                    outs.append(h)
            if not last_layer:
                seq = jnp.stack(outs, axis=1)              # (B, T, H) for next layer

        # Head: shared FC + ReLU, then merged classifier+regressor matmul.
        z = jnp.maximum(
            jnp.dot(h, w1_ref[...], preferred_element_type=jnp.float32) + b1_ref[...],
            0.0,
        )
        zh = jnp.dot(z, wh_ref[...], preferred_element_type=jnp.float32) + bh_ref[...]
        logits_ref[...] = zh[:, :C]
        mass_ref[...] = zh[:, C:C + 1]

    return kernel


# ----------------------------------------------------------------------------
# Wrapper (single pallas_call)
# ----------------------------------------------------------------------------
def lstm_classifier_forward(x, params):
    """x: (B, T, input_size) float32, batch-first (as in the PyTorch module)."""
    B, T, _ = x.shape
    H = params["w1"].shape[0]
    num_layers = len(params["lstm"])
    C = params["wh"].shape[1] - 1

    inputs = [x]
    for (wih, whh, b) in params["lstm"]:
        inputs += [wih, whh, b]
    inputs += [params["w1"], params["b1"], params["wh"], params["bh"]]

    logits, mass = pl.pallas_call(
        _make_fused_kernel(num_layers, T, B, H, C),
        out_shape=(
            jax.ShapeDtypeStruct((B, C), jnp.float32),
            jax.ShapeDtypeStruct((B, 1), jnp.float32),
        ),
        in_specs=[_VMEM_SPEC] * len(inputs),
        out_specs=(_VMEM_SPEC, _VMEM_SPEC),
    )(*inputs)
    return logits, jnp.squeeze(mass, axis=-1)


# ----------------------------------------------------------------------------
# Deterministic parameter construction (PyTorch-style uniform init),
# converted to the per-gate, lane-aligned kernel layout.
# ----------------------------------------------------------------------------
def init_params(key, input_size, hidden_size, num_layers, num_classes):
    H = hidden_size

    def unif(k, shape, bound):
        return jax.random.uniform(k, shape, jnp.float32, -bound, bound)

    params = {"lstm": []}
    k_lstm = 1.0 / math.sqrt(H)
    for layer in range(num_layers):
        d_in = input_size if layer == 0 else H
        key, k1, k2, k3, k4 = jax.random.split(key, 5)
        w_ih = unif(k1, (4 * H, d_in), k_lstm)   # PyTorch weight_ih_l{k}, gates [i,f,g,o]
        w_hh = unif(k2, (4 * H, H), k_lstm)
        b_ih = unif(k3, (4 * H,), k_lstm)
        b_hh = unif(k4, (4 * H,), k_lstm)
        wih = jnp.stack([w_ih[k * H:(k + 1) * H, :].T for k in range(4)])       # (4, D, H)
        whh = jnp.stack([w_hh[k * H:(k + 1) * H, :].T for k in range(4)])       # (4, H, H)
        bb = jnp.stack([(b_ih + b_hh)[k * H:(k + 1) * H].reshape(1, H)
                        for k in range(4)])                                     # (4, 1, H)
        params["lstm"].append((wih, whh, bb))

    def linear(k, fan_in, fan_out):
        bound = 1.0 / math.sqrt(fan_in)
        kw, kb = jax.random.split(k)
        return unif(kw, (fan_out, fan_in), bound).T, unif(kb, (fan_out,), bound)

    key, k1, k2, k3 = jax.random.split(key, 4)
    w1, b1 = linear(k1, H, H)
    wc, bc = linear(k2, H, num_classes)
    wr, br = linear(k3, H, 1)
    params["w1"] = w1
    params["b1"] = b1.reshape(1, H)
    params["wh"] = jnp.concatenate([wc, wr], axis=1)                  # (H, C+1) merged head
    params["bh"] = jnp.concatenate([bc, br]).reshape(1, num_classes + 1)
    return params


# ----------------------------------------------------------------------------
# Pure-JAX reference (correctness sanity check)
# ----------------------------------------------------------------------------
def reference_forward(x, params):
    B, T, _ = x.shape
    seq = x
    for (wih, whh, b) in params["lstm"]:
        H = whh.shape[1]
        h = jnp.zeros((B, H), jnp.float32)
        c = jnp.zeros((B, H), jnp.float32)
        outs = []
        for t in range(T):
            xt = seq[:, t, :]
            gi = xt @ wih[0] + h @ whh[0] + b[0]
            gf = xt @ wih[1] + h @ whh[1] + b[1]
            gg = xt @ wih[2] + h @ whh[2] + b[2]
            go = xt @ wih[3] + h @ whh[3] + b[3]
            c = jax.nn.sigmoid(gf) * c + jax.nn.sigmoid(gi) * jnp.tanh(gg)
            h = jax.nn.sigmoid(go) * jnp.tanh(c)
            outs.append(h)
        seq = jnp.stack(outs, axis=1)
    z = jnp.maximum(seq[:, -1, :] @ params["w1"] + params["b1"], 0.0)
    zh = z @ params["wh"] + params["bh"]
    C = params["wh"].shape[1] - 1
    return zh[:, :C], zh[:, C]


# ----------------------------------------------------------------------------
if __name__ == "__main__":
    batch = 4
    seq_len = 8
    input_size = 6       # problemDim
    hidden_size = 48
    num_layers = 2
    num_classes = 3

    key = jax.random.PRNGKey(0)
    key, k_x, k_p = jax.random.split(key, 3)
    x = jax.random.normal(k_x, (batch, seq_len, input_size), jnp.float32)
    params = init_params(k_p, input_size, hidden_size, num_layers, num_classes)

    logits, mass = jax.jit(lstm_classifier_forward)(x, params)
    jax.block_until_ready((logits, mass))

    ref_logits, ref_mass = reference_forward(x, params)
    assert logits.shape == (batch, num_classes)
    assert mass.shape == (batch,)
    # Tolerance loosened slightly vs 1e-4 because the kernel sigmoid uses the
    # EUP approx reciprocal (per perf review).
    assert jnp.allclose(logits, ref_logits, atol=5e-3, rtol=5e-3)
    assert jnp.allclose(mass, ref_mass, atol=5e-3, rtol=5e-3)

    print("KERNEL_OK")
</pallas_src>

<mosaic_0001>
module attributes {stable_mosaic.version = 11 : i64} {
  func.func @kernel(%arg0: memref<4x8x6xf32, #tpu.memory_space<vmem>>, %arg1: memref<4x6x48xf32, #tpu.memory_space<vmem>>, %arg2: memref<4x48x48xf32, #tpu.memory_space<vmem>>, %arg3: memref<4x1x48xf32, #tpu.memory_space<vmem>>, %arg4: memref<4x48x48xf32, #tpu.memory_space<vmem>>, %arg5: memref<4x48x48xf32, #tpu.memory_space<vmem>>, %arg6: memref<4x1x48xf32, #tpu.memory_space<vmem>>, %arg7: memref<48x48xf32, #tpu.memory_space<vmem>>, %arg8: memref<1x48xf32, #tpu.memory_space<vmem>>, %arg9: memref<48x4xf32, #tpu.memory_space<vmem>>, %arg10: memref<1x4xf32, #tpu.memory_space<vmem>>, %arg11: memref<4x3xf32, #tpu.memory_space<vmem>>, %arg12: memref<4x1xf32, #tpu.memory_space<vmem>>) attributes {dimension_semantics = [], scalar_prefetch = 0 : i64, scratch_operands = 0 : i64, tpu.core_type = #tpu.core_type<tc>} {
    %c0 = arith.constant 0 : index
    %c0_0 = arith.constant 0 : index
    %c0_1 = arith.constant 0 : index
    %0 = vector.load %arg0[%c0, %c0_0, %c0_1] : memref<4x8x6xf32, #tpu.memory_space<vmem>>, vector<4x8x6xf32>
    %1 = vector.shape_cast %0 : vector<4x8x6xf32> to vector<32x6xf32>
    %c0_2 = arith.constant 0 : index
    %c0_3 = arith.constant 0 : index
    %c0_4 = arith.constant 0 : index
    %2 = vector.load %arg1[%c0_2, %c0_3, %c0_4] : memref<4x6x48xf32, #tpu.memory_space<vmem>>, vector<1x6x48xf32>
    %3 = vector.shape_cast %2 : vector<1x6x48xf32> to vector<6x48xf32>
    %cst = arith.constant dense<0.000000e+00> : vector<32x48xf32>
    %4 = tpu.matmul %1, %3, %cst {dimension_numbers = #tpu.dot_dimension_numbers<[1], [0], [0], [1], [0, 0, 1, 1], [], []>} : vector<32x6xf32>, vector<6x48xf32>, vector<32x48xf32> -> vector<32x48xf32>
    %5 = vector.shape_cast %4 : vector<32x48xf32> to vector<4x8x48xf32>
    %c0_5 = arith.constant 0 : index
    %c0_6 = arith.constant 0 : index
    %c0_7 = arith.constant 0 : index
    %6 = vector.load %arg3[%c0_5, %c0_6, %c0_7] : memref<4x1x48xf32, #tpu.memory_space<vmem>>, vector<1x1x48xf32>
    %7 = vector.shape_cast %6 : vector<1x1x48xf32> to vector<1x48xf32>
    %8 = vector.shape_cast %7 : vector<1x48xf32> to vector<1x1x48xf32>
    %9 = vector.broadcast %8 : vector<1x1x48xf32> to vector<4x8x48xf32>
    %10 = arith.addf %5, %9 : vector<4x8x48xf32>
    %c1 = arith.constant 1 : index
    %c0_8 = arith.constant 0 : index
    %c0_9 = arith.constant 0 : index
    %11 = vector.load %arg1[%c1, %c0_8, %c0_9] : memref<4x6x48xf32, #tpu.memory_space<vmem>>, vector<1x6x48xf32>
    %12 = vector.shape_cast %11 : vector<1x6x48xf32> to vector<6x48xf32>
    %cst_10 = arith.constant dense<0.000000e+00> : vector<32x48xf32>
    %13 = tpu.matmul %1, %12, %cst_10 {dimension_numbers = #tpu.dot_dimension_numbers<[1], [0], [0], [1], [0, 0, 1, 1], [], []>} : vector<32x6xf32>, vector<6x48xf32>, vector<32x48xf32> -> vector<32x48xf32>
    %14 = vector.shape_cast %13 : vector<32x48xf32> to vector<4x8x48xf32>
    %c1_11 = arith.constant 1 : index
    %c0_12 = arith.constant 0 : index
    %c0_13 = arith.constant 0 : index
    %15 = vector.load %arg3[%c1_11, %c0_12, %c0_13] : memref<4x1x48xf32, #tpu.memory_space<vmem>>, vector<1x1x48xf32>
    %16 = vector.shape_cast %15 : vector<1x1x48xf32> to vector<1x48xf32>
    %17 = vector.shape_cast %16 : vector<1x48xf32> to vector<1x1x48xf32>
    %18 = vector.broadcast %17 : vector<1x1x48xf32> to vector<4x8x48xf32>
    %19 = arith.addf %14, %18 : vector<4x8x48xf32>
    %c2 = arith.constant 2 : index
    %c0_14 = arith.constant 0 : index
    %c0_15 = arith.constant 0 : index
    %20 = vector.load %arg1[%c2, %c0_14, %c0_15] : memref<4x6x48xf32, #tpu.memory_space<vmem>>, vector<1x6x48xf32>
    %21 = vector.shape_cast %20 : vector<1x6x48xf32> to vector<6x48xf32>
    %cst_16 = arith.constant dense<0.000000e+00> : vector<32x48xf32>
    %22 = tpu.matmul %1, %21, %cst_16 {dimension_numbers = #tpu.dot_dimension_numbers<[1], [0], [0], [1], [0, 0, 1, 1], [], []>} : vector<32x6xf32>, vector<6x48xf32>, vector<32x48xf32> -> vector<32x48xf32>
    %23 = vector.shape_cast %22 : vector<32x48xf32> to vector<4x8x48xf32>
    %c2_17 = arith.constant 2 : index
    %c0_18 = arith.constant 0 : index
    %c0_19 = arith.constant 0 : index
    %24 = vector.load %arg3[%c2_17, %c0_18, %c0_19] : memref<4x1x48xf32, #tpu.memory_space<vmem>>, vector<1x1x48xf32>
    %25 = vector.shape_cast %24 : vector<1x1x48xf32> to vector<1x48xf32>
    %26 = vector.shape_cast %25 : vector<1x48xf32> to vector<1x1x48xf32>
    %27 = vector.broadcast %26 : vector<1x1x48xf32> to vector<4x8x48xf32>
    %28 = arith.addf %23, %27 : vector<4x8x48xf32>
    %c3 = arith.constant 3 : index
    %c0_20 = arith.constant 0 : index
    %c0_21 = arith.constant 0 : index
    %29 = vector.load %arg1[%c3, %c0_20, %c0_21] : memref<4x6x48xf32, #tpu.memory_space<vmem>>, vector<1x6x48xf32>
    %30 = vector.shape_cast %29 : vector<1x6x48xf32> to vector<6x48xf32>
    %cst_22 = arith.constant dense<0.000000e+00> : vector<32x48xf32>
    %31 = tpu.matmul %1, %30, %cst_22 {dimension_numbers = #tpu.dot_dimension_numbers<[1], [0], [0], [1], [0, 0, 1, 1], [], []>} : vector<32x6xf32>, vector<6x48xf32>, vector<32x48xf32> -> vector<32x48xf32>
    %32 = vector.shape_cast %31 : vector<32x48xf32> to vector<4x8x48xf32>
    %c3_23 = arith.constant 3 : index
    %c0_24 = arith.constant 0 : index
    %c0_25 = arith.constant 0 : index
    %33 = vector.load %arg3[%c3_23, %c0_24, %c0_25] : memref<4x1x48xf32, #tpu.memory_space<vmem>>, vector<1x1x48xf32>
    %34 = vector.shape_cast %33 : vector<1x1x48xf32> to vector<1x48xf32>
    %35 = vector.shape_cast %34 : vector<1x48xf32> to vector<1x1x48xf32>
    %36 = vector.broadcast %35 : vector<1x1x48xf32> to vector<4x8x48xf32>
    %37 = arith.addf %32, %36 : vector<4x8x48xf32>
    %c0_26 = arith.constant 0 : index
    %c0_27 = arith.constant 0 : index
    %c0_28 = arith.constant 0 : index
    %38 = vector.load %arg2[%c0_26, %c0_27, %c0_28] : memref<4x48x48xf32, #tpu.memory_space<vmem>>, vector<1x48x48xf32>
    %39 = vector.shape_cast %38 : vector<1x48x48xf32> to vector<48x48xf32>
    %c1_29 = arith.constant 1 : index
    %c0_30 = arith.constant 0 : index
    %c0_31 = arith.constant 0 : index
    %40 = vector.load %arg2[%c1_29, %c0_30, %c0_31] : memref<4x48x48xf32, #tpu.memory_space<vmem>>, vector<1x48x48xf32>
    %41 = vector.shape_cast %40 : vector<1x48x48xf32> to vector<48x48xf32>
    %c2_32 = arith.constant 2 : index
    %c0_33 = arith.constant 0 : index
    %c0_34 = arith.constant 0 : index
    %42 = vector.load %arg2[%c2_32, %c0_33, %c0_34] : memref<4x48x48xf32, #tpu.memory_space<vmem>>, vector<1x48x48xf32>
    %43 = vector.shape_cast %42 : vector<1x48x48xf32> to vector<48x48xf32>
    %c3_35 = arith.constant 3 : index
    %c0_36 = arith.constant 0 : index
    %c0_37 = arith.constant 0 : index
    %44 = vector.load %arg2[%c3_35, %c0_36, %c0_37] : memref<4x48x48xf32, #tpu.memory_space<vmem>>, vector<1x48x48xf32>
    %45 = vector.shape_cast %44 : vector<1x48x48xf32> to vector<48x48xf32>
    %cst_38 = arith.constant 0.000000e+00 : f32
    %46 = vector.broadcast %cst_38 : f32 to vector<4x48xf32>
    %cst_39 = arith.constant 0.000000e+00 : f32
    %47 = vector.broadcast %cst_39 : f32 to vector<4x48xf32>
    %48 = vector.extract_strided_slice %10 {offsets = [0, 0, 0], sizes = [4, 1, 48], strides = [1, 1, 1]} : vector<4x8x48xf32> to vector<4x1x48xf32>
    %49 = vector.shape_cast %48 : vector<4x1x48xf32> to vector<4x48xf32>
    %cst_40 = arith.constant dense<0.000000e+00> : vector<4x48xf32>
    %50 = tpu.matmul %46, %39, %cst_40 {dimension_numbers = #tpu.dot_dimension_numbers<[1], [0], [0], [1], [0, 0, 1, 1], [], []>} : vector<4x48xf32>, vector<48x48xf32>, vector<4x48xf32> -> vector<4x48xf32>
    %51 = arith.addf %49, %50 : vector<4x48xf32>
    %52 = vector.extract_strided_slice %19 {offsets = [0, 0, 0], sizes = [4, 1, 48], strides = [1, 1, 1]} : vector<4x8x48xf32> to vector<4x1x48xf32>
    %53 = vector.shape_cast %52 : vector<4x1x48xf32> to vector<4x48xf32>
    %cst_41 = arith.constant dense<0.000000e+00> : vector<4x48xf32>
    %54 = tpu.matmul %46, %41, %cst_41 {dimension_numbers = #tpu.dot_dimension_numbers<[1], [0], [0], [1], [0, 0, 1, 1], [], []>} : vector<4x48xf32>, vector<48x48xf32>, vector<4x48xf32> -> vector<4x48xf32>
    %55 = arith.addf %53, %54 : vector<4x48xf32>
    %56 = vector.extract_strided_slice %28 {offsets = [0, 0, 0], sizes = [4, 1, 48], strides = [1, 1, 1]} : vector<4x8x48xf32> to vector<4x1x48xf32>
    %57 = vector.shape_cast %56 : vector<4x1x48xf32> to vector<4x48xf32>
    %cst_42 = arith.constant dense<0.000000e+00> : vector<4x48xf32>
    %58 = tpu.matmul %46, %43, %cst_42 {dimension_numbers = #tpu.dot_dimension_numbers<[1], [0], [0], [1], [0, 0, 1, 1], [], []>} : vector<4x48xf32>, vector<48x48xf32>, vector<4x48xf32> -> vector<4x48xf32>
    %59 = arith.addf %57, %58 : vector<4x48xf32>
    %60 = vector.extract_strided_slice %37 {offsets = [0, 0, 0], sizes = [4, 1, 48], strides = [1, 1, 1]} : vector<4x8x48xf32> to vector<4x1x48xf32>
    %61 = vector.shape_cast %60 : vector<4x1x48xf32> to vector<4x48xf32>
    %cst_43 = arith.constant dense<0.000000e+00> : vector<4x48xf32>
    %62 = tpu.matmul %46, %45, %cst_43 {dimension_numbers = #tpu.dot_dimension_numbers<[1], [0], [0], [1], [0, 0, 1, 1], [], []>} : vector<4x48xf32>, vector<48x48xf32>, vector<4x48xf32> -> vector<4x48xf32>
    %63 = arith.addf %61, %62 : vector<4x48xf32>
    %cst_44 = arith.constant 0.000000e+00 : f32
    %64 = vector.broadcast %cst_44 : f32 to vector<4x48xf32>
    %65 = arith.subf %64, %55 : vector<4x48xf32>
    %66 = math.exp %65 : vector<4x48xf32>
    %cst_45 = arith.constant 1.000000e+00 : f32
    %67 = vector.broadcast %cst_45 : f32 to vector<4x48xf32>
    %68 = arith.addf %67, %66 : vector<4x48xf32>
    %69 = tpu.reciprocal %68 {approx = true} : vector<4x48xf32> -> vector<4x48xf32>
    %70 = arith.mulf %69, %47 : vector<4x48xf32>
    %cst_46 = arith.constant 0.000000e+00 : f32
    %71 = vector.broadcast %cst_46 : f32 to vector<4x48xf32>
    %72 = arith.subf %71, %51 : vector<4x48xf32>
    %73 = math.exp %72 : vector<4x48xf32>
    %cst_47 = arith.constant 1.000000e+00 : f32
    %74 = vector.broadcast %cst_47 : f32 to vector<4x48xf32>
    %75 = arith.addf %74, %73 : vector<4x48xf32>
    %76 = tpu.reciprocal %75 {approx = true} : vector<4x48xf32> -> vector<4x48xf32>
    %77 = math.tanh %59 : vector<4x48xf32>
    %78 = arith.mulf %76, %77 : vector<4x48xf32>
    %79 = arith.addf %70, %78 : vector<4x48xf32>
    %cst_48 = arith.constant 0.000000e+00 : f32
    %80 = vector.broadcast %cst_48 : f32 to vector<4x48xf32>
    %81 = arith.subf %80, %63 : vector<4x48xf32>
    %82 = math.exp %81 : vector<4x48xf32>
    %cst_49 = arith.constant 1.000000e+00 : f32
    %83 = vector.broadcast %cst_49 : f32 to vector<4x48xf32>
    %84 = arith.addf %83, %82 : vector<4x48xf32>
    %85 = tpu.reciprocal %84 {approx = true} : vector<4x48xf32> -> vector<4x48xf32>
    %86 = math.tanh %79 : vector<4x48xf32>
    %87 = arith.mulf %85, %86 : vector<4x48xf32>
    %88 = vector.extract_strided_slice %10 {offsets = [0, 1, 0], sizes = [4, 1, 48], strides = [1, 1, 1]} : vector<4x8x48xf32> to vector<4x1x48xf32>
    %89 = vector.shape_cast %88 : vector<4x1x48xf32> to vector<4x48xf32>
    %cst_50 = arith.constant dense<0.000000e+00> : vector<4x48xf32>
    %90 = tpu.matmul %87, %39, %cst_50 {dimension_numbers = #tpu.dot_dimension_numbers<[1], [0], [0], [1], [0, 0, 1, 1], [], []>} : vector<4x48xf32>, vector<48x48xf32>, vector<4x48xf32> -> vector<4x48xf32>
    %91 = arith.addf %89, %90 : vector<4x48xf32>
    %92 = vector.extract_strided_slice %19 {offsets = [0, 1, 0], sizes = [4, 1, 48], strides = [1, 1, 1]} : vector<4x8x48xf32> to vector<4x1x48xf32>
    %93 = vector.shape_cast %92 : vector<4x1x48xf32> to vector<4x48xf32>
    %cst_51 = arith.constant dense<0.000000e+00> : vector<4x48xf32>
    %94 = tpu.matmul %87, %41, %cst_51 {dimension_numbers = #tpu.dot_dimension_numbers<[1], [0], [0], [1], [0, 0, 1, 1], [], []>} : vector<4x48xf32>, vector<48x48xf32>, vector<4x48xf32> -> vector<4x48xf32>
    %95 = arith.addf %93, %94 : vector<4x48xf32>
    %96 = vector.extract_strided_slice %28 {offsets = [0, 1, 0], sizes = [4, 1, 48], strides = [1, 1, 1]} : vector<4x8x48xf32> to vector<4x1x48xf32>
    %97 = vector.shape_cast %96 : vector<4x1x48xf32> to vector<4x48xf32>
    %cst_52 = arith.constant dense<0.000000e+00> : vector<4x48xf32>
    %98 = tpu.matmul %87, %43, %cst_52 {dimension_numbers = #tpu.dot_dimension_numbers<[1], [0], [0], [1], [0, 0, 1, 1], [], []>} : vector<4x48xf32>, vector<48x48xf32>, vector<4x48xf32> -> vector<4x48xf32>
    %99 = arith.addf %97, %98 : vector<4x48xf32>
    %100 = vector.extract_strided_slice %37 {offsets = [0, 1, 0], sizes = [4, 1, 48], strides = [1, 1, 1]} : vector<4x8x48xf32> to vector<4x1x48xf32>
    %101 = vector.shape_cast %100 : vector<4x1x48xf32> to vector<4x48xf32>
    %cst_53 = arith.constant dense<0.000000e+00> : vector<4x48xf32>
    %102 = tpu.matmul %87, %45, %cst_53 {dimension_numbers = #tpu.dot_dimension_numbers<[1], [0], [0], [1], [0, 0, 1, 1], [], []>} : vector<4x48xf32>, vector<48x48xf32>, vector<4x48xf32> -> vector<4x48xf32>
    %103 = arith.addf %101, %102 : vector<4x48xf32>
    %cst_54 = arith.constant 0.000000e+00 : f32
    %104 = vector.broadcast %cst_54 : f32 to vector<4x48xf32>
    %105 = arith.subf %104, %95 : vector<4x48xf32>
    %106 = math.exp %105 : vector<4x48xf32>
    %cst_55 = arith.constant 1.000000e+00 : f32
    %107 = vector.broadcast %cst_55 : f32 to vector<4x48xf32>
    %108 = arith.addf %107, %106 : vector<4x48xf32>
    %109 = tpu.reciprocal %108 {approx = true} : vector<4x48xf32> -> vector<4x48xf32>
    %110 = arith.mulf %109, %79 : vector<4x48xf32>
    %cst_56 = arith.constant 0.000000e+00 : f32
    %111 = vector.broadcast %cst_56 : f32 to vector<4x48xf32>
    %112 = arith.subf %111, %91 : vector<4x48xf32>
    %113 = math.exp %112 : vector<4x48xf32>
    %cst_57 = arith.constant 1.000000e+00 : f32
    %114 = vector.broadcast %cst_57 : f32 to vector<4x48xf32>
    %115 = arith.addf %114, %113 : vector<4x48xf32>
    %116 = tpu.reciprocal %115 {approx = true} : vector<4x48xf32> -> vector<4x48xf32>
    %117 = math.tanh %99 : vector<4x48xf32>
    %118 = arith.mulf %116, %117 : vector<4x48xf32>
    %119 = arith.addf %110, %118 : vector<4x48xf32>
    %cst_58 = arith.constant 0.000000e+00 : f32
    %120 = vector.broadcast %cst_58 : f32 to vector<4x48xf32>
    %121 = arith.subf %120, %103 : vector<4x48xf32>
    %122 = math.exp %121 : vector<4x48xf32>
    %cst_59 = arith.constant 1.000000e+00 : f32
    %123 = vector.broadcast %cst_59 : f32 to vector<4x48xf32>
    %124 = arith.addf %123, %122 : vector<4x48xf32>
    %125 = tpu.reciprocal %124 {approx = true} : vector<4x48xf32> -> vector<4x48xf32>
    %126 = math.tanh %119 : vector<4x48xf32>
    %127 = arith.mulf %125, %126 : vector<4x48xf32>
    %128 = vector.extract_strided_slice %10 {offsets = [0, 2, 0], sizes = [4, 1, 48], strides = [1, 1, 1]} : vector<4x8x48xf32> to vector<4x1x48xf32>
    %129 = vector.shape_cast %128 : vector<4x1x48xf32> to vector<4x48xf32>
    %cst_60 = arith.constant dense<0.000000e+00> : vector<4x48xf32>
    %130 = tpu.matmul %127, %39, %cst_60 {dimension_numbers = #tpu.dot_dimension_numbers<[1], [0], [0], [1], [0, 0, 1, 1], [], []>} : vector<4x48xf32>, vector<48x48xf32>, vector<4x48xf32> -> vector<4x48xf32>
    %131 = arith.addf %129, %130 : vector<4x48xf32>
    %132 = vector.extract_strided_slice %19 {offsets = [0, 2, 0], sizes = [4, 1, 48], strides = [1, 1, 1]} : vector<4x8x48xf32> to vector<4x1x48xf32>
    %133 = vector.shape_cast %132 : vector<4x1x48xf32> to vector<4x48xf32>
    %cst_61 = arith.constant dense<0.000000e+00> : vector<4x48xf32>
    %134 = tpu.matmul %127, %41, %cst_61 {dimension_numbers = #tpu.dot_dimension_numbers<[1], [0], [0], [1], [0, 0, 1, 1], [], []>} : vector<4x48xf32>, vector<48x48xf32>, vector<4x48xf32> -> vector<4x48xf32>
    %135 = arith.addf %133, %134 : vector<4x48xf32>
    %136 = vector.extract_strided_slice %28 {offsets = [0, 2, 0], sizes = [4, 1, 48], strides = [1, 1, 1]} : vector<4x8x48xf32> to vector<4x1x48xf32>
    %137 = vector.shape_cast %136 : vector<4x1x48xf32> to vector<4x48xf32>
    %cst_62 = arith.constant dense<0.000000e+00> : vector<4x48xf32>
    %138 = tpu.matmul %127, %43, %cst_62 {dimension_numbers = #tpu.dot_dimension_numbers<[1], [0], [0], [1], [0, 0, 1, 1], [], []>} : vector<4x48xf32>, vector<48x48xf32>, vector<4x48xf32> -> vector<4x48xf32>
    %139 = arith.addf %137, %138 : vector<4x48xf32>
    %140 = vector.extract_strided_slice %37 {offsets = [0, 2, 0], sizes = [4, 1, 48], strides = [1, 1, 1]} : vector<4x8x48xf32> to vector<4x1x48xf32>
    %141 = vector.shape_cast %140 : vector<4x1x48xf32> to vector<4x48xf32>
    %cst_63 = arith.constant dense<0.000000e+00> : vector<4x48xf32>
    %142 = tpu.matmul %127, %45, %cst_63 {dimension_numbers = #tpu.dot_dimension_numbers<[1], [0], [0], [1], [0, 0, 1, 1], [], []>} : vector<4x48xf32>, vector<48x48xf32>, vector<4x48xf32> -> vector<4x48xf32>
    %143 = arith.addf %141, %142 : vector<4x48xf32>
    %cst_64 = arith.constant 0.000000e+00 : f32
    %144 = vector.broadcast %cst_64 : f32 to vector<4x48xf32>
    %145 = arith.subf %144, %135 : vector<4x48xf32>
    %146 = math.exp %145 : vector<4x48xf32>
    %cst_65 = arith.constant 1.000000e+00 : f32
    %147 = vector.broadcast %cst_65 : f32 to vector<4x48xf32>
    %148 = arith.addf %147, %146 : vector<4x48xf32>
    %149 = tpu.reciprocal %148 {approx = true} : vector<4x48xf32> -> vector<4x48xf32>
    %150 = arith.mulf %149, %119 : vector<4x48xf32>
    %cst_66 = arith.constant 0.000000e+00 : f32
    %151 = vector.broadcast %cst_66 : f32 to vector<4x48xf32>
    %152 = arith.subf %151, %131 : vector<4x48xf32>
    %153 = math.exp %152 : vector<4x48xf32>
    %cst_67 = arith.constant 1.000000e+00 : f32
    %154 = vector.broadcast %cst_67 : f32 to vector<4x48xf32>
    %155 = arith.addf %154, %153 : vector<4x48xf32>
    %156 = tpu.reciprocal %155 {approx = true} : vector<4x48xf32> -> vector<4x48xf32>
    %157 = math.tanh %139 : vector<4x48xf32>
    %158 = arith.mulf %156, %157 : vector<4x48xf32>
    %159 = arith.addf %150, %158 : vector<4x48xf32>
    %cst_68 = arith.constant 0.000000e+00 : f32
    %160 = vector.broadcast %cst_68 : f32 to vector<4x48xf32>
    %161 = arith.subf %160, %143 : vector<4x48xf32>
    %162 = math.exp %161 : vector<4x48xf32>
    %cst_69 = arith.constant 1.000000e+00 : f32
    %163 = vector.broadcast %cst_69 : f32 to vector<4x48xf32>
    %164 = arith.addf %163, %162 : vector<4x48xf32>
    %165 = tpu.reciprocal %164 {approx = true} : vector<4x48xf32> -> vector<4x48xf32>
    %166 = math.tanh %159 : vector<4x48xf32>
    %167 = arith.mulf %165, %166 : vector<4x48xf32>
    %168 = vector.extract_strided_slice %10 {offsets = [0, 3, 0], sizes = [4, 1, 48], strides = [1, 1, 1]} : vector<4x8x48xf32> to vector<4x1x48xf32>
    %169 = vector.shape_cast %168 : vector<4x1x48xf32> to vector<4x48xf32>
    %cst_70 = arith.constant dense<0.000000e+00> : vector<4x48xf32>
    %170 = tpu.matmul %167, %39, %cst_70 {dimension_numbers = #tpu.dot_dimension_numbers<[1], [0], [0], [1], [0, 0, 1, 1], [], []>} : vector<4x48xf32>, vector<48x48xf32>, vector<4x48xf32> -> vector<4x48xf32>
    %171 = arith.addf %169, %170 : vector<4x48xf32>
    %172 = vector.extract_strided_slice %19 {offsets = [0, 3, 0], sizes = [4, 1, 48], strides = [1, 1, 1]} : vector<4x8x48xf32> to vector<4x1x48xf32>
    %173 = vector.shape_cast %172 : vector<4x1x48xf32> to vector<4x48xf32>
    %cst_71 = arith.constant dense<0.000000e+00> : vector<4x48xf32>
    %174 = tpu.matmul %167, %41, %cst_71 {dimension_numbers = #tpu.dot_dimension_numbers<[1], [0], [0], [1], [0, 0, 1, 1], [], []>} : vector<4x48xf32>, vector<48x48xf32>, vector<4x48xf32> -> vector<4x48xf32>
    %175 = arith.addf %173, %174 : vector<4x48xf32>
    %176 = vector.extract_strided_slice %28 {offsets = [0, 3, 0], sizes = [4, 1, 48], strides = [1, 1, 1]} : vector<4x8x48xf32> to vector<4x1x48xf32>
    %177 = vector.shape_cast %176 : vector<4x1x48xf32> to vector<4x48xf32>
    %cst_72 = arith.constant dense<0.000000e+00> : vector<4x48xf32>
    %178 = tpu.matmul %167, %43, %cst_72 {dimension_numbers = #tpu.dot_dimension_numbers<[1], [0], [0], [1], [0, 0, 1, 1], [], []>} : vector<4x48xf32>, vector<48x48xf32>, vector<4x48xf32> -> vector<4x48xf32>
    %179 = arith.addf %177, %178 : vector<4x48xf32>
    %180 = vector.extract_strided_slice %37 {offsets = [0, 3, 0], sizes = [4, 1, 48], strides = [1, 1, 1]} : vector<4x8x48xf32> to vector<4x1x48xf32>
    %181 = vector.shape_cast %180 : vector<4x1x48xf32> to vector<4x48xf32>
    %cst_73 = arith.constant dense<0.000000e+00> : vector<4x48xf32>
    %182 = tpu.matmul %167, %45, %cst_73 {dimension_numbers = #tpu.dot_dimension_numbers<[1], [0], [0], [1], [0, 0, 1, 1], [], []>} : vector<4x48xf32>, vector<48x48xf32>, vector<4x48xf32> -> vector<4x48xf32>
    %183 = arith.addf %181, %182 : vector<4x48xf32>
    %cst_74 = arith.constant 0.000000e+00 : f32
    %184 = vector.broadcast %cst_74 : f32 to vector<4x48xf32>
    %185 = arith.subf %184, %175 : vector<4x48xf32>
    %186 = math.exp %185 : vector<4x48xf32>
    %cst_75 = arith.constant 1.000000e+00 : f32
    %187 = vector.broadcast %cst_75 : f32 to vector<4x48xf32>
    %188 = arith.addf %187, %186 : vector<4x48xf32>
    %189 = tpu.reciprocal %188 {approx = true} : vector<4x48xf32> -> vector<4x48xf32>
    %190 = arith.mulf %189, %159 : vector<4x48xf32>
    %cst_76 = arith.constant 0.000000e+00 : f32
    %191 = vector.broadcast %cst_76 : f32 to vector<4x48xf32>
    %192 = arith.subf %191, %171 : vector<4x48xf32>
    %193 = math.exp %192 : vector<4x48xf32>
    %cst_77 = arith.constant 1.000000e+00 : f32
    %194 = vector.broadcast %cst_77 : f32 to vector<4x48xf32>
    %195 = arith.addf %194, %193 : vector<4x48xf32>
    %196 = tpu.reciprocal %195 {approx = true} : vector<4x48xf32> -> vector<4x48xf32>
    %197 = math.tanh %179 : vector<4x48xf32>
    %198 = arith.mulf %196, %197 : vector<4x48xf32>
    %199 = arith.addf %190, %198 : vector<4x48xf32>
    %cst_78 = arith.constant 0.000000e+00 : f32
    %200 = vector.broadcast %cst_78 : f32 to vector<4x48xf32>
    %201 = arith.subf %200, %183 : vector<4x48xf32>
    %202 = math.exp %201 : vector<4x48xf32>
    %cst_79 = arith.constant 1.000000e+00 : f32
    %203 = vector.broadcast %cst_79 : f32 to vector<4x48xf32>
    %204 = arith.addf %203, %202 : vector<4x48xf32>
    %205 = tpu.reciprocal %204 {approx = true} : vector<4x48xf32> -> vector<4x48xf32>
    %206 = math.tanh %199 : vector<4x48xf32>
    %207 = arith.mulf %205, %206 : vector<4x48xf32>
    %208 = vector.extract_strided_slice %10 {offsets = [0, 4, 0], sizes = [4, 1, 48], strides = [1, 1, 1]} : vector<4x8x48xf32> to vector<4x1x48xf32>
    %209 = vector.shape_cast %208 : vector<4x1x48xf32> to vector<4x48xf32>
    %cst_80 = arith.constant dense<0.000000e+00> : vector<4x48xf32>
    %210 = tpu.matmul %207, %39, %cst_80 {dimension_numbers = #tpu.dot_dimension_numbers<[1], [0], [0], [1], [0, 0, 1, 1], [], []>} : vector<4x48xf32>, vector<48x48xf32>, vector<4x48xf32> -> vector<4x48xf32>
    %211 = arith.addf %209, %210 : vector<4x48xf32>
    %212 = vector.extract_strided_slice %19 {offsets = [0, 4, 0], sizes = [4, 1, 48], strides = [1, 1, 1]} : vector<4x8x48xf32> to vector<4x1x48xf32>
    %213 = vector.shape_cast %212 : vector<4x1x48xf32> to vector<4x48xf32>
    %cst_81 = arith.constant dense<0.000000e+00> : vector<4x48xf32>
    %214 = tpu.matmul %207, %41, %cst_81 {dimension_numbers = #tpu.dot_dimension_numbers<[1], [0], [0], [1], [0, 0, 1, 1], [], []>} : vector<4x48xf32>, vector<48x48xf32>, vector<4x48xf32> -> vector<4x48xf32>
    %215 = arith.addf %213, %214 : vector<4x48xf32>
    %216 = vector.extract_strided_slice %28 {offsets = [0, 4, 0], sizes = [4, 1, 48], strides = [1, 1, 1]} : vector<4x8x48xf32> to vector<4x1x48xf32>
    %217 = vector.shape_cast %216 : vector<4x1x48xf32> to vector<4x48xf32>
    %cst_82 = arith.constant dense<0.000000e+00> : vector<4x48xf32>
    %218 = tpu.matmul %207, %43, %cst_82 {dimension_numbers = #tpu.dot_dimension_numbers<[1], [0], [0], [1], [0, 0, 1, 1], [], []>} : vector<4x48xf32>, vector<48x48xf32>, vector<4x48xf32> -> vector<4x48xf32>
    %219 = arith.addf %217, %218 : vector<4x48xf32>
    %220 = vector.extract_strided_slice %37 {offsets = [0, 4, 0], sizes = [4, 1, 48], strides = [1, 1, 1]} : vector<4x8x48xf32> to vector<4x1x48xf32>
    %221 = vector.shape_cast %220 : vector<4x1x48xf32> to vector<4x48xf32>
    %cst_83 = arith.constant dense<0.000000e+00> : vector<4x48xf32>
    %222 = tpu.matmul %207, %45, %cst_83 {dimension_numbers = #tpu.dot_dimension_numbers<[1], [0], [0], [1], [0, 0, 1, 1], [], []>} : vector<4x48xf32>, vector<48x48xf32>, vector<4x48xf32> -> vector<4x48xf32>
    %223 = arith.addf %221, %222 : vector<4x48xf32>
    %cst_84 = arith.constant 0.000000e+00 : f32
    %224 = vector.broadcast %cst_84 : f32 to vector<4x48xf32>
    %225 = arith.subf %224, %215 : vector<4x48xf32>
    %226 = math.exp %225 : vector<4x48xf32>
    %cst_85 = arith.constant 1.000000e+00 : f32
    %227 = vector.broadcast %cst_85 : f32 to vector<4x48xf32>
    %228 = arith.addf %227, %226 : vector<4x48xf32>
    %229 = tpu.reciprocal %228 {approx = true} : vector<4x48xf32> -> vector<4x48xf32>
    %230 = arith.mulf %229, %199 : vector<4x48xf32>
    %cst_86 = arith.constant 0.000000e+00 : f32
    %231 = vector.broadcast %cst_86 : f32 to vector<4x48xf32>
    %232 = arith.subf %231, %211 : vector<4x48xf32>
    %233 = math.exp %232 : vector<4x48xf32>
    %cst_87 = arith.constant 1.000000e+00 : f32
    %234 = vector.broadcast %cst_87 : f32 to vector<4x48xf32>
    %235 = arith.addf %234, %233 : vector<4x48xf32>
    %236 = tpu.reciprocal %235 {approx = true} : vector<4x48xf32> -> vector<4x48xf32>
    %237 = math.tanh %219 : vector<4x48xf32>
    %238 = arith.mulf %236, %237 : vector<4x48xf32>
    %239 = arith.addf %230, %238 : vector<4x48xf32>
    %cst_88 = arith.constant 0.000000e+00 : f32
    %240 = vector.broadcast %cst_88 : f32 to vector<4x48xf32>
    %241 = arith.subf %240, %223 : vector<4x48xf32>
    %242 = math.exp %241 : vector<4x48xf32>
    %cst_89 = arith.constant 1.000000e+00 : f32
    %243 = vector.broadcast %cst_89 : f32 to vector<4x48xf32>
    %244 = arith.addf %243, %242 : vector<4x48xf32>
    %245 = tpu.reciprocal %244 {approx = true} : vector<4x48xf32> -> vector<4x48xf32>
    %246 = math.tanh %239 : vector<4x48xf32>
    %247 = arith.mulf %245, %246 : vector<4x48xf32>
    %248 = vector.extract_strided_slice %10 {offsets = [0, 5, 0], sizes = [4, 1, 48], strides = [1, 1, 1]} : vector<4x8x48xf32> to vector<4x1x48xf32>
    %249 = vector.shape_cast %248 : vector<4x1x48xf32> to vector<4x48xf32>
    %cst_90 = arith.constant dense<0.000000e+00> : vector<4x48xf32>
    %250 = tpu.matmul %247, %39, %cst_90 {dimension_numbers = #tpu.dot_dimension_numbers<[1], [0], [0], [1], [0, 0, 1, 1], [], []>} : vector<4x48xf32>, vector<48x48xf32>, vector<4x48xf32> -> vector<4x48xf32>
    %251 = arith.addf %249, %250 : vector<4x48xf32>
    %252 = vector.extract_strided_slice %19 {offsets = [0, 5, 0], sizes = [4, 1, 48], strides = [1, 1, 1]} : vector<4x8x48xf32> to vector<4x1x48xf32>
    %253 = vector.shape_cast %252 : vector<4x1x48xf32> to vector<4x48xf32>
    %cst_91 = arith.constant dense<0.000000e+00> : vector<4x48xf32>
    %254 = tpu.matmul %247, %41, %cst_91 {dimension_numbers = #tpu.dot_dimension_numbers<[1], [0], [0], [1], [0, 0, 1, 1], [], []>} : vector<4x48xf32>, vector<48x48xf32>, vector<4x48xf32> -> vector<4x48xf32>
    %255 = arith.addf %253, %254 : vector<4x48xf32>
    %256 = vector.extract_strided_slice %28 {offsets = [0, 5, 0], sizes = [4, 1, 48], strides = [1, 1, 1]} : vector<4x8x48xf32> to vector<4x1x48xf32>
    %257 = vector.shape_cast %256 : vector<4x1x48xf32> to vector<4x48xf32>
    %cst_92 = arith.constant dense<0.000000e+00> : vector<4x48xf32>
    %258 = tpu.matmul %247, %43, %cst_92 {dimension_numbers = #tpu.dot_dimension_numbers<[1], [0], [0], [1], [0, 0, 1, 1], [], []>} : vector<4x48xf32>, vector<48x48xf32>, vector<4x48xf32> -> vector<4x48xf32>
    %259 = arith.addf %257, %258 : vector<4x48xf32>
    %260 = vector.extract_strided_slice %37 {offsets = [0, 5, 0], sizes = [4, 1, 48], strides = [1, 1, 1]} : vector<4x8x48xf32> to vector<4x1x48xf32>
    %261 = vector.shape_cast %260 : vector<4x1x48xf32> to vector<4x48xf32>
    %cst_93 = arith.constant dense<0.000000e+00> : vector<4x48xf32>
    %262 = tpu.matmul %247, %45, %cst_93 {dimension_numbers = #tpu.dot_dimension_numbers<[1], [0], [0], [1], [0, 0, 1, 1], [], []>} : vector<4x48xf32>, vector<48x48xf32>, vector<4x48xf32> -> vector<4x48xf32>
    %263 = arith.addf %261, %262 : vector<4x48xf32>
    %cst_94 = arith.constant 0.000000e+00 : f32
    %264 = vector.broadcast %cst_94 : f32 to vector<4x48xf32>
    %265 = arith.subf %264, %255 : vector<4x48xf32>
    %266 = math.exp %265 : vector<4x48xf32>
    %cst_95 = arith.constant 1.000000e+00 : f32
    %267 = vector.broadcast %cst_95 : f32 to vector<4x48xf32>
    %268 = arith.addf %267, %266 : vector<4x48xf32>
    %269 = tpu.reciprocal %268 {approx = true} : vector<4x48xf32> -> vector<4x48xf32>
    %270 = arith.mulf %269, %239 : vector<4x48xf32>
    %cst_96 = arith.constant 0.000000e+00 : f32
    %271 = vector.broadcast %cst_96 : f32 to vector<4x48xf32>
    %272 = arith.subf %271, %251 : vector<4x48xf32>
    %273 = math.exp %272 : vector<4x48xf32>
    %cst_97 = arith.constant 1.000000e+00 : f32
    %274 = vector.broadcast %cst_97 : f32 to vector<4x48xf32>
    %275 = arith.addf %274, %273 : vector<4x48xf32>
    %276 = tpu.reciprocal %275 {approx = true} : vector<4x48xf32> -> vector<4x48xf32>
    %277 = math.tanh %259 : vector<4x48xf32>
    %278 = arith.mulf %276, %277 : vector<4x48xf32>
    %279 = arith.addf %270, %278 : vector<4x48xf32>
    %cst_98 = arith.constant 0.000000e+00 : f32
    %280 = vector.broadcast %cst_98 : f32 to vector<4x48xf32>
    %281 = arith.subf %280, %263 : vector<4x48xf32>
    %282 = math.exp %281 : vector<4x48xf32>
    %cst_99 = arith.constant 1.000000e+00 : f32
    %283 = vector.broadcast %cst_99 : f32 to vector<4x48xf32>
    %284 = arith.addf %283, %282 : vector<4x48xf32>
    %285 = tpu.reciprocal %284 {approx = true} : vector<4x48xf32> -> vector<4x48xf32>
    %286 = math.tanh %279 : vector<4x48xf32>
    %287 = arith.mulf %285, %286 : vector<4x48xf32>
    %288 = vector.extract_strided_slice %10 {offsets = [0, 6, 0], sizes = [4, 1, 48], strides = [1, 1, 1]} : vector<4x8x48xf32> to vector<4x1x48xf32>
    %289 = vector.shape_cast %288 : vector<4x1x48xf32> to vector<4x48xf32>
    %cst_100 = arith.constant dense<0.000000e+00> : vector<4x48xf32>
    %290 = tpu.matmul %287, %39, %cst_100 {dimension_numbers = #tpu.dot_dimension_numbers<[1], [0], [0], [1], [0, 0, 1, 1], [], []>} : vector<4x48xf32>, vector<48x48xf32>, vector<4x48xf32> -> vector<4x48xf32>
    %291 = arith.addf %289, %290 : vector<4x48xf32>
    %292 = vector.extract_strided_slice %19 {offsets = [0, 6, 0], sizes = [4, 1, 48], strides = [1, 1, 1]} : vector<4x8x48xf32> to vector<4x1x48xf32>
    %293 = vector.shape_cast %292 : vector<4x1x48xf32> to vector<4x48xf32>
    %cst_101 = arith.constant dense<0.000000e+00> : vector<4x48xf32>
    %294 = tpu.matmul %287, %41, %cst_101 {dimension_numbers = #tpu.dot_dimension_numbers<[1], [0], [0], [1], [0, 0, 1, 1], [], []>} : vector<4x48xf32>, vector<48x48xf32>, vector<4x48xf32> -> vector<4x48xf32>
    %295 = arith.addf %293, %294 : vector<4x48xf32>
    %296 = vector.extract_strided_slice %28 {offsets = [0, 6, 0], sizes = [4, 1, 48], strides = [1, 1, 1]} : vector<4x8x48xf32> to vector<4x1x48xf32>
    %297 = vector.shape_cast %296 : vector<4x1x48xf32> to vector<4x48xf32>
    %cst_102 = arith.constant dense<0.000000e+00> : vector<4x48xf32>
    %298 = tpu.matmul %287, %43, %cst_102 {dimension_numbers = #tpu.dot_dimension_numbers<[1], [0], [0], [1], [0, 0, 1, 1], [], []>} : vector<4x48xf32>, vector<48x48xf32>, vector<4x48xf32> -> vector<4x48xf32>
    %299 = arith.addf %297, %298 : vector<4x48xf32>
    %300 = vector.extract_strided_slice %37 {offsets = [0, 6, 0], sizes = [4, 1, 48], strides = [1, 1, 1]} : vector<4x8x48xf32> to vector<4x1x48xf32>
    %301 = vector.shape_cast %300 : vector<4x1x48xf32> to vector<4x48xf32>
    %cst_103 = arith.constant dense<0.000000e+00> : vector<4x48xf32>
    %302 = tpu.matmul %287, %45, %cst_103 {dimension_numbers = #tpu.dot_dimension_numbers<[1], [0], [0], [1], [0, 0, 1, 1], [], []>} : vector<4x48xf32>, vector<48x48xf32>, vector<4x48xf32> -> vector<4x48xf32>
    %303 = arith.addf %301, %302 : vector<4x48xf32>
    %cst_104 = arith.constant 0.000000e+00 : f32
    %304 = vector.broadcast %cst_104 : f32 to vector<4x48xf32>
    %305 = arith.subf %304, %295 : vector<4x48xf32>
    %306 = math.exp %305 : vector<4x48xf32>
    %cst_105 = arith.constant 1.000000e+00 : f32
    %307 = vector.broadcast %cst_105 : f32 to vector<4x48xf32>
    %308 = arith.addf %307, %306 : vector<4x48xf32>
    %309 = tpu.reciprocal %308 {approx = true} : vector<4x48xf32> -> vector<4x48xf32>
    %310 = arith.mulf %309, %279 : vector<4x48xf32>
    %cst_106 = arith.constant 0.000000e+00 : f32
    %311 = vector.broadcast %cst_106 : f32 to vector<4x48xf32>
    %312 = arith.subf %311, %291 : vector<4x48xf32>
    %313 = math.exp %312 : vector<4x48xf32>
    %cst_107 = arith.constant 1.000000e+00 : f32
    %314 = vector.broadcast %cst_107 : f32 to vector<4x48xf32>
    %315 = arith.addf %314, %313 : vector<4x48xf32>
    %316 = tpu.reciprocal %315 {approx = true} : vector<4x48xf32> -> vector<4x48xf32>
    %317 = math.tanh %299 : vector<4x48xf32>
    %318 = arith.mulf %316, %317 : vector<4x48xf32>
    %319 = arith.addf %310, %318 : vector<4x48xf32>
    %cst_108 = arith.constant 0.000000e+00 : f32
    %320 = vector.broadcast %cst_108 : f32 to vector<4x48xf32>
    %321 = arith.subf %320, %303 : vector<4x48xf32>
    %322 = math.exp %321 : vector<4x48xf32>
    %cst_109 = arith.constant 1.000000e+00 : f32
    %323 = vector.broadcast %cst_109 : f32 to vector<4x48xf32>
    %324 = arith.addf %323, %322 : vector<4x48xf32>
    %325 = tpu.reciprocal %324 {approx = true} : vector<4x48xf32> -> vector<4x48xf32>
    %326 = math.tanh %319 : vector<4x48xf32>
    %327 = arith.mulf %325, %326 : vector<4x48xf32>
    %328 = vector.extract_strided_slice %10 {offsets = [0, 7, 0], sizes = [4, 1, 48], strides = [1, 1, 1]} : vector<4x8x48xf32> to vector<4x1x48xf32>
    %329 = vector.shape_cast %328 : vector<4x1x48xf32> to vector<4x48xf32>
    %cst_110 = arith.constant dense<0.000000e+00> : vector<4x48xf32>
    %330 = tpu.matmul %327, %39, %cst_110 {dimension_numbers = #tpu.dot_dimension_numbers<[1], [0], [0], [1], [0, 0, 1, 1], [], []>} : vector<4x48xf32>, vector<48x48xf32>, vector<4x48xf32> -> vector<4x48xf32>
    %331 = arith.addf %329, %330 : vector<4x48xf32>
    %332 = vector.extract_strided_slice %19 {offsets = [0, 7, 0], sizes = [4, 1, 48], strides = [1, 1, 1]} : vector<4x8x48xf32> to vector<4x1x48xf32>
    %333 = vector.shape_cast %332 : vector<4x1x48xf32> to vector<4x48xf32>
    %cst_111 = arith.constant dense<0.000000e+00> : vector<4x48xf32>
    %334 = tpu.matmul %327, %41, %cst_111 {dimension_numbers = #tpu.dot_dimension_numbers<[1], [0], [0], [1], [0, 0, 1, 1], [], []>} : vector<4x48xf32>, vector<48x48xf32>, vector<4x48xf32> -> vector<4x48xf32>
    %335 = arith.addf %333, %334 : vector<4x48xf32>
    %336 = vector.extract_strided_slice %28 {offsets = [0, 7, 0], sizes = [4, 1, 48], strides = [1, 1, 1]} : vector<4x8x48xf32> to vector<4x1x48xf32>
    %337 = vector.shape_cast %336 : vector<4x1x48xf32> to vector<4x48xf32>
    %cst_112 = arith.constant dense<0.000000e+00> : vector<4x48xf32>
    %338 = tpu.matmul %327, %43, %cst_112 {dimension_numbers = #tpu.dot_dimension_numbers<[1], [0], [0], [1], [0, 0, 1, 1], [], []>} : vector<4x48xf32>, vector<48x48xf32>, vector<4x48xf32> -> vector<4x48xf32>
    %339 = arith.addf %337, %338 : vector<4x48xf32>
    %340 = vector.extract_strided_slice %37 {offsets = [0, 7, 0], sizes = [4, 1, 48], strides = [1, 1, 1]} : vector<4x8x48xf32> to vector<4x1x48xf32>
    %341 = vector.shape_cast %340 : vector<4x1x48xf32> to vector<4x48xf32>
    %cst_113 = arith.constant dense<0.000000e+00> : vector<4x48xf32>
    %342 = tpu.matmul %327, %45, %cst_113 {dimension_numbers = #tpu.dot_dimension_numbers<[1], [0], [0], [1], [0, 0, 1, 1], [], []>} : vector<4x48xf32>, vector<48x48xf32>, vector<4x48xf32> -> vector<4x48xf32>
    %343 = arith.addf %341, %342 : vector<4x48xf32>
    %cst_114 = arith.constant 0.000000e+00 : f32
    %344 = vector.broadcast %cst_114 : f32 to vector<4x48xf32>
    %345 = arith.subf %344, %335 : vector<4x48xf32>
    %346 = math.exp %345 : vector<4x48xf32>
    %cst_115 = arith.constant 1.000000e+00 : f32
    %347 = vector.broadcast %cst_115 : f32 to vector<4x48xf32>
    %348 = arith.addf %347, %346 : vector<4x48xf32>
    %349 = tpu.reciprocal %348 {approx = true} : vector<4x48xf32> -> vector<4x48xf32>
    %350 = arith.mulf %349, %319 : vector<4x48xf32>
    %cst_116 = arith.constant 0.000000e+00 : f32
    %351 = vector.broadcast %cst_116 : f32 to vector<4x48xf32>
    %352 = arith.subf %351, %331 : vector<4x48xf32>
    %353 = math.exp %352 : vector<4x48xf32>
    %cst_117 = arith.constant 1.000000e+00 : f32
    %354 = vector.broadcast %cst_117 : f32 to vector<4x48xf32>
    %355 = arith.addf %354, %353 : vector<4x48xf32>
    %356 = tpu.reciprocal %355 {approx = true} : vector<4x48xf32> -> vector<4x48xf32>
    %357 = math.tanh %339 : vector<4x48xf32>
    %358 = arith.mulf %356, %357 : vector<4x48xf32>
    %359 = arith.addf %350, %358 : vector<4x48xf32>
    %cst_118 = arith.constant 0.000000e+00 : f32
    %360 = vector.broadcast %cst_118 : f32 to vector<4x48xf32>
    %361 = arith.subf %360, %343 : vector<4x48xf32>
    %362 = math.exp %361 : vector<4x48xf32>
    %cst_119 = arith.constant 1.000000e+00 : f32
    %363 = vector.broadcast %cst_119 : f32 to vector<4x48xf32>
    %364 = arith.addf %363, %362 : vector<4x48xf32>
    %365 = tpu.reciprocal %364 {approx = true} : vector<4x48xf32> -> vector<4x48xf32>
    %366 = math.tanh %359 : vector<4x48xf32>
    %367 = arith.mulf %365, %366 : vector<4x48xf32>
    %368 = vector.shape_cast %87 : vector<4x48xf32> to vector<4x1x48xf32>
    %369 = vector.shape_cast %127 : vector<4x48xf32> to vector<4x1x48xf32>
    %370 = vector.shape_cast %167 : vector<4x48xf32> to vector<4x1x48xf32>
    %371 = vector.shape_cast %207 : vector<4x48xf32> to vector<4x1x48xf32>
    %372 = vector.shape_cast %247 : vector<4x48xf32> to vector<4x1x48xf32>
    %373 = vector.shape_cast %287 : vector<4x48xf32> to vector<4x1x48xf32>
    %374 = vector.shape_cast %327 : vector<4x48xf32> to vector<4x1x48xf32>
    %375 = vector.shape_cast %367 : vector<4x48xf32> to vector<4x1x48xf32>
    %376 = tpu.concatenate %368, %369, %370, %371, %372, %373, %374, %375 in 1 : vector<4x1x48xf32>, vector<4x1x48xf32>, vector<4x1x48xf32>, vector<4x1x48xf32>, vector<4x1x48xf32>, vector<4x1x48xf32>, vector<4x1x48xf32>, vector<4x1x48xf32> -> vector<4x8x48xf32>
    %377 = vector.shape_cast %376 : vector<4x8x48xf32> to vector<32x48xf32>
    %c0_120 = arith.constant 0 : index
    %c0_121 = arith.constant 0 : index
    %c0_122 = arith.constant 0 : index
    %378 = vector.load %arg4[%c0_120, %c0_121, %c0_122] : memref<4x48x48xf32, #tpu.memory_space<vmem>>, vector<1x48x48xf32>
    %379 = vector.shape_cast %378 : vector<1x48x48xf32> to vector<48x48xf32>
    %cst_123 = arith.constant dense<0.000000e+00> : vector<32x48xf32>
    %380 = tpu.matmul %377, %379, %cst_123 {dimension_numbers = #tpu.dot_dimension_numbers<[1], [0], [0], [1], [0, 0, 1, 1], [], []>} : vector<32x48xf32>, vector<48x48xf32>, vector<32x48xf32> -> vector<32x48xf32>
    %381 = vector.shape_cast %380 : vector<32x48xf32> to vector<4x8x48xf32>
    %c0_124 = arith.constant 0 : index
    %c0_125 = arith.constant 0 : index
    %c0_126 = arith.constant 0 : index
    %382 = vector.load %arg6[%c0_124, %c0_125, %c0_126] : memref<4x1x48xf32, #tpu.memory_space<vmem>>, vector<1x1x48xf32>
    %383 = vector.shape_cast %382 : vector<1x1x48xf32> to vector<1x48xf32>
    %384 = vector.shape_cast %383 : vector<1x48xf32> to vector<1x1x48xf32>
    %385 = vector.broadcast %384 : vector<1x1x48xf32> to vector<4x8x48xf32>
    %386 = arith.addf %381, %385 : vector<4x8x48xf32>
    %c1_127 = arith.constant 1 : index
    %c0_128 = arith.constant 0 : index
    %c0_129 = arith.constant 0 : index
    %387 = vector.load %arg4[%c1_127, %c0_128, %c0_129] : memref<4x48x48xf32, #tpu.memory_space<vmem>>, vector<1x48x48xf32>
    %388 = vector.shape_cast %387 : vector<1x48x48xf32> to vector<48x48xf32>
    %cst_130 = arith.constant dense<0.000000e+00> : vector<32x48xf32>
    %389 = tpu.matmul %377, %388, %cst_130 {dimension_numbers = #tpu.dot_dimension_numbers<[1], [0], [0], [1], [0, 0, 1, 1], [], []>} : vector<32x48xf32>, vector<48x48xf32>, vector<32x48xf32> -> vector<32x48xf32>
    %390 = vector.shape_cast %389 : vector<32x48xf32> to vector<4x8x48xf32>
    %c1_131 = arith.constant 1 : index
    %c0_132 = arith.constant 0 : index
    %c0_133 = arith.constant 0 : index
    %391 = vector.load %arg6[%c1_131, %c0_132, %c0_133] : memref<4x1x48xf32, #tpu.memory_space<vmem>>, vector<1x1x48xf32>
    %392 = vector.shape_cast %391 : vector<1x1x48xf32> to vector<1x48xf32>
    %393 = vector.shape_cast %392 : vector<1x48xf32> to vector<1x1x48xf32>
    %394 = vector.broadcast %393 : vector<1x1x48xf32> to vector<4x8x48xf32>
    %395 = arith.addf %390, %394 : vector<4x8x48xf32>
    %c2_134 = arith.constant 2 : index
    %c0_135 = arith.constant 0 : index
    %c0_136 = arith.constant 0 : index
    %396 = vector.load %arg4[%c2_134, %c0_135, %c0_136] : memref<4x48x48xf32, #tpu.memory_space<vmem>>, vector<1x48x48xf32>
    %397 = vector.shape_cast %396 : vector<1x48x48xf32> to vector<48x48xf32>
    %cst_137 = arith.constant dense<0.000000e+00> : vector<32x48xf32>
    %398 = tpu.matmul %377, %397, %cst_137 {dimension_numbers = #tpu.dot_dimension_numbers<[1], [0], [0], [1], [0, 0, 1, 1], [], []>} : vector<32x48xf32>, vector<48x48xf32>, vector<32x48xf32> -> vector<32x48xf32>
    %399 = vector.shape_cast %398 : vector<32x48xf32> to vector<4x8x48xf32>
    %c2_138 = arith.constant 2 : index
    %c0_139 = arith.constant 0 : index
    %c0_140 = arith.constant 0 : index
    %400 = vector.load %arg6[%c2_138, %c0_139, %c0_140] : memref<4x1x48xf32, #tpu.memory_space<vmem>>, vector<1x1x48xf32>
    %401 = vector.shape_cast %400 : vector<1x1x48xf32> to vector<1x48xf32>
    %402 = vector.shape_cast %401 : vector<1x48xf32> to vector<1x1x48xf32>
    %403 = vector.broadcast %402 : vector<1x1x48xf32> to vector<4x8x48xf32>
    %404 = arith.addf %399, %403 : vector<4x8x48xf32>
    %c3_141 = arith.constant 3 : index
    %c0_142 = arith.constant 0 : index
    %c0_143 = arith.constant 0 : index
    %405 = vector.load %arg4[%c3_141, %c0_142, %c0_143] : memref<4x48x48xf32, #tpu.memory_space<vmem>>, vector<1x48x48xf32>
    %406 = vector.shape_cast %405 : vector<1x48x48xf32> to vector<48x48xf32>
    %cst_144 = arith.constant dense<0.000000e+00> : vector<32x48xf32>
    %407 = tpu.matmul %377, %406, %cst_144 {dimension_numbers = #tpu.dot_dimension_numbers<[1], [0], [0], [1], [0, 0, 1, 1], [], []>} : vector<32x48xf32>, vector<48x48xf32>, vector<32x48xf32> -> vector<32x48xf32>
    %408 = vector.shape_cast %407 : vector<32x48xf32> to vector<4x8x48xf32>
    %c3_145 = arith.constant 3 : index
    %c0_146 = arith.constant 0 : index
    %c0_147 = arith.constant 0 : index
    %409 = vector.load %arg6[%c3_145, %c0_146, %c0_147] : memref<4x1x48xf32, #tpu.memory_space<vmem>>, vector<1x1x48xf32>
    %410 = vector.shape_cast %409 : vector<1x1x48xf32> to vector<1x48xf32>
    %411 = vector.shape_cast %410 : vector<1x48xf32> to vector<1x1x48xf32>
    %412 = vector.broadcast %411 : vector<1x1x48xf32> to vector<4x8x48xf32>
    %413 = arith.addf %408, %412 : vector<4x8x48xf32>
    %c0_148 = arith.constant 0 : index
    %c0_149 = arith.constant 0 : index
    %c0_150 = arith.constant 0 : index
    %414 = vector.load %arg5[%c0_148, %c0_149, %c0_150] : memref<4x48x48xf32, #tpu.memory_space<vmem>>, vector<1x48x48xf32>
    %415 = vector.shape_cast %414 : vector<1x48x48xf32> to vector<48x48xf32>
    %c1_151 = arith.constant 1 : index
    %c0_152 = arith.constant 0 : index
    %c0_153 = arith.constant 0 : index
    %416 = vector.load %arg5[%c1_151, %c0_152, %c0_153] : memref<4x48x48xf32, #tpu.memory_space<vmem>>, vector<1x48x48xf32>
    %417 = vector.shape_cast %416 : vector<1x48x48xf32> to vector<48x48xf32>
    %c2_154 = arith.constant 2 : index
    %c0_155 = arith.constant 0 : index
    %c0_156 = arith.constant 0 : index
    %418 = vector.load %arg5[%c2_154, %c0_155, %c0_156] : memref<4x48x48xf32, #tpu.memory_space<vmem>>, vector<1x48x48xf32>
    %419 = vector.shape_cast %418 : vector<1x48x48xf32> to vector<48x48xf32>
    %c3_157 = arith.constant 3 : index
    %c0_158 = arith.constant 0 : index
    %c0_159 = arith.constant 0 : index
    %420 = vector.load %arg5[%c3_157, %c0_158, %c0_159] : memref<4x48x48xf32, #tpu.memory_space<vmem>>, vector<1x48x48xf32>
    %421 = vector.shape_cast %420 : vector<1x48x48xf32> to vector<48x48xf32>
    %cst_160 = arith.constant 0.000000e+00 : f32
    %422 = vector.broadcast %cst_160 : f32 to vector<4x48xf32>
    %cst_161 = arith.constant 0.000000e+00 : f32
    %423 = vector.broadcast %cst_161 : f32 to vector<4x48xf32>
    %424 = vector.extract_strided_slice %386 {offsets = [0, 0, 0], sizes = [4, 1, 48], strides = [1, 1, 1]} : vector<4x8x48xf32> to vector<4x1x48xf32>
    %425 = vector.shape_cast %424 : vector<4x1x48xf32> to vector<4x48xf32>
    %cst_162 = arith.constant dense<0.000000e+00> : vector<4x48xf32>
    %426 = tpu.matmul %422, %415, %cst_162 {dimension_numbers = #tpu.dot_dimension_numbers<[1], [0], [0], [1], [0, 0, 1, 1], [], []>} : vector<4x48xf32>, vector<48x48xf32>, vector<4x48xf32> -> vector<4x48xf32>
    %427 = arith.addf %425, %426 : vector<4x48xf32>
    %428 = vector.extract_strided_slice %395 {offsets = [0, 0, 0], sizes = [4, 1, 48], strides = [1, 1, 1]} : vector<4x8x48xf32> to vector<4x1x48xf32>
    %429 = vector.shape_cast %428 : vector<4x1x48xf32> to vector<4x48xf32>
    %cst_163 = arith.constant dense<0.000000e+00> : vector<4x48xf32>
    %430 = tpu.matmul %422, %417, %cst_163 {dimension_numbers = #tpu.dot_dimension_numbers<[1], [0], [0], [1], [0, 0, 1, 1], [], []>} : vector<4x48xf32>, vector<48x48xf32>, vector<4x48xf32> -> vector<4x48xf32>
    %431 = arith.addf %429, %430 : vector<4x48xf32>
    %432 = vector.extract_strided_slice %404 {offsets = [0, 0, 0], sizes = [4, 1, 48], strides = [1, 1, 1]} : vector<4x8x48xf32> to vector<4x1x48xf32>
    %433 = vector.shape_cast %432 : vector<4x1x48xf32> to vector<4x48xf32>
    %cst_164 = arith.constant dense<0.000000e+00> : vector<4x48xf32>
    %434 = tpu.matmul %422, %419, %cst_164 {dimension_numbers = #tpu.dot_dimension_numbers<[1], [0], [0], [1], [0, 0, 1, 1], [], []>} : vector<4x48xf32>, vector<48x48xf32>, vector<4x48xf32> -> vector<4x48xf32>
    %435 = arith.addf %433, %434 : vector<4x48xf32>
    %436 = vector.extract_strided_slice %413 {offsets = [0, 0, 0], sizes = [4, 1, 48], strides = [1, 1, 1]} : vector<4x8x48xf32> to vector<4x1x48xf32>
    %437 = vector.shape_cast %436 : vector<4x1x48xf32> to vector<4x48xf32>
    %cst_165 = arith.constant dense<0.000000e+00> : vector<4x48xf32>
    %438 = tpu.matmul %422, %421, %cst_165 {dimension_numbers = #tpu.dot_dimension_numbers<[1], [0], [0], [1], [0, 0, 1, 1], [], []>} : vector<4x48xf32>, vector<48x48xf32>, vector<4x48xf32> -> vector<4x48xf32>
    %439 = arith.addf %437, %438 : vector<4x48xf32>
    %cst_166 = arith.constant 0.000000e+00 : f32
    %440 = vector.broadcast %cst_166 : f32 to vector<4x48xf32>
    %441 = arith.subf %440, %431 : vector<4x48xf32>
    %442 = math.exp %441 : vector<4x48xf32>
    %cst_167 = arith.constant 1.000000e+00 : f32
    %443 = vector.broadcast %cst_167 : f32 to vector<4x48xf32>
    %444 = arith.addf %443, %442 : vector<4x48xf32>
    %445 = tpu.reciprocal %444 {approx = true} : vector<4x48xf32> -> vector<4x48xf32>
    %446 = arith.mulf %445, %423 : vector<4x48xf32>
    %cst_168 = arith.constant 0.000000e+00 : f32
    %447 = vector.broadcast %cst_168 : f32 to vector<4x48xf32>
    %448 = arith.subf %447, %427 : vector<4x48xf32>
    %449 = math.exp %448 : vector<4x48xf32>
    %cst_169 = arith.constant 1.000000e+00 : f32
    %450 = vector.broadcast %cst_169 : f32 to vector<4x48xf32>
    %451 = arith.addf %450, %449 : vector<4x48xf32>
    %452 = tpu.reciprocal %451 {approx = true} : vector<4x48xf32> -> vector<4x48xf32>
    %453 = math.tanh %435 : vector<4x48xf32>
    %454 = arith.mulf %452, %453 : vector<4x48xf32>
    %455 = arith.addf %446, %454 : vector<4x48xf32>
    %cst_170 = arith.constant 0.000000e+00 : f32
    %456 = vector.broadcast %cst_170 : f32 to vector<4x48xf32>
    %457 = arith.subf %456, %439 : vector<4x48xf32>
    %458 = math.exp %457 : vector<4x48xf32>
    %cst_171 = arith.constant 1.000000e+00 : f32
    %459 = vector.broadcast %cst_171 : f32 to vector<4x48xf32>
    %460 = arith.addf %459, %458 : vector<4x48xf32>
    %461 = tpu.reciprocal %460 {approx = true} : vector<4x48xf32> -> vector<4x48xf32>
    %462 = math.tanh %455 : vector<4x48xf32>
    %463 = arith.mulf %461, %462 : vector<4x48xf32>
    %464 = vector.extract_strided_slice %386 {offsets = [0, 1, 0], sizes = [4, 1, 48], strides = [1, 1, 1]} : vector<4x8x48xf32> to vector<4x1x48xf32>
    %465 = vector.shape_cast %464 : vector<4x1x48xf32> to vector<4x48xf32>
    %cst_172 = arith.constant dense<0.000000e+00> : vector<4x48xf32>
    %466 = tpu.matmul %463, %415, %cst_172 {dimension_numbers = #tpu.dot_dimension_numbers<[1], [0], [0], [1], [0, 0, 1, 1], [], []>} : vector<4x48xf32>, vector<48x48xf32>, vector<4x48xf32> -> vector<4x48xf32>
    %467 = arith.addf %465, %466 : vector<4x48xf32>
    %468 = vector.extract_strided_slice %395 {offsets = [0, 1, 0], sizes = [4, 1, 48], strides = [1, 1, 1]} : vector<4x8x48xf32> to vector<4x1x48xf32>
    %469 = vector.shape_cast %468 : vector<4x1x48xf32> to vector<4x48xf32>
    %cst_173 = arith.constant dense<0.000000e+00> : vector<4x48xf32>
    %470 = tpu.matmul %463, %417, %cst_173 {dimension_numbers = #tpu.dot_dimension_numbers<[1], [0], [0], [1], [0, 0, 1, 1], [], []>} : vector<4x48xf32>, vector<48x48xf32>, vector<4x48xf32> -> vector<4x48xf32>
    %471 = arith.addf %469, %470 : vector<4x48xf32>
    %472 = vector.extract_strided_slice %404 {offsets = [0, 1, 0], sizes = [4, 1, 48], strides = [1, 1, 1]} : vector<4x8x48xf32> to vector<4x1x48xf32>
    %473 = vector.shape_cast %472 : vector<4x1x48xf32> to vector<4x48xf32>
    %cst_174 = arith.constant dense<0.000000e+00> : vector<4x48xf32>
    %474 = tpu.matmul %463, %419, %cst_174 {dimension_numbers = #tpu.dot_dimension_numbers<[1], [0], [0], [1], [0, 0, 1, 1], [], []>} : vector<4x48xf32>, vector<48x48xf32>, vector<4x48xf32> -> vector<4x48xf32>
    %475 = arith.addf %473, %474 : vector<4x48xf32>
    %476 = vector.extract_strided_slice %413 {offsets = [0, 1, 0], sizes = [4, 1, 48], strides = [1, 1, 1]} : vector<4x8x48xf32> to vector<4x1x48xf32>
    %477 = vector.shape_cast %476 : vector<4x1x48xf32> to vector<4x48xf32>
    %cst_175 = arith.constant dense<0.000000e+00> : vector<4x48xf32>
    %478 = tpu.matmul %463, %421, %cst_175 {dimension_numbers = #tpu.dot_dimension_numbers<[1], [0], [0], [1], [0, 0, 1, 1], [], []>} : vector<4x48xf32>, vector<48x48xf32>, vector<4x48xf32> -> vector<4x48xf32>
    %479 = arith.addf %477, %478 : vector<4x48xf32>
    %cst_176 = arith.constant 0.000000e+00 : f32
    %480 = vector.broadcast %cst_176 : f32 to vector<4x48xf32>
    %481 = arith.subf %480, %471 : vector<4x48xf32>
    %482 = math.exp %481 : vector<4x48xf32>
    %cst_177 = arith.constant 1.000000e+00 : f32
    %483 = vector.broadcast %cst_177 : f32 to vector<4x48xf32>
    %484 = arith.addf %483, %482 : vector<4x48xf32>
    %485 = tpu.reciprocal %484 {approx = true} : vector<4x48xf32> -> vector<4x48xf32>
    %486 = arith.mulf %485, %455 : vector<4x48xf32>
    %cst_178 = arith.constant 0.000000e+00 : f32
    %487 = vector.broadcast %cst_178 : f32 to vector<4x48xf32>
    %488 = arith.subf %487, %467 : vector<4x48xf32>
    %489 = math.exp %488 : vector<4x48xf32>
    %cst_179 = arith.constant 1.000000e+00 : f32
    %490 = vector.broadcast %cst_179 : f32 to vector<4x48xf32>
    %491 = arith.addf %490, %489 : vector<4x48xf32>
    %492 = tpu.reciprocal %491 {approx = true} : vector<4x48xf32> -> vector<4x48xf32>
    %493 = math.tanh %475 : vector<4x48xf32>
    %494 = arith.mulf %492, %493 : vector<4x48xf32>
    %495 = arith.addf %486, %494 : vector<4x48xf32>
    %cst_180 = arith.constant 0.000000e+00 : f32
    %496 = vector.broadcast %cst_180 : f32 to vector<4x48xf32>
    %497 = arith.subf %496, %479 : vector<4x48xf32>
    %498 = math.exp %497 : vector<4x48xf32>
    %cst_181 = arith.constant 1.000000e+00 : f32
    %499 = vector.broadcast %cst_181 : f32 to vector<4x48xf32>
    %500 = arith.addf %499, %498 : vector<4x48xf32>
    %501 = tpu.reciprocal %500 {approx = true} : vector<4x48xf32> -> vector<4x48xf32>
    %502 = math.tanh %495 : vector<4x48xf32>
    %503 = arith.mulf %501, %502 : vector<4x48xf32>
    %504 = vector.extract_strided_slice %386 {offsets = [0, 2, 0], sizes = [4, 1, 48], strides = [1, 1, 1]} : vector<4x8x48xf32> to vector<4x1x48xf32>
    %505 = vector.shape_cast %504 : vector<4x1x48xf32> to vector<4x48xf32>
    %cst_182 = arith.constant dense<0.000000e+00> : vector<4x48xf32>
    %506 = tpu.matmul %503, %415, %cst_182 {dimension_numbers = #tpu.dot_dimension_numbers<[1], [0], [0], [1], [0, 0, 1, 1], [], []>} : vector<4x48xf32>, vector<48x48xf32>, vector<4x48xf32> -> vector<4x48xf32>
    %507 = arith.addf %505, %506 : vector<4x48xf32>
    %508 = vector.extract_strided_slice %395 {offsets = [0, 2, 0], sizes = [4, 1, 48], strides = [1, 1, 1]} : vector<4x8x48xf32> to vector<4x1x48xf32>
    %509 = vector.shape_cast %508 : vector<4x1x48xf32> to vector<4x48xf32>
    %cst_183 = arith.constant dense<0.000000e+00> : vector<4x48xf32>
    %510 = tpu.matmul %503, %417, %cst_183 {dimension_numbers = #tpu.dot_dimension_numbers<[1], [0], [0], [1], [0, 0, 1, 1], [], []>} : vector<4x48xf32>, vector<48x48xf32>, vector<4x48xf32> -> vector<4x48xf32>
    %511 = arith.addf %509, %510 : vector<4x48xf32>
    %512 = vector.extract_strided_slice %404 {offsets = [0, 2, 0], sizes = [4, 1, 48], strides = [1, 1, 1]} : vector<4x8x48xf32> to vector<4x1x48xf32>
    %513 = vector.shape_cast %512 : vector<4x1x48xf32> to vector<4x48xf32>
    %cst_184 = arith.constant dense<0.000000e+00> : vector<4x48xf32>
    %514 = tpu.matmul %503, %419, %cst_184 {dimension_numbers = #tpu.dot_dimension_numbers<[1], [0], [0], [1], [0, 0, 1, 1], [], []>} : vector<4x48xf32>, vector<48x48xf32>, vector<4x48xf32> -> vector<4x48xf32>
    %515 = arith.addf %513, %514 : vector<4x48xf32>
    %516 = vector.extract_strided_slice %413 {offsets = [0, 2, 0], sizes = [4, 1, 48], strides = [1, 1, 1]} : vector<4x8x48xf32> to vector<4x1x48xf32>
    %517 = vector.shape_cast %516 : vector<4x1x48xf32> to vector<4x48xf32>
    %cst_185 = arith.constant dense<0.000000e+00> : vector<4x48xf32>
    %518 = tpu.matmul %503, %421, %cst_185 {dimension_numbers = #tpu.dot_dimension_numbers<[1], [0], [0], [1], [0, 0, 1, 1], [], []>} : vector<4x48xf32>, vector<48x48xf32>, vector<4x48xf32> -> vector<4x48xf32>
    %519 = arith.addf %517, %518 : vector<4x48xf32>
    %cst_186 = arith.constant 0.000000e+00 : f32
    %520 = vector.broadcast %cst_186 : f32 to vector<4x48xf32>
    %521 = arith.subf %520, %511 : vector<4x48xf32>
    %522 = math.exp %521 : vector<4x48xf32>
    %cst_187 = arith.constant 1.000000e+00 : f32
    %523 = vector.broadcast %cst_187 : f32 to vector<4x48xf32>
    %524 = arith.addf %523, %522 : vector<4x48xf32>
    %525 = tpu.reciprocal %524 {approx = true} : vector<4x48xf32> -> vector<4x48xf32>
    %526 = arith.mulf %525, %495 : vector<4x48xf32>
    %cst_188 = arith.constant 0.000000e+00 : f32
    %527 = vector.broadcast %cst_188 : f32 to vector<4x48xf32>
    %528 = arith.subf %527, %507 : vector<4x48xf32>
    %529 = math.exp %528 : vector<4x48xf32>
    %cst_189 = arith.constant 1.000000e+00 : f32
    %530 = vector.broadcast %cst_189 : f32 to vector<4x48xf32>
    %531 = arith.addf %530, %529 : vector<4x48xf32>
    %532 = tpu.reciprocal %531 {approx = true} : vector<4x48xf32> -> vector<4x48xf32>
    %533 = math.tanh %515 : vector<4x48xf32>
    %534 = arith.mulf %532, %533 : vector<4x48xf32>
    %535 = arith.addf %526, %534 : vector<4x48xf32>
    %cst_190 = arith.constant 0.000000e+00 : f32
    %536 = vector.broadcast %cst_190 : f32 to vector<4x48xf32>
    %537 = arith.subf %536, %519 : vector<4x48xf32>
    %538 = math.exp %537 : vector<4x48xf32>
    %cst_191 = arith.constant 1.000000e+00 : f32
    %539 = vector.broadcast %cst_191 : f32 to vector<4x48xf32>
    %540 = arith.addf %539, %538 : vector<4x48xf32>
    %541 = tpu.reciprocal %540 {approx = true} : vector<4x48xf32> -> vector<4x48xf32>
    %542 = math.tanh %535 : vector<4x48xf32>
    %543 = arith.mulf %541, %542 : vector<4x48xf32>
    %544 = vector.extract_strided_slice %386 {offsets = [0, 3, 0], sizes = [4, 1, 48], strides = [1, 1, 1]} : vector<4x8x48xf32> to vector<4x1x48xf32>
    %545 = vector.shape_cast %544 : vector<4x1x48xf32> to vector<4x48xf32>
    %cst_192 = arith.constant dense<0.000000e+00> : vector<4x48xf32>
    %546 = tpu.matmul %543, %415, %cst_192 {dimension_numbers = #tpu.dot_dimension_numbers<[1], [0], [0], [1], [0, 0, 1, 1], [], []>} : vector<4x48xf32>, vector<48x48xf32>, vector<4x48xf32> -> vector<4x48xf32>
    %547 = arith.addf %545, %546 : vector<4x48xf32>
    %548 = vector.extract_strided_slice %395 {offsets = [0, 3, 0], sizes = [4, 1, 48], strides = [1, 1, 1]} : vector<4x8x48xf32> to vector<4x1x48xf32>
    %549 = vector.shape_cast %548 : vector<4x1x48xf32> to vector<4x48xf32>
    %cst_193 = arith.constant dense<0.000000e+00> : vector<4x48xf32>
    %550 = tpu.matmul %543, %417, %cst_193 {dimension_numbers = #tpu.dot_dimension_numbers<[1], [0], [0], [1], [0, 0, 1, 1], [], []>} : vector<4x48xf32>, vector<48x48xf32>, vector<4x48xf32> -> vector<4x48xf32>
    %551 = arith.addf %549, %550 : vector<4x48xf32>
    %552 = vector.extract_strided_slice %404 {offsets = [0, 3, 0], sizes = [4, 1, 48], strides = [1, 1, 1]} : vector<4x8x48xf32> to vector<4x1x48xf32>
    %553 = vector.shape_cast %552 : vector<4x1x48xf32> to vector<4x48xf32>
    %cst_194 = arith.constant dense<0.000000e+00> : vector<4x48xf32>
    %554 = tpu.matmul %543, %419, %cst_194 {dimension_numbers = #tpu.dot_dimension_numbers<[1], [0], [0], [1], [0, 0, 1, 1], [], []>} : vector<4x48xf32>, vector<48x48xf32>, vector<4x48xf32> -> vector<4x48xf32>
    %555 = arith.addf %553, %554 : vector<4x48xf32>
    %556 = vector.extract_strided_slice %413 {offsets = [0, 3, 0], sizes = [4, 1, 48], strides = [1, 1, 1]} : vector<4x8x48xf32> to vector<4x1x48xf32>
    %557 = vector.shape_cast %556 : vector<4x1x48xf32> to vector<4x48xf32>
    %cst_195 = arith.constant dense<0.000000e+00> : vector<4x48xf32>
    %558 = tpu.matmul %543, %421, %cst_195 {dimension_numbers = #tpu.dot_dimension_numbers<[1], [0], [0], [1], [0, 0, 1, 1], [], []>} : vector<4x48xf32>, vector<48x48xf32>, vector<4x48xf32> -> vector<4x48xf32>
    %559 = arith.addf %557, %558 : vector<4x48xf32>
    %cst_196 = arith.constant 0.000000e+00 : f32
    %560 = vector.broadcast %cst_196 : f32 to vector<4x48xf32>
    %561 = arith.subf %560, %551 : vector<4x48xf32>
    %562 = math.exp %561 : vector<4x48xf32>
    %cst_197 = arith.constant 1.000000e+00 : f32
    %563 = vector.broadcast %cst_197 : f32 to vector<4x48xf32>
    %564 = arith.addf %563, %562 : vector<4x48xf32>
    %565 = tpu.reciprocal %564 {approx = true} : vector<4x48xf32> -> vector<4x48xf32>
    %566 = arith.mulf %565, %535 : vector<4x48xf32>
    %cst_198 = arith.constant 0.000000e+00 : f32
    %567 = vector.broadcast %cst_198 : f32 to vector<4x48xf32>
    %568 = arith.subf %567, %547 : vector<4x48xf32>
    %569 = math.exp %568 : vector<4x48xf32>
    %cst_199 = arith.constant 1.000000e+00 : f32
    %570 = vector.broadcast %cst_199 : f32 to vector<4x48xf32>
    %571 = arith.addf %570, %569 : vector<4x48xf32>
    %572 = tpu.reciprocal %571 {approx = true} : vector<4x48xf32> -> vector<4x48xf32>
    %573 = math.tanh %555 : vector<4x48xf32>
    %574 = arith.mulf %572, %573 : vector<4x48xf32>
    %575 = arith.addf %566, %574 : vector<4x48xf32>
    %cst_200 = arith.constant 0.000000e+00 : f32
    %576 = vector.broadcast %cst_200 : f32 to vector<4x48xf32>
    %577 = arith.subf %576, %559 : vector<4x48xf32>
    %578 = math.exp %577 : vector<4x48xf32>
    %cst_201 = arith.constant 1.000000e+00 : f32
    %579 = vector.broadcast %cst_201 : f32 to vector<4x48xf32>
    %580 = arith.addf %579, %578 : vector<4x48xf32>
    %581 = tpu.reciprocal %580 {approx = true} : vector<4x48xf32> -> vector<4x48xf32>
    %582 = math.tanh %575 : vector<4x48xf32>
    %583 = arith.mulf %581, %582 : vector<4x48xf32>
    %584 = vector.extract_strided_slice %386 {offsets = [0, 4, 0], sizes = [4, 1, 48], strides = [1, 1, 1]} : vector<4x8x48xf32> to vector<4x1x48xf32>
    %585 = vector.shape_cast %584 : vector<4x1x48xf32> to vector<4x48xf32>
    %cst_202 = arith.constant dense<0.000000e+00> : vector<4x48xf32>
    %586 = tpu.matmul %583, %415, %cst_202 {dimension_numbers = #tpu.dot_dimension_numbers<[1], [0], [0], [1], [0, 0, 1, 1], [], []>} : vector<4x48xf32>, vector<48x48xf32>, vector<4x48xf32> -> vector<4x48xf32>
    %587 = arith.addf %585, %586 : vector<4x48xf32>
    %588 = vector.extract_strided_slice %395 {offsets = [0, 4, 0], sizes = [4, 1, 48], strides = [1, 1, 1]} : vector<4x8x48xf32> to vector<4x1x48xf32>
    %589 = vector.shape_cast %588 : vector<4x1x48xf32> to vector<4x48xf32>
    %cst_203 = arith.constant dense<0.000000e+00> : vector<4x48xf32>
    %590 = tpu.matmul %583, %417, %cst_203 {dimension_numbers = #tpu.dot_dimension_numbers<[1], [0], [0], [1], [0, 0, 1, 1], [], []>} : vector<4x48xf32>, vector<48x48xf32>, vector<4x48xf32> -> vector<4x48xf32>
    %591 = arith.addf %589, %590 : vector<4x48xf32>
    %592 = vector.extract_strided_slice %404 {offsets = [0, 4, 0], sizes = [4, 1, 48], strides = [1, 1, 1]} : vector<4x8x48xf32> to vector<4x1x48xf32>
    %593 = vector.shape_cast %592 : vector<4x1x48xf32> to vector<4x48xf32>
    %cst_204 = arith.constant dense<0.000000e+00> : vector<4x48xf32>
    %594 = tpu.matmul %583, %419, %cst_204 {dimension_numbers = #tpu.dot_dimension_numbers<[1], [0], [0], [1], [0, 0, 1, 1], [], []>} : vector<4x48xf32>, vector<48x48xf32>, vector<4x48xf32> -> vector<4x48xf32>
    %595 = arith.addf %593, %594 : vector<4x48xf32>
    %596 = vector.extract_strided_slice %413 {offsets = [0, 4, 0], sizes = [4, 1, 48], strides = [1, 1, 1]} : vector<4x8x48xf32> to vector<4x1x48xf32>
    %597 = vector.shape_cast %596 : vector<4x1x48xf32> to vector<4x48xf32>
    %cst_205 = arith.constant dense<0.000000e+00> : vector<4x48xf32>
    %598 = tpu.matmul %583, %421, %cst_205 {dimension_numbers = #tpu.dot_dimension_numbers<[1], [0], [0], [1], [0, 0, 1, 1], [], []>} : vector<4x48xf32>, vector<48x48xf32>, vector<4x48xf32> -> vector<4x48xf32>
    %599 = arith.addf %597, %598 : vector<4x48xf32>
    %cst_206 = arith.constant 0.000000e+00 : f32
    %600 = vector.broadcast %cst_206 : f32 to vector<4x48xf32>
    %601 = arith.subf %600, %591 : vector<4x48xf32>
    %602 = math.exp %601 : vector<4x48xf32>
    %cst_207 = arith.constant 1.000000e+00 : f32
    %603 = vector.broadcast %cst_207 : f32 to vector<4x48xf32>
    %604 = arith.addf %603, %602 : vector<4x48xf32>
    %605 = tpu.reciprocal %604 {approx = true} : vector<4x48xf32> -> vector<4x48xf32>
    %606 = arith.mulf %605, %575 : vector<4x48xf32>
    %cst_208 = arith.constant 0.000000e+00 : f32
    %607 = vector.broadcast %cst_208 : f32 to vector<4x48xf32>
    %608 = arith.subf %607, %587 : vector<4x48xf32>
    %609 = math.exp %608 : vector<4x48xf32>
    %cst_209 = arith.constant 1.000000e+00 : f32
    %610 = vector.broadcast %cst_209 : f32 to vector<4x48xf32>
    %611 = arith.addf %610, %609 : vector<4x48xf32>
    %612 = tpu.reciprocal %611 {approx = true} : vector<4x48xf32> -> vector<4x48xf32>
    %613 = math.tanh %595 : vector<4x48xf32>
    %614 = arith.mulf %612, %613 : vector<4x48xf32>
    %615 = arith.addf %606, %614 : vector<4x48xf32>
    %cst_210 = arith.constant 0.000000e+00 : f32
    %616 = vector.broadcast %cst_210 : f32 to vector<4x48xf32>
    %617 = arith.subf %616, %599 : vector<4x48xf32>
    %618 = math.exp %617 : vector<4x48xf32>
    %cst_211 = arith.constant 1.000000e+00 : f32
    %619 = vector.broadcast %cst_211 : f32 to vector<4x48xf32>
    %620 = arith.addf %619, %618 : vector<4x48xf32>
    %621 = tpu.reciprocal %620 {approx = true} : vector<4x48xf32> -> vector<4x48xf32>
    %622 = math.tanh %615 : vector<4x48xf32>
    %623 = arith.mulf %621, %622 : vector<4x48xf32>
    %624 = vector.extract_strided_slice %386 {offsets = [0, 5, 0], sizes = [4, 1, 48], strides = [1, 1, 1]} : vector<4x8x48xf32> to vector<4x1x48xf32>
    %625 = vector.shape_cast %624 : vector<4x1x48xf32> to vector<4x48xf32>
    %cst_212 = arith.constant dense<0.000000e+00> : vector<4x48xf32>
    %626 = tpu.matmul %623, %415, %cst_212 {dimension_numbers = #tpu.dot_dimension_numbers<[1], [0], [0], [1], [0, 0, 1, 1], [], []>} : vector<4x48xf32>, vector<48x48xf32>, vector<4x48xf32> -> vector<4x48xf32>
    %627 = arith.addf %625, %626 : vector<4x48xf32>
    %628 = vector.extract_strided_slice %395 {offsets = [0, 5, 0], sizes = [4, 1, 48], strides = [1, 1, 1]} : vector<4x8x48xf32> to vector<4x1x48xf32>
    %629 = vector.shape_cast %628 : vector<4x1x48xf32> to vector<4x48xf32>
    %cst_213 = arith.constant dense<0.000000e+00> : vector<4x48xf32>
    %630 = tpu.matmul %623, %417, %cst_213 {dimension_numbers = #tpu.dot_dimension_numbers<[1], [0], [0], [1], [0, 0, 1, 1], [], []>} : vector<4x48xf32>, vector<48x48xf32>, vector<4x48xf32> -> vector<4x48xf32>
    %631 = arith.addf %629, %630 : vector<4x48xf32>
    %632 = vector.extract_strided_slice %404 {offsets = [0, 5, 0], sizes = [4, 1, 48], strides = [1, 1, 1]} : vector<4x8x48xf32> to vector<4x1x48xf32>
    %633 = vector.shape_cast %632 : vector<4x1x48xf32> to vector<4x48xf32>
    %cst_214 = arith.constant dense<0.000000e+00> : vector<4x48xf32>
    %634 = tpu.matmul %623, %419, %cst_214 {dimension_numbers = #tpu.dot_dimension_numbers<[1], [0], [0], [1], [0, 0, 1, 1], [], []>} : vector<4x48xf32>, vector<48x48xf32>, vector<4x48xf32> -> vector<4x48xf32>
    %635 = arith.addf %633, %634 : vector<4x48xf32>
    %636 = vector.extract_strided_slice %413 {offsets = [0, 5, 0], sizes = [4, 1, 48], strides = [1, 1, 1]} : vector<4x8x48xf32> to vector<4x1x48xf32>
    %637 = vector.shape_cast %636 : vector<4x1x48xf32> to vector<4x48xf32>
    %cst_215 = arith.constant dense<0.000000e+00> : vector<4x48xf32>
    %638 = tpu.matmul %623, %421, %cst_215 {dimension_numbers = #tpu.dot_dimension_numbers<[1], [0], [0], [1], [0, 0, 1, 1], [], []>} : vector<4x48xf32>, vector<48x48xf32>, vector<4x48xf32> -> vector<4x48xf32>
    %639 = arith.addf %637, %638 : vector<4x48xf32>
    %cst_216 = arith.constant 0.000000e+00 : f32
    %640 = vector.broadcast %cst_216 : f32 to vector<4x48xf32>
    %641 = arith.subf %640, %631 : vector<4x48xf32>
    %642 = math.exp %641 : vector<4x48xf32>
    %cst_217 = arith.constant 1.000000e+00 : f32
    %643 = vector.broadcast %cst_217 : f32 to vector<4x48xf32>
    %644 = arith.addf %643, %642 : vector<4x48xf32>
    %645 = tpu.reciprocal %644 {approx = true} : vector<4x48xf32> -> vector<4x48xf32>
    %646 = arith.mulf %645, %615 : vector<4x48xf32>
    %cst_218 = arith.constant 0.000000e+00 : f32
    %647 = vector.broadcast %cst_218 : f32 to vector<4x48xf32>
    %648 = arith.subf %647, %627 : vector<4x48xf32>
    %649 = math.exp %648 : vector<4x48xf32>
    %cst_219 = arith.constant 1.000000e+00 : f32
    %650 = vector.broadcast %cst_219 : f32 to vector<4x48xf32>
    %651 = arith.addf %650, %649 : vector<4x48xf32>
    %652 = tpu.reciprocal %651 {approx = true} : vector<4x48xf32> -> vector<4x48xf32>
    %653 = math.tanh %635 : vector<4x48xf32>
    %654 = arith.mulf %652, %653 : vector<4x48xf32>
    %655 = arith.addf %646, %654 : vector<4x48xf32>
    %cst_220 = arith.constant 0.000000e+00 : f32
    %656 = vector.broadcast %cst_220 : f32 to vector<4x48xf32>
    %657 = arith.subf %656, %639 : vector<4x48xf32>
    %658 = math.exp %657 : vector<4x48xf32>
    %cst_221 = arith.constant 1.000000e+00 : f32
    %659 = vector.broadcast %cst_221 : f32 to vector<4x48xf32>
    %660 = arith.addf %659, %658 : vector<4x48xf32>
    %661 = tpu.reciprocal %660 {approx = true} : vector<4x48xf32> -> vector<4x48xf32>
    %662 = math.tanh %655 : vector<4x48xf32>
    %663 = arith.mulf %661, %662 : vector<4x48xf32>
    %664 = vector.extract_strided_slice %386 {offsets = [0, 6, 0], sizes = [4, 1, 48], strides = [1, 1, 1]} : vector<4x8x48xf32> to vector<4x1x48xf32>
    %665 = vector.shape_cast %664 : vector<4x1x48xf32> to vector<4x48xf32>
    %cst_222 = arith.constant dense<0.000000e+00> : vector<4x48xf32>
    %666 = tpu.matmul %663, %415, %cst_222 {dimension_numbers = #tpu.dot_dimension_numbers<[1], [0], [0], [1], [0, 0, 1, 1], [], []>} : vector<4x48xf32>, vector<48x48xf32>, vector<4x48xf32> -> vector<4x48xf32>
    %667 = arith.addf %665, %666 : vector<4x48xf32>
    %668 = vector.extract_strided_slice %395 {offsets = [0, 6, 0], sizes = [4, 1, 48], strides = [1, 1, 1]} : vector<4x8x48xf32> to vector<4x1x48xf32>
    %669 = vector.shape_cast %668 : vector<4x1x48xf32> to vector<4x48xf32>
    %cst_223 = arith.constant dense<0.000000e+00> : vector<4x48xf32>
    %670 = tpu.matmul %663, %417, %cst_223 {dimension_numbers = #tpu.dot_dimension_numbers<[1], [0], [0], [1], [0, 0, 1, 1], [], []>} : vector<4x48xf32>, vector<48x48xf32>, vector<4x48xf32> -> vector<4x48xf32>
    %671 = arith.addf %669, %670 : vector<4x48xf32>
    %672 = vector.extract_strided_slice %404 {offsets = [0, 6, 0], sizes = [4, 1, 48], strides = [1, 1, 1]} : vector<4x8x48xf32> to vector<4x1x48xf32>
    %673 = vector.shape_cast %672 : vector<4x1x48xf32> to vector<4x48xf32>
    %cst_224 = arith.constant dense<0.000000e+00> : vector<4x48xf32>
    %674 = tpu.matmul %663, %419, %cst_224 {dimension_numbers = #tpu.dot_dimension_numbers<[1], [0], [0], [1], [0, 0, 1, 1], [], []>} : vector<4x48xf32>, vector<48x48xf32>, vector<4x48xf32> -> vector<4x48xf32>
    %675 = arith.addf %673, %674 : vector<4x48xf32>
    %676 = vector.extract_strided_slice %413 {offsets = [0, 6, 0], sizes = [4, 1, 48], strides = [1, 1, 1]} : vector<4x8x48xf32> to vector<4x1x48xf32>
    %677 = vector.shape_cast %676 : vector<4x1x48xf32> to vector<4x48xf32>
    %cst_225 = arith.constant dense<0.000000e+00> : vector<4x48xf32>
    %678 = tpu.matmul %663, %421, %cst_225 {dimension_numbers = #tpu.dot_dimension_numbers<[1], [0], [0], [1], [0, 0, 1, 1], [], []>} : vector<4x48xf32>, vector<48x48xf32>, vector<4x48xf32> -> vector<4x48xf32>
    %679 = arith.addf %677, %678 : vector<4x48xf32>
    %cst_226 = arith.constant 0.000000e+00 : f32
    %680 = vector.broadcast %cst_226 : f32 to vector<4x48xf32>
    %681 = arith.subf %680, %671 : vector<4x48xf32>
    %682 = math.exp %681 : vector<4x48xf32>
    %cst_227 = arith.constant 1.000000e+00 : f32
    %683 = vector.broadcast %cst_227 : f32 to vector<4x48xf32>
    %684 = arith.addf %683, %682 : vector<4x48xf32>
    %685 = tpu.reciprocal %684 {approx = true} : vector<4x48xf32> -> vector<4x48xf32>
    %686 = arith.mulf %685, %655 : vector<4x48xf32>
    %cst_228 = arith.constant 0.000000e+00 : f32
    %687 = vector.broadcast %cst_228 : f32 to vector<4x48xf32>
    %688 = arith.subf %687, %667 : vector<4x48xf32>
    %689 = math.exp %688 : vector<4x48xf32>
    %cst_229 = arith.constant 1.000000e+00 : f32
    %690 = vector.broadcast %cst_229 : f32 to vector<4x48xf32>
    %691 = arith.addf %690, %689 : vector<4x48xf32>
    %692 = tpu.reciprocal %691 {approx = true} : vector<4x48xf32> -> vector<4x48xf32>
    %693 = math.tanh %675 : vector<4x48xf32>
    %694 = arith.mulf %692, %693 : vector<4x48xf32>
    %695 = arith.addf %686, %694 : vector<4x48xf32>
    %cst_230 = arith.constant 0.000000e+00 : f32
    %696 = vector.broadcast %cst_230 : f32 to vector<4x48xf32>
    %697 = arith.subf %696, %679 : vector<4x48xf32>
    %698 = math.exp %697 : vector<4x48xf32>
    %cst_231 = arith.constant 1.000000e+00 : f32
    %699 = vector.broadcast %cst_231 : f32 to vector<4x48xf32>
    %700 = arith.addf %699, %698 : vector<4x48xf32>
    %701 = tpu.reciprocal %700 {approx = true} : vector<4x48xf32> -> vector<4x48xf32>
    %702 = math.tanh %695 : vector<4x48xf32>
    %703 = arith.mulf %701, %702 : vector<4x48xf32>
    %704 = vector.extract_strided_slice %386 {offsets = [0, 7, 0], sizes = [4, 1, 48], strides = [1, 1, 1]} : vector<4x8x48xf32> to vector<4x1x48xf32>
    %705 = vector.shape_cast %704 : vector<4x1x48xf32> to vector<4x48xf32>
    %cst_232 = arith.constant dense<0.000000e+00> : vector<4x48xf32>
    %706 = tpu.matmul %703, %415, %cst_232 {dimension_numbers = #tpu.dot_dimension_numbers<[1], [0], [0], [1], [0, 0, 1, 1], [], []>} : vector<4x48xf32>, vector<48x48xf32>, vector<4x48xf32> -> vector<4x48xf32>
    %707 = arith.addf %705, %706 : vector<4x48xf32>
    %708 = vector.extract_strided_slice %395 {offsets = [0, 7, 0], sizes = [4, 1, 48], strides = [1, 1, 1]} : vector<4x8x48xf32> to vector<4x1x48xf32>
    %709 = vector.shape_cast %708 : vector<4x1x48xf32> to vector<4x48xf32>
    %cst_233 = arith.constant dense<0.000000e+00> : vector<4x48xf32>
    %710 = tpu.matmul %703, %417, %cst_233 {dimension_numbers = #tpu.dot_dimension_numbers<[1], [0], [0], [1], [0, 0, 1, 1], [], []>} : vector<4x48xf32>, vector<48x48xf32>, vector<4x48xf32> -> vector<4x48xf32>
    %711 = arith.addf %709, %710 : vector<4x48xf32>
    %712 = vector.extract_strided_slice %404 {offsets = [0, 7, 0], sizes = [4, 1, 48], strides = [1, 1, 1]} : vector<4x8x48xf32> to vector<4x1x48xf32>
    %713 = vector.shape_cast %712 : vector<4x1x48xf32> to vector<4x48xf32>
    %cst_234 = arith.constant dense<0.000000e+00> : vector<4x48xf32>
    %714 = tpu.matmul %703, %419, %cst_234 {dimension_numbers = #tpu.dot_dimension_numbers<[1], [0], [0], [1], [0, 0, 1, 1], [], []>} : vector<4x48xf32>, vector<48x48xf32>, vector<4x48xf32> -> vector<4x48xf32>
    %715 = arith.addf %713, %714 : vector<4x48xf32>
    %716 = vector.extract_strided_slice %413 {offsets = [0, 7, 0], sizes = [4, 1, 48], strides = [1, 1, 1]} : vector<4x8x48xf32> to vector<4x1x48xf32>
    %717 = vector.shape_cast %716 : vector<4x1x48xf32> to vector<4x48xf32>
    %cst_235 = arith.constant dense<0.000000e+00> : vector<4x48xf32>
    %718 = tpu.matmul %703, %421, %cst_235 {dimension_numbers = #tpu.dot_dimension_numbers<[1], [0], [0], [1], [0, 0, 1, 1], [], []>} : vector<4x48xf32>, vector<48x48xf32>, vector<4x48xf32> -> vector<4x48xf32>
    %719 = arith.addf %717, %718 : vector<4x48xf32>
    %cst_236 = arith.constant 0.000000e+00 : f32
    %720 = vector.broadcast %cst_236 : f32 to vector<4x48xf32>
    %721 = arith.subf %720, %711 : vector<4x48xf32>
    %722 = math.exp %721 : vector<4x48xf32>
    %cst_237 = arith.constant 1.000000e+00 : f32
    %723 = vector.broadcast %cst_237 : f32 to vector<4x48xf32>
    %724 = arith.addf %723, %722 : vector<4x48xf32>
    %725 = tpu.reciprocal %724 {approx = true} : vector<4x48xf32> -> vector<4x48xf32>
    %726 = arith.mulf %725, %695 : vector<4x48xf32>
    %cst_238 = arith.constant 0.000000e+00 : f32
    %727 = vector.broadcast %cst_238 : f32 to vector<4x48xf32>
    %728 = arith.subf %727, %707 : vector<4x48xf32>
    %729 = math.exp %728 : vector<4x48xf32>
    %cst_239 = arith.constant 1.000000e+00 : f32
    %730 = vector.broadcast %cst_239 : f32 to vector<4x48xf32>
    %731 = arith.addf %730, %729 : vector<4x48xf32>
    %732 = tpu.reciprocal %731 {approx = true} : vector<4x48xf32> -> vector<4x48xf32>
    %733 = math.tanh %715 : vector<4x48xf32>
    %734 = arith.mulf %732, %733 : vector<4x48xf32>
    %735 = arith.addf %726, %734 : vector<4x48xf32>
    %cst_240 = arith.constant 0.000000e+00 : f32
    %736 = vector.broadcast %cst_240 : f32 to vector<4x48xf32>
    %737 = arith.subf %736, %719 : vector<4x48xf32>
    %738 = math.exp %737 : vector<4x48xf32>
    %cst_241 = arith.constant 1.000000e+00 : f32
    %739 = vector.broadcast %cst_241 : f32 to vector<4x48xf32>
    %740 = arith.addf %739, %738 : vector<4x48xf32>
    %741 = tpu.reciprocal %740 {approx = true} : vector<4x48xf32> -> vector<4x48xf32>
    %742 = math.tanh %735 : vector<4x48xf32>
    %743 = arith.mulf %741, %742 : vector<4x48xf32>
    %c0_242 = arith.constant 0 : index
    %c0_243 = arith.constant 0 : index
    %744 = vector.load %arg7[%c0_242, %c0_243] : memref<48x48xf32, #tpu.memory_space<vmem>>, vector<48x48xf32>
    %cst_244 = arith.constant dense<0.000000e+00> : vector<4x48xf32>
    %745 = tpu.matmul %743, %744, %cst_244 {dimension_numbers = #tpu.dot_dimension_numbers<[1], [0], [0], [1], [0, 0, 1, 1], [], []>} : vector<4x48xf32>, vector<48x48xf32>, vector<4x48xf32> -> vector<4x48xf32>
    %c0_245 = arith.constant 0 : index
    %c0_246 = arith.constant 0 : index
    %746 = vector.load %arg8[%c0_245, %c0_246] : memref<1x48xf32, #tpu.memory_space<vmem>>, vector<1x48xf32>
    %747 = vector.broadcast %746 : vector<1x48xf32> to vector<4x48xf32>
    %748 = arith.addf %745, %747 : vector<4x48xf32>
    %cst_247 = arith.constant 0.000000e+00 : f32
    %749 = vector.broadcast %cst_247 : f32 to vector<4x48xf32>
    %750 = arith.maximumf %748, %749 : vector<4x48xf32>
    %c0_248 = arith.constant 0 : index
    %c0_249 = arith.constant 0 : index
    %751 = vector.load %arg9[%c0_248, %c0_249] : memref<48x4xf32, #tpu.memory_space<vmem>>, vector<48x4xf32>
    %cst_250 = arith.constant dense<0.000000e+00> : vector<4x4xf32>
    %752 = tpu.matmul %750, %751, %cst_250 {dimension_numbers = #tpu.dot_dimension_numbers<[1], [0], [0], [1], [0, 0, 1, 1], [], []>} : vector<4x48xf32>, vector<48x4xf32>, vector<4x4xf32> -> vector<4x4xf32>
    %c0_251 = arith.constant 0 : index
    %c0_252 = arith.constant 0 : index
    %753 = vector.load %arg10[%c0_251, %c0_252] : memref<1x4xf32, #tpu.memory_space<vmem>>, vector<1x4xf32>
    %754 = vector.broadcast %753 : vector<1x4xf32> to vector<4x4xf32>
    %755 = arith.addf %752, %754 : vector<4x4xf32>
    %756 = vector.extract_strided_slice %755 {offsets = [0, 0], sizes = [4, 3], strides = [1, 1]} : vector<4x4xf32> to vector<4x3xf32>
    %c0_253 = arith.constant 0 : index
    %c0_254 = arith.constant 0 : index
    %757 = vector.load %arg11[%c0_253, %c0_254] : memref<4x3xf32, #tpu.memory_space<vmem>>, vector<4x3xf32>
    tpu.vector_store %arg11[%c0_253, %c0_254], %756 {strides = array<i32>} : memref<4x3xf32, #tpu.memory_space<vmem>>, vector<4x3xf32>,
    %758 = vector.extract_strided_slice %755 {offsets = [0, 3], sizes = [4, 1], strides = [1, 1]} : vector<4x4xf32> to vector<4x1xf32>
    %c0_255 = arith.constant 0 : index
    %c0_256 = arith.constant 0 : index
    %759 = vector.load %arg12[%c0_255, %c0_256] : memref<4x1xf32, #tpu.memory_space<vmem>>, vector<4x1xf32>
    tpu.vector_store %arg12[%c0_255, %c0_256], %758 {strides = array<i32>} : memref<4x1xf32, #tpu.memory_space<vmem>>, vector<4x1xf32>,
    return
  }
}

</mosaic_0001>

<bundles_post_ra>
// kernel: lstm_classifier_forward.1
= control target key start
LH: loop header
LB: loop body
LE: loop exit
PB: predicated region body
PF: predicated region fallthrough
CT: control target
= control target key end

     0   :  { %18 = vsyncpa [#allocation3], 0  ;;  %s13336_s0 = inlined_call_operand.vmem [shape: f32[4,8,6], index: 0, kind: input, shape index: {}]   ;;  %s13337_s1 = inlined_call_operand.vmem [shape: f32[4,6,48], index: 1, kind: input, shape index: {}]   ;;  %s13338_s2 = inlined_call_operand.hbm [shape: f32[4,48,48], index: 2, kind: input, shape index: {}]   ;;  %s13339_s3 = inlined_call_operand.vmem [shape: f32[4,1,48], index: 3, kind: input, shape index: {}]   ;;  %s13340_s4 = inlined_call_operand.hbm [shape: f32[4,48,48], index: 4, kind: input, shape index: {}]   ;;  %s13341_s5 = inlined_call_operand.hbm [shape: f32[4,48,48], index: 5, kind: input, shape index: {}]   ;;  %s13342_s6 = inlined_call_operand.vmem [shape: f32[4,1,48], index: 6, kind: input, shape index: {}]   ;;  %s13343_s7 = inlined_call_operand.vmem [shape: f32[48,48], index: 7, kind: input, shape index: {}]   ;;  %s13344_s8 = inlined_call_operand.vmem [shape: f32[1,48], index: 8, kind: input, shape index: {}]   ;;  %s13345_s9 = inlined_call_operand.vmem [shape: f32[48,4], index: 9, kind: input, shape index: {}]   ;;  %s13346_s10 = inlined_call_operand.vmem [shape: f32[1,4], index: 10, kind: input, shape index: {}]   ;;  %s13347_s11 = inlined_call_operand.hbm [shape: f32[4,3], index: 11, kind: output, shape index: {0}]   ;;  %s13348_s12 = inlined_call_operand.vmem [shape: f32[4,1], index: 12, kind: output, shape index: {1}]  }
   0x1   :  { %19 = vsyncpa [#allocation6], 0 }
   0x2   :  { %20 = vsyncpa [#allocation4], 0  ;;  %s11703_s21 = smov [#allocation5]   ;;  %s11704_s23 = smov [#allocation2]  }
   0x3   :  { %s44_s22 = sshll.u32 %s11703_s21, 4  ;;  %s30_s24 = sshll.u32 %s11704_s23, 4  ;;  %s45_s22 = int_to_ptr.vmem [resolvable:$true] %s44_s22  ;;  %s11778_s24 = int_to_ptr.vmem [resolvable:$true] %s30_s24 }
   0x4   :  { %s11609_s27 = scalar_lea.hbm %s13340_s4, 3072 }
   0x5   :  { %p11610_p0 = scmp.ne.s32.totalorder %s13340_s4, %s11609_s27  ;;  %p11613_p1 = scmp.lt.u32.totalorder %s11609_s27, %s13340_s4 }
   0x7   :  { %p11615_p2 = pnand %p11613_p1, %p11610_p0 }
   0x9   :  { %11618 = shalt.err (!%p11615_p2)
}
   0xa   :  { %s11619_s14 = scalar_lea.vmem %s45_s22, 3072  ;;  %p11624_p4 = scmp.lt.s32.totalorder %s45_s22, %s45_s22 }
   0xb   :  { %p11620_p3 = scmp.ne.s32.totalorder %s45_s22, %s11619_s14  ;;  %p11625_p5 = scmp.lt.s32.totalorder %s11619_s14, %s11619_s14 }
   0xd   :  { %p11626_p6 = por %p11625_p5, %p11624_p4 }
   0xf   :  { %p11627_p7 = pnand %p11626_p6, %p11620_p3 }
  0x11   :  { %11630 = shalt.err (!%p11627_p7)
}
  0x12   :  { %s11705_s15 = smov 128   ;;  %s11706_s16 = smov 8  }
  0x13   :  { %50 = dma.hbm_to_vmem [thread:$0]  %s13340_s4, 3072, %s45_s22, [#allocation6], %s11705_s15, %s11705_s15, %s11706_s16  }
  0x14   :  { %s11631_s21 = scalar_lea.hbm %s13338_s2, 3072 }
  0x15   :  { %p11632_p8 = scmp.ne.s32.totalorder %s13338_s2, %s11631_s21  ;;  %p11635_p9 = scmp.lt.u32.totalorder %s11631_s21, %s13338_s2 }
  0x17   :  { %p11637_p10 = pnand %p11635_p9, %p11632_p8 }
  0x19   :  { %11640 = shalt.err (!%p11637_p10)
}
  0x1a   :  { %s11641_s28 = scalar_lea.vmem %s11778_s24, 3072  ;;  %p11646_p12 = scmp.lt.s32.totalorder %s11778_s24, %s11778_s24 }
  0x1b   :  { %p11642_p11 = scmp.ne.s32.totalorder %s11778_s24, %s11641_s28  ;;  %p11647_p13 = scmp.lt.s32.totalorder %s11641_s28, %s11641_s28 }
  0x1d   :  { %p11648_p0 = por %p11647_p13, %p11646_p12 }
  0x1f   :  { %p11649_p1 = pnand %p11648_p0, %p11642_p11 }
  0x21   :  { %11652 = shalt.err (!%p11649_p1)
}
  0x22   :  { %36 = dma.hbm_to_vmem [thread:$0]  %s13338_s2, 3072, %s11778_s24, [#allocation3], %s11705_s15, %s11705_s15, %s11706_s16  }
  0x23   :  { %s11707_s29 = smov [#allocation7]   ;;  %s11653_s17 = scalar_lea.hbm %s13341_s5, 3072 }
  0x24   :  { %s56_s30 = sshll.u32 %s11707_s29, 4  ;;  %p11654_p2 = scmp.ne.s32.totalorder %s13341_s5, %s11653_s17  ;;  %s57_s30 = int_to_ptr.vmem [resolvable:$true] %s56_s30 }
  0x25   :  { %p11657_p3 = scmp.lt.u32.totalorder %s11653_s17, %s13341_s5 }
  0x27   :  { %p11659_p4 = pnand %p11657_p3, %p11654_p2 }
  0x29   :  { %11662 = shalt.err (!%p11659_p4)
}
  0x2a   :  { %s11663_s23 = scalar_lea.vmem %s57_s30, 3072  ;;  %p11668_p6 = scmp.lt.s32.totalorder %s57_s30, %s57_s30 }
  0x2b   :  { %p11664_p5 = scmp.ne.s32.totalorder %s57_s30, %s11663_s23  ;;  %p11669_p7 = scmp.lt.s32.totalorder %s11663_s23, %s11663_s23 }
  0x2d   :  { %p11670_p8 = por %p11669_p7, %p11668_p6 }
  0x2f   :  { %p11671_p9 = pnand %p11670_p8, %p11664_p5 }
  0x31   :  { %11674 = shalt.err (!%p11671_p9)
}
  0x32   :  { %62 = dma.hbm_to_vmem [thread:$0]  %s13341_s5, 3072, %s57_s30, [#allocation6], %s11705_s15, %s11705_s15, %s11706_s16  }
  0x33   :  { %11697 = dma.done.wait [#allocation3], 3072  }
  0x34   :  { %11698 = vsyncadd [#allocation3], 4294964224 }
  0x35   :  { %11699 = dma.done.wait [#allocation6], 6144  }
  0x36   :  { %11700 = vsyncadd [#allocation6], 4294961152  ;;  %vm100_vm0 = vcmask 1045504   ;;  %vm87_vm1 = vcmask 48128   ;;  %v86_v0 = vld [vmem:[%s13337_s1] sm:$0x3f] }
  0x37   :  { %v8210_v1 = vld [vmem:[%s13337_s1 + $0x8] sm:$0x3f]  ;;  %v82_v2 = vld [vmem:[%s13336_s0] sm:$0xff]  ;;  %8839 = vmatprep.subr.msk.mxu0 %vm100_vm0, %v86_v0  ;;  %v8218_v4 = vld [vmem:[%s13337_s1 + $0x10] sm:$0x3f]  ;;  %v13351_v15 = vmov 0.0|0.0  }
  0x38   :  { %8847 = vmatprep.subr.msk.mxu1 %vm100_vm0, %v8210_v1  ;;  %v83_v3 = vld [vmem:[%s13336_s0 + $0x8] sm:$0xff]  ;;  %8840 = vmatpush3.msk.msra.mxu0 %vm100_vm0, %v86_v0  ;;  %v8226_v5 = vld [vmem:[%s13337_s1 + $0x18] sm:$0x3f]  ;;  %v84_v6 = vld [vmem:[%s13336_s0 + $0x10] sm:$0xff]  ;;  %vm11709_vm2 = vmmov 0   ;;  %v13349_v31 = vmov 0.0  }
  0x39   :  { %8841 = vmatprep.mubr.msk.f32.mxu0 %vm87_vm1, %v82_v2  ;;  %8848 = vmatpush3.msk.msra.mxu1 %vm100_vm0, %v8210_v1  ;;  %v85_v7 = vld [vmem:[%s13336_s0 + $0x18] sm:$0xff]  ;;  %v506_v8 = vld [vmem:[#allocation2] sm:$0xff]  ;;  %v507_v9 = vld [vmem:[#allocation2 + $0x8] sm:$0xff]  ;;  %vm954_vm3 = vcmask 1041409   ;;  %vm957_vm4 = vcmask 1042434   ;;  %vm960_vm5 = vcmask 1043459  }
  0x3a   :  { %8849 = vmatprep.mubr.msk.f32.mxu1 %vm87_vm1, %v82_v2  ;;  %8842 = vmatmul.mubr.msk.f32.vlgmr.msra.gmra.mrb[0].mxu0 %vm87_vm1, %v83_v3  ;;  %v513_v10 = vld [vmem:[#allocation2 + $0x30] sm:$0xff]  ;;  %v514_v11 = vld [vmem:[#allocation2 + $0x38] sm:$0xff]  ;;  %v11872_v12 = vpack.c.bf16 %v507_v9, %v506_v8  ;;  %v515_v17 = vld [vmem:[#allocation2 + $0x40] sm:$0xff]  ;;  %vm533_vm6 = vcmask 392192   ;;  %vm4023_vm7 = vcmask 1040384   ;;  %vm4028_vm8 = vcmask 1041408  }
  0x3b   :  { %8850 = vmatmul.mubr.msk.f32.vlgmr.msra.gmra.mrb[0].mxu1 %vm87_vm1, %v83_v3  ;;  %8855 = vmatprep.subr.msk.mxu0 %vm100_vm0, %v8218_v4  ;;  %v11874_v13 = vpack.c.bf16 %v514_v11, %v513_v10  ;;  %v508_v14 = vld [vmem:[#allocation2 + $0x10] sm:$0xff]  ;;  %v509_v16 = vld [vmem:[#allocation2 + $0x18] sm:$0xff]  ;;  %v516_v18 = vld [vmem:[#allocation2 + $0x48] sm:$0xff]  ;;  %vm4033_vm9 = vcmask 1042432   ;;  %vm4038_vm10 = vcmask 1043456   ;;  %vm4043_vm11 = vcmask 1044480  }
  0x3c   :  { %8863 = vmatprep.subr.msk.mxu1 %vm100_vm0, %v8226_v5  ;;  %8856 = vmatpush3.msk.msra.mxu0 %vm100_vm0, %v8218_v4  ;;  %v11882_v19 = vpack.c.bf16 %v509_v16, %v508_v14  ;;  %v11884_v20 = vpack.c.bf16 %v516_v18, %v515_v17  ;;  %v510_v21 = vld [vmem:[#allocation2 + $0x20] sm:$0xff]  ;;  %v511_v22 = vld [vmem:[#allocation2 + $0x28] sm:$0xff]  ;;  %v517_v23 = vld [vmem:[#allocation2 + $0x50] sm:$0xff]  ;;  %vm4052_vm12 = vcmask 1046528   ;;  %s11711_s29 = smov [#allocation8]   ;;  %vm8176_vm13 = vcmask 19456  }
  0x3d   :  { %8864 = vmatpush3.msk.msra.mxu1 %vm100_vm0, %v8226_v5  ;;  %8844 = vmatprep.mubr.msk.f32.mxu0 %vm87_vm1, %v84_v6  ;;  %v518_v24 = vld [vmem:[#allocation2 + $0x58] sm:$0xff]  ;;  %v11894_v25 = vpack.c.bf16 %v511_v22, %v510_v21  ;;  %v520_v27 = vld [vmem:[#allocation2 + $0x60] sm:$0xff]  ;;  %v521_v28 = vld [vmem:[#allocation2 + $0x68] sm:$0xff]  ;;  %s8190_s30 = sshll.u32 %s11711_s29, 4  ;;  %s8191_s30 = int_to_ptr.vmem [resolvable:$true] %s8190_s30 }
  0x3e   :  { %8852 = vmatprep.mubr.msk.f32.mxu1 %vm87_vm1, %v84_v6  ;;  %8845 = vmatmul.mubr.msk.f32.gmra.mrb[2].mxu0 %vm87_vm1, %v85_v7  ;;  %v11896_v26 = vpack.c.bf16 %v518_v24, %v517_v23  ;;  %v527_v29 = vld [vmem:[#allocation2 + $0x90] sm:$0xff]  ;;  %v528_v30 = vld [vmem:[#allocation2 + $0x98] sm:$0xff]  ;;  %v11906_v32 = vpack.c.bf16 %v521_v28, %v520_v27  ;;  %v529_v36 = vld [vmem:[#allocation2 + $0xa0] sm:$0xff]  ;;  %p11680_p11 = scmp.lt.s32.totalorder %s8191_s30, %s8191_s30 }
  0x3f   :  { %8853 = vmatmul.mubr.msk.f32.gmra.mrb[2].mxu1 %vm87_vm1, %v85_v7  ;;  %8857 = vmatprep.mubr.msk.f32.mxu0 %vm87_vm1, %v82_v2  ;;  %v11908_v33 = vpack.c.bf16 %v528_v30, %v527_v29  ;;  %v522_v34 = vld [vmem:[#allocation2 + $0x70] sm:$0xff]  ;;  %v523_v35 = vld [vmem:[#allocation2 + $0x78] sm:$0xff]  ;;  %v530_v37 = vld [vmem:[#allocation2 + $0xa8] sm:$0xff] }
  0x40   :  { %8865 = vmatprep.mubr.msk.f32.mxu1 %vm87_vm1, %v82_v2  ;;  %9933 = vmatprep.subr.bf16.mxu0 %v13351_v15  ;;  %v11916_v38 = vpack.c.bf16 %v523_v35, %v522_v34  ;;  %v11918_v39 = vpack.c.bf16 %v530_v37, %v529_v36  ;;  %v524_v40 = vld [vmem:[#allocation2 + $0x80] sm:$0xff]  ;;  %v525_v41 = vld [vmem:[#allocation2 + $0x88] sm:$0xff]  ;;  %v531_v42 = vld [vmem:[#allocation2 + $0xb0] sm:$0xff] }
  0x41   :  { %9942 = vmatprep.subr.bf16.mxu1 %v13351_v15  ;;  %v532_v43 = vld [vmem:[#allocation2 + $0xb8] sm:$0xff]  ;;  %v11928_v44 = vpack.c.bf16 %v525_v41, %v524_v40  ;;  %v8209_v62 = vld [vmem:[%s13339_s3] ss:$0 sm:$0xff]  ;;  %v8217_v63 = vld [vmem:[%s13339_s3 + $0x1] ss:$0 sm:$0xff] }
  0x42   :  { %8858 = vmatmul.mubr.msk.f32.vlgmr.msra.gmra.mrb[4].mxu0 %vm87_vm1, %v83_v3  ;;  %v11930_v45 = vpack.c.bf16 %v532_v43, %v531_v42 }
  0x43   :  { %8866 = vmatmul.mubr.msk.f32.vlgmr.msra.gmra.mrb[4].mxu1 %vm87_vm1, %v83_v3  ;;  %9935 = vmatpush3.bf16.msra.mxu0 %v11872_v12 }
  0x44   :  { %9944 = vmatpush3.bf16.msra.mxu1 %v11874_v13  ;;  %9936 = vmatprep.subr.bf16.mxu0 %v13351_v15 }
  0x45   :  { %9945 = vmatprep.subr.bf16.mxu1 %v13351_v15  ;;  %8860 = vmatprep.mubr.msk.f32.mxu0 %vm87_vm1, %v84_v6 }
  0x46   :  { %8868 = vmatprep.mubr.msk.f32.mxu1 %vm87_vm1, %v84_v6  ;;  %8861 = vmatmul.mubr.msk.f32.gmra.mrb[6].mxu0 %vm87_vm1, %v85_v7 }
  0x47   :  { %8869 = vmatmul.mubr.msk.f32.gmra.mrb[6].mxu1 %vm87_vm1, %v85_v7  ;;  %9938 = vmatpush3.bf16.msra.mxu0 %v11882_v19 }
  0x48   :  { %9947 = vmatpush3.bf16.msra.mxu1 %v11884_v20  ;;  %9939 = vmatprep.subr.bf16.mxu0 %v13351_v15 }
  0x49   :  { %9948 = vmatprep.subr.bf16.mxu1 %v13351_v15  ;;  %8883 = vmatprep.mubr.msk.f32.mxu0 %vm11709_vm2, %v13349_v31 }
  0x4a   :  { %8898 = vmatprep.mubr.msk.f32.mxu1 %vm11709_vm2, %v13349_v31 }
  0x4b   :  { %9941 = vmatpush3.bf16.msra.mxu0 %v11894_v25 }
  0x4c   :  { %9950 = vmatpush3.bf16.msra.mxu1 %v11896_v26  ;;  %9951 = vmatprep.subr.bf16.mxu0 %v13351_v15 }
  0x4d   :  { %9960 = vmatprep.subr.bf16.mxu1 %v13351_v15 }
  0x4e   :  { %8884 = vmatmul.mubr.f32.vlgmr.msra.gmra.mrb[8].mxu0 %v13349_v31 }
  0x4f   :  { %8899 = vmatmul.mubr.f32.vlgmr.msra.gmra.mrb[8].mxu1 %v13349_v31  ;;  %9953 = vmatpush3.bf16.msra.mxu0 %v11906_v32 }
  0x50   :  { %9962 = vmatpush3.bf16.msra.mxu1 %v11908_v33  ;;  %9954 = vmatprep.subr.bf16.mxu0 %v13351_v15 }
  0x51   :  { %9963 = vmatprep.subr.bf16.mxu1 %v13351_v15  ;;  %8913 = vmatprep.mubr.msk.f32.mxu0 %vm11709_vm2, %v13349_v31 }
  0x52   :  { %8928 = vmatprep.mubr.msk.f32.mxu1 %vm11709_vm2, %v13349_v31 }
  0x53   :  { %9956 = vmatpush3.bf16.msra.mxu0 %v11916_v38 }
  0x54   :  { %9965 = vmatpush3.bf16.msra.mxu1 %v11918_v39  ;;  %9957 = vmatprep.subr.bf16.mxu0 %v13351_v15 }
  0x55   :  { %9966 = vmatprep.subr.bf16.mxu1 %v13351_v15 }
  0x57   :  { %9959 = vmatpush3.bf16.msra.mxu0 %v11928_v44 }
  0x58   :  { %9968 = vmatpush3.bf16.msra.mxu1 %v11930_v45  ;;  %9969 = vmatprep.subr.bf16.mxu0 %v13351_v15 }
  0x59   :  { %9978 = vmatprep.subr.bf16.mxu1 %v13351_v15 }
  0x5a   :  { %8914 = vmatmul.mubr.f32.vlgmr.msra.gmra.mrb[10].mxu0 %v13349_v31 }
  0x5b   :  { %8929 = vmatmul.mubr.f32.vlgmr.msra.gmra.mrb[10].mxu1 %v13349_v31  ;;  %9971 = vmatpush3.bf16.msra.mxu0 %v11872_v12 }
  0x5c   :  { %9980 = vmatpush3.bf16.msra.mxu1 %v11874_v13  ;;  %9972 = vmatprep.subr.bf16.mxu0 %v13351_v15 }
  0x5d   :  { %9981 = vmatprep.subr.bf16.mxu1 %v13351_v15  ;;  %8943 = vmatprep.mubr.msk.f32.mxu0 %vm11709_vm2, %v13349_v31 }
  0x5e   :  { %8958 = vmatprep.mubr.msk.f32.mxu1 %vm11709_vm2, %v13349_v31 }
  0x5f   :  { %9974 = vmatpush3.bf16.msra.mxu0 %v11882_v19 }
  0x60   :  { %9983 = vmatpush3.bf16.msra.mxu1 %v11884_v20  ;;  %9975 = vmatprep.subr.bf16.mxu0 %v13351_v15 }
  0x61   :  { %9984 = vmatprep.subr.bf16.mxu1 %v13351_v15 }
  0x63   :  { %9977 = vmatpush3.bf16.msra.mxu0 %v11894_v25 }
  0x64   :  { %9986 = vmatpush3.bf16.msra.mxu1 %v11896_v26  ;;  %9987 = vmatprep.subr.bf16.mxu0 %v13351_v15 }
  0x65   :  { %9996 = vmatprep.subr.bf16.mxu1 %v13351_v15 }
 0x10d   :  { %v8843_v46 = vpop.f32.mrb[0].mxu0 }
 0x10e   :  { %v8851_v47 = vpop.f32.mrb[0].mxu1  ;;  %v170_v48 = vpop.f32.mrb[1].mxu0  ;;  %v11966_v0 = vadd.f32 %v8843_v46, %v8209_v62 }
 0x10f   :  { %v271_v49 = vpop.f32.mrb[1].mxu1  ;;  %v11968_v1 = vadd.f32 %v8851_v47, %v8217_v63  ;;  %v11970_v2 = vadd.f32 %v8209_v62, %v170_v48 }
 0x110   :  { %v11972_v3 = vadd.f32 %v8217_v63, %v271_v49 }
 0x111   :  { %v8846_v50 = vpop.f32.mrb[2].mxu0 }
 0x112   :  { %v8854_v51 = vpop.f32.mrb[2].mxu1  ;;  %v180_v52 = vpop.f32.mrb[3].mxu0  ;;  %v11974_v4 = vadd.f32 %v8846_v50, %v8209_v62 }
 0x113   :  { %v281_v53 = vpop.f32.mrb[3].mxu1  ;;  %v11976_v5 = vadd.f32 %v8854_v51, %v8217_v63  ;;  %v11978_v6 = vadd.f32 %v8209_v62, %v180_v52  ;;  %v8233_v62 = vld [vmem:[%s13339_s3 + $0x3] ss:$0 sm:$0xff] }
 0x114   :  { %v11980_v7 = vadd.f32 %v8217_v63, %v281_v53  ;;  %v8225_v53 = vld [vmem:[%s13339_s3 + $0x2] ss:$0 sm:$0xff] }
 0x115   :  { %v8859_v54 = vpop.f32.mrb[4].mxu0 }
 0x116   :  { %v8867_v55 = vpop.f32.mrb[4].mxu1  ;;  %v373_v56 = vpop.f32.mrb[5].mxu0 }
 0x117   :  { %v475_v57 = vpop.f32.mrb[5].mxu1 }
 0x119   :  { %v8862_v58 = vpop.f32.mrb[6].mxu0 }
 0x11a   :  { %v11956_v59 = vpop.f32.mrb[6].mxu1  ;;  %v383_v60 = vpop.f32.mrb[7].mxu0 }
 0x11b   :  { %v11958_v61 = vpop.f32.mrb[7].mxu1 }
 0x121   :  { %v603_v8 = vpop.f32.mrb[8].mxu0 }
 0x122   :  { %v685_v9 = vpop.f32.mrb[8].mxu1  ;;  %v608_v10 = vrot.slane %v603_v8, 1  ;;  %v609_v11 = vrot.slane %v603_v8, 2  ;;  %v610_v14 = vrot.slane %v603_v8, 3  ;;  %v615_v16 = vadd.f32 %v603_v8, %v11970_v2  ;;  %v8885_v17 = vpop.f32.mrb[9].mxu0 }
 0x123   :  { %v8900_v18 = vpop.f32.mrb[9].mxu1  ;;  %v690_v21 = vrot.slane %v685_v9, 1  ;;  %v691_v22 = vrot.slane %v685_v9, 2  ;;  %v692_v23 = vrot.slane %v685_v9, 3  ;;  %v697_v24 = vadd.f32 %v685_v9, %v11972_v3 }
 0x124   :  { %v616_v27 = vadd.f32 %v608_v10, %v11966_v0  ;;  %v617_v28 = vadd.f32 %v609_v11, %v11978_v6  ;;  %v618_v29 = vadd.f32 %v610_v14, %v11974_v4  ;;  %v889_v30 = vsub.f32 0.0, %v615_v16 }
 0x125   :  { %v698_v34 = vadd.f32 %v690_v21, %v11968_v1  ;;  %v699_v35 = vadd.f32 %v691_v22, %v11980_v7  ;;  %v700_v36 = vadd.f32 %v692_v23, %v11976_v5  ;;  %v865_v37 = vsub.f32 0.0, %v697_v24 }
 0x126   :  { %v890_v40 = vsub.f32 0.0, %v616_v27  ;;  %v891_v41 = vsub.f32 0.0, %v617_v28  ;;  %v892_v42 = vsub.f32 0.0, %v618_v29  ;;  %v893_v43 = vmul.f32 1.442695, %v889_v30 }
 0x127   :  { %v866_v46 = vsub.f32 0.0, %v698_v34  ;;  %v867_v47 = vsub.f32 0.0, %v699_v35  ;;  %v868_v48 = vsub.f32 0.0, %v700_v36  ;;  %v869_v49 = vmul.f32 1.442695, %v865_v37 }
 0x128   :  { %10585 = vpow2.f32 %v893_v43  ;;  %v895_v50 = vmul.f32 1.442695, %v890_v40  ;;  %v897_v51 = vmul.f32 1.442695, %v891_v41  ;;  %v899_v52 = vmul.f32 1.442695, %v892_v42 }
 0x129   :  { %10587 = vpow2.f32 %v869_v49  ;;  %v871_v63 = vmul.f32 1.442695, %v866_v46  ;;  %v873_v8 = vmul.f32 1.442695, %v867_v47  ;;  %v875_v9 = vmul.f32 1.442695, %v868_v48 }
 0x12a   :  { %10589 = vpow2.f32 %v895_v50  ;;  %v11996_v10 = vadd.f32 %v8859_v54, %v8225_v53  ;;  %v11998_v11 = vadd.f32 %v8867_v55, %v8233_v62  ;;  %v12000_v14 = vadd.f32 %v8225_v53, %v373_v56 }
 0x12b   :  { %10591 = vpow2.f32 %v897_v51  ;;  %v12002_v16 = vadd.f32 %v8233_v62, %v475_v57  ;;  %v12004_v17 = vadd.f32 %v8862_v58, %v8225_v53  ;;  %v12006_v18 = vadd.f32 %v8225_v53, %v383_v60 }
 0x12c   :  { %10593 = vpow2.f32 %v899_v52  ;;  %v12013_v34 = vadd.f32 %v8233_v62, %v11958_v61  ;;  %v12017_v37 = vadd.f32 %v11956_v59, %v8233_v62 }
 0x12d   :  { %10595 = vpow2.f32 %v871_v63  ;;  %v767_v21 = vpop.f32.mrb[10].mxu0 }
 0x12e   :  { %v849_v22 = vpop.f32.mrb[10].mxu1  ;;  %10597 = vpow2.f32 %v873_v8  ;;  %v772_v23 = vrot.slane %v767_v21, 1  ;;  %v773_v24 = vrot.slane %v767_v21, 2  ;;  %v774_v27 = vrot.slane %v767_v21, 3  ;;  %v8915_v28 = vpop.f32.mrb[11].mxu0 }
 0x12f   :  { %v8930_v54 = vpop.f32.mrb[11].mxu1  ;;  %10599 = vpow2.f32 %v875_v9  ;;  %v779_v55 = vadd.f32 %v767_v21, %v12000_v14  ;;  %v854_v56 = vrot.slane %v849_v22, 1  ;;  %v855_v29 = vrot.slane %v849_v22, 2 }
 0x130   :  { %v780_v57 = vadd.f32 %v772_v23, %v11996_v10  ;;  %v781_v58 = vadd.f32 %v773_v24, %v12006_v18  ;;  %v782_v60 = vadd.f32 %v774_v27, %v12004_v17  ;;  %v856_v30 = vrot.slane %v849_v22, 3 }
 0x131   :  { %10601 = vtanh.f32 %v779_v55  ;;  %v861_v35 = vadd.f32 %v849_v22, %v12002_v16  ;;  %v862_v40 = vadd.f32 %v854_v56, %v11998_v11  ;;  %v863_v43 = vadd.f32 %v855_v29, %v12013_v34 }
 0x132   :  { %v10586_v36 = vpop.eup %10585  ;;  %10603 = vtanh.f32 %v780_v57  ;;  %v864_v61 = vadd.f32 %v856_v30, %v12017_v37 }
 0x133   :  { %v10588_v41 = vpop.eup %10587  ;;  %v901_v42 = vadd.f32 1.0, %v10586_v36  ;;  %10605 = vtanh.f32 %v781_v58  ;;  %v921_v50 = vsub.f32 0.0, %v861_v35  ;;  %v922_v52 = vsub.f32 0.0, %v862_v40 }
 0x134   :  { %v10590_v46 = vpop.eup %10589  ;;  %v877_v47 = vadd.f32 1.0, %v10588_v41  ;;  %10607 = vtanh.f32 %v782_v60  ;;  %v923_v63 = vsub.f32 0.0, %v863_v43  ;;  %v924_v21 = vsub.f32 0.0, %v864_v61 }
 0x135   :  { %v10592_v48 = vpop.eup %10591  ;;  %v902_v49 = vadd.f32 1.0, %v10590_v46  ;;  %10609 = vrcp.f32 %v901_v42  ;;  %v925_v24 = vmul.f32 1.442695, %v921_v50  ;;  %v927_v54 = vmul.f32 1.442695, %v922_v52 }
 0x136   :  { %v10594_v51 = vpop.eup %10593  ;;  %v903_v59 = vadd.f32 1.0, %v10592_v48  ;;  %10611 = vrcp.f32 %v877_v47  ;;  %v929_v55 = vmul.f32 1.442695, %v923_v63  ;;  %v931_v29 = vmul.f32 1.442695, %v924_v21 }
 0x137   :  { %v10596_v53 = vpop.eup %10595  ;;  %v904_v62 = vadd.f32 1.0, %v10594_v51  ;;  %10613 = vrcp.f32 %v902_v49 }
 0x138   :  { %v10598_v8 = vpop.eup %10597  ;;  %10615 = vrcp.f32 %v903_v59  ;;  %v878_v9 = vadd.f32 1.0, %v10596_v53 }
 0x139   :  { %v10600_v22 = vpop.eup %10599  ;;  %10617 = vrcp.f32 %v904_v62  ;;  %v879_v23 = vadd.f32 1.0, %v10598_v8 }
 0x13a   :  { %v880_v27 = vadd.f32 1.0, %v10600_v22  ;;  %10619 = vrcp.f32 %v878_v9 }
 0x13b   :  { %v10602_v28 = vpop.eup %10601  ;;  %10621 = vrcp.f32 %v879_v23 }
 0x13c   :  { %v10604_v56 = vpop.eup %10603  ;;  %10623 = vrcp.f32 %v880_v27 }
 0x13d   :  { %v10606_v57 = vpop.eup %10605  ;;  %10625 = vpow2.f32 %v925_v24 }
 0x13e   :  { %v10608_v58 = vpop.eup %10607  ;;  %10627 = vpow2.f32 %v927_v54 }
 0x13f   :  { %v10610_v60 = vpop.eup %10609  ;;  %10629 = vpow2.f32 %v929_v55 }
 0x140   :  { %v10612_v30 = vpop.eup %10611  ;;  %v913_v35 = vmul.f32 %v10610_v60, %v10602_v28  ;;  %10631 = vpow2.f32 %v931_v29 }
 0x141   :  { %v10614_v36 = vpop.eup %10613  ;;  %v885_v40 = vmul.f32 0.0, %v10612_v30 }
 0x142   :  { %v10616_v41 = vpop.eup %10615  ;;  %v914_v42 = vmul.f32 %v10614_v36, %v10604_v56 }
 0x143   :  { %v10618_v43 = vpop.eup %10617  ;;  %v915_v46 = vmul.f32 %v10616_v41, %v10606_v57  ;;  %v12022_v47 = vadd.f32 %v913_v35, %v885_v40 }
 0x144   :  { %v10620_v61 = vpop.eup %10619  ;;  %v916_v48 = vmul.f32 %v10618_v43, %v10608_v58 }
 0x145   :  { %v10622_v49 = vpop.eup %10621  ;;  %v886_v50 = vmul.f32 0.0, %v10620_v61  ;;  %10633 = vtanh.f32 %v12022_v47 }
 0x146   :  { %v10624_v51 = vpop.eup %10623  ;;  %v887_v59 = vmul.f32 0.0, %v10622_v49 }
 0x147   :  { %v10626_v52 = vpop.eup %10625  ;;  %v888_v53 = vmul.f32 0.0, %v10624_v51  ;;  %v12024_v62 = vadd.f32 %v914_v42, %v886_v50 }
 0x148   :  { %v10628_v63 = vpop.eup %10627  ;;  %v12026_v8 = vadd.f32 %v915_v46, %v887_v59  ;;  %v933_v9 = vadd.f32 1.0, %v10626_v52 }
 0x149   :  { %v10630_v21 = vpop.eup %10629  ;;  %v12029_v22 = vadd.f32 %v916_v48, %v888_v53  ;;  %10635 = vtanh.f32 %v12024_v62  ;;  %v934_v23 = vadd.f32 1.0, %v10628_v63 }
 0x14a   :  { %v10632_v24 = vpop.eup %10631  ;;  %10637 = vtanh.f32 %v12026_v8  ;;  %v935_v27 = vadd.f32 1.0, %v10630_v21 }
 0x14b   :  { %v936_v54 = vadd.f32 1.0, %v10632_v24  ;;  %10639 = vrcp.f32 %v933_v9 }
 0x14c   :  { %10641 = vrcp.f32 %v934_v23 }
 0x14d   :  { %10643 = vrcp.f32 %v935_v27 }
 0x14e   :  { %10645 = vrcp.f32 %v936_v54 }
 0x14f   :  { %10647 = vtanh.f32 %v12029_v22  ;;  %v10634_v28 = vpop.eup %10633 }
 0x153   :  { %v10636_v55 = vpop.eup %10635 }
 0x154   :  { %v10638_v56 = vpop.eup %10637 }
 0x155   :  { %v10640_v29 = vpop.eup %10639 }
 0x156   :  { %v10642_v57 = vpop.eup %10641  ;;  %v12034_v58 = vmul.f32 %v10640_v29, %v10634_v28 }
 0x157   :  { %v10644_v60 = vpop.eup %10643  ;;  %v12036_v30 = vmul.f32 %v10642_v57, %v10636_v55 }
 0x158   :  { %v10646_v35 = vpop.eup %10645  ;;  %v12038_v36 = vmul.f32 %v10644_v60, %v10638_v56 }
 0x159   :  { %v10648_v40 = vpop.eup %10647  ;;  %v953_v41 = vrot.slane %v12036_v30, 7 }
 0x15a   :  { %v12041_v42 = vmul.f32 %v10648_v40, %v10646_v35  ;;  %v956_v43 = vrot.slane %v12038_v36, 6 }
 0x15b   :  { %v955_v46 = vsel %vm954_vm3, %v953_v41, %v12034_v58 }
 0x15c   :  { %v958_v61 = vsel %vm957_vm4, %v956_v43, %v955_v46  ;;  %v959_v48 = vrot.slane %v12041_v42, 5 }
 0x15e   :  { %v961_v49 = vsel %vm960_vm5, %v959_v48, %v958_v61 }
 0x15f   :  { %8944 = vmatmul.mubr.msk.f32.vlgmr.msra.gmra.mrb[12].mxu0 %vm533_vm6, %v961_v49  ;;  %8959 = vmatmul.mubr.msk.f32.vlgmr.msra.gmra.mrb[12].mxu1 %vm533_vm6, %v961_v49 }
 0x160   :  { %9989 = vmatpush3.bf16.msra.mxu0 %v11906_v32  ;;  %9998 = vmatpush3.bf16.msra.mxu1 %v11908_v33 }
 0x161   :  { %9990 = vmatprep.subr.bf16.mxu0 %v13351_v15  ;;  %9999 = vmatprep.subr.bf16.mxu1 %v13351_v15 }
 0x162   :  { %8973 = vmatprep.mubr.msk.f32.mxu0 %vm11709_vm2, %v13349_v31  ;;  %8988 = vmatprep.mubr.msk.f32.mxu1 %vm11709_vm2, %v13349_v31 }
 0x164   :  { %9992 = vmatpush3.bf16.msra.mxu0 %v11916_v38  ;;  %10001 = vmatpush3.bf16.msra.mxu1 %v11918_v39 }
 0x165   :  { %9993 = vmatprep.subr.bf16.mxu0 %v13351_v15  ;;  %10002 = vmatprep.subr.bf16.mxu1 %v13351_v15 }
 0x168   :  { %9995 = vmatpush3.bf16.msra.mxu0 %v11928_v44  ;;  %10004 = vmatpush3.bf16.msra.mxu1 %v11930_v45 }
 0x169   :  { %10005 = vmatprep.subr.bf16.mxu0 %v13351_v15  ;;  %10014 = vmatprep.subr.bf16.mxu1 %v13351_v15 }
 0x16b   :  { %8974 = vmatmul.mubr.msk.f32.vlgmr.msra.gmra.mrb[14].mxu0 %vm533_vm6, %v961_v49  ;;  %8989 = vmatmul.mubr.msk.f32.vlgmr.msra.gmra.mrb[14].mxu1 %vm533_vm6, %v961_v49 }
 0x16c   :  { %10007 = vmatpush3.bf16.msra.mxu0 %v11872_v12  ;;  %10016 = vmatpush3.bf16.msra.mxu1 %v11874_v13 }
 0x16d   :  { %10008 = vmatprep.subr.bf16.mxu0 %v13351_v15  ;;  %10017 = vmatprep.subr.bf16.mxu1 %v13351_v15 }
 0x16e   :  { %9003 = vmatprep.mubr.msk.f32.mxu0 %vm11709_vm2, %v13349_v31  ;;  %9018 = vmatprep.mubr.msk.f32.mxu1 %vm11709_vm2, %v13349_v31 }
 0x170   :  { %10010 = vmatpush3.bf16.msra.mxu0 %v11882_v19  ;;  %10019 = vmatpush3.bf16.msra.mxu1 %v11884_v20 }
 0x171   :  { %10011 = vmatprep.subr.bf16.mxu0 %v13351_v15  ;;  %10020 = vmatprep.subr.bf16.mxu1 %v13351_v15 }
 0x174   :  { %10013 = vmatpush3.bf16.msra.mxu0 %v11894_v25  ;;  %10022 = vmatpush3.bf16.msra.mxu1 %v11896_v26 }
 0x175   :  { %10023 = vmatprep.subr.bf16.mxu0 %v13351_v15  ;;  %10032 = vmatprep.subr.bf16.mxu1 %v13351_v15 }
 0x232   :  { %v1030_v50 = vpop.f32.mrb[12].mxu0  ;;  %v1112_v51 = vpop.f32.mrb[12].mxu1 }
 0x233   :  { %v1035_v59 = vrot.slane %v1030_v50, 7  ;;  %v1036_v52 = vrot.slane %v1030_v50, 1  ;;  %v1037_v53 = vrot.slane %v1030_v50, 2  ;;  %v1043_v63 = vadd.f32 %v1030_v50, %v11966_v0  ;;  %v8945_v9 = vpop.f32.mrb[13].mxu0  ;;  %v8960_v21 = vpop.f32.mrb[13].mxu1 }
 0x234   :  { %v1117_v23 = vrot.slane %v1112_v51, 7  ;;  %v1118_v24 = vrot.slane %v1112_v51, 1  ;;  %v1119_v27 = vrot.slane %v1112_v51, 2  ;;  %v1125_v54 = vadd.f32 %v1112_v51, %v11968_v1 }
 0x235   :  { %v1042_v28 = vadd.f32 %v1035_v59, %v11970_v2  ;;  %v1044_v55 = vadd.f32 %v1036_v52, %v11978_v6  ;;  %v1045_v56 = vadd.f32 %v1037_v53, %v11974_v4  ;;  %v1329_v29 = vsub.f32 0.0, %v1043_v63 }
 0x236   :  { %v1124_v57 = vadd.f32 %v1117_v23, %v11972_v3  ;;  %v1126_v60 = vadd.f32 %v1118_v24, %v11980_v7  ;;  %v1127_v35 = vadd.f32 %v1119_v27, %v11976_v5  ;;  %v1293_v40 = vsub.f32 0.0, %v1125_v54 }
 0x237   :  { %v1328_v41 = vsub.f32 0.0, %v1042_v28  ;;  %v1330_v43 = vsub.f32 0.0, %v1044_v55  ;;  %v1331_v46 = vsub.f32 0.0, %v1045_v56  ;;  %v1334_v61 = vmul.f32 1.442695, %v1329_v29 }
 0x238   :  { %v1292_v48 = vsub.f32 0.0, %v1124_v57  ;;  %v1294_v49 = vsub.f32 0.0, %v1126_v60  ;;  %v1295_v50 = vsub.f32 0.0, %v1127_v35  ;;  %v1298_v51 = vmul.f32 1.442695, %v1293_v40 }
 0x239   :  { %v1332_v59 = vmul.f32 1.442695, %v1328_v41  ;;  %10649 = vpow2.f32 %v1334_v61  ;;  %v1336_v52 = vmul.f32 1.442695, %v1330_v43  ;;  %v1338_v53 = vmul.f32 1.442695, %v1331_v46 }
 0x23a   :  { %v1296_v63 = vmul.f32 1.442695, %v1292_v48  ;;  %10651 = vpow2.f32 %v1298_v51  ;;  %v1300_v9 = vmul.f32 1.442695, %v1294_v49  ;;  %v1302_v21 = vmul.f32 1.442695, %v1295_v50 }
 0x23b   :  { %10653 = vpow2.f32 %v1332_v59 }
 0x23c   :  { %10655 = vpow2.f32 %v1336_v52 }
 0x23d   :  { %10657 = vpow2.f32 %v1338_v53 }
 0x23e   :  { %10659 = vpow2.f32 %v1296_v63  ;;  %v1194_v23 = vpop.f32.mrb[14].mxu0  ;;  %v1276_v24 = vpop.f32.mrb[14].mxu1 }
 0x23f   :  { %10661 = vpow2.f32 %v1300_v9  ;;  %v1199_v27 = vrot.slane %v1194_v23, 7  ;;  %v1200_v54 = vrot.slane %v1194_v23, 1  ;;  %v1201_v28 = vrot.slane %v1194_v23, 2  ;;  %v8975_v55 = vpop.f32.mrb[15].mxu0  ;;  %v8990_v56 = vpop.f32.mrb[15].mxu1 }
 0x240   :  { %10663 = vpow2.f32 %v1302_v21  ;;  %v1207_v29 = vadd.f32 %v1194_v23, %v11996_v10  ;;  %v1281_v57 = vrot.slane %v1276_v24, 7  ;;  %v1282_v60 = vrot.slane %v1276_v24, 1 }
 0x241   :  { %v1206_v35 = vadd.f32 %v1199_v27, %v12000_v14  ;;  %v1208_v40 = vadd.f32 %v1200_v54, %v12006_v18  ;;  %v1209_v41 = vadd.f32 %v1201_v28, %v12004_v17  ;;  %v1283_v43 = vrot.slane %v1276_v24, 2 }
 0x242   :  { %10665 = vtanh.f32 %v1207_v29  ;;  %v1288_v46 = vadd.f32 %v1281_v57, %v12002_v16  ;;  %v1289_v48 = vadd.f32 %v1276_v24, %v11998_v11  ;;  %v1290_v51 = vadd.f32 %v1282_v60, %v12013_v34 }
 0x243   :  { %v10650_v61 = vpop.eup %10649  ;;  %10667 = vtanh.f32 %v1206_v35  ;;  %v1291_v53 = vadd.f32 %v1283_v43, %v12017_v37 }
 0x244   :  { %v10652_v49 = vpop.eup %10651  ;;  %v1341_v50 = vadd.f32 1.0, %v10650_v61  ;;  %10669 = vtanh.f32 %v1208_v40  ;;  %v1360_v21 = vsub.f32 0.0, %v1288_v46  ;;  %v1361_v54 = vsub.f32 0.0, %v1289_v48 }
 0x245   :  { %v10654_v59 = vpop.eup %10653  ;;  %v1305_v52 = vadd.f32 1.0, %v10652_v49  ;;  %10671 = vtanh.f32 %v1209_v41  ;;  %v1362_v55 = vsub.f32 0.0, %v1290_v51  ;;  %v1363_v57 = vsub.f32 0.0, %v1291_v53 }
 0x246   :  { %v10656_v63 = vpop.eup %10655  ;;  %v1340_v9 = vadd.f32 1.0, %v10654_v59  ;;  %10673 = vrcp.f32 %v1341_v50  ;;  %v1364_v40 = vmul.f32 1.442695, %v1360_v21  ;;  %v1366_v43 = vmul.f32 1.442695, %v1361_v54 }
 0x247   :  { %v10658_v23 = vpop.eup %10657  ;;  %v1342_v27 = vadd.f32 1.0, %v10656_v63  ;;  %10675 = vrcp.f32 %v1305_v52  ;;  %v1368_v61 = vmul.f32 1.442695, %v1362_v55  ;;  %v1370_v48 = vmul.f32 1.442695, %v1363_v57 }
 0x248   :  { %v10660_v28 = vpop.eup %10659  ;;  %v1343_v24 = vadd.f32 1.0, %v10658_v23  ;;  %10677 = vrcp.f32 %v1340_v9  ;;  %v1317_v52 = vrot.slane %v12024_v62, 7  ;;  %v1319_v62 = vrot.slane %v12029_v22, 7 }
 0x249   :  { %v10662_v56 = vpop.eup %10661  ;;  %10679 = vrcp.f32 %v1342_v27  ;;  %v1304_v29 = vadd.f32 1.0, %v10660_v28  ;;  %v1316_v28 = vrot.slane %v12022_v47, 7 }
 0x24a   :  { %v10664_v60 = vpop.eup %10663  ;;  %10681 = vrcp.f32 %v1343_v24  ;;  %v1306_v35 = vadd.f32 1.0, %v10662_v56 }
 0x24b   :  { %v1307_v41 = vadd.f32 1.0, %v10664_v60  ;;  %10683 = vrcp.f32 %v1304_v29  ;;  %v1318_v29 = vrot.slane %v12026_v8, 7 }
 0x24c   :  { %v10666_v46 = vpop.eup %10665  ;;  %10685 = vrcp.f32 %v1306_v35 }
 0x24d   :  { %v10668_v49 = vpop.eup %10667  ;;  %10687 = vrcp.f32 %v1307_v41 }
 0x24e   :  { %v10670_v50 = vpop.eup %10669  ;;  %10689 = vpow2.f32 %v1364_v40 }
 0x24f   :  { %v10672_v51 = vpop.eup %10671  ;;  %10691 = vpow2.f32 %v1366_v43 }
 0x250   :  { %v10674_v59 = vpop.eup %10673  ;;  %10693 = vpow2.f32 %v1368_v61 }
 0x251   :  { %v10676_v53 = vpop.eup %10675  ;;  %v1353_v63 = vmul.f32 %v10674_v59, %v10666_v46  ;;  %10695 = vpow2.f32 %v1370_v48 }
 0x252   :  { %v10678_v9 = vpop.eup %10677  ;;  %v1325_v21 = vmul.f32 %v10676_v53, %v1317_v52 }
 0x253   :  { %v10680_v23 = vpop.eup %10679  ;;  %v1352_v27 = vmul.f32 %v10678_v9, %v10668_v49 }
 0x254   :  { %v10682_v54 = vpop.eup %10681  ;;  %v1354_v24 = vmul.f32 %v10680_v23, %v10670_v50  ;;  %v12103_v55 = vadd.f32 %v1353_v63, %v1325_v21 }
 0x255   :  { %v10684_v56 = vpop.eup %10683  ;;  %v1355_v57 = vmul.f32 %v10682_v54, %v10672_v51 }
 0x256   :  { %v10686_v60 = vpop.eup %10685  ;;  %v1324_v35 = vmul.f32 %v10684_v56, %v1316_v28  ;;  %10697 = vtanh.f32 %v12103_v55 }
 0x257   :  { %v10688_v40 = vpop.eup %10687  ;;  %v1326_v41 = vmul.f32 %v10686_v60, %v1318_v29 }
 0x258   :  { %v10690_v43 = vpop.eup %10689  ;;  %v1327_v46 = vmul.f32 %v10688_v40, %v1319_v62  ;;  %v12107_v61 = vadd.f32 %v1352_v27, %v1324_v35 }
 0x259   :  { %v10692_v49 = vpop.eup %10691  ;;  %v12109_v48 = vadd.f32 %v1354_v24, %v1326_v41  ;;  %v1372_v47 = vadd.f32 1.0, %v10690_v43 }
 0x25a   :  { %v10694_v50 = vpop.eup %10693  ;;  %v12112_v59 = vadd.f32 %v1355_v57, %v1327_v46  ;;  %10699 = vtanh.f32 %v12107_v61  ;;  %v1373_v8 = vadd.f32 1.0, %v10692_v49 }
 0x25b   :  { %v10696_v22 = vpop.eup %10695  ;;  %10701 = vtanh.f32 %v12109_v48  ;;  %v1374_v51 = vadd.f32 1.0, %v10694_v50 }
 0x25c   :  { %v1375_v52 = vadd.f32 1.0, %v10696_v22  ;;  %10703 = vrcp.f32 %v1372_v47 }
 0x25d   :  { %10705 = vrcp.f32 %v1373_v8 }
 0x25e   :  { %10707 = vrcp.f32 %v1374_v51 }
 0x25f   :  { %10709 = vrcp.f32 %v1375_v52 }
 0x260   :  { %10711 = vtanh.f32 %v12112_v59  ;;  %v10698_v53 = vpop.eup %10697 }
 0x264   :  { %v10700_v63 = vpop.eup %10699 }
 0x265   :  { %v10702_v9 = vpop.eup %10701 }
 0x266   :  { %v10704_v21 = vpop.eup %10703 }
 0x267   :  { %v10706_v23 = vpop.eup %10705  ;;  %v12117_v27 = vmul.f32 %v10704_v21, %v10700_v63 }
 0x268   :  { %v10708_v54 = vpop.eup %10707  ;;  %v12119_v28 = vmul.f32 %v10706_v23, %v10698_v53 }
 0x269   :  { %v10710_v24 = vpop.eup %10709  ;;  %v12121_v56 = vmul.f32 %v10708_v54, %v10702_v9  ;;  %v1392_v29 = vrot.slane %v12117_v27, 1 }
 0x26a   :  { %v10712_v57 = vpop.eup %10711 }
 0x26b   :  { %v12124_v60 = vmul.f32 %v10712_v57, %v10710_v24  ;;  %v1393_v62 = vsel %vm954_vm3, %v12119_v28, %v1392_v29  ;;  %v1394_v35 = vrot.slane %v12121_v56, 7 }
 0x26d   :  { %v1395_v40 = vsel %vm957_vm4, %v1394_v35, %v1393_v62  ;;  %v1396_v41 = vrot.slane %v12124_v60, 6 }
 0x26f   :  { %v1397_v43 = vsel %vm960_vm5, %v1396_v41, %v1395_v40 }
 0x270   :  { %9004 = vmatmul.mubr.msk.f32.vlgmr.msra.gmra.mrb[16].mxu0 %vm533_vm6, %v1397_v43  ;;  %9019 = vmatmul.mubr.msk.f32.vlgmr.msra.gmra.mrb[16].mxu1 %vm533_vm6, %v1397_v43 }
 0x271   :  { %10025 = vmatpush3.bf16.msra.mxu0 %v11906_v32  ;;  %10034 = vmatpush3.bf16.msra.mxu1 %v11908_v33 }
 0x272   :  { %10026 = vmatprep.subr.bf16.mxu0 %v13351_v15  ;;  %10035 = vmatprep.subr.bf16.mxu1 %v13351_v15 }
 0x273   :  { %9033 = vmatprep.mubr.msk.f32.mxu0 %vm11709_vm2, %v13349_v31  ;;  %9048 = vmatprep.mubr.msk.f32.mxu1 %vm11709_vm2, %v13349_v31 }
 0x275   :  { %10028 = vmatpush3.bf16.msra.mxu0 %v11916_v38  ;;  %10037 = vmatpush3.bf16.msra.mxu1 %v11918_v39 }
 0x276   :  { %10029 = vmatprep.subr.bf16.mxu0 %v13351_v15  ;;  %10038 = vmatprep.subr.bf16.mxu1 %v13351_v15 }
 0x279   :  { %10031 = vmatpush3.bf16.msra.mxu0 %v11928_v44  ;;  %10040 = vmatpush3.bf16.msra.mxu1 %v11930_v45 }
 0x27a   :  { %10041 = vmatprep.subr.bf16.mxu0 %v13351_v15  ;;  %10050 = vmatprep.subr.bf16.mxu1 %v13351_v15 }
 0x27c   :  { %9034 = vmatmul.mubr.msk.f32.vlgmr.msra.gmra.mrb[18].mxu0 %vm533_vm6, %v1397_v43  ;;  %9049 = vmatmul.mubr.msk.f32.vlgmr.msra.gmra.mrb[18].mxu1 %vm533_vm6, %v1397_v43 }
 0x27d   :  { %10043 = vmatpush3.bf16.msra.mxu0 %v11872_v12  ;;  %10052 = vmatpush3.bf16.msra.mxu1 %v11874_v13 }
 0x27e   :  { %10044 = vmatprep.subr.bf16.mxu0 %v13351_v15  ;;  %10053 = vmatprep.subr.bf16.mxu1 %v13351_v15 }
 0x27f   :  { %9063 = vmatprep.mubr.msk.f32.mxu0 %vm11709_vm2, %v13349_v31  ;;  %9078 = vmatprep.mubr.msk.f32.mxu1 %vm11709_vm2, %v13349_v31 }
 0x281   :  { %10046 = vmatpush3.bf16.msra.mxu0 %v11882_v19  ;;  %10055 = vmatpush3.bf16.msra.mxu1 %v11884_v20 }
 0x282   :  { %10047 = vmatprep.subr.bf16.mxu0 %v13351_v15  ;;  %10056 = vmatprep.subr.bf16.mxu1 %v13351_v15 }
 0x285   :  { %10049 = vmatpush3.bf16.msra.mxu0 %v11894_v25  ;;  %10058 = vmatpush3.bf16.msra.mxu1 %v11896_v26 }
 0x286   :  { %10059 = vmatprep.subr.bf16.mxu0 %v13351_v15  ;;  %10068 = vmatprep.subr.bf16.mxu1 %v13351_v15 }
 0x343   :  { %v1466_v46 = vpop.f32.mrb[16].mxu0  ;;  %v1548_v49 = vpop.f32.mrb[16].mxu1 }
 0x344   :  { %v1471_v47 = vrot.slane %v1466_v46, 6  ;;  %v1472_v50 = vrot.slane %v1466_v46, 7  ;;  %v1473_v8 = vrot.slane %v1466_v46, 1  ;;  %v1480_v22 = vadd.f32 %v1466_v46, %v11978_v6  ;;  %v9005_v51 = vpop.f32.mrb[17].mxu0  ;;  %v9020_v52 = vpop.f32.mrb[17].mxu1 }
 0x345   :  { %v1553_v53 = vrot.slane %v1548_v49, 6  ;;  %v1554_v63 = vrot.slane %v1548_v49, 7  ;;  %v1555_v9 = vrot.slane %v1548_v49, 1  ;;  %v1562_v21 = vadd.f32 %v1548_v49, %v11980_v7 }
 0x346   :  { %v1478_v23 = vadd.f32 %v1471_v47, %v11970_v2  ;;  %v1479_v54 = vadd.f32 %v1472_v50, %v11966_v0  ;;  %v1481_v24 = vadd.f32 %v1473_v8, %v11974_v4  ;;  %v1766_v29 = vsub.f32 0.0, %v1480_v22 }
 0x347   :  { %v1560_v57 = vadd.f32 %v1553_v53, %v11972_v3  ;;  %v1561_v62 = vadd.f32 %v1554_v63, %v11968_v1  ;;  %v1563_v35 = vadd.f32 %v1555_v9, %v11976_v5  ;;  %v1730_v40 = vsub.f32 0.0, %v1562_v21 }
 0x348   :  { %v1764_v41 = vsub.f32 0.0, %v1478_v23  ;;  %v1765_v43 = vsub.f32 0.0, %v1479_v54  ;;  %v1767_v46 = vsub.f32 0.0, %v1481_v24  ;;  %v1772_v51 = vmul.f32 1.442695, %v1766_v29 }
 0x349   :  { %v1728_v52 = vsub.f32 0.0, %v1560_v57  ;;  %v1729_v49 = vsub.f32 0.0, %v1561_v62  ;;  %v1731_v31 = vsub.f32 0.0, %v1563_v35  ;;  %v1736_v47 = vmul.f32 1.442695, %v1730_v40 }
 0x34a   :  { %v1768_v15 = vmul.f32 1.442695, %v1764_v41  ;;  %v1770_v50 = vmul.f32 1.442695, %v1765_v43  ;;  %10713 = vpow2.f32 %v1772_v51  ;;  %v1774_v8 = vmul.f32 1.442695, %v1767_v46 }
 0x34b   :  { %v1732_v22 = vmul.f32 1.442695, %v1728_v52  ;;  %10715 = vpow2.f32 %v1736_v47  ;;  %v1734_v53 = vmul.f32 1.442695, %v1729_v49  ;;  %v1738_v63 = vmul.f32 1.442695, %v1731_v31 }
 0x34c   :  { %10717 = vpow2.f32 %v1768_v15 }
 0x34d   :  { %10719 = vpow2.f32 %v1770_v50 }
 0x34e   :  { %10721 = vpow2.f32 %v1774_v8 }
 0x34f   :  { %10723 = vpow2.f32 %v1732_v22  ;;  %v1630_v9 = vpop.f32.mrb[18].mxu0  ;;  %v1712_v21 = vpop.f32.mrb[18].mxu1 }
 0x350   :  { %10725 = vpow2.f32 %v1734_v53  ;;  %v1635_v23 = vrot.slane %v1630_v9, 6  ;;  %v1636_v54 = vrot.slane %v1630_v9, 7  ;;  %v1637_v24 = vrot.slane %v1630_v9, 1  ;;  %v9035_v29 = vpop.f32.mrb[19].mxu0  ;;  %v9050_v57 = vpop.f32.mrb[19].mxu1 }
 0x351   :  { %10727 = vpow2.f32 %v1738_v63  ;;  %v1644_v62 = vadd.f32 %v1630_v9, %v12006_v18  ;;  %v1717_v35 = vrot.slane %v1712_v21, 6  ;;  %v1718_v40 = vrot.slane %v1712_v21, 7 }
 0x352   :  { %v1642_v15 = vadd.f32 %v1635_v23, %v12000_v14  ;;  %v1643_v41 = vadd.f32 %v1636_v54, %v11996_v10  ;;  %v1645_v31 = vadd.f32 %v1637_v24, %v12004_v17  ;;  %v1719_v43 = vrot.slane %v1712_v21, 1 }
 0x353   :  { %10729 = vtanh.f32 %v1644_v62  ;;  %v1724_v46 = vadd.f32 %v1717_v35, %v12002_v16  ;;  %v1725_v52 = vadd.f32 %v1718_v40, %v11998_v11  ;;  %v1726_v50 = vadd.f32 %v1712_v21, %v12013_v34 }
 0x354   :  { %v10714_v51 = vpop.eup %10713  ;;  %10731 = vtanh.f32 %v1642_v15  ;;  %v1727_v53 = vadd.f32 %v1719_v43, %v12017_v37 }
 0x355   :  { %v10716_v49 = vpop.eup %10715  ;;  %v1778_v47 = vadd.f32 1.0, %v10714_v51  ;;  %10733 = vtanh.f32 %v1643_v41  ;;  %v1796_v23 = vsub.f32 0.0, %v1724_v46  ;;  %v1797_v29 = vsub.f32 0.0, %v1725_v52 }
 0x356   :  { %v10718_v8 = vpop.eup %10717  ;;  %v1742_v22 = vadd.f32 1.0, %v10716_v49  ;;  %10735 = vtanh.f32 %v1645_v31  ;;  %v1798_v35 = vsub.f32 0.0, %v1726_v50  ;;  %v1799_v15 = vsub.f32 0.0, %v1727_v53 }
 0x357   :  { %v10720_v63 = vpop.eup %10719  ;;  %v1776_v9 = vadd.f32 1.0, %v10718_v8  ;;  %10737 = vrcp.f32 %v1778_v47  ;;  %v1800_v43 = vmul.f32 1.442695, %v1796_v23  ;;  %v1802_v49 = vmul.f32 1.442695, %v1797_v29 }
 0x358   :  { %v10722_v54 = vpop.eup %10721  ;;  %v1777_v24 = vadd.f32 1.0, %v10720_v63  ;;  %10739 = vrcp.f32 %v1742_v22  ;;  %v1804_v47 = vmul.f32 1.442695, %v1798_v35  ;;  %v1806_v52 = vmul.f32 1.442695, %v1799_v15 }
 0x359   :  { %v10724_v57 = vpop.eup %10723  ;;  %v1779_v62 = vadd.f32 1.0, %v10722_v54  ;;  %10741 = vrcp.f32 %v1776_v9  ;;  %v1754_v53 = vrot.slane %v12109_v48, 7  ;;  %v1752_v35 = vrot.slane %v12107_v61, 7 }
 0x35a   :  { %v10726_v40 = vpop.eup %10725  ;;  %10743 = vrcp.f32 %v1777_v24  ;;  %v1740_v21 = vadd.f32 1.0, %v10724_v57  ;;  %v1755_v48 = vrot.slane %v12112_v59, 7 }
 0x35b   :  { %v10728_v41 = vpop.eup %10727  ;;  %10745 = vrcp.f32 %v1779_v62  ;;  %v1741_v31 = vadd.f32 1.0, %v10726_v40 }
 0x35c   :  { %v1743_v51 = vadd.f32 1.0, %v10728_v41  ;;  %10747 = vrcp.f32 %v1740_v21  ;;  %v1753_v41 = vrot.slane %v12103_v55, 7 }
 0x35d   :  { %v10730_v46 = vpop.eup %10729  ;;  %10749 = vrcp.f32 %v1741_v31 }
 0x35e   :  { %v10732_v8 = vpop.eup %10731  ;;  %10751 = vrcp.f32 %v1743_v51 }
 0x35f   :  { %v10734_v22 = vpop.eup %10733  ;;  %10753 = vpow2.f32 %v1800_v43 }
 0x360   :  { %v10736_v50 = vpop.eup %10735  ;;  %10755 = vpow2.f32 %v1802_v49 }
 0x361   :  { %v10738_v63 = vpop.eup %10737  ;;  %10757 = vpow2.f32 %v1804_v47 }
 0x362   :  { %v10740_v9 = vpop.eup %10739  ;;  %v1790_v54 = vmul.f32 %v10738_v63, %v10730_v46  ;;  %10759 = vpow2.f32 %v1806_v52 }
 0x363   :  { %v10742_v23 = vpop.eup %10741  ;;  %v1762_v24 = vmul.f32 %v10740_v9, %v1754_v53 }
 0x364   :  { %v10744_v29 = vpop.eup %10743  ;;  %v1788_v57 = vmul.f32 %v10742_v23, %v10732_v8 }
 0x365   :  { %v10746_v62 = vpop.eup %10745  ;;  %v1789_v40 = vmul.f32 %v10744_v29, %v10734_v22  ;;  %v12186_v21 = vadd.f32 %v1790_v54, %v1762_v24 }
 0x366   :  { %v10748_v15 = vpop.eup %10747  ;;  %v1791_v31 = vmul.f32 %v10746_v62, %v10736_v50 }
 0x367   :  { %v10750_v43 = vpop.eup %10749  ;;  %v1760_v51 = vmul.f32 %v10748_v15, %v1752_v35  ;;  %10761 = vtanh.f32 %v12186_v21 }
 0x368   :  { %v10752_v49 = vpop.eup %10751  ;;  %v1761_v46 = vmul.f32 %v10750_v43, %v1753_v41  ;;  %v4024_v41 = vsel %vm4023_vm7, %v12034_v58, %v12117_v27  ;;  %v4026_v58 = vsel %vm4023_vm7, %v12038_v36, %v12121_v56  ;;  %v13353_v36 = vmov 0.0|0.0  }
 0x369   :  { %v10754_v47 = vpop.eup %10753  ;;  %v1763_v52 = vmul.f32 %v10752_v49, %v1755_v48  ;;  %v12190_v63 = vadd.f32 %v1788_v57, %v1760_v51  ;;  %v4025_v49 = vsel %vm4023_vm7, %v12036_v30, %v12119_v28 }
 0x36a   :  { %v10756_v8 = vpop.eup %10755  ;;  %v12192_v53 = vadd.f32 %v1789_v40, %v1761_v46  ;;  %v1808_v61 = vadd.f32 1.0, %v10754_v47 }
 0x36b   :  { %v10758_v22 = vpop.eup %10757  ;;  %v12195_v9 = vadd.f32 %v1791_v31, %v1763_v52  ;;  %10763 = vtanh.f32 %v12190_v63  ;;  %v1809_v55 = vadd.f32 1.0, %v10756_v8 }
 0x36c   :  { %v10760_v59 = vpop.eup %10759  ;;  %10765 = vtanh.f32 %v12192_v53  ;;  %v1810_v50 = vadd.f32 1.0, %v10758_v22 }
 0x36d   :  { %v1811_v54 = vadd.f32 1.0, %v10760_v59  ;;  %10767 = vrcp.f32 %v1808_v61  ;;  %v4027_v61 = vsel %vm4023_vm7, %v12041_v42, %v12124_v60  ;;  %v13354_v42 = vmov 0.0  }
 0x36e   :  { %10769 = vrcp.f32 %v1809_v55 }
 0x36f   :  { %10771 = vrcp.f32 %v1810_v50 }
 0x370   :  { %10773 = vrcp.f32 %v1811_v54 }
 0x371   :  { %10775 = vtanh.f32 %v12195_v9  ;;  %v10762_v23 = vpop.eup %10761 }
 0x375   :  { %v10764_v24 = vpop.eup %10763 }
 0x376   :  { %v10766_v29 = vpop.eup %10765 }
 0x377   :  { %v10768_v57 = vpop.eup %10767 }
 0x378   :  { %v10770_v62 = vpop.eup %10769  ;;  %v1820_v35 = vmul.f32 %v10768_v57, %v10764_v24 }
 0x379   :  { %v10772_v40 = vpop.eup %10771  ;;  %v1821_v15 = vmul.f32 %v10770_v62, %v10766_v29 }
 0x37a   :  { %v10774_v31 = vpop.eup %10773  ;;  %v1822_v43 = vmul.f32 %v10772_v40, %v10762_v23  ;;  %v1828_v48 = vrot.slane %v1820_v35, 2  ;;  %v12204_v51 = vsel %vm4028_vm8, %v4024_v41, %v1820_v35 }
 0x37b   :  { %v10776_v46 = vpop.eup %10775  ;;  %v1829_v47 = vrot.slane %v1821_v15, 1  ;;  %v12210_v52 = vsel %vm4028_vm8, %v4025_v49, %v1821_v15 }
 0x37c   :  { %v1823_v27 = vmul.f32 %v10776_v46, %v10774_v31  ;;  %v12216_v8 = vsel %vm4028_vm8, %v4026_v58, %v1822_v43 }
 0x37d   :  { %v1830_v22 = vsel %vm954_vm3, %v1829_v47, %v1828_v48 }
 0x37e   :  { %v1831_v30 = vsel %vm957_vm4, %v1822_v43, %v1830_v22  ;;  %v1832_v28 = vrot.slane %v1823_v27, 7  ;;  %v12224_v55 = vsel %vm4028_vm8, %v4027_v61, %v1823_v27 }
 0x380   :  { %v1833_v59 = vsel %vm960_vm5, %v1832_v28, %v1831_v30 }
 0x381   :  { %9064 = vmatmul.mubr.msk.f32.vlgmr.msra.gmra.mrb[20].mxu0 %vm533_vm6, %v1833_v59  ;;  %9079 = vmatmul.mubr.msk.f32.vlgmr.msra.gmra.mrb[20].mxu1 %vm533_vm6, %v1833_v59 }
 0x382   :  { %10061 = vmatpush3.bf16.msra.mxu0 %v11906_v32  ;;  %10070 = vmatpush3.bf16.msra.mxu1 %v11908_v33 }
 0x383   :  { %10062 = vmatprep.subr.bf16.mxu0 %v13353_v36  ;;  %10071 = vmatprep.subr.bf16.mxu1 %v13353_v36 }
 0x384   :  { %9093 = vmatprep.mubr.msk.f32.mxu0 %vm11709_vm2, %v13354_v42  ;;  %9108 = vmatprep.mubr.msk.f32.mxu1 %vm11709_vm2, %v13354_v42 }
 0x386   :  { %10064 = vmatpush3.bf16.msra.mxu0 %v11916_v38  ;;  %10073 = vmatpush3.bf16.msra.mxu1 %v11918_v39 }
 0x387   :  { %10065 = vmatprep.subr.bf16.mxu0 %v13353_v36  ;;  %10074 = vmatprep.subr.bf16.mxu1 %v13353_v36 }
 0x38a   :  { %10067 = vmatpush3.bf16.msra.mxu0 %v11928_v44  ;;  %10076 = vmatpush3.bf16.msra.mxu1 %v11930_v45 }
 0x38b   :  { %10077 = vmatprep.subr.bf16.mxu0 %v13353_v36  ;;  %10086 = vmatprep.subr.bf16.mxu1 %v13353_v36 }
 0x38d   :  { %9094 = vmatmul.mubr.msk.f32.vlgmr.msra.gmra.mrb[22].mxu0 %vm533_vm6, %v1833_v59  ;;  %9109 = vmatmul.mubr.msk.f32.vlgmr.msra.gmra.mrb[22].mxu1 %vm533_vm6, %v1833_v59 }
 0x38e   :  { %10079 = vmatpush3.bf16.msra.mxu0 %v11872_v12  ;;  %10088 = vmatpush3.bf16.msra.mxu1 %v11874_v13 }
 0x38f   :  { %10080 = vmatprep.subr.bf16.mxu0 %v13353_v36  ;;  %10089 = vmatprep.subr.bf16.mxu1 %v13353_v36 }
 0x390   :  { %9123 = vmatprep.mubr.msk.f32.mxu0 %vm11709_vm2, %v13354_v42  ;;  %9138 = vmatprep.mubr.msk.f32.mxu1 %vm11709_vm2, %v13354_v42 }
 0x392   :  { %10082 = vmatpush3.bf16.msra.mxu0 %v11882_v19  ;;  %10091 = vmatpush3.bf16.msra.mxu1 %v11884_v20 }
 0x393   :  { %10083 = vmatprep.subr.bf16.mxu0 %v13353_v36  ;;  %10092 = vmatprep.subr.bf16.mxu1 %v13353_v36 }
 0x396   :  { %10085 = vmatpush3.bf16.msra.mxu0 %v11894_v25  ;;  %10094 = vmatpush3.bf16.msra.mxu1 %v11896_v26 }
 0x397   :  { %10095 = vmatprep.subr.bf16.mxu0 %v13353_v36  ;;  %10104 = vmatprep.subr.bf16.mxu1 %v13353_v36 }
 0x454   :  { %v1902_v56 = vpop.f32.mrb[20].mxu0  ;;  %v1984_v60 = vpop.f32.mrb[20].mxu1 }
 0x455   :  { %v1907_v50 = vrot.slane %v1902_v56, 5  ;;  %v1908_v54 = vrot.slane %v1902_v56, 6  ;;  %v1909_v23 = vrot.slane %v1902_v56, 7  ;;  %v1917_v24 = vadd.f32 %v1902_v56, %v11974_v4  ;;  %v9065_v29 = vpop.f32.mrb[21].mxu0  ;;  %v9080_v57 = vpop.f32.mrb[21].mxu1 }
 0x456   :  { %v1989_v62 = vrot.slane %v1984_v60, 5  ;;  %v1990_v35 = vrot.slane %v1984_v60, 6  ;;  %v1991_v40 = vrot.slane %v1984_v60, 7  ;;  %v1999_v15 = vadd.f32 %v1984_v60, %v11976_v5 }
 0x457   :  { %v1914_v41 = vadd.f32 %v1907_v50, %v11970_v2  ;;  %v1915_v31 = vadd.f32 %v1908_v54, %v11966_v0  ;;  %v1916_v43 = vadd.f32 %v1909_v23, %v11978_v6  ;;  %v2203_v48 = vsub.f32 0.0, %v1917_v24 }
 0x458   :  { %v1996_v49 = vadd.f32 %v1989_v62, %v11972_v3  ;;  %v1997_v46 = vadd.f32 %v1990_v35, %v11968_v1  ;;  %v1998_v47 = vadd.f32 %v1991_v40, %v11980_v7  ;;  %v2167_v58 = vsub.f32 0.0, %v1999_v15 }
 0x459   :  { %v2200_v27 = vsub.f32 0.0, %v1914_v41  ;;  %v2201_v61 = vsub.f32 0.0, %v1915_v31  ;;  %v2202_v22 = vsub.f32 0.0, %v1916_v43  ;;  %v2210_v30 = vmul.f32 1.442695, %v2203_v48 }
 0x45a   :  { %v2164_v28 = vsub.f32 0.0, %v1996_v49  ;;  %v2165_v59 = vsub.f32 0.0, %v1997_v46  ;;  %v2166_v56 = vsub.f32 0.0, %v1998_v47  ;;  %v2174_v60 = vmul.f32 1.442695, %v2167_v58 }
 0x45b   :  { %v2204_v50 = vmul.f32 1.442695, %v2200_v27  ;;  %v2206_v54 = vmul.f32 1.442695, %v2201_v61  ;;  %v2208_v29 = vmul.f32 1.442695, %v2202_v22  ;;  %10777 = vpow2.f32 %v2210_v30 }
 0x45c   :  { %v2168_v23 = vmul.f32 1.442695, %v2164_v28  ;;  %10779 = vpow2.f32 %v2174_v60  ;;  %v2170_v24 = vmul.f32 1.442695, %v2165_v59  ;;  %v2172_v57 = vmul.f32 1.442695, %v2166_v56 }
 0x45d   :  { %10781 = vpow2.f32 %v2204_v50 }
 0x45e   :  { %10783 = vpow2.f32 %v2206_v54 }
 0x45f   :  { %10785 = vpow2.f32 %v2208_v29 }
 0x460   :  { %10787 = vpow2.f32 %v2168_v23  ;;  %v2066_v62 = vpop.f32.mrb[22].mxu0  ;;  %v2148_v35 = vpop.f32.mrb[22].mxu1 }
 0x461   :  { %10789 = vpow2.f32 %v2170_v24  ;;  %v2071_v40 = vrot.slane %v2066_v62, 5  ;;  %v2072_v15 = vrot.slane %v2066_v62, 6  ;;  %v2073_v41 = vrot.slane %v2066_v62, 7  ;;  %v9095_v31 = vpop.f32.mrb[23].mxu0  ;;  %v9110_v43 = vpop.f32.mrb[23].mxu1 }
 0x462   :  { %10791 = vpow2.f32 %v2172_v57  ;;  %v2081_v48 = vadd.f32 %v2066_v62, %v12004_v17  ;;  %v2153_v49 = vrot.slane %v2148_v35, 5  ;;  %v2154_v46 = vrot.slane %v2148_v35, 6 }
 0x463   :  { %v2078_v47 = vadd.f32 %v2071_v40, %v12000_v14  ;;  %v2079_v58 = vadd.f32 %v2072_v15, %v11996_v10  ;;  %v2080_v27 = vadd.f32 %v2073_v41, %v12006_v18  ;;  %v2155_v61 = vrot.slane %v2148_v35, 7 }
 0x464   :  { %10793 = vtanh.f32 %v2081_v48  ;;  %v2160_v22 = vadd.f32 %v2153_v49, %v12002_v16  ;;  %v2161_v28 = vadd.f32 %v2154_v46, %v11998_v11  ;;  %v2163_v29 = vadd.f32 %v2148_v35, %v12017_v37 }
 0x465   :  { %v10778_v30 = vpop.eup %10777  ;;  %10795 = vtanh.f32 %v2078_v47  ;;  %v2162_v60 = vadd.f32 %v2155_v61, %v12013_v34 }
 0x466   :  { %v10780_v59 = vpop.eup %10779  ;;  %v2215_v56 = vadd.f32 1.0, %v10778_v30  ;;  %10797 = vtanh.f32 %v2079_v58  ;;  %v2232_v57 = vsub.f32 0.0, %v2160_v22  ;;  %v2233_v15 = vsub.f32 0.0, %v2161_v28 }
 0x467   :  { %v10782_v50 = vpop.eup %10781  ;;  %v2179_v54 = vadd.f32 1.0, %v10780_v59  ;;  %10799 = vtanh.f32 %v2080_v27  ;;  %v2234_v43 = vsub.f32 0.0, %v2162_v60  ;;  %v2235_v46 = vsub.f32 0.0, %v2163_v29 }
 0x468   :  { %v10784_v23 = vpop.eup %10783  ;;  %v2212_v24 = vadd.f32 1.0, %v10782_v50  ;;  %10801 = vrcp.f32 %v2215_v56  ;;  %v2236_v35 = vmul.f32 1.442695, %v2232_v57  ;;  %v2238_v61 = vmul.f32 1.442695, %v2233_v15 }
 0x469   :  { %v10786_v62 = vpop.eup %10785  ;;  %v2213_v40 = vadd.f32 1.0, %v10784_v23  ;;  %10803 = vrcp.f32 %v2179_v54  ;;  %v2240_v30 = vmul.f32 1.442695, %v2234_v43  ;;  %v2242_v28 = vmul.f32 1.442695, %v2235_v46 }
 0x46a   :  { %v10788_v41 = vpop.eup %10787  ;;  %v2214_v31 = vadd.f32 1.0, %v10786_v62  ;;  %10805 = vrcp.f32 %v2212_v24  ;;  %v2191_v54 = vrot.slane %v12195_v9, 7  ;;  %v2190_v9 = vrot.slane %v12186_v21, 7 }
 0x46b   :  { %v10790_v48 = vpop.eup %10789  ;;  %10807 = vrcp.f32 %v2213_v40  ;;  %v2176_v49 = vadd.f32 1.0, %v10788_v41  ;;  %v2188_v41 = vrot.slane %v12190_v63, 7 }
 0x46c   :  { %v10792_v47 = vpop.eup %10791  ;;  %10809 = vrcp.f32 %v2214_v31  ;;  %v2177_v58 = vadd.f32 1.0, %v10790_v48 }
 0x46d   :  { %v2178_v27 = vadd.f32 1.0, %v10792_v47  ;;  %10811 = vrcp.f32 %v2176_v49  ;;  %v2189_v49 = vrot.slane %v12192_v53, 7 }
 0x46e   :  { %v10794_v22 = vpop.eup %10793  ;;  %10813 = vrcp.f32 %v2177_v58 }
 0x46f   :  { %v10796_v59 = vpop.eup %10795  ;;  %10815 = vrcp.f32 %v2178_v27 }
 0x470   :  { %v10798_v56 = vpop.eup %10797  ;;  %10817 = vpow2.f32 %v2236_v35 }
 0x471   :  { %v10800_v60 = vpop.eup %10799  ;;  %10819 = vpow2.f32 %v2238_v61 }
 0x472   :  { %v10802_v50 = vpop.eup %10801  ;;  %10821 = vpow2.f32 %v2240_v30 }
 0x473   :  { %v10804_v29 = vpop.eup %10803  ;;  %v2227_v23 = vmul.f32 %v10802_v50, %v10794_v22  ;;  %10823 = vpow2.f32 %v2242_v28 }
 0x474   :  { %v10806_v24 = vpop.eup %10805  ;;  %v2199_v57 = vmul.f32 %v10804_v29, %v2191_v54 }
 0x475   :  { %v10808_v62 = vpop.eup %10807  ;;  %v2224_v40 = vmul.f32 %v10806_v24, %v10796_v59 }
 0x476   :  { %v10810_v15 = vpop.eup %10809  ;;  %v2225_v31 = vmul.f32 %v10808_v62, %v10798_v56  ;;  %v12281_v43 = vadd.f32 %v2227_v23, %v2199_v57 }
 0x477   :  { %v10812_v48 = vpop.eup %10811  ;;  %v2226_v46 = vmul.f32 %v10810_v15, %v10800_v60 }
 0x478   :  { %v10814_v47 = vpop.eup %10813  ;;  %v2196_v58 = vmul.f32 %v10812_v48, %v2188_v41  ;;  %10825 = vtanh.f32 %v12281_v43 }
 0x479   :  { %v10816_v35 = vpop.eup %10815  ;;  %v2197_v27 = vmul.f32 %v10814_v47, %v2189_v49 }
 0x47a   :  { %v10818_v61 = vpop.eup %10817  ;;  %v2198_v22 = vmul.f32 %v10816_v35, %v2190_v9  ;;  %v12285_v30 = vadd.f32 %v2224_v40, %v2196_v58 }
 0x47b   :  { %v10820_v59 = vpop.eup %10819  ;;  %v12287_v28 = vadd.f32 %v2225_v31, %v2197_v27  ;;  %v2244_v63 = vadd.f32 1.0, %v10818_v61 }
 0x47c   :  { %v10822_v56 = vpop.eup %10821  ;;  %v12290_v50 = vadd.f32 %v2226_v46, %v2198_v22  ;;  %10827 = vtanh.f32 %v12285_v30  ;;  %v2245_v53 = vadd.f32 1.0, %v10820_v59 }
 0x47d   :  { %v10824_v21 = vpop.eup %10823  ;;  %10829 = vtanh.f32 %v12287_v28  ;;  %v2246_v60 = vadd.f32 1.0, %v10822_v56 }
 0x47e   :  { %10831 = vtanh.f32 %v12290_v50  ;;  %v2247_v54 = vadd.f32 1.0, %v10824_v21 }
 0x47f   :  { %10833 = vrcp.f32 %v2244_v63 }
 0x480   :  { %10835 = vrcp.f32 %v2245_v53 }
 0x481   :  { %10837 = vrcp.f32 %v2246_v60 }
 0x482   :  { %10839 = vrcp.f32 %v2247_v54  ;;  %v10826_v29 = vpop.eup %10825 }
 0x486   :  { %v10828_v23 = vpop.eup %10827 }
 0x487   :  { %v10830_v24 = vpop.eup %10829 }
 0x488   :  { %v10832_v57 = vpop.eup %10831 }
 0x489   :  { %v10834_v62 = vpop.eup %10833 }
 0x48a   :  { %v10836_v40 = vpop.eup %10835  ;;  %v2256_v15 = vmul.f32 %v10834_v62, %v10828_v23 }
 0x48b   :  { %v10838_v41 = vpop.eup %10837  ;;  %v2257_v31 = vmul.f32 %v10836_v40, %v10830_v24 }
 0x48c   :  { %v10840_v48 = vpop.eup %10839  ;;  %v2258_v49 = vmul.f32 %v10838_v41, %v10832_v57  ;;  %v2264_v46 = vrot.slane %v2256_v15, 3  ;;  %v12296_v47 = vsel %vm4033_vm9, %v12204_v51, %v2256_v15 }
 0x48d   :  { %v2259_v9 = vmul.f32 %v10840_v48, %v10826_v29  ;;  %v2265_v58 = vrot.slane %v2257_v31, 2  ;;  %v12299_v35 = vsel %vm4033_vm9, %v12210_v52, %v2257_v31 }
 0x48e   :  { %v2267_v27 = vrot.slane %v2258_v49, 1  ;;  %v12302_v61 = vsel %vm4033_vm9, %v12216_v8, %v2258_v49 }
 0x48f   :  { %v2266_v22 = vsel %vm954_vm3, %v2265_v58, %v2264_v46  ;;  %v12306_v59 = vsel %vm4033_vm9, %v12224_v55, %v2259_v9 }
 0x490   :  { %v2268_v63 = vsel %vm957_vm4, %v2267_v27, %v2266_v22 }
 0x491   :  { %v2269_v56 = vsel %vm960_vm5, %v2259_v9, %v2268_v63 }
 0x492   :  { %9124 = vmatmul.mubr.msk.f32.vlgmr.msra.gmra.mrb[24].mxu0 %vm533_vm6, %v2269_v56  ;;  %9139 = vmatmul.mubr.msk.f32.vlgmr.msra.gmra.mrb[24].mxu1 %vm533_vm6, %v2269_v56 }
 0x493   :  { %10097 = vmatpush3.bf16.msra.mxu0 %v11906_v32  ;;  %10106 = vmatpush3.bf16.msra.mxu1 %v11908_v33 }
 0x494   :  { %10098 = vmatprep.subr.bf16.mxu0 %v13353_v36  ;;  %10107 = vmatprep.subr.bf16.mxu1 %v13353_v36 }
 0x495   :  { %9153 = vmatprep.mubr.msk.f32.mxu0 %vm11709_vm2, %v13354_v42  ;;  %9168 = vmatprep.mubr.msk.f32.mxu1 %vm11709_vm2, %v13354_v42 }
 0x497   :  { %10100 = vmatpush3.bf16.msra.mxu0 %v11916_v38  ;;  %10109 = vmatpush3.bf16.msra.mxu1 %v11918_v39 }
 0x498   :  { %10101 = vmatprep.subr.bf16.mxu0 %v13353_v36  ;;  %10110 = vmatprep.subr.bf16.mxu1 %v13353_v36 }
 0x49b   :  { %10103 = vmatpush3.bf16.msra.mxu0 %v11928_v44  ;;  %10112 = vmatpush3.bf16.msra.mxu1 %v11930_v45 }
 0x49c   :  { %10113 = vmatprep.subr.bf16.mxu0 %v13353_v36  ;;  %10122 = vmatprep.subr.bf16.mxu1 %v13353_v36 }
 0x49e   :  { %9154 = vmatmul.mubr.msk.f32.vlgmr.msra.gmra.mrb[26].mxu0 %vm533_vm6, %v2269_v56  ;;  %9169 = vmatmul.mubr.msk.f32.vlgmr.msra.gmra.mrb[26].mxu1 %vm533_vm6, %v2269_v56 }
 0x49f   :  { %10115 = vmatpush3.bf16.msra.mxu0 %v11872_v12  ;;  %10124 = vmatpush3.bf16.msra.mxu1 %v11874_v13 }
 0x4a0   :  { %10116 = vmatprep.subr.bf16.mxu0 %v13353_v36  ;;  %10125 = vmatprep.subr.bf16.mxu1 %v13353_v36 }
 0x4a1   :  { %9183 = vmatprep.mubr.msk.f32.mxu0 %vm11709_vm2, %v13354_v42  ;;  %9198 = vmatprep.mubr.msk.f32.mxu1 %vm11709_vm2, %v13354_v42 }
 0x4a3   :  { %10118 = vmatpush3.bf16.msra.mxu0 %v11882_v19  ;;  %10127 = vmatpush3.bf16.msra.mxu1 %v11884_v20 }
 0x4a4   :  { %10119 = vmatprep.subr.bf16.mxu0 %v13353_v36  ;;  %10128 = vmatprep.subr.bf16.mxu1 %v13353_v36 }
 0x4a7   :  { %10121 = vmatpush3.bf16.msra.mxu0 %v11894_v25  ;;  %10130 = vmatpush3.bf16.msra.mxu1 %v11896_v26 }
 0x4a8   :  { %10131 = vmatprep.subr.bf16.mxu0 %v13353_v36  ;;  %10140 = vmatprep.subr.bf16.mxu1 %v13353_v36 }
 0x565   :  { %v2338_v51 = vpop.f32.mrb[24].mxu0  ;;  %v2421_v52 = vpop.f32.mrb[24].mxu1 }
 0x566   :  { %v2343_v8 = vrot.slane %v2338_v51, 4  ;;  %v2344_v55 = vrot.slane %v2338_v51, 5  ;;  %v2345_v53 = vrot.slane %v2338_v51, 6  ;;  %v2346_v21 = vrot.slane %v2338_v51, 7  ;;  %v9125_v60 = vpop.f32.mrb[25].mxu0  ;;  %v9140_v54 = vpop.f32.mrb[25].mxu1 }
 0x567   :  { %v2426_v29 = vrot.slane %v2421_v52, 4  ;;  %v2427_v23 = vrot.slane %v2421_v52, 5  ;;  %v2428_v24 = vrot.slane %v2421_v52, 6  ;;  %v2429_v57 = vrot.slane %v2421_v52, 7 }
 0x568   :  { %v2351_v62 = vadd.f32 %v2343_v8, %v11970_v2  ;;  %v2352_v40 = vadd.f32 %v2344_v55, %v11966_v0  ;;  %v2353_v15 = vadd.f32 %v2345_v53, %v11978_v6  ;;  %v2354_v41 = vadd.f32 %v2346_v21, %v11974_v4 }
 0x569   :  { %v2434_v31 = vadd.f32 %v2426_v29, %v11972_v3  ;;  %v2435_v48 = vadd.f32 %v2427_v23, %v11968_v1  ;;  %v2436_v49 = vadd.f32 %v2428_v24, %v11980_v7  ;;  %v2437_v46 = vadd.f32 %v2429_v57, %v11976_v5 }
 0x56a   :  { %v2640_v9 = vsub.f32 0.0, %v2351_v62  ;;  %v2641_v58 = vsub.f32 0.0, %v2352_v40  ;;  %v2642_v27 = vsub.f32 0.0, %v2353_v15  ;;  %v2643_v22 = vsub.f32 0.0, %v2354_v41 }
 0x56b   :  { %v2604_v63 = vsub.f32 0.0, %v2434_v31  ;;  %v2605_v56 = vsub.f32 0.0, %v2435_v48  ;;  %v2606_v51 = vsub.f32 0.0, %v2436_v49  ;;  %v2607_v21 = vsub.f32 0.0, %v2437_v46 }
 0x56c   :  { %v2644_v52 = vmul.f32 1.442695, %v2640_v9  ;;  %v2646_v8 = vmul.f32 1.442695, %v2641_v58  ;;  %v2648_v55 = vmul.f32 1.442695, %v2642_v27 }
 0x56d   :  { %v2650_v53 = vmul.f32 1.442695, %v2643_v22  ;;  %v2608_v60 = vmul.f32 1.442695, %v2604_v63  ;;  %v2610_v54 = vmul.f32 1.442695, %v2605_v56 }
 0x56e   :  { %10841 = vpow2.f32 %v2644_v52  ;;  %v2612_v29 = vmul.f32 1.442695, %v2606_v51  ;;  %v2614_v23 = vmul.f32 1.442695, %v2607_v21 }
 0x56f   :  { %10843 = vpow2.f32 %v2646_v8 }
 0x570   :  { %10845 = vpow2.f32 %v2648_v55 }
 0x571   :  { %10847 = vpow2.f32 %v2650_v53  ;;  %v2504_v24 = vpop.f32.mrb[26].mxu0  ;;  %v2587_v57 = vpop.f32.mrb[26].mxu1 }
 0x572   :  { %10849 = vpow2.f32 %v2608_v60  ;;  %v2509_v62 = vrot.slane %v2504_v24, 4  ;;  %v2510_v40 = vrot.slane %v2504_v24, 5  ;;  %v2511_v15 = vrot.slane %v2504_v24, 6  ;;  %v9155_v41 = vpop.f32.mrb[27].mxu0  ;;  %v9170_v31 = vpop.f32.mrb[27].mxu1 }
 0x573   :  { %10851 = vpow2.f32 %v2610_v54  ;;  %v2512_v48 = vrot.slane %v2504_v24, 7  ;;  %v2592_v49 = vrot.slane %v2587_v57, 4  ;;  %v2593_v58 = vrot.slane %v2587_v57, 5 }
 0x574   :  { %10853 = vpow2.f32 %v2612_v29  ;;  %v2517_v46 = vadd.f32 %v2509_v62, %v12000_v14  ;;  %v2518_v9 = vadd.f32 %v2510_v40, %v11996_v10  ;;  %v2519_v27 = vadd.f32 %v2511_v15, %v12006_v18 }
 0x575   :  { %10855 = vpow2.f32 %v2614_v23  ;;  %v2594_v22 = vrot.slane %v2587_v57, 6  ;;  %v2520_v63 = vadd.f32 %v2512_v48, %v12004_v17  ;;  %v2595_v56 = vrot.slane %v2587_v57, 7 }
 0x576   :  { %10857 = vtanh.f32 %v2517_v46  ;;  %v2600_v51 = vadd.f32 %v2592_v49, %v12002_v16  ;;  %v2601_v8 = vadd.f32 %v2593_v58, %v11998_v11 }
 0x577   :  { %10859 = vtanh.f32 %v2518_v9  ;;  %v2602_v21 = vadd.f32 %v2594_v22, %v12013_v34  ;;  %v2603_v29 = vadd.f32 %v2595_v56, %v12017_v37 }
 0x578   :  { %v10842_v52 = vpop.eup %10841  ;;  %10861 = vtanh.f32 %v2519_v27  ;;  %v2672_v57 = vsub.f32 0.0, %v2600_v51  ;;  %v2673_v15 = vsub.f32 0.0, %v2601_v8 }
 0x579   :  { %v10844_v55 = vpop.eup %10843  ;;  %v2652_v53 = vadd.f32 1.0, %v10842_v52  ;;  %10863 = vtanh.f32 %v2520_v63  ;;  %v2674_v48 = vsub.f32 0.0, %v2602_v21  ;;  %v2675_v9 = vsub.f32 0.0, %v2603_v29 }
 0x57a   :  { %v10846_v60 = vpop.eup %10845  ;;  %v2653_v54 = vadd.f32 1.0, %v10844_v55  ;;  %v2676_v22 = vmul.f32 1.442695, %v2672_v57  ;;  %v2678_v56 = vmul.f32 1.442695, %v2673_v15 }
 0x57b   :  { %v10848_v23 = vpop.eup %10847  ;;  %v2654_v24 = vadd.f32 1.0, %v10846_v60  ;;  %10865 = vrcp.f32 %v2652_v53  ;;  %v2680_v52 = vmul.f32 1.442695, %v2674_v48  ;;  %v2682_v8 = vmul.f32 1.442695, %v2675_v9 }
 0x57c   :  { %v10850_v62 = vpop.eup %10849  ;;  %v2655_v40 = vadd.f32 1.0, %v10848_v23  ;;  %10867 = vrcp.f32 %v2653_v54 }
 0x57d   :  { %v10852_v41 = vpop.eup %10851  ;;  %10869 = vrcp.f32 %v2654_v24  ;;  %v2616_v31 = vadd.f32 1.0, %v10850_v62  ;;  %v2628_v62 = vrot.slane %v12285_v30, 7 }
 0x57e   :  { %v10854_v49 = vpop.eup %10853  ;;  %10871 = vrcp.f32 %v2655_v40  ;;  %v2617_v46 = vadd.f32 1.0, %v10852_v41  ;;  %v2629_v41 = vrot.slane %v12287_v28, 7 }
 0x57f   :  { %v10856_v58 = vpop.eup %10855  ;;  %v2618_v27 = vadd.f32 1.0, %v10854_v49  ;;  %10873 = vrcp.f32 %v2616_v31  ;;  %v2630_v49 = vrot.slane %v12290_v50, 7 }
 0x580   :  { %v2619_v63 = vadd.f32 1.0, %v10856_v58  ;;  %10875 = vrcp.f32 %v2617_v46  ;;  %v10858_v51 = vpop.eup %10857  ;;  %v2631_v58 = vrot.slane %v12281_v43, 7 }
 0x581   :  { %10877 = vrcp.f32 %v2618_v27  ;;  %v10860_v55 = vpop.eup %10859 }
 0x582   :  { %10879 = vrcp.f32 %v2619_v63  ;;  %v10862_v53 = vpop.eup %10861 }
 0x583   :  { %10881 = vpow2.f32 %v2676_v22  ;;  %v10864_v21 = vpop.eup %10863 }
 0x584   :  { %10883 = vpow2.f32 %v2678_v56 }
 0x585   :  { %v10866_v60 = vpop.eup %10865  ;;  %10885 = vpow2.f32 %v2680_v52 }
 0x586   :  { %v10868_v54 = vpop.eup %10867  ;;  %v2664_v29 = vmul.f32 %v10866_v60, %v10858_v51  ;;  %10887 = vpow2.f32 %v2682_v8 }
 0x587   :  { %v10870_v23 = vpop.eup %10869  ;;  %v2665_v24 = vmul.f32 %v10868_v54, %v10860_v55 }
 0x588   :  { %v10872_v57 = vpop.eup %10871  ;;  %v2666_v40 = vmul.f32 %v10870_v23, %v10862_v53 }
 0x589   :  { %v10874_v15 = vpop.eup %10873  ;;  %v2667_v31 = vmul.f32 %v10872_v57, %v10864_v21 }
 0x58a   :  { %v10876_v48 = vpop.eup %10875  ;;  %v2636_v46 = vmul.f32 %v10874_v15, %v2628_v62 }
 0x58b   :  { %v10878_v9 = vpop.eup %10877  ;;  %v2637_v27 = vmul.f32 %v10876_v48, %v2629_v41 }
 0x58c   :  { %v10880_v22 = vpop.eup %10879  ;;  %v2638_v63 = vmul.f32 %v10878_v9, %v2630_v49  ;;  %v12366_v56 = vadd.f32 %v2664_v29, %v2636_v46 }
 0x58d   :  { %v10882_v51 = vpop.eup %10881  ;;  %v2639_v52 = vmul.f32 %v10880_v22, %v2631_v58  ;;  %v12368_v30 = vadd.f32 %v2665_v24, %v2637_v27 }
 0x58e   :  { %v10884_v55 = vpop.eup %10883  ;;  %v12370_v8 = vadd.f32 %v2666_v40, %v2638_v63  ;;  %10889 = vtanh.f32 %v12366_v56  ;;  %v2684_v28 = vadd.f32 1.0, %v10882_v51 }
 0x58f   :  { %v10886_v50 = vpop.eup %10885  ;;  %v12373_v53 = vadd.f32 %v2667_v31, %v2639_v52  ;;  %10891 = vtanh.f32 %v12368_v30  ;;  %v2685_v43 = vadd.f32 1.0, %v10884_v55 }
 0x590   :  { %v10888_v21 = vpop.eup %10887  ;;  %10893 = vtanh.f32 %v12370_v8  ;;  %v2686_v60 = vadd.f32 1.0, %v10886_v50 }
 0x591   :  { %v2687_v54 = vadd.f32 1.0, %v10888_v21  ;;  %10895 = vrcp.f32 %v2684_v28 }
 0x592   :  { %10897 = vrcp.f32 %v2685_v43 }
 0x593   :  { %10899 = vrcp.f32 %v2686_v60 }
 0x594   :  { %10901 = vrcp.f32 %v2687_v54 }
 0x595   :  { %10903 = vtanh.f32 %v12373_v53 }
 0x598   :  { %v10890_v29 = vpop.eup %10889 }
 0x599   :  { %v10892_v23 = vpop.eup %10891 }
 0x59a   :  { %v10894_v24 = vpop.eup %10893 }
 0x59b   :  { %v10896_v57 = vpop.eup %10895 }
 0x59c   :  { %v10898_v62 = vpop.eup %10897  ;;  %v2696_v40 = vmul.f32 %v10896_v57, %v10890_v29 }
 0x59d   :  { %v10900_v15 = vpop.eup %10899  ;;  %v2697_v41 = vmul.f32 %v10898_v62, %v10892_v23 }
 0x59e   :  { %v10902_v31 = vpop.eup %10901  ;;  %v2698_v48 = vmul.f32 %v10900_v15, %v10894_v24  ;;  %v2704_v49 = vrot.slane %v2696_v40, 4  ;;  %v12380_v46 = vsel %vm4038_vm10, %v12296_v47, %v2696_v40 }
 0x59f   :  { %v10904_v9 = vpop.eup %10903  ;;  %v2705_v58 = vrot.slane %v2697_v41, 3  ;;  %v12384_v27 = vsel %vm4038_vm10, %v12299_v35, %v2697_v41 }
 0x5a0   :  { %v2699_v22 = vmul.f32 %v10904_v9, %v10902_v31  ;;  %v2707_v63 = vrot.slane %v2698_v48, 2  ;;  %v12388_v51 = vsel %vm4038_vm10, %v12302_v61, %v2698_v48 }
 0x5a1   :  { %v2706_v52 = vsel %vm954_vm3, %v2705_v58, %v2704_v49 }
 0x5a2   :  { %v2708_v55 = vsel %vm957_vm4, %v2707_v63, %v2706_v52  ;;  %v2709_v28 = vrot.slane %v2699_v22, 1  ;;  %v12394_v47 = vsel %vm4038_vm10, %v12306_v59, %v2699_v22 }
 0x5a4   :  { %v2710_v50 = vsel %vm960_vm5, %v2709_v28, %v2708_v55 }
 0x5a5   :  { %9184 = vmatmul.mubr.msk.f32.vlgmr.msra.gmra.mrb[28].mxu0 %vm533_vm6, %v2710_v50  ;;  %9199 = vmatmul.mubr.msk.f32.vlgmr.msra.gmra.mrb[28].mxu1 %vm533_vm6, %v2710_v50 }
 0x5a6   :  { %10133 = vmatpush3.bf16.msra.mxu0 %v11906_v32  ;;  %10142 = vmatpush3.bf16.msra.mxu1 %v11908_v33 }
 0x5a7   :  { %10134 = vmatprep.subr.bf16.mxu0 %v13353_v36  ;;  %10143 = vmatprep.subr.bf16.mxu1 %v13353_v36 }
 0x5a8   :  { %9213 = vmatprep.mubr.msk.f32.mxu0 %vm11709_vm2, %v13354_v42  ;;  %9228 = vmatprep.mubr.msk.f32.mxu1 %vm11709_vm2, %v13354_v42 }
 0x5aa   :  { %10136 = vmatpush3.bf16.msra.mxu0 %v11916_v38  ;;  %10145 = vmatpush3.bf16.msra.mxu1 %v11918_v39 }
 0x5ab   :  { %10137 = vmatprep.subr.bf16.mxu0 %v13353_v36  ;;  %10146 = vmatprep.subr.bf16.mxu1 %v13353_v36 }
 0x5ae   :  { %10139 = vmatpush3.bf16.msra.mxu0 %v11928_v44  ;;  %10148 = vmatpush3.bf16.msra.mxu1 %v11930_v45 }
 0x5af   :  { %10149 = vmatprep.subr.bf16.mxu0 %v13353_v36  ;;  %10158 = vmatprep.subr.bf16.mxu1 %v13353_v36 }
 0x5b1   :  { %9214 = vmatmul.mubr.msk.f32.vlgmr.msra.gmra.mrb[30].mxu0 %vm533_vm6, %v2710_v50  ;;  %9229 = vmatmul.mubr.msk.f32.vlgmr.msra.gmra.mrb[30].mxu1 %vm533_vm6, %v2710_v50 }
 0x5b2   :  { %10151 = vmatpush3.bf16.msra.mxu0 %v11872_v12  ;;  %10160 = vmatpush3.bf16.msra.mxu1 %v11874_v13 }
 0x5b3   :  { %10152 = vmatprep.subr.bf16.mxu0 %v13353_v36  ;;  %10161 = vmatprep.subr.bf16.mxu1 %v13353_v36 }
 0x5b4   :  { %9243 = vmatprep.mubr.msk.f32.mxu0 %vm11709_vm2, %v13354_v42  ;;  %9258 = vmatprep.mubr.msk.f32.mxu1 %vm11709_vm2, %v13354_v42 }
 0x5b6   :  { %10154 = vmatpush3.bf16.msra.mxu0 %v11882_v19  ;;  %10163 = vmatpush3.bf16.msra.mxu1 %v11884_v20 }
 0x5b7   :  { %10155 = vmatprep.subr.bf16.mxu0 %v13353_v36  ;;  %10164 = vmatprep.subr.bf16.mxu1 %v13353_v36 }
 0x5ba   :  { %10157 = vmatpush3.bf16.msra.mxu0 %v11894_v25  ;;  %10166 = vmatpush3.bf16.msra.mxu1 %v11896_v26 }
 0x5bb   :  { %10167 = vmatprep.subr.bf16.mxu0 %v13353_v36  ;;  %10176 = vmatprep.subr.bf16.mxu1 %v13353_v36 }
 0x678   :  { %v2779_v35 = vpop.f32.mrb[28].mxu0  ;;  %v2862_v61 = vpop.f32.mrb[28].mxu1 }
 0x679   :  { %v2784_v59 = vrot.slane %v2779_v35, 3  ;;  %v2785_v43 = vrot.slane %v2779_v35, 4  ;;  %v2786_v21 = vrot.slane %v2779_v35, 5  ;;  %v2787_v60 = vrot.slane %v2779_v35, 6  ;;  %v9185_v54 = vpop.f32.mrb[29].mxu0  ;;  %v9200_v29 = vpop.f32.mrb[29].mxu1 }
 0x67a   :  { %v2867_v23 = vrot.slane %v2862_v61, 3  ;;  %v2868_v24 = vrot.slane %v2862_v61, 4  ;;  %v2869_v57 = vrot.slane %v2862_v61, 5  ;;  %v2870_v62 = vrot.slane %v2862_v61, 6 }
 0x67b   :  { %v2792_v40 = vadd.f32 %v2784_v59, %v11970_v2  ;;  %v2793_v15 = vadd.f32 %v2785_v43, %v11966_v0  ;;  %v2794_v41 = vadd.f32 %v2786_v21, %v11978_v6  ;;  %v2795_v31 = vadd.f32 %v2787_v60, %v11974_v4 }
 0x67c   :  { %v2875_v48 = vadd.f32 %v2867_v23, %v11972_v3  ;;  %v2876_v49 = vadd.f32 %v2868_v24, %v11968_v1  ;;  %v2877_v9 = vadd.f32 %v2869_v57, %v11980_v7  ;;  %v2878_v58 = vadd.f32 %v2870_v62, %v11976_v5 }
 0x67d   :  { %v3081_v22 = vsub.f32 0.0, %v2792_v40  ;;  %v3082_v63 = vsub.f32 0.0, %v2793_v15  ;;  %v3083_v52 = vsub.f32 0.0, %v2794_v41  ;;  %v3084_v55 = vsub.f32 0.0, %v2795_v31 }
 0x67e   :  { %v3045_v28 = vsub.f32 0.0, %v2875_v48  ;;  %v3046_v50 = vsub.f32 0.0, %v2876_v49  ;;  %v3047_v35 = vsub.f32 0.0, %v2877_v9  ;;  %v3048_v60 = vsub.f32 0.0, %v2878_v58 }
 0x67f   :  { %v3085_v61 = vmul.f32 1.442695, %v3081_v22  ;;  %v3087_v59 = vmul.f32 1.442695, %v3082_v63  ;;  %v3089_v43 = vmul.f32 1.442695, %v3083_v52 }
 0x680   :  { %v3091_v21 = vmul.f32 1.442695, %v3084_v55  ;;  %v3049_v54 = vmul.f32 1.442695, %v3045_v28  ;;  %v3051_v29 = vmul.f32 1.442695, %v3046_v50 }
 0x681   :  { %10905 = vpow2.f32 %v3085_v61  ;;  %v3053_v23 = vmul.f32 1.442695, %v3047_v35  ;;  %v3055_v24 = vmul.f32 1.442695, %v3048_v60 }
 0x682   :  { %10907 = vpow2.f32 %v3087_v59 }
 0x683   :  { %10909 = vpow2.f32 %v3089_v43 }
 0x684   :  { %10911 = vpow2.f32 %v3091_v21  ;;  %v2945_v57 = vpop.f32.mrb[30].mxu0  ;;  %v3028_v62 = vpop.f32.mrb[30].mxu1 }
 0x685   :  { %10913 = vpow2.f32 %v3049_v54  ;;  %v2950_v40 = vrot.slane %v2945_v57, 3  ;;  %v2951_v15 = vrot.slane %v2945_v57, 4  ;;  %v2952_v41 = vrot.slane %v2945_v57, 5  ;;  %v9215_v31 = vpop.f32.mrb[31].mxu0  ;;  %v9230_v48 = vpop.f32.mrb[31].mxu1 }
 0x686   :  { %10915 = vpow2.f32 %v3051_v29  ;;  %v2953_v49 = vrot.slane %v2945_v57, 6  ;;  %v3033_v9 = vrot.slane %v3028_v62, 3  ;;  %v3034_v63 = vrot.slane %v3028_v62, 4 }
 0x687   :  { %10917 = vpow2.f32 %v3053_v23  ;;  %v2958_v58 = vadd.f32 %v2950_v40, %v12000_v14  ;;  %v2959_v22 = vadd.f32 %v2951_v15, %v11996_v10  ;;  %v2960_v52 = vadd.f32 %v2952_v41, %v12006_v18 }
 0x688   :  { %10919 = vpow2.f32 %v3055_v24  ;;  %v3035_v55 = vrot.slane %v3028_v62, 5  ;;  %v2961_v28 = vadd.f32 %v2953_v49, %v12004_v17  ;;  %v3036_v50 = vrot.slane %v3028_v62, 6 }
 0x689   :  { %10921 = vtanh.f32 %v2958_v58  ;;  %v3041_v35 = vadd.f32 %v3033_v9, %v12002_v16  ;;  %v3042_v59 = vadd.f32 %v3034_v63, %v11998_v11 }
 0x68a   :  { %10923 = vtanh.f32 %v2959_v22  ;;  %v3043_v60 = vadd.f32 %v3035_v55, %v12013_v34  ;;  %v3044_v23 = vadd.f32 %v3036_v50, %v12017_v37 }
 0x68b   :  { %v10906_v61 = vpop.eup %10905  ;;  %10925 = vtanh.f32 %v2960_v52  ;;  %v3113_v62 = vsub.f32 0.0, %v3041_v35  ;;  %v3114_v41 = vsub.f32 0.0, %v3042_v59 }
 0x68c   :  { %v10908_v43 = vpop.eup %10907  ;;  %v3093_v21 = vadd.f32 1.0, %v10906_v61  ;;  %10927 = vtanh.f32 %v2961_v28  ;;  %v3115_v49 = vsub.f32 0.0, %v3043_v60  ;;  %v3116_v22 = vsub.f32 0.0, %v3044_v23 }
 0x68d   :  { %v10910_v54 = vpop.eup %10909  ;;  %v3094_v29 = vadd.f32 1.0, %v10908_v43  ;;  %v3117_v55 = vmul.f32 1.442695, %v3113_v62  ;;  %v3119_v50 = vmul.f32 1.442695, %v3114_v41 }
 0x68e   :  { %v10912_v24 = vpop.eup %10911  ;;  %v3095_v57 = vadd.f32 1.0, %v10910_v54  ;;  %10929 = vrcp.f32 %v3093_v21  ;;  %v3121_v61 = vmul.f32 1.442695, %v3115_v49  ;;  %v3123_v59 = vmul.f32 1.442695, %v3116_v22 }
 0x68f   :  { %v10914_v40 = vpop.eup %10913  ;;  %v3096_v15 = vadd.f32 1.0, %v10912_v24  ;;  %10931 = vrcp.f32 %v3094_v29 }
 0x690   :  { %v10916_v31 = vpop.eup %10915  ;;  %10933 = vrcp.f32 %v3095_v57  ;;  %v3057_v48 = vadd.f32 1.0, %v10914_v40  ;;  %v3069_v40 = vrot.slane %v12366_v56, 7 }
 0x691   :  { %v10918_v9 = vpop.eup %10917  ;;  %10935 = vrcp.f32 %v3096_v15  ;;  %v3058_v58 = vadd.f32 1.0, %v10916_v31  ;;  %v3070_v31 = vrot.slane %v12368_v30, 7 }
 0x692   :  { %v10920_v63 = vpop.eup %10919  ;;  %v3059_v52 = vadd.f32 1.0, %v10918_v9  ;;  %10937 = vrcp.f32 %v3057_v48  ;;  %v3071_v9 = vrot.slane %v12370_v8, 7 }
 0x693   :  { %v3060_v28 = vadd.f32 1.0, %v10920_v63  ;;  %10939 = vrcp.f32 %v3058_v58  ;;  %v10922_v35 = vpop.eup %10921  ;;  %v3072_v63 = vrot.slane %v12373_v53, 7 }
 0x694   :  { %10941 = vrcp.f32 %v3059_v52  ;;  %v10924_v43 = vpop.eup %10923 }
 0x695   :  { %10943 = vrcp.f32 %v3060_v28  ;;  %v10926_v21 = vpop.eup %10925 }
 0x696   :  { %10945 = vpow2.f32 %v3117_v55  ;;  %v10928_v60 = vpop.eup %10927 }
 0x697   :  { %10947 = vpow2.f32 %v3119_v50 }
 0x698   :  { %v10930_v54 = vpop.eup %10929  ;;  %10949 = vpow2.f32 %v3121_v61 }
 0x699   :  { %v10932_v29 = vpop.eup %10931  ;;  %v3105_v23 = vmul.f32 %v10930_v54, %v10922_v35  ;;  %10951 = vpow2.f32 %v3123_v59 }
 0x69a   :  { %v10934_v24 = vpop.eup %10933  ;;  %v3106_v57 = vmul.f32 %v10932_v29, %v10924_v43 }
 0x69b   :  { %v10936_v62 = vpop.eup %10935  ;;  %v3107_v15 = vmul.f32 %v10934_v24, %v10926_v21 }
 0x69c   :  { %v10938_v41 = vpop.eup %10937  ;;  %v3108_v48 = vmul.f32 %v10936_v62, %v10928_v60 }
 0x69d   :  { %v10940_v49 = vpop.eup %10939  ;;  %v3077_v58 = vmul.f32 %v10938_v41, %v3069_v40 }
 0x69e   :  { %v10942_v22 = vpop.eup %10941  ;;  %v3078_v52 = vmul.f32 %v10940_v49, %v3070_v31 }
 0x69f   :  { %v10944_v55 = vpop.eup %10943  ;;  %v3079_v28 = vmul.f32 %v10942_v22, %v3071_v9  ;;  %v12453_v50 = vadd.f32 %v3105_v23, %v3077_v58 }
 0x6a0   :  { %v10946_v35 = vpop.eup %10945  ;;  %v3080_v61 = vmul.f32 %v10944_v55, %v3072_v63  ;;  %v12455_v56 = vadd.f32 %v3106_v57, %v3078_v52 }
 0x6a1   :  { %v10948_v43 = vpop.eup %10947  ;;  %v12457_v59 = vadd.f32 %v3107_v15, %v3079_v28  ;;  %10953 = vtanh.f32 %v12453_v50  ;;  %v3125_v30 = vadd.f32 1.0, %v10946_v35 }
 0x6a2   :  { %v10950_v8 = vpop.eup %10949  ;;  %v12460_v21 = vadd.f32 %v3108_v48, %v3080_v61  ;;  %10955 = vtanh.f32 %v12455_v56  ;;  %v3126_v53 = vadd.f32 1.0, %v10948_v43 }
 0x6a3   :  { %v10952_v60 = vpop.eup %10951  ;;  %10957 = vtanh.f32 %v12457_v59  ;;  %v3127_v54 = vadd.f32 1.0, %v10950_v8 }
 0x6a4   :  { %v3128_v29 = vadd.f32 1.0, %v10952_v60  ;;  %10959 = vrcp.f32 %v3125_v30 }
 0x6a5   :  { %10961 = vrcp.f32 %v3126_v53 }
 0x6a6   :  { %10963 = vrcp.f32 %v3127_v54 }
 0x6a7   :  { %10965 = vrcp.f32 %v3128_v29 }
 0x6a8   :  { %10967 = vtanh.f32 %v12460_v21 }
 0x6ab   :  { %v10954_v23 = vpop.eup %10953 }
 0x6ac   :  { %v10956_v24 = vpop.eup %10955 }
 0x6ad   :  { %v10958_v57 = vpop.eup %10957 }
 0x6ae   :  { %v10960_v62 = vpop.eup %10959 }
 0x6af   :  { %v10962_v40 = vpop.eup %10961  ;;  %v3137_v15 = vmul.f32 %v10960_v62, %v10954_v23 }
 0x6b0   :  { %v10964_v41 = vpop.eup %10963  ;;  %v3138_v31 = vmul.f32 %v10962_v40, %v10956_v24 }
 0x6b1   :  { %v10966_v48 = vpop.eup %10965  ;;  %v3139_v49 = vmul.f32 %v10964_v41, %v10958_v57  ;;  %v3145_v9 = vrot.slane %v3137_v15, 5  ;;  %v12467_v58 = vsel %vm4043_vm11, %v12380_v46, %v3137_v15 }
 0x6b2   :  { %v10968_v22 = vpop.eup %10967  ;;  %v3146_v63 = vrot.slane %v3138_v31, 4  ;;  %v12471_v52 = vsel %vm4043_vm11, %v12384_v27, %v3138_v31 }
 0x6b3   :  { %v3140_v55 = vmul.f32 %v10968_v22, %v10966_v48  ;;  %v3148_v28 = vrot.slane %v3139_v49, 3  ;;  %v12475_v35 = vsel %vm4043_vm11, %v12388_v51, %v3139_v49 }
 0x6b4   :  { %v3147_v61 = vsel %vm954_vm3, %v3146_v63, %v3145_v9 }
 0x6b5   :  { %v3149_v43 = vsel %vm957_vm4, %v3148_v28, %v3147_v61  ;;  %v3150_v30 = vrot.slane %v3140_v55, 2  ;;  %v12481_v46 = vsel %vm4043_vm11, %v12394_v47, %v3140_v55 }
 0x6b7   :  { %v3151_v8 = vsel %vm960_vm5, %v3150_v30, %v3149_v43 }
 0x6b8   :  { %9244 = vmatmul.mubr.msk.f32.vlgmr.msra.gmra.mrb[32].mxu0 %vm533_vm6, %v3151_v8  ;;  %9259 = vmatmul.mubr.msk.f32.vlgmr.msra.gmra.mrb[32].mxu1 %vm533_vm6, %v3151_v8 }
 0x6b9   :  { %10169 = vmatpush3.bf16.msra.mxu0 %v11906_v32  ;;  %10178 = vmatpush3.bf16.msra.mxu1 %v11908_v33 }
 0x6ba   :  { %10170 = vmatprep.subr.bf16.mxu0 %v13353_v36  ;;  %10179 = vmatprep.subr.bf16.mxu1 %v13353_v36 }
 0x6bb   :  { %9273 = vmatprep.mubr.msk.f32.mxu0 %vm11709_vm2, %v13354_v42  ;;  %9288 = vmatprep.mubr.msk.f32.mxu1 %vm11709_vm2, %v13354_v42 }
 0x6bd   :  { %10172 = vmatpush3.bf16.msra.mxu0 %v11916_v38  ;;  %10181 = vmatpush3.bf16.msra.mxu1 %v11918_v39 }
 0x6be   :  { %10173 = vmatprep.subr.bf16.mxu0 %v13353_v36  ;;  %10182 = vmatprep.subr.bf16.mxu1 %v13353_v36 }
 0x6c1   :  { %10175 = vmatpush3.bf16.msra.mxu0 %v11928_v44  ;;  %10184 = vmatpush3.bf16.msra.mxu1 %v11930_v45 }
 0x6c2   :  { %10185 = vmatprep.subr.bf16.mxu0 %v13353_v36  ;;  %10194 = vmatprep.subr.bf16.mxu1 %v13353_v36 }
 0x6c4   :  { %9274 = vmatmul.mubr.msk.f32.vlgmr.msra.gmra.mrb[34].mxu0 %vm533_vm6, %v3151_v8  ;;  %9289 = vmatmul.mubr.msk.f32.vlgmr.msra.gmra.mrb[34].mxu1 %vm533_vm6, %v3151_v8 }
 0x6c5   :  { %10187 = vmatpush3.bf16.msra.mxu0 %v11872_v12  ;;  %10196 = vmatpush3.bf16.msra.mxu1 %v11874_v13 }
 0x6c6   :  { %10188 = vmatprep.subr.bf16.mxu0 %v13353_v36  ;;  %10197 = vmatprep.subr.bf16.mxu1 %v13353_v36 }
 0x6c7   :  { %9303 = vmatprep.mubr.msk.f32.mxu0 %vm11709_vm2, %v13354_v42  ;;  %9318 = vmatprep.mubr.msk.f32.mxu1 %vm11709_vm2, %v13354_v42 }
 0x6c9   :  { %10190 = vmatpush3.bf16.msra.mxu0 %v11882_v19  ;;  %10199 = vmatpush3.bf16.msra.mxu1 %v11884_v20 }
 0x6ca   :  { %10191 = vmatprep.subr.bf16.mxu0 %v13353_v36  ;;  %10200 = vmatprep.subr.bf16.mxu1 %v13353_v36 }
 0x6cd   :  { %10193 = vmatpush3.bf16.msra.mxu0 %v11894_v25  ;;  %10202 = vmatpush3.bf16.msra.mxu1 %v11896_v26 }
 0x6ce   :  { %10203 = vmatprep.subr.bf16.mxu0 %v13353_v36  ;;  %10212 = vmatprep.subr.bf16.mxu1 %v13353_v36 }
 0x78b   :  { %v3220_v12 = vpop.f32.mrb[32].mxu0  ;;  %v3303_v13 = vpop.f32.mrb[32].mxu1 }
 0x78c   :  { %v3225_v27 = vrot.slane %v3220_v12, 2  ;;  %v3226_v51 = vrot.slane %v3220_v12, 3  ;;  %v3227_v47 = vrot.slane %v3220_v12, 4  ;;  %v3228_v19 = vrot.slane %v3220_v12, 5  ;;  %v9245_v53 = vpop.f32.mrb[33].mxu0  ;;  %v9260_v20 = vpop.f32.mrb[33].mxu1 }
 0x78d   :  { %v3308_v60 = vrot.slane %v3303_v13, 2  ;;  %v3309_v54 = vrot.slane %v3303_v13, 3  ;;  %v3310_v29 = vrot.slane %v3303_v13, 4  ;;  %v3311_v23 = vrot.slane %v3303_v13, 5 }
 0x78e   :  { %v3233_v25 = vadd.f32 %v3225_v27, %v11970_v2  ;;  %v3234_v26 = vadd.f32 %v3226_v51, %v11966_v0  ;;  %v3235_v24 = vadd.f32 %v3227_v47, %v11978_v6  ;;  %v3236_v57 = vadd.f32 %v3228_v19, %v11974_v4 }
 0x78f   :  { %v3316_v62 = vadd.f32 %v3308_v60, %v11972_v3  ;;  %v3317_v40 = vadd.f32 %v3309_v54, %v11968_v1  ;;  %v3318_v15 = vadd.f32 %v3310_v29, %v11980_v7  ;;  %v3319_v41 = vadd.f32 %v3311_v23, %v11976_v5 }
 0x790   :  { %v3522_v31 = vsub.f32 0.0, %v3233_v25  ;;  %v3523_v48 = vsub.f32 0.0, %v3234_v26  ;;  %v3524_v49 = vsub.f32 0.0, %v3235_v24  ;;  %v3525_v9 = vsub.f32 0.0, %v3236_v57 }
 0x791   :  { %v3486_v22 = vsub.f32 0.0, %v3316_v62  ;;  %v3487_v63 = vsub.f32 0.0, %v3317_v40  ;;  %v3488_v55 = vsub.f32 0.0, %v3318_v15  ;;  %v3489_v8 = vsub.f32 0.0, %v3319_v41 }
 0x792   :  { %v3526_v28 = vmul.f32 1.442695, %v3522_v31  ;;  %v3528_v61 = vmul.f32 1.442695, %v3523_v48  ;;  %v3530_v43 = vmul.f32 1.442695, %v3524_v49 }
 0x793   :  { %v3532_v30 = vmul.f32 1.442695, %v3525_v9  ;;  %v3490_v12 = vmul.f32 1.442695, %v3486_v22  ;;  %v3492_v13 = vmul.f32 1.442695, %v3487_v63 }
 0x794   :  { %10969 = vpow2.f32 %v3526_v28  ;;  %v3494_v27 = vmul.f32 1.442695, %v3488_v55  ;;  %v3496_v51 = vmul.f32 1.442695, %v3489_v8 }
 0x795   :  { %10971 = vpow2.f32 %v3528_v61 }
 0x796   :  { %10973 = vpow2.f32 %v3530_v43 }
 0x797   :  { %10975 = vpow2.f32 %v3532_v30  ;;  %v3386_v47 = vpop.f32.mrb[34].mxu0  ;;  %v3469_v19 = vpop.f32.mrb[34].mxu1 }
 0x798   :  { %10977 = vpow2.f32 %v3490_v12  ;;  %v3391_v53 = vrot.slane %v3386_v47, 2  ;;  %v3392_v20 = vrot.slane %v3386_v47, 3  ;;  %v3393_v60 = vrot.slane %v3386_v47, 4  ;;  %v9275_v54 = vpop.f32.mrb[35].mxu0  ;;  %v9290_v29 = vpop.f32.mrb[35].mxu1 }
 0x799   :  { %10979 = vpow2.f32 %v3492_v13  ;;  %v3394_v23 = vrot.slane %v3386_v47, 5  ;;  %v3474_v25 = vrot.slane %v3469_v19, 2  ;;  %v3475_v57 = vrot.slane %v3469_v19, 3 }
 0x79a   :  { %10981 = vpow2.f32 %v3494_v27  ;;  %v3399_v26 = vadd.f32 %v3391_v53, %v12000_v14  ;;  %v3400_v24 = vadd.f32 %v3392_v20, %v11996_v10  ;;  %v3401_v62 = vadd.f32 %v3393_v60, %v12006_v18 }
 0x79b   :  { %10983 = vpow2.f32 %v3496_v51  ;;  %v3476_v40 = vrot.slane %v3469_v19, 4  ;;  %v3402_v15 = vadd.f32 %v3394_v23, %v12004_v17  ;;  %v3477_v41 = vrot.slane %v3469_v19, 5 }
 0x79c   :  { %10985 = vtanh.f32 %v3399_v26  ;;  %v3482_v31 = vadd.f32 %v3474_v25, %v12002_v16  ;;  %v3483_v49 = vadd.f32 %v3475_v57, %v11998_v11 }
 0x79d   :  { %10987 = vtanh.f32 %v3400_v24  ;;  %v3484_v63 = vadd.f32 %v3476_v40, %v12013_v34  ;;  %v3485_v61 = vadd.f32 %v3477_v41, %v12017_v37 }
 0x79e   :  { %v10970_v48 = vpop.eup %10969  ;;  %10989 = vtanh.f32 %v3401_v62  ;;  %v3554_v8 = vsub.f32 0.0, %v3482_v31  ;;  %v3555_v27 = vsub.f32 0.0, %v3483_v49 }
 0x79f   :  { %v10972_v9 = vpop.eup %10971  ;;  %v3534_v22 = vadd.f32 1.0, %v10970_v48  ;;  %10991 = vtanh.f32 %v3402_v15  ;;  %v3556_v19 = vsub.f32 0.0, %v3484_v63  ;;  %v3557_v60 = vsub.f32 0.0, %v3485_v61 }
 0x7a0   :  { %v10974_v55 = vpop.eup %10973  ;;  %v3535_v28 = vadd.f32 1.0, %v10972_v9  ;;  %v3558_v23 = vmul.f32 1.442695, %v3554_v8  ;;  %v3560_v26 = vmul.f32 1.442695, %v3555_v27 }
 0x7a1   :  { %v10976_v43 = vpop.eup %10975  ;;  %v3536_v30 = vadd.f32 1.0, %v10974_v55  ;;  %10993 = vrcp.f32 %v3534_v22  ;;  %v3562_v57 = vmul.f32 1.442695, %v3556_v19  ;;  %v3564_v40 = vmul.f32 1.442695, %v3557_v60 }
 0x7a2   :  { %v10978_v12 = vpop.eup %10977  ;;  %v3537_v13 = vadd.f32 1.0, %v10976_v43  ;;  %10995 = vrcp.f32 %v3535_v28  ;;  %v3510_v55 = vrot.slane %v12453_v50, 7  ;;  %v3511_v43 = vrot.slane %v12455_v56, 7 }
 0x7a3   :  { %v10980_v51 = vpop.eup %10979  ;;  %10997 = vrcp.f32 %v3536_v30  ;;  %v3498_v47 = vadd.f32 1.0, %v10978_v12  ;;  %v3512_v12 = vrot.slane %v12457_v59, 7 }
 0x7a4   :  { %v10982_v53 = vpop.eup %10981  ;;  %10999 = vrcp.f32 %v3537_v13  ;;  %v3499_v20 = vadd.f32 1.0, %v10980_v51  ;;  %v3513_v51 = vrot.slane %v12460_v21, 7 }
 0x7a5   :  { %v10984_v54 = vpop.eup %10983  ;;  %v3500_v29 = vadd.f32 1.0, %v10982_v53  ;;  %11001 = vrcp.f32 %v3498_v47 }
 0x7a6   :  { %v3501_v25 = vadd.f32 1.0, %v10984_v54  ;;  %11003 = vrcp.f32 %v3499_v20  ;;  %v10986_v24 = vpop.eup %10985 }
 0x7a7   :  { %11005 = vrcp.f32 %v3500_v29  ;;  %v10988_v62 = vpop.eup %10987 }
 0x7a8   :  { %11007 = vrcp.f32 %v3501_v25  ;;  %v10990_v15 = vpop.eup %10989 }
 0x7a9   :  { %11009 = vpow2.f32 %v3558_v23  ;;  %v10992_v41 = vpop.eup %10991 }
 0x7aa   :  { %11011 = vpow2.f32 %v3560_v26 }
 0x7ab   :  { %v10994_v31 = vpop.eup %10993  ;;  %11013 = vpow2.f32 %v3562_v57 }
 0x7ac   :  { %v10996_v48 = vpop.eup %10995  ;;  %v3546_v49 = vmul.f32 %v10994_v31, %v10986_v24  ;;  %11015 = vpow2.f32 %v3564_v40 }
 0x7ad   :  { %v10998_v9 = vpop.eup %10997  ;;  %v3547_v22 = vmul.f32 %v10996_v48, %v10988_v62 }
 0x7ae   :  { %v11000_v63 = vpop.eup %10999  ;;  %v3548_v28 = vmul.f32 %v10998_v9, %v10990_v15 }
 0x7af   :  { %v11002_v61 = vpop.eup %11001  ;;  %v3549_v30 = vmul.f32 %v11000_v63, %v10992_v41 }
 0x7b0   :  { %v11004_v8 = vpop.eup %11003  ;;  %v3518_v13 = vmul.f32 %v11002_v61, %v3510_v55 }
 0x7b1   :  { %v11006_v27 = vpop.eup %11005  ;;  %v3519_v47 = vmul.f32 %v11004_v8, %v3511_v43 }
 0x7b2   :  { %v11008_v19 = vpop.eup %11007  ;;  %v3520_v53 = vmul.f32 %v11006_v27, %v3512_v12  ;;  %v12540_v20 = vadd.f32 %v3546_v49, %v3518_v13 }
 0x7b3   :  { %v11010_v60 = vpop.eup %11009  ;;  %v3521_v54 = vmul.f32 %v11008_v19, %v3513_v51  ;;  %v12542_v50 = vadd.f32 %v3547_v22, %v3519_v47 }
 0x7b4   :  { %v11012_v29 = vpop.eup %11011  ;;  %v12544_v23 = vadd.f32 %v3548_v28, %v3520_v53  ;;  %11017 = vtanh.f32 %v12540_v20  ;;  %v3566_v56 = vadd.f32 1.0, %v11010_v60  ;;  %v4060_v53 = vld [vmem:[#allocation5 + $0x18] sm:$0xff] }
 0x7b5   :  { %v11014_v59 = vpop.eup %11013  ;;  %v12547_v25 = vadd.f32 %v3549_v30, %v3521_v54  ;;  %11019 = vtanh.f32 %v12542_v50  ;;  %v3567_v21 = vadd.f32 1.0, %v11012_v29  ;;  %v4174_v54 = vld [vmem:[#allocation5 + $0x40] sm:$0xff]  ;;  %v4175_v29 = vld [vmem:[#allocation5 + $0x48] sm:$0xff] }
 0x7b6   :  { %v11016_v26 = vpop.eup %11015  ;;  %11021 = vtanh.f32 %v12544_v23  ;;  %v3568_v24 = vadd.f32 1.0, %v11014_v59  ;;  %v4062_v59 = vld [vmem:[#allocation5 + $0x28] sm:$0xff] }
 0x7b7   :  { %v3569_v57 = vadd.f32 1.0, %v11016_v26  ;;  %11023 = vrcp.f32 %v3566_v56  ;;  %v4061_v56 = vld [vmem:[#allocation5 + $0x20] sm:$0xff] }
 0x7b8   :  { %11025 = vrcp.f32 %v3567_v21  ;;  %v4177_v21 = vld [vmem:[#allocation5 + $0x58] sm:$0xff]  ;;  %v10229_v26 = vpack.c.bf16 %v4062_v59, %v4061_v56 }
 0x7b9   :  { %11027 = vrcp.f32 %v3568_v24 }
 0x7ba   :  { %11029 = vrcp.f32 %v3569_v57  ;;  %v4276_v57 = vld [vmem:[#allocation5 + $0x60] sm:$0xff] }
 0x7bb   :  { %11031 = vtanh.f32 %v12547_v25 }
 0x7be   :  { %v11018_v62 = vpop.eup %11017 }
 0x7bf   :  { %v11020_v40 = vpop.eup %11019 }
 0x7c0   :  { %v11022_v15 = vpop.eup %11021 }
 0x7c1   :  { %v11024_v41 = vpop.eup %11023 }
 0x7c2   :  { %v11026_v31 = vpop.eup %11025  ;;  %v3578_v48 = vmul.f32 %v11024_v41, %v11018_v62  ;;  %v4277_v62 = vld [vmem:[#allocation5 + $0x68] sm:$0xff]  ;;  %v4381_v41 = vld [vmem:[#allocation5 + $0x98] sm:$0xff] }
 0x7c3   :  { %v11028_v49 = vpop.eup %11027  ;;  %v3579_v9 = vmul.f32 %v11026_v31, %v11020_v40  ;;  %v4380_v40 = vld [vmem:[#allocation5 + $0x90] sm:$0xff] }
 0x7c4   :  { %v11030_v22 = vpop.eup %11029  ;;  %v3580_v63 = vmul.f32 %v11028_v49, %v11022_v15  ;;  %v3586_v55 = vrot.slane %v3578_v48, 6  ;;  %v12554_v28 = vsel %vm100_vm0, %v12467_v58, %v3578_v48  ;;  %v12589_v15 = vpack.c.bf16 %v4277_v62, %v4276_v57 }
 0x7c5   :  { %v11032_v61 = vpop.eup %11031  ;;  %v3587_v43 = vrot.slane %v3579_v9, 5  ;;  %v12558_v30 = vsel %vm100_vm0, %v12471_v52, %v3579_v9  ;;  %v4172_v52 = vld [vmem:[#allocation5 + $0x30] sm:$0xff]  ;;  %v12591_v31 = vpack.c.bf16 %v4381_v41, %v4380_v40 }
 0x7c6   :  { %v3581_v8 = vmul.f32 %v11032_v61, %v11030_v22  ;;  %v3589_v12 = vrot.slane %v3580_v63, 4  ;;  %v12562_v13 = vsel %vm100_vm0, %v12475_v35, %v3580_v63 }
 0x7c7   :  { %v3588_v27 = vsel %vm954_vm3, %v3587_v43, %v3586_v55 }
 0x7c8   :  { %v3590_v51 = vsel %vm957_vm4, %v3589_v12, %v3588_v27  ;;  %v3591_v47 = vrot.slane %v3581_v8, 3  ;;  %v12568_v58 = vsel %vm100_vm0, %v12481_v46, %v3581_v8  ;;  %v4173_v46 = vld [vmem:[#allocation5 + $0x38] sm:$0xff] }
 0x7ca   :  { %v3592_v19 = vsel %vm960_vm5, %v3591_v47, %v3590_v51 }
 0x7cb   :  { %9304 = vmatmul.mubr.msk.f32.vlgmr.msra.gmra.mrb[36].mxu0 %vm533_vm6, %v3592_v19  ;;  %9319 = vmatmul.mubr.msk.f32.vlgmr.msra.gmra.mrb[36].mxu1 %vm533_vm6, %v3592_v19 }
 0x7cc   :  { %10205 = vmatpush3.bf16.msra.mxu0 %v11906_v32  ;;  %10214 = vmatpush3.bf16.msra.mxu1 %v11908_v33  ;;  %v4057_v32 = vld [vmem:[#allocation5] sm:$0xff]  ;;  %v4058_v33 = vld [vmem:[#allocation5 + $0x8] sm:$0xff] }
 0x7cd   :  { %10206 = vmatprep.subr.bf16.mxu0 %v13353_v36  ;;  %10215 = vmatprep.subr.bf16.mxu1 %v13353_v36  ;;  %v10221_v35 = vpack.c.bf16 %v4058_v33, %v4057_v32 }
 0x7ce   :  { %9333 = vmatprep.mubr.msk.f32.mxu0 %vm11709_vm2, %v13354_v42  ;;  %9348 = vmatprep.mubr.msk.f32.mxu1 %vm11709_vm2, %v13354_v42 }
 0x7d0   :  { %10208 = vmatpush3.bf16.msra.mxu0 %v11916_v38  ;;  %10217 = vmatpush3.bf16.msra.mxu1 %v11918_v39  ;;  %v4059_v38 = vld [vmem:[#allocation5 + $0x10] sm:$0xff]  ;;  %v10233_v39 = vpack.c.bf16 %v4173_v46, %v4172_v52 }
 0x7d1   :  { %10209 = vmatprep.subr.bf16.mxu0 %v13353_v36  ;;  %10218 = vmatprep.subr.bf16.mxu1 %v13353_v36  ;;  %v10225_v60 = vpack.c.bf16 %v4060_v53, %v4059_v38 }
 0x7d4   :  { %10211 = vmatpush3.bf16.msra.mxu0 %v11928_v44  ;;  %10220 = vmatpush3.bf16.msra.mxu1 %v11930_v45  ;;  %v10237_v44 = vpack.c.bf16 %v4175_v29, %v4174_v54  ;;  %v4176_v45 = vld [vmem:[#allocation5 + $0x50] sm:$0xff] }
 0x7d5   :  { %10222 = vmatprep.subr.bf16.mxu0 %v10221_v35  ;;  %10234 = vmatprep.subr.bf16.mxu1 %v10233_v39  ;;  %v10241_v24 = vpack.c.bf16 %v4177_v21, %v4176_v45 }
 0x7d7   :  { %9334 = vmatmul.mubr.msk.f32.vlgmr.msra.gmra.mrb[38].mxu0 %vm533_vm6, %v3592_v19  ;;  %9349 = vmatmul.mubr.msk.f32.vlgmr.msra.gmra.mrb[38].mxu1 %vm533_vm6, %v3592_v19 }
 0x7d8   :  { %10224 = vmatpush3.bf16.msra.mxu0 %v10221_v35  ;;  %10236 = vmatpush3.bf16.msra.mxu1 %v10233_v39 }
 0x7d9   :  { %10226 = vmatprep.subr.bf16.mxu0 %v10225_v60  ;;  %10238 = vmatprep.subr.bf16.mxu1 %v10237_v44 }
 0x7dc   :  { %10228 = vmatpush3.bf16.msra.mxu0 %v10225_v60  ;;  %10240 = vmatpush3.bf16.msra.mxu1 %v10237_v44 }
 0x7dd   :  { %10230 = vmatprep.subr.bf16.mxu0 %v10229_v26  ;;  %10242 = vmatprep.subr.bf16.mxu1 %v10241_v24 }
 0x7e0   :  { %10232 = vmatpush3.bf16.msra.mxu0 %v10229_v26  ;;  %10244 = vmatpush3.bf16.msra.mxu1 %v10241_v24 }
 0x7e1   :  { %10246 = vmatprep.subr.bf16.mxu0 %v12589_v15  ;;  %10258 = vmatprep.subr.bf16.mxu1 %v12591_v31 }
 0x89e   :  { %v3661_v48 = vpop.f32.mrb[36].mxu0  ;;  %v3744_v49 = vpop.f32.mrb[36].mxu1 }
 0x89f   :  { %v3666_v9 = vrot.slane %v3661_v48, 1  ;;  %v3667_v22 = vrot.slane %v3661_v48, 2  ;;  %v3668_v63 = vrot.slane %v3661_v48, 3  ;;  %v3669_v55 = vrot.slane %v3661_v48, 4  ;;  %v9305_v61 = vpop.f32.mrb[37].mxu0  ;;  %v9320_v43 = vpop.f32.mrb[37].mxu1 }
 0x8a0   :  { %v3749_v8 = vrot.slane %v3744_v49, 1  ;;  %v3750_v12 = vrot.slane %v3744_v49, 2  ;;  %v3751_v27 = vrot.slane %v3744_v49, 3  ;;  %v3752_v51 = vrot.slane %v3744_v49, 4 }
 0x8a1   :  { %v3674_v47 = vadd.f32 %v3666_v9, %v11970_v2  ;;  %v3675_v19 = vadd.f32 %v3667_v22, %v11966_v0  ;;  %v3676_v32 = vadd.f32 %v3668_v63, %v11978_v6  ;;  %v3677_v33 = vadd.f32 %v3669_v55, %v11974_v4 }
 0x8a2   :  { %v3757_v52 = vadd.f32 %v3749_v8, %v11972_v3  ;;  %v3758_v35 = vadd.f32 %v3750_v12, %v11968_v1  ;;  %v3759_v46 = vadd.f32 %v3751_v27, %v11980_v7  ;;  %v3760_v38 = vadd.f32 %v3752_v51, %v11976_v5 }
 0x8a3   :  { %v3963_v53 = vsub.f32 0.0, %v3674_v47  ;;  %v3964_v39 = vsub.f32 0.0, %v3675_v19  ;;  %v3965_v60 = vsub.f32 0.0, %v3676_v32  ;;  %v3966_v54 = vsub.f32 0.0, %v3677_v33 }
 0x8a4   :  { %v3927_v29 = vsub.f32 0.0, %v3757_v52  ;;  %v3928_v2 = vsub.f32 0.0, %v3758_v35  ;;  %v3929_v56 = vsub.f32 0.0, %v3759_v46  ;;  %v3930_v4 = vsub.f32 0.0, %v3760_v38 }
 0x8a5   :  { %v3967_v0 = vmul.f32 1.442695, %v3963_v53  ;;  %v3969_v44 = vmul.f32 1.442695, %v3964_v39  ;;  %v3971_v6 = vmul.f32 1.442695, %v3965_v60 }
 0x8a6   :  { %v3973_v59 = vmul.f32 1.442695, %v3966_v54  ;;  %v3931_v3 = vmul.f32 1.442695, %v3927_v29  ;;  %v3933_v1 = vmul.f32 1.442695, %v3928_v2 }
 0x8a7   :  { %11033 = vpow2.f32 %v3967_v0  ;;  %v3935_v7 = vmul.f32 1.442695, %v3929_v56  ;;  %v3937_v5 = vmul.f32 1.442695, %v3930_v4 }
 0x8a8   :  { %11035 = vpow2.f32 %v3969_v44 }
 0x8a9   :  { %11037 = vpow2.f32 %v3971_v6 }
 0x8aa   :  { %11039 = vpow2.f32 %v3973_v59  ;;  %v3827_v45 = vpop.f32.mrb[38].mxu0  ;;  %v3910_v21 = vpop.f32.mrb[38].mxu1 }
 0x8ab   :  { %11041 = vpow2.f32 %v3931_v3  ;;  %v3832_v26 = vrot.slane %v3827_v45, 1  ;;  %v3833_v24 = vrot.slane %v3827_v45, 2  ;;  %v3834_v57 = vrot.slane %v3827_v45, 3  ;;  %v9335_v62 = vpop.f32.mrb[39].mxu0  ;;  %v9350_v40 = vpop.f32.mrb[39].mxu1 }
 0x8ac   :  { %11043 = vpow2.f32 %v3933_v1  ;;  %v3835_v41 = vrot.slane %v3827_v45, 4  ;;  %v3915_v48 = vrot.slane %v3910_v21, 1  ;;  %v3916_v22 = vrot.slane %v3910_v21, 2 }
 0x8ad   :  { %11045 = vpow2.f32 %v3935_v7  ;;  %v3840_v49 = vadd.f32 %v3832_v26, %v12000_v14  ;;  %v3841_v9 = vadd.f32 %v3833_v24, %v11996_v10  ;;  %v3842_v63 = vadd.f32 %v3834_v57, %v12006_v18 }
 0x8ae   :  { %11047 = vpow2.f32 %v3937_v5  ;;  %v3917_v55 = vrot.slane %v3910_v21, 3  ;;  %v3843_v61 = vadd.f32 %v3835_v41, %v12004_v17  ;;  %v3918_v43 = vrot.slane %v3910_v21, 4 }
 0x8af   :  { %11049 = vtanh.f32 %v3840_v49  ;;  %v3923_v8 = vadd.f32 %v3915_v48, %v12002_v16  ;;  %v3924_v27 = vadd.f32 %v3916_v22, %v11998_v11  ;;  %v3951_v26 = vrot.slane %v12540_v20, 7 }
 0x8b0   :  { %11051 = vtanh.f32 %v3841_v9  ;;  %v3925_v10 = vadd.f32 %v3917_v55, %v12013_v34  ;;  %v3926_v18 = vadd.f32 %v3918_v43, %v12017_v37  ;;  %v3952_v62 = vrot.slane %v12542_v50, 7 }
 0x8b1   :  { %v11034_v12 = vpop.eup %11033  ;;  %11053 = vtanh.f32 %v3842_v63  ;;  %v3995_v33 = vsub.f32 0.0, %v3923_v8  ;;  %v3996_v35 = vsub.f32 0.0, %v3924_v27  ;;  %v3953_v48 = vrot.slane %v12544_v23, 7 }
 0x8b2   :  { %v11036_v51 = vpop.eup %11035  ;;  %v3975_v47 = vadd.f32 1.0, %v11034_v12  ;;  %11055 = vtanh.f32 %v3843_v61  ;;  %v3997_v38 = vsub.f32 0.0, %v3925_v10  ;;  %v3998_v39 = vsub.f32 0.0, %v3926_v18 }
 0x8b3   :  { %v11038_v14 = vpop.eup %11037  ;;  %v3976_v19 = vadd.f32 1.0, %v11036_v51  ;;  %v3999_v37 = vmul.f32 1.442695, %v3995_v33  ;;  %v4001_v2 = vmul.f32 1.442695, %v3996_v35  ;;  %v3954_v22 = vrot.slane %v12547_v25, 7 }
 0x8b4   :  { %v11040_v32 = vpop.eup %11039  ;;  %v3977_v17 = vadd.f32 1.0, %v11038_v14  ;;  %11057 = vrcp.f32 %v3975_v47  ;;  %v4003_v0 = vmul.f32 1.442695, %v3997_v38  ;;  %v4005_v6 = vmul.f32 1.442695, %v3998_v39  ;;  %v4383_v35 = vld [vmem:[#allocation5 + $0xa8] sm:$0xff] }
 0x8b5   :  { %v11042_v52 = vpop.eup %11041  ;;  %v3978_v16 = vadd.f32 1.0, %v11040_v32  ;;  %11059 = vrcp.f32 %v3976_v19 }
 0x8b6   :  { %v11044_v46 = vpop.eup %11043  ;;  %11061 = vrcp.f32 %v3977_v17  ;;  %v3939_v11 = vadd.f32 1.0, %v11042_v52  ;;  %v4278_v17 = vld [vmem:[#allocation5 + $0x70] sm:$0xff]  ;;  %v4279_v52 = vld [vmem:[#allocation5 + $0x78] sm:$0xff] }
 0x8b7   :  { %v11046_v53 = vpop.eup %11045  ;;  %11063 = vrcp.f32 %v3978_v16  ;;  %v3940_v34 = vadd.f32 1.0, %v11044_v46  ;;  %v4382_v16 = vld [vmem:[#allocation5 + $0xa0] sm:$0xff] }
 0x8b8   :  { %v11048_v60 = vpop.eup %11047  ;;  %v3941_v54 = vadd.f32 1.0, %v11046_v53  ;;  %11065 = vrcp.f32 %v3939_v11 }
 0x8b9   :  { %v3942_v29 = vadd.f32 1.0, %v11048_v60  ;;  %11067 = vrcp.f32 %v3940_v34  ;;  %v11050_v56 = vpop.eup %11049  ;;  %v10249_v60 = vpack.c.bf16 %v4279_v52, %v4278_v17 }
 0x8ba   :  { %11069 = vrcp.f32 %v3941_v54  ;;  %v11052_v44 = vpop.eup %11051  ;;  %v10261_v54 = vpack.c.bf16 %v4383_v35, %v4382_v16 }
 0x8bb   :  { %11071 = vrcp.f32 %v3942_v29  ;;  %v11054_v59 = vpop.eup %11053 }
 0x8bc   :  { %11073 = vpow2.f32 %v3999_v37  ;;  %v11056_v4 = vpop.eup %11055 }
 0x8bd   :  { %11075 = vpow2.f32 %v4001_v2  ;;  %v4280_v2 = vld [vmem:[#allocation5 + $0x80] sm:$0xff] }
 0x8be   :  { %v11058_v3 = vpop.eup %11057  ;;  %11077 = vpow2.f32 %v4003_v0 }
 0x8bf   :  { %v11060_v1 = vpop.eup %11059  ;;  %v3987_v7 = vmul.f32 %v11058_v3, %v11050_v56  ;;  %11079 = vpow2.f32 %v4005_v6  ;;  %v4384_v6 = vld [vmem:[#allocation5 + $0xb0] sm:$0xff] }
 0x8c0   :  { %v11062_v5 = vpop.eup %11061  ;;  %v3988_v45 = vmul.f32 %v11060_v1, %v11052_v44  ;;  %v4281_v44 = vld [vmem:[#allocation5 + $0x88] sm:$0xff] }
 0x8c1   :  { %v11064_v21 = vpop.eup %11063  ;;  %v3989_v24 = vmul.f32 %v11062_v5, %v11054_v59  ;;  %v10253_v3 = vpack.c.bf16 %v4281_v44, %v4280_v2 }
 0x8c2   :  { %v11066_v57 = vpop.eup %11065  ;;  %v3990_v40 = vmul.f32 %v11064_v21, %v11056_v4  ;;  %v4486_v21 = vld [vmem:[#allocation7 + $0x18] sm:$0xff] }
 0x8c3   :  { %v11068_v41 = vpop.eup %11067  ;;  %v3959_v49 = vmul.f32 %v11066_v57, %v3951_v26  ;;  %v4492_v26 = vld [vmem:[#allocation7 + $0x40] sm:$0xff] }
 0x8c4   :  { %v11070_v9 = vpop.eup %11069  ;;  %v3960_v63 = vmul.f32 %v11068_v41, %v3952_v62  ;;  %v4488_v41 = vld [vmem:[#allocation7 + $0x28] sm:$0xff] }
 0x8c5   :  { %v11072_v55 = vpop.eup %11071  ;;  %v3991_v61 = vadd.f32 %v3987_v7, %v3959_v49  ;;  %v3961_v43 = vmul.f32 %v11070_v9, %v3953_v48  ;;  %v4491_v7 = vld [vmem:[#allocation7 + $0x38] sm:$0xff]  ;;  %v4494_v48 = vld [vmem:[#allocation7 + $0x50] sm:$0xff] }
 0x8c6   :  { %v11074_v8 = vpop.eup %11073  ;;  %v3992_v12 = vadd.f32 %v3988_v45, %v3960_v63  ;;  %v3962_v27 = vmul.f32 %v11072_v55, %v3954_v22  ;;  %v4485_v45 = vld [vmem:[#allocation7 + $0x10] sm:$0xff]  ;;  %v4495_v49 = vld [vmem:[#allocation7 + $0x58] sm:$0xff]  ;;  %v4497_v63 = vld [vmem:[#allocation7 + $0x60] sm:$0xff] }
 0x8c7   :  { %v11076_v20 = vpop.eup %11075  ;;  %v4007_v51 = vadd.f32 1.0, %v11074_v8  ;;  %11081 = vtanh.f32 %v3991_v61  ;;  %v3993_v47 = vadd.f32 %v3989_v24, %v3961_v43  ;;  %v4493_v24 = vld [vmem:[#allocation7 + $0x48] sm:$0xff]  ;;  %v12647_v57 = vpack.c.bf16 %v4486_v21, %v4485_v45  ;;  %v4504_v61 = vld [vmem:[#allocation7 + $0x90] sm:$0xff]  ;;  %v4505_v43 = vld [vmem:[#allocation7 + $0x98] sm:$0xff] }
 0x8c8   :  { %v11078_v50 = vpop.eup %11077  ;;  %v4008_v10 = vadd.f32 1.0, %v11076_v20  ;;  %11083 = vtanh.f32 %v3992_v12  ;;  %v3994_v14 = vadd.f32 %v3990_v40, %v3962_v27  ;;  %v12649_v62 = vpack.c.bf16 %v4493_v24, %v4492_v26  ;;  %v4487_v40 = vld [vmem:[#allocation7 + $0x20] sm:$0xff]  ;;  %v4498_v55 = vld [vmem:[#allocation7 + $0x68] sm:$0xff]  ;;  %v4499_v27 = vld [vmem:[#allocation7 + $0x70] sm:$0xff] }
 0x8c9   :  { %v11080_v23 = vpop.eup %11079  ;;  %v4009_v19 = vadd.f32 1.0, %v11078_v50  ;;  %11085 = vrcp.f32 %v4007_v51  ;;  %v12661_v9 = vpack.c.bf16 %v4488_v41, %v4487_v40  ;;  %v12663_v22 = vpack.c.bf16 %v4495_v49, %v4494_v48  ;;  %v4500_v20 = vld [vmem:[#allocation7 + $0x78] sm:$0xff]  ;;  %v4506_v51 = vld [vmem:[#allocation7 + $0xa0] sm:$0xff] }
 0x8ca   :  { %v4010_v18 = vadd.f32 1.0, %v11080_v23  ;;  %11087 = vrcp.f32 %v4008_v10  ;;  %v12669_v8 = vpack.c.bf16 %v4498_v55, %v4497_v63  ;;  %v12671_v12 = vpack.c.bf16 %v4505_v43, %v4504_v61  ;;  %v4502_v23 = vld [vmem:[#allocation7 + $0x88] sm:$0xff] }
 0x8cb   :  { %11089 = vrcp.f32 %v4009_v19  ;;  %v12679_v50 = vpack.c.bf16 %v4500_v20, %v4499_v27  ;;  %v4508_v19 = vld [vmem:[#allocation7 + $0xb0] sm:$0xff] }
 0x8cc   :  { %11091 = vrcp.f32 %v4010_v18  ;;  %v4509_v18 = vld [vmem:[#allocation7 + $0xb8] sm:$0xff] }
 0x8cd   :  { %11093 = vtanh.f32 %v3993_v47  ;;  %v4507_v47 = vld [vmem:[#allocation7 + $0xa8] sm:$0xff] }
 0x8ce   :  { %11095 = vtanh.f32 %v3994_v14  ;;  %v12681_v10 = vpack.c.bf16 %v4507_v47, %v4506_v51  ;;  %v4501_v14 = vld [vmem:[#allocation7 + $0x80] sm:$0xff] }
 0x8d1   :  { %v11082_v25 = vpop.eup %11081 }
 0x8d2   :  { %v11084_v32 = vpop.eup %11083 }
 0x8d3   :  { %v11086_v33 = vpop.eup %11085 }
 0x8d4   :  { %v11088_v46 = vpop.eup %11087  ;;  %v4019_v11 = vmul.f32 %v11086_v33, %v11082_v25  ;;  %v12691_v25 = vpack.c.bf16 %v4502_v23, %v4501_v14 }
 0x8d5   :  { %v11090_v38 = vpop.eup %11089  ;;  %v4020_v53 = vmul.f32 %v11088_v46, %v11084_v32  ;;  %v12693_v32 = vpack.c.bf16 %v4509_v18, %v4508_v19 }
 0x8d6   :  { %v11092_v34 = vpop.eup %11091  ;;  %v4053_v39 = vsel %vm4052_vm12, %v12554_v28, %v4019_v11  ;;  %v4385_v28 = vld [vmem:[#allocation5 + $0xb8] sm:$0xff] }
 0x8d7   :  { %v11094_v37 = vpop.eup %11093  ;;  %9363 = vmatprep.mubr.msk.f32.mxu0 %vm533_vm6, %v4053_v39  ;;  %9381 = vmatprep.mubr.msk.f32.mxu1 %vm533_vm6, %v4053_v39  ;;  %v4054_v29 = vsel %vm4052_vm12, %v12558_v30, %v4020_v53  ;;  %v10265_v1 = vpack.c.bf16 %v4385_v28, %v4384_v6 }
 0x8d8   :  { %v11096_v56 = vpop.eup %11095  ;;  %9364 = vmatmul.mubr.msk.f32.vlgmr.msra.gmra.mrb[40].mxu0 %vm533_vm6, %v4054_v29  ;;  %9382 = vmatmul.mubr.msk.f32.vlgmr.msra.gmra.mrb[40].mxu1 %vm533_vm6, %v4054_v29  ;;  %v4021_v0 = vmul.f32 %v11094_v37, %v11090_v38 }
 0x8d9   :  { %10248 = vmatpush3.bf16.msra.mxu0 %v12589_v15  ;;  %10260 = vmatpush3.bf16.msra.mxu1 %v12591_v31  ;;  %v4022_v59 = vmul.f32 %v11096_v56, %v11092_v34  ;;  %v4484_v15 = vld [vmem:[#allocation7 + $0x8] sm:$0xff]  ;;  %v4490_v31 = vld [vmem:[#allocation7 + $0x30] sm:$0xff]  ;;  %v8266_v56 = vld [vmem:[%s13342_s6] ss:$0 sm:$0xff] }
 0x8da   :  { %v4055_v4 = vsel %vm4052_vm12, %v12562_v13, %v4021_v0  ;;  %10250 = vmatprep.subr.bf16.mxu0 %v10249_v60  ;;  %10262 = vmatprep.subr.bf16.mxu1 %v10261_v54  ;;  %v4483_v13 = vld [vmem:[#allocation7] sm:$0xff]  ;;  %v12639_v5 = vpack.c.bf16 %v4491_v7, %v4490_v31 }
 0x8db   :  { %9366 = vmatprep.mubr.msk.f32.mxu0 %vm533_vm6, %v4055_v4  ;;  %9384 = vmatprep.mubr.msk.f32.mxu1 %vm533_vm6, %v4055_v4  ;;  %v4056_v30 = vsel %vm4052_vm12, %v12568_v58, %v4022_v59  ;;  %v12637_v58 = vpack.c.bf16 %v4484_v15, %v4483_v13  ;;  %v8272_v0 = vld [vmem:[%s13342_s6 + $0x1] ss:$0 sm:$0xff] }
 0x8dc   :  { %9367 = vmatmul.mubr.msk.f32.gmra.mrb[42].mxu0 %vm533_vm6, %v4056_v30  ;;  %9385 = vmatmul.mubr.msk.f32.gmra.mrb[42].mxu1 %vm533_vm6, %v4056_v30 }
 0x8dd   :  { %10252 = vmatpush3.bf16.msra.mxu0 %v10249_v60  ;;  %10264 = vmatpush3.bf16.msra.mxu1 %v10261_v54 }
 0x8de   :  { %9399 = vmatprep.mubr.msk.f32.mxu0 %vm533_vm6, %v4053_v39  ;;  %9417 = vmatprep.mubr.msk.f32.mxu1 %vm533_vm6, %v4053_v39 }
 0x8df   :  { %10254 = vmatprep.subr.bf16.mxu0 %v10253_v3  ;;  %10266 = vmatprep.subr.bf16.mxu1 %v10265_v1 }
 0x8e1   :  { %10256 = vmatpush3.bf16.msra.mxu0 %v10253_v3  ;;  %10268 = vmatpush3.bf16.msra.mxu1 %v10265_v1 }
 0x8e2   :  { %10269 = vmatprep.subr.bf16.mxu0 %v13353_v36  ;;  %10278 = vmatprep.subr.bf16.mxu1 %v13353_v36 }
 0x8e4   :  { %9400 = vmatmul.mubr.msk.f32.vlgmr.msra.gmra.mrb[44].mxu0 %vm533_vm6, %v4054_v29  ;;  %9418 = vmatmul.mubr.msk.f32.vlgmr.msra.gmra.mrb[44].mxu1 %vm533_vm6, %v4054_v29 }
 0x8e5   :  { %9402 = vmatprep.mubr.msk.f32.mxu0 %vm533_vm6, %v4055_v4  ;;  %9420 = vmatprep.mubr.msk.f32.mxu1 %vm533_vm6, %v4055_v4 }
 0x8e6   :  { %10271 = vmatpush3.bf16.msra.mxu0 %v12637_v58  ;;  %10280 = vmatpush3.bf16.msra.mxu1 %v12639_v5 }
 0x8e7   :  { %10272 = vmatprep.subr.bf16.mxu0 %v13353_v36  ;;  %10281 = vmatprep.subr.bf16.mxu1 %v13353_v36 }
 0x8e8   :  { %9403 = vmatmul.mubr.msk.f32.gmra.mrb[46].mxu0 %vm533_vm6, %v4056_v30  ;;  %9421 = vmatmul.mubr.msk.f32.gmra.mrb[46].mxu1 %vm533_vm6, %v4056_v30 }
 0x8e9   :  { %9435 = vmatprep.mubr.msk.f32.mxu0 %vm11709_vm2, %v13354_v42  ;;  %9450 = vmatprep.mubr.msk.f32.mxu1 %vm11709_vm2, %v13354_v42 }
 0x8ea   :  { %10274 = vmatpush3.bf16.msra.mxu0 %v12647_v57  ;;  %10283 = vmatpush3.bf16.msra.mxu1 %v12649_v62 }
 0x8eb   :  { %10275 = vmatprep.subr.bf16.mxu0 %v13353_v36  ;;  %10284 = vmatprep.subr.bf16.mxu1 %v13353_v36 }
 0x8ee   :  { %10277 = vmatpush3.bf16.msra.mxu0 %v12661_v9  ;;  %10286 = vmatpush3.bf16.msra.mxu1 %v12663_v22 }
 0x8ef   :  { %10287 = vmatprep.subr.bf16.mxu0 %v13353_v36  ;;  %10296 = vmatprep.subr.bf16.mxu1 %v13353_v36 }
 0x8f1   :  { %9436 = vmatmul.mubr.f32.vlgmr.msra.gmra.mrb[48].mxu0 %v13354_v42  ;;  %9451 = vmatmul.mubr.f32.vlgmr.msra.gmra.mrb[48].mxu1 %v13354_v42 }
 0x8f2   :  { %10289 = vmatpush3.bf16.msra.mxu0 %v12669_v8  ;;  %10298 = vmatpush3.bf16.msra.mxu1 %v12671_v12 }
 0x8f3   :  { %10290 = vmatprep.subr.bf16.mxu0 %v13353_v36  ;;  %10299 = vmatprep.subr.bf16.mxu1 %v13353_v36 }
 0x8f4   :  { %9465 = vmatprep.mubr.msk.f32.mxu0 %vm11709_vm2, %v13354_v42  ;;  %9480 = vmatprep.mubr.msk.f32.mxu1 %vm11709_vm2, %v13354_v42 }
 0x8f6   :  { %10292 = vmatpush3.bf16.msra.mxu0 %v12679_v50  ;;  %10301 = vmatpush3.bf16.msra.mxu1 %v12681_v10 }
 0x8f7   :  { %10293 = vmatprep.subr.bf16.mxu0 %v13353_v36  ;;  %10302 = vmatprep.subr.bf16.mxu1 %v13353_v36 }
 0x8fa   :  { %10295 = vmatpush3.bf16.msra.mxu0 %v12691_v25  ;;  %10304 = vmatpush3.bf16.msra.mxu1 %v12693_v32 }
 0x8fb   :  { %10305 = vmatprep.subr.bf16.mxu0 %v13353_v36  ;;  %10314 = vmatprep.subr.bf16.mxu1 %v13353_v36 }
 0x8fd   :  { %9466 = vmatmul.mubr.f32.vlgmr.msra.gmra.mrb[50].mxu0 %v13354_v42  ;;  %9481 = vmatmul.mubr.f32.vlgmr.msra.gmra.mrb[50].mxu1 %v13354_v42 }
 0x8fe   :  { %10307 = vmatpush3.bf16.msra.mxu0 %v12637_v58  ;;  %10316 = vmatpush3.bf16.msra.mxu1 %v12639_v5 }
 0x8ff   :  { %10308 = vmatprep.subr.bf16.mxu0 %v13353_v36  ;;  %10317 = vmatprep.subr.bf16.mxu1 %v13353_v36 }
 0x900   :  { %9495 = vmatprep.mubr.msk.f32.mxu0 %vm11709_vm2, %v13354_v42  ;;  %9510 = vmatprep.mubr.msk.f32.mxu1 %vm11709_vm2, %v13354_v42 }
 0x902   :  { %10310 = vmatpush3.bf16.msra.mxu0 %v12647_v57  ;;  %10319 = vmatpush3.bf16.msra.mxu1 %v12649_v62 }
 0x903   :  { %10311 = vmatprep.subr.bf16.mxu0 %v13353_v36  ;;  %10320 = vmatprep.subr.bf16.mxu1 %v13353_v36 }
 0x906   :  { %10313 = vmatpush3.bf16.msra.mxu0 %v12661_v9  ;;  %10322 = vmatpush3.bf16.msra.mxu1 %v12663_v22 }
 0x907   :  { %10323 = vmatprep.subr.bf16.mxu0 %v13353_v36  ;;  %10332 = vmatprep.subr.bf16.mxu1 %v13353_v36 }
 0x9ab   :  { %v9365_v17 = vpop.f32.mrb[40].mxu0  ;;  %v9383_v33 = vpop.f32.mrb[40].mxu1 }
 0x9ac   :  { %v4141_v52 = vpop.f32.mrb[41].mxu0  ;;  %v4244_v16 = vpop.f32.mrb[41].mxu1  ;;  %v12729_v44 = vadd.f32 %v9365_v17, %v8266_v56  ;;  %v12731_v6 = vadd.f32 %v9383_v33, %v8272_v0 }
 0x9ad   :  { %v12733_v28 = vadd.f32 %v8266_v56, %v4141_v52  ;;  %v12735_v59 = vadd.f32 %v8272_v0, %v4244_v16 }
 0x9af   :  { %v9368_v35 = vpop.f32.mrb[42].mxu0  ;;  %v9386_v46 = vpop.f32.mrb[42].mxu1 }
 0x9b0   :  { %v4151_v11 = vpop.f32.mrb[43].mxu0  ;;  %v4254_v38 = vpop.f32.mrb[43].mxu1  ;;  %v12737_v4 = vadd.f32 %v9368_v35, %v8266_v56  ;;  %v12739_v30 = vadd.f32 %v9386_v46, %v8272_v0 }
 0x9b1   :  { %v12741_v3 = vadd.f32 %v8266_v56, %v4151_v11  ;;  %v12743_v1 = vadd.f32 %v8272_v0, %v4254_v38  ;;  %v8278_v38 = vld [vmem:[%s13342_s6 + $0x2] ss:$0 sm:$0xff]  ;;  %v8284_v56 = vld [vmem:[%s13342_s6 + $0x3] ss:$0 sm:$0xff] }
 0x9b7   :  { %v9401_v53 = vpop.f32.mrb[44].mxu0  ;;  %v9419_v34 = vpop.f32.mrb[44].mxu1 }
 0x9b8   :  { %v4348_v39 = vpop.f32.mrb[45].mxu0  ;;  %v4452_v60 = vpop.f32.mrb[45].mxu1 }
 0x9bb   :  { %v9404_v54 = vpop.f32.mrb[46].mxu0  ;;  %v12719_v37 = vpop.f32.mrb[46].mxu1 }
 0x9bc   :  { %v4358_v29 = vpop.f32.mrb[47].mxu0  ;;  %v12721_v2 = vpop.f32.mrb[47].mxu1 }
 0x9c4   :  { %v4576_v13 = vpop.f32.mrb[48].mxu0  ;;  %v4658_v15 = vpop.f32.mrb[48].mxu1 }
 0x9c5   :  { %v4581_v31 = vrot.slane %v4576_v13, 1  ;;  %v4582_v7 = vrot.slane %v4576_v13, 2  ;;  %v4583_v45 = vrot.slane %v4576_v13, 3  ;;  %v4588_v21 = vadd.f32 %v4576_v13, %v12733_v28  ;;  %v9437_v26 = vpop.f32.mrb[49].mxu0  ;;  %v9452_v24 = vpop.f32.mrb[49].mxu1 }
 0x9c6   :  { %v4663_v40 = vrot.slane %v4658_v15, 1  ;;  %v4664_v41 = vrot.slane %v4658_v15, 2  ;;  %v4665_v48 = vrot.slane %v4658_v15, 3  ;;  %v4670_v49 = vadd.f32 %v4658_v15, %v12735_v59 }
 0x9c7   :  { %v4589_v63 = vadd.f32 %v4581_v31, %v12729_v44  ;;  %v4590_v55 = vadd.f32 %v4582_v7, %v12741_v3  ;;  %v4591_v61 = vadd.f32 %v4583_v45, %v12737_v4  ;;  %v4862_v43 = vsub.f32 0.0, %v4588_v21 }
 0x9c8   :  { %v4671_v27 = vadd.f32 %v4663_v40, %v12731_v6  ;;  %v4672_v20 = vadd.f32 %v4664_v41, %v12743_v1  ;;  %v4673_v51 = vadd.f32 %v4665_v48, %v12739_v30  ;;  %v4838_v47 = vsub.f32 0.0, %v4670_v49 }
 0x9c9   :  { %v4863_v14 = vsub.f32 0.0, %v4589_v63  ;;  %v4864_v23 = vsub.f32 0.0, %v4590_v55  ;;  %v4865_v19 = vsub.f32 0.0, %v4591_v61  ;;  %v4866_v18 = vmul.f32 1.442695, %v4862_v43 }
 0x9ca   :  { %v4839_v17 = vsub.f32 0.0, %v4671_v27  ;;  %v4840_v33 = vsub.f32 0.0, %v4672_v20  ;;  %v4841_v52 = vsub.f32 0.0, %v4673_v51  ;;  %v4842_v16 = vmul.f32 1.442695, %v4838_v47 }
 0x9cb   :  { %11097 = vpow2.f32 %v4866_v18  ;;  %v4868_v35 = vmul.f32 1.442695, %v4863_v14  ;;  %v4870_v46 = vmul.f32 1.442695, %v4864_v23  ;;  %v4872_v11 = vmul.f32 1.442695, %v4865_v19 }
 0x9cc   :  { %11099 = vpow2.f32 %v4842_v16  ;;  %v4844_v0 = vmul.f32 1.442695, %v4839_v17  ;;  %v4846_v13 = vmul.f32 1.442695, %v4840_v33  ;;  %v4848_v15 = vmul.f32 1.442695, %v4841_v52 }
 0x9cd   :  { %11101 = vpow2.f32 %v4868_v35  ;;  %v12759_v31 = vadd.f32 %v9401_v53, %v8278_v38  ;;  %v12761_v7 = vadd.f32 %v9419_v34, %v8284_v56  ;;  %v12763_v45 = vadd.f32 %v8278_v38, %v4348_v39 }
 0x9ce   :  { %11103 = vpow2.f32 %v4870_v46  ;;  %v12765_v21 = vadd.f32 %v8284_v56, %v4452_v60  ;;  %v12767_v26 = vadd.f32 %v9404_v54, %v8278_v38  ;;  %v12769_v24 = vadd.f32 %v8278_v38, %v4358_v29 }
 0x9cf   :  { %11105 = vpow2.f32 %v4872_v11  ;;  %v12776_v27 = vadd.f32 %v8284_v56, %v12721_v2  ;;  %v12780_v47 = vadd.f32 %v12719_v37, %v8284_v56 }
 0x9d0   :  { %11107 = vpow2.f32 %v4844_v0  ;;  %v4740_v40 = vpop.f32.mrb[50].mxu0  ;;  %v4822_v41 = vpop.f32.mrb[50].mxu1 }
 0x9d1   :  { %11109 = vpow2.f32 %v4846_v13  ;;  %v4745_v48 = vrot.slane %v4740_v40, 1  ;;  %v4746_v49 = vrot.slane %v4740_v40, 2  ;;  %v4747_v63 = vrot.slane %v4740_v40, 3  ;;  %v9482_v53 = vpop.f32.mrb[51].mxu1  ;;  %v9467_v55 = vpop.f32.mrb[51].mxu0 }
 0x9d2   :  { %11111 = vpow2.f32 %v4848_v15  ;;  %v4752_v34 = vadd.f32 %v4740_v40, %v12763_v45  ;;  %v4827_v39 = vrot.slane %v4822_v41, 1  ;;  %v4828_v61 = vrot.slane %v4822_v41, 2 }
 0x9d3   :  { %v4753_v60 = vadd.f32 %v4745_v48, %v12759_v31  ;;  %v4754_v54 = vadd.f32 %v4746_v49, %v12769_v24  ;;  %v4755_v29 = vadd.f32 %v4747_v63, %v12767_v26  ;;  %v4829_v43 = vrot.slane %v4822_v41, 3 }
 0x9d4   :  { %11113 = vtanh.f32 %v4752_v34  ;;  %v4834_v20 = vadd.f32 %v4822_v41, %v12765_v21  ;;  %v4835_v14 = vadd.f32 %v4827_v39, %v12761_v7  ;;  %v4836_v18 = vadd.f32 %v4828_v61, %v12776_v27 }
 0x9d5   :  { %v11098_v51 = vpop.eup %11097  ;;  %11115 = vtanh.f32 %v4753_v60  ;;  %v4837_v2 = vadd.f32 %v4829_v43, %v12780_v47 }
 0x9d6   :  { %v11100_v23 = vpop.eup %11099  ;;  %v4874_v19 = vadd.f32 1.0, %v11098_v51  ;;  %11117 = vtanh.f32 %v4754_v54  ;;  %v4894_v35 = vsub.f32 0.0, %v4834_v20  ;;  %v4895_v11 = vsub.f32 0.0, %v4835_v14 }
 0x9d7   :  { %v11102_v17 = vpop.eup %11101  ;;  %v4850_v33 = vadd.f32 1.0, %v11100_v23  ;;  %11119 = vtanh.f32 %v4755_v29  ;;  %v4896_v0 = vsub.f32 0.0, %v4836_v18  ;;  %v4897_v40 = vsub.f32 0.0, %v4837_v2 }
 0x9d8   :  { %v11104_v52 = vpop.eup %11103  ;;  %v4875_v16 = vadd.f32 1.0, %v11102_v17  ;;  %11121 = vrcp.f32 %v4874_v19  ;;  %v4898_v49 = vmul.f32 1.442695, %v4894_v35  ;;  %v4900_v53 = vmul.f32 1.442695, %v4895_v11 }
 0x9d9   :  { %v11106_v46 = vpop.eup %11105  ;;  %v4876_v37 = vadd.f32 1.0, %v11104_v52  ;;  %11123 = vrcp.f32 %v4850_v33  ;;  %v4902_v34 = vmul.f32 1.442695, %v4896_v0  ;;  %v4904_v61 = vmul.f32 1.442695, %v4897_v40 }
 0x9da   :  { %v11108_v38 = vpop.eup %11107  ;;  %v4877_v56 = vadd.f32 1.0, %v11106_v46  ;;  %11125 = vrcp.f32 %v4875_v16 }
 0x9db   :  { %v11110_v13 = vpop.eup %11109  ;;  %11127 = vrcp.f32 %v4876_v37  ;;  %v4851_v15 = vadd.f32 1.0, %v11108_v38 }
 0x9dc   :  { %v11112_v41 = vpop.eup %11111  ;;  %11129 = vrcp.f32 %v4877_v56  ;;  %v4852_v48 = vadd.f32 1.0, %v11110_v13 }
 0x9dd   :  { %v4853_v63 = vadd.f32 1.0, %v11112_v41  ;;  %11131 = vrcp.f32 %v4851_v15 }
 0x9de   :  { %v11114_v55 = vpop.eup %11113  ;;  %11133 = vrcp.f32 %v4852_v48 }
 0x9df   :  { %v11116_v39 = vpop.eup %11115  ;;  %11135 = vrcp.f32 %v4853_v63 }
 0x9e0   :  { %v11118_v60 = vpop.eup %11117  ;;  %11137 = vpow2.f32 %v4898_v49 }
 0x9e1   :  { %v11120_v54 = vpop.eup %11119  ;;  %11139 = vpow2.f32 %v4900_v53 }
 0x9e2   :  { %v11122_v29 = vpop.eup %11121  ;;  %11141 = vpow2.f32 %v4902_v34 }
 0x9e3   :  { %v11124_v43 = vpop.eup %11123  ;;  %v4886_v20 = vmul.f32 %v11122_v29, %v11114_v55  ;;  %11143 = vpow2.f32 %v4904_v61 }
 0x9e4   :  { %v11126_v51 = vpop.eup %11125  ;;  %v4858_v14 = vmul.f32 0.0, %v11124_v43 }
 0x9e5   :  { %v11128_v23 = vpop.eup %11127  ;;  %v4887_v19 = vmul.f32 %v11126_v51, %v11116_v39 }
 0x9e6   :  { %v11130_v18 = vpop.eup %11129  ;;  %v4888_v17 = vmul.f32 %v11128_v23, %v11118_v60  ;;  %v12785_v33 = vadd.f32 %v4886_v20, %v4858_v14 }
 0x9e7   :  { %v11132_v2 = vpop.eup %11131  ;;  %v4889_v52 = vmul.f32 %v11130_v18, %v11120_v54 }
 0x9e8   :  { %v11134_v16 = vpop.eup %11133  ;;  %v4859_v35 = vmul.f32 0.0, %v11132_v2  ;;  %11145 = vtanh.f32 %v12785_v33 }
 0x9e9   :  { %v11136_v46 = vpop.eup %11135  ;;  %v4860_v37 = vmul.f32 0.0, %v11134_v16 }
 0x9ea   :  { %v11138_v11 = vpop.eup %11137  ;;  %v4861_v38 = vmul.f32 0.0, %v11136_v46  ;;  %v12787_v56 = vadd.f32 %v4887_v19, %v4859_v35 }
 0x9eb   :  { %v11140_v0 = vpop.eup %11139  ;;  %v12789_v13 = vadd.f32 %v4888_v17, %v4860_v37  ;;  %v4906_v15 = vadd.f32 1.0, %v11138_v11 }
 0x9ec   :  { %v11142_v40 = vpop.eup %11141  ;;  %v12792_v41 = vadd.f32 %v4889_v52, %v4861_v38  ;;  %11147 = vtanh.f32 %v12787_v56  ;;  %v4907_v48 = vadd.f32 1.0, %v11140_v0 }
 0x9ed   :  { %v11144_v49 = vpop.eup %11143  ;;  %11149 = vtanh.f32 %v12789_v13  ;;  %v4908_v63 = vadd.f32 1.0, %v11142_v40 }
 0x9ee   :  { %v4909_v53 = vadd.f32 1.0, %v11144_v49  ;;  %11151 = vrcp.f32 %v4906_v15 }
 0x9ef   :  { %11153 = vrcp.f32 %v4907_v48 }
 0x9f0   :  { %11155 = vrcp.f32 %v4908_v63 }
 0x9f1   :  { %11157 = vrcp.f32 %v4909_v53 }
 0x9f2   :  { %11159 = vtanh.f32 %v12792_v41  ;;  %v11146_v55 = vpop.eup %11145 }
 0x9f6   :  { %v11148_v34 = vpop.eup %11147 }
 0x9f7   :  { %v11150_v39 = vpop.eup %11149 }
 0x9f8   :  { %v11152_v61 = vpop.eup %11151 }
 0x9f9   :  { %v11154_v60 = vpop.eup %11153  ;;  %v4918_v54 = vmul.f32 %v11152_v61, %v11146_v55 }
 0x9fa   :  { %v11156_v29 = vpop.eup %11155  ;;  %v4919_v43 = vmul.f32 %v11154_v60, %v11148_v34 }
 0x9fb   :  { %v11158_v20 = vpop.eup %11157  ;;  %v4920_v51 = vmul.f32 %v11156_v29, %v11150_v39 }
 0x9fc   :  { %v11160_v14 = vpop.eup %11159  ;;  %v4926_v23 = vrot.slane %v4919_v43, 7 }
 0x9fd   :  { %v4921_v19 = vmul.f32 %v11160_v14, %v11158_v20  ;;  %v4928_v18 = vrot.slane %v4920_v51, 6 }
 0x9fe   :  { %v4927_v17 = vsel %vm954_vm3, %v4926_v23, %v4918_v54 }
 0x9ff   :  { %v4929_v2 = vsel %vm957_vm4, %v4928_v18, %v4927_v17  ;;  %v4930_v52 = vrot.slane %v4921_v19, 5 }
 0xa01   :  { %v4931_v16 = vsel %vm960_vm5, %v4930_v52, %v4929_v2 }
 0xa02   :  { %9496 = vmatmul.mubr.msk.f32.vlgmr.msra.gmra.mrb[52].mxu0 %vm533_vm6, %v4931_v16  ;;  %9511 = vmatmul.mubr.msk.f32.vlgmr.msra.gmra.mrb[52].mxu1 %vm533_vm6, %v4931_v16 }
 0xa03   :  { %10325 = vmatpush3.bf16.msra.mxu0 %v12669_v8  ;;  %10334 = vmatpush3.bf16.msra.mxu1 %v12671_v12 }
 0xa04   :  { %10326 = vmatprep.subr.bf16.mxu0 %v13353_v36  ;;  %10335 = vmatprep.subr.bf16.mxu1 %v13353_v36 }
 0xa05   :  { %9525 = vmatprep.mubr.msk.f32.mxu0 %vm11709_vm2, %v13354_v42  ;;  %9540 = vmatprep.mubr.msk.f32.mxu1 %vm11709_vm2, %v13354_v42 }
 0xa07   :  { %10328 = vmatpush3.bf16.msra.mxu0 %v12679_v50  ;;  %10337 = vmatpush3.bf16.msra.mxu1 %v12681_v10 }
 0xa08   :  { %10329 = vmatprep.subr.bf16.mxu0 %v13353_v36  ;;  %10338 = vmatprep.subr.bf16.mxu1 %v13353_v36 }
 0xa0b   :  { %10331 = vmatpush3.bf16.msra.mxu0 %v12691_v25  ;;  %10340 = vmatpush3.bf16.msra.mxu1 %v12693_v32 }
 0xa0c   :  { %10341 = vmatprep.subr.bf16.mxu0 %v13353_v36  ;;  %10350 = vmatprep.subr.bf16.mxu1 %v13353_v36 }
 0xa0e   :  { %9526 = vmatmul.mubr.msk.f32.vlgmr.msra.gmra.mrb[54].mxu0 %vm533_vm6, %v4931_v16  ;;  %9541 = vmatmul.mubr.msk.f32.vlgmr.msra.gmra.mrb[54].mxu1 %vm533_vm6, %v4931_v16 }
 0xa0f   :  { %10343 = vmatpush3.bf16.msra.mxu0 %v12637_v58  ;;  %10352 = vmatpush3.bf16.msra.mxu1 %v12639_v5 }
 0xa10   :  { %10344 = vmatprep.subr.bf16.mxu0 %v13353_v36  ;;  %10353 = vmatprep.subr.bf16.mxu1 %v13353_v36 }
 0xa11   :  { %9555 = vmatprep.mubr.msk.f32.mxu0 %vm11709_vm2, %v13354_v42  ;;  %9570 = vmatprep.mubr.msk.f32.mxu1 %vm11709_vm2, %v13354_v42 }
 0xa13   :  { %10346 = vmatpush3.bf16.msra.mxu0 %v12647_v57  ;;  %10355 = vmatpush3.bf16.msra.mxu1 %v12649_v62 }
 0xa14   :  { %10347 = vmatprep.subr.bf16.mxu0 %v13353_v36  ;;  %10356 = vmatprep.subr.bf16.mxu1 %v13353_v36 }
 0xa17   :  { %10349 = vmatpush3.bf16.msra.mxu0 %v12661_v9  ;;  %10358 = vmatpush3.bf16.msra.mxu1 %v12663_v22 }
 0xa18   :  { %10359 = vmatprep.subr.bf16.mxu0 %v13353_v36  ;;  %10368 = vmatprep.subr.bf16.mxu1 %v13353_v36 }
 0xad5   :  { %v5000_v35 = vpop.f32.mrb[52].mxu0  ;;  %v5082_v46 = vpop.f32.mrb[52].mxu1 }
 0xad6   :  { %v5005_v37 = vrot.slane %v5000_v35, 7  ;;  %v5006_v11 = vrot.slane %v5000_v35, 1  ;;  %v5007_v38 = vrot.slane %v5000_v35, 2  ;;  %v5013_v0 = vadd.f32 %v5000_v35, %v12729_v44  ;;  %v9497_v15 = vpop.f32.mrb[53].mxu0  ;;  %v9512_v40 = vpop.f32.mrb[53].mxu1 }
 0xad7   :  { %v5087_v48 = vrot.slane %v5082_v46, 7  ;;  %v5088_v49 = vrot.slane %v5082_v46, 1  ;;  %v5089_v63 = vrot.slane %v5082_v46, 2  ;;  %v5095_v53 = vadd.f32 %v5082_v46, %v12731_v6 }
 0xad8   :  { %v5012_v55 = vadd.f32 %v5005_v37, %v12733_v28  ;;  %v5014_v34 = vadd.f32 %v5006_v11, %v12741_v3  ;;  %v5015_v39 = vadd.f32 %v5007_v38, %v12737_v4  ;;  %v5299_v61 = vsub.f32 0.0, %v5013_v0 }
 0xad9   :  { %v5094_v60 = vadd.f32 %v5087_v48, %v12735_v59  ;;  %v5096_v54 = vadd.f32 %v5088_v49, %v12743_v1  ;;  %v5097_v29 = vadd.f32 %v5089_v63, %v12739_v30  ;;  %v5263_v43 = vsub.f32 0.0, %v5095_v53 }
 0xada   :  { %v5298_v20 = vsub.f32 0.0, %v5012_v55  ;;  %v5300_v51 = vsub.f32 0.0, %v5014_v34  ;;  %v5301_v14 = vsub.f32 0.0, %v5015_v39  ;;  %v5304_v23 = vmul.f32 1.442695, %v5299_v61 }
 0xadb   :  { %v5262_v19 = vsub.f32 0.0, %v5094_v60  ;;  %v5264_v18 = vsub.f32 0.0, %v5096_v54  ;;  %v5265_v17 = vsub.f32 0.0, %v5097_v29  ;;  %v5268_v2 = vmul.f32 1.442695, %v5263_v43 }
 0xadc   :  { %v5302_v52 = vmul.f32 1.442695, %v5298_v20  ;;  %11161 = vpow2.f32 %v5304_v23  ;;  %v5306_v16 = vmul.f32 1.442695, %v5300_v51  ;;  %v5308_v35 = vmul.f32 1.442695, %v5301_v14 }
 0xadd   :  { %v5266_v46 = vmul.f32 1.442695, %v5262_v19  ;;  %11163 = vpow2.f32 %v5268_v2  ;;  %v5270_v37 = vmul.f32 1.442695, %v5264_v18  ;;  %v5272_v11 = vmul.f32 1.442695, %v5265_v17 }
 0xade   :  { %11165 = vpow2.f32 %v5302_v52 }
 0xadf   :  { %11167 = vpow2.f32 %v5306_v16 }
 0xae0   :  { %11169 = vpow2.f32 %v5308_v35 }
 0xae1   :  { %11171 = vpow2.f32 %v5266_v46  ;;  %v5164_v38 = vpop.f32.mrb[54].mxu0  ;;  %v5246_v0 = vpop.f32.mrb[54].mxu1 }
 0xae2   :  { %11173 = vpow2.f32 %v5270_v37  ;;  %v5169_v15 = vrot.slane %v5164_v38, 7  ;;  %v5170_v40 = vrot.slane %v5164_v38, 1  ;;  %v5171_v48 = vrot.slane %v5164_v38, 2  ;;  %v9527_v49 = vpop.f32.mrb[55].mxu0  ;;  %v9542_v63 = vpop.f32.mrb[55].mxu1 }
 0xae3   :  { %11175 = vpow2.f32 %v5272_v11  ;;  %v5177_v53 = vadd.f32 %v5164_v38, %v12759_v31  ;;  %v5251_v55 = vrot.slane %v5246_v0, 7  ;;  %v5252_v34 = vrot.slane %v5246_v0, 1 }
 0xae4   :  { %v5176_v39 = vadd.f32 %v5169_v15, %v12763_v45  ;;  %v5178_v61 = vadd.f32 %v5170_v40, %v12769_v24  ;;  %v5179_v60 = vadd.f32 %v5171_v48, %v12767_v26  ;;  %v5253_v54 = vrot.slane %v5246_v0, 2 }
 0xae5   :  { %11177 = vtanh.f32 %v5177_v53  ;;  %v5258_v29 = vadd.f32 %v5251_v55, %v12765_v21  ;;  %v5259_v20 = vadd.f32 %v5246_v0, %v12761_v7  ;;  %v5260_v23 = vadd.f32 %v5252_v34, %v12776_v27 }
 0xae6   :  { %v11162_v43 = vpop.eup %11161  ;;  %11179 = vtanh.f32 %v5176_v39  ;;  %v5261_v17 = vadd.f32 %v5253_v54, %v12780_v47 }
 0xae7   :  { %v11164_v51 = vpop.eup %11163  ;;  %v5311_v14 = vadd.f32 1.0, %v11162_v43  ;;  %11181 = vtanh.f32 %v5178_v61  ;;  %v5330_v16 = vsub.f32 0.0, %v5258_v29  ;;  %v5331_v37 = vsub.f32 0.0, %v5259_v20 }
 0xae8   :  { %v11166_v19 = vpop.eup %11165  ;;  %v5275_v18 = vadd.f32 1.0, %v11164_v51  ;;  %11183 = vtanh.f32 %v5179_v60  ;;  %v5332_v0 = vsub.f32 0.0, %v5260_v23  ;;  %v5333_v48 = vsub.f32 0.0, %v5261_v17 }
 0xae9   :  { %v11168_v2 = vpop.eup %11167  ;;  %v5310_v52 = vadd.f32 1.0, %v11166_v19  ;;  %11185 = vrcp.f32 %v5311_v14  ;;  %v5334_v53 = vmul.f32 1.442695, %v5330_v16  ;;  %v5336_v34 = vmul.f32 1.442695, %v5331_v37 }
 0xaea   :  { %v11170_v35 = vpop.eup %11169  ;;  %v5312_v46 = vadd.f32 1.0, %v11168_v2  ;;  %11187 = vrcp.f32 %v5275_v18  ;;  %v5338_v61 = vmul.f32 1.442695, %v5332_v0  ;;  %v5340_v54 = vmul.f32 1.442695, %v5333_v48 }
 0xaeb   :  { %v11172_v11 = vpop.eup %11171  ;;  %v5313_v38 = vadd.f32 1.0, %v11170_v35  ;;  %11189 = vrcp.f32 %v5310_v52  ;;  %v5287_v51 = vrot.slane %v12787_v56, 7  ;;  %v5286_v16 = vrot.slane %v12785_v33, 7 }
 0xaec   :  { %v11174_v15 = vpop.eup %11173  ;;  %11191 = vrcp.f32 %v5312_v46  ;;  %v5274_v40 = vadd.f32 1.0, %v11172_v11  ;;  %v5288_v11 = vrot.slane %v12789_v13, 7  ;;  %v5289_v56 = vrot.slane %v12792_v41, 7 }
 0xaed   :  { %v11176_v49 = vpop.eup %11175  ;;  %11193 = vrcp.f32 %v5313_v38  ;;  %v5276_v63 = vadd.f32 1.0, %v11174_v15 }
 0xaee   :  { %v5277_v55 = vadd.f32 1.0, %v11176_v49  ;;  %11195 = vrcp.f32 %v5274_v40 }
 0xaef   :  { %v11178_v39 = vpop.eup %11177  ;;  %11197 = vrcp.f32 %v5276_v63 }
 0xaf0   :  { %v11180_v60 = vpop.eup %11179  ;;  %11199 = vrcp.f32 %v5277_v55 }
 0xaf1   :  { %v11182_v29 = vpop.eup %11181  ;;  %11201 = vpow2.f32 %v5334_v53 }
 0xaf2   :  { %v11184_v43 = vpop.eup %11183  ;;  %11203 = vpow2.f32 %v5336_v34 }
 0xaf3   :  { %v11186_v20 = vpop.eup %11185  ;;  %11205 = vpow2.f32 %v5338_v61 }
 0xaf4   :  { %v11188_v14 = vpop.eup %11187  ;;  %v5323_v23 = vmul.f32 %v11186_v20, %v11178_v39  ;;  %11207 = vpow2.f32 %v5340_v54 }
 0xaf5   :  { %v11190_v19 = vpop.eup %11189  ;;  %v5295_v18 = vmul.f32 %v11188_v14, %v5287_v51 }
 0xaf6   :  { %v11192_v17 = vpop.eup %11191  ;;  %v5322_v2 = vmul.f32 %v11190_v19, %v11180_v60 }
 0xaf7   :  { %v11194_v52 = vpop.eup %11193  ;;  %v5324_v35 = vmul.f32 %v11192_v17, %v11182_v29  ;;  %v12854_v46 = vadd.f32 %v5323_v23, %v5295_v18 }
 0xaf8   :  { %v11196_v37 = vpop.eup %11195  ;;  %v5325_v38 = vmul.f32 %v11194_v52, %v11184_v43 }
 0xaf9   :  { %v11198_v0 = vpop.eup %11197  ;;  %v5294_v15 = vmul.f32 %v11196_v37, %v5286_v16  ;;  %11209 = vtanh.f32 %v12854_v46 }
 0xafa   :  { %v11200_v40 = vpop.eup %11199  ;;  %v5296_v48 = vmul.f32 %v11198_v0, %v5288_v11 }
 0xafb   :  { %v11202_v49 = vpop.eup %11201  ;;  %v5297_v63 = vmul.f32 %v11200_v40, %v5289_v56  ;;  %v12858_v53 = vadd.f32 %v5322_v2, %v5294_v15 }
 0xafc   :  { %v11204_v55 = vpop.eup %11203  ;;  %v12860_v34 = vadd.f32 %v5324_v35, %v5296_v48  ;;  %v5342_v33 = vadd.f32 1.0, %v11202_v49 }
 0xafd   :  { %v11206_v39 = vpop.eup %11205  ;;  %v12863_v61 = vadd.f32 %v5325_v38, %v5297_v63  ;;  %11211 = vtanh.f32 %v12858_v53  ;;  %v5343_v13 = vadd.f32 1.0, %v11204_v55 }
 0xafe   :  { %v11208_v41 = vpop.eup %11207  ;;  %11213 = vtanh.f32 %v12860_v34  ;;  %v5344_v60 = vadd.f32 1.0, %v11206_v39 }
 0xaff   :  { %v5345_v54 = vadd.f32 1.0, %v11208_v41  ;;  %11215 = vrcp.f32 %v5342_v33 }
 0xb00   :  { %11217 = vrcp.f32 %v5343_v13 }
 0xb01   :  { %11219 = vrcp.f32 %v5344_v60 }
 0xb02   :  { %11221 = vrcp.f32 %v5345_v54 }
 0xb03   :  { %11223 = vtanh.f32 %v12863_v61  ;;  %v11210_v29 = vpop.eup %11209 }
 0xb07   :  { %v11212_v43 = vpop.eup %11211 }
 0xb08   :  { %v11214_v20 = vpop.eup %11213 }
 0xb09   :  { %v11216_v51 = vpop.eup %11215 }
 0xb0a   :  { %v11218_v14 = vpop.eup %11217  ;;  %v5354_v23 = vmul.f32 %v11216_v51, %v11212_v43 }
 0xb0b   :  { %v11220_v19 = vpop.eup %11219  ;;  %v5355_v18 = vmul.f32 %v11218_v14, %v11210_v29 }
 0xb0c   :  { %v11222_v17 = vpop.eup %11221  ;;  %v5356_v2 = vmul.f32 %v11220_v19, %v11214_v20  ;;  %v5362_v52 = vrot.slane %v5354_v23, 1 }
 0xb0d   :  { %v11224_v16 = vpop.eup %11223 }
 0xb0e   :  { %v5357_v35 = vmul.f32 %v11224_v16, %v11222_v17  ;;  %v5363_v37 = vsel %vm954_vm3, %v5355_v18, %v5362_v52  ;;  %v5364_v11 = vrot.slane %v5356_v2, 7 }
 0xb10   :  { %v5365_v38 = vsel %vm957_vm4, %v5364_v11, %v5363_v37  ;;  %v5366_v0 = vrot.slane %v5357_v35, 6 }
 0xb12   :  { %v5367_v56 = vsel %vm960_vm5, %v5366_v0, %v5365_v38 }
 0xb13   :  { %9556 = vmatmul.mubr.msk.f32.vlgmr.msra.gmra.mrb[56].mxu0 %vm533_vm6, %v5367_v56  ;;  %9571 = vmatmul.mubr.msk.f32.vlgmr.msra.gmra.mrb[56].mxu1 %vm533_vm6, %v5367_v56 }
 0xb14   :  { %10361 = vmatpush3.bf16.msra.mxu0 %v12669_v8  ;;  %10370 = vmatpush3.bf16.msra.mxu1 %v12671_v12 }
 0xb15   :  { %10362 = vmatprep.subr.bf16.mxu0 %v13353_v36  ;;  %10371 = vmatprep.subr.bf16.mxu1 %v13353_v36 }
 0xb16   :  { %9585 = vmatprep.mubr.msk.f32.mxu0 %vm11709_vm2, %v13354_v42  ;;  %9600 = vmatprep.mubr.msk.f32.mxu1 %vm11709_vm2, %v13354_v42 }
 0xb18   :  { %10364 = vmatpush3.bf16.msra.mxu0 %v12679_v50  ;;  %10373 = vmatpush3.bf16.msra.mxu1 %v12681_v10 }
 0xb19   :  { %10365 = vmatprep.subr.bf16.mxu0 %v13353_v36  ;;  %10374 = vmatprep.subr.bf16.mxu1 %v13353_v36 }
 0xb1c   :  { %10367 = vmatpush3.bf16.msra.mxu0 %v12691_v25  ;;  %10376 = vmatpush3.bf16.msra.mxu1 %v12693_v32 }
 0xb1d   :  { %10377 = vmatprep.subr.bf16.mxu0 %v13353_v36  ;;  %10386 = vmatprep.subr.bf16.mxu1 %v13353_v36 }
 0xb1f   :  { %9586 = vmatmul.mubr.msk.f32.vlgmr.msra.gmra.mrb[58].mxu0 %vm533_vm6, %v5367_v56  ;;  %9601 = vmatmul.mubr.msk.f32.vlgmr.msra.gmra.mrb[58].mxu1 %vm533_vm6, %v5367_v56 }
 0xb20   :  { %10379 = vmatpush3.bf16.msra.mxu0 %v12637_v58  ;;  %10388 = vmatpush3.bf16.msra.mxu1 %v12639_v5 }
 0xb21   :  { %10380 = vmatprep.subr.bf16.mxu0 %v13353_v36  ;;  %10389 = vmatprep.subr.bf16.mxu1 %v13353_v36 }
 0xb22   :  { %9615 = vmatprep.mubr.msk.f32.mxu0 %vm11709_vm2, %v13354_v42  ;;  %9630 = vmatprep.mubr.msk.f32.mxu1 %vm11709_vm2, %v13354_v42 }
 0xb24   :  { %10382 = vmatpush3.bf16.msra.mxu0 %v12647_v57  ;;  %10391 = vmatpush3.bf16.msra.mxu1 %v12649_v62 }
 0xb25   :  { %10383 = vmatprep.subr.bf16.mxu0 %v13353_v36  ;;  %10392 = vmatprep.subr.bf16.mxu1 %v13353_v36 }
 0xb28   :  { %10385 = vmatpush3.bf16.msra.mxu0 %v12661_v9  ;;  %10394 = vmatpush3.bf16.msra.mxu1 %v12663_v22 }
 0xb29   :  { %10395 = vmatprep.subr.bf16.mxu0 %v13353_v36  ;;  %10404 = vmatprep.subr.bf16.mxu1 %v13353_v36 }
 0xbe6   :  { %v5436_v15 = vpop.f32.mrb[56].mxu0  ;;  %v5518_v40 = vpop.f32.mrb[56].mxu1 }
 0xbe7   :  { %v5441_v48 = vrot.slane %v5436_v15, 6  ;;  %v5442_v49 = vrot.slane %v5436_v15, 7  ;;  %v5443_v63 = vrot.slane %v5436_v15, 1  ;;  %v5450_v55 = vadd.f32 %v5436_v15, %v12741_v3  ;;  %v9557_v33 = vpop.f32.mrb[57].mxu0  ;;  %v9572_v39 = vpop.f32.mrb[57].mxu1 }
 0xbe8   :  { %v5523_v13 = vrot.slane %v5518_v40, 6  ;;  %v5524_v41 = vrot.slane %v5518_v40, 7  ;;  %v5525_v60 = vrot.slane %v5518_v40, 1  ;;  %v5532_v54 = vadd.f32 %v5518_v40, %v12743_v1 }
 0xbe9   :  { %v5448_v29 = vadd.f32 %v5441_v48, %v12733_v28  ;;  %v5449_v43 = vadd.f32 %v5442_v49, %v12729_v44  ;;  %v5451_v20 = vadd.f32 %v5443_v63, %v12737_v4  ;;  %v5736_v51 = vsub.f32 0.0, %v5450_v55 }
 0xbea   :  { %v5530_v14 = vadd.f32 %v5523_v13, %v12735_v59  ;;  %v5531_v23 = vadd.f32 %v5524_v41, %v12731_v6  ;;  %v5533_v19 = vadd.f32 %v5525_v60, %v12739_v30  ;;  %v5700_v18 = vsub.f32 0.0, %v5532_v54 }
 0xbeb   :  { %v5734_v17 = vsub.f32 0.0, %v5448_v29  ;;  %v5735_v2 = vsub.f32 0.0, %v5449_v43  ;;  %v5737_v52 = vsub.f32 0.0, %v5451_v20  ;;  %v5742_v16 = vmul.f32 1.442695, %v5736_v51 }
 0xbec   :  { %v5698_v35 = vsub.f32 0.0, %v5530_v14  ;;  %v5699_v37 = vsub.f32 0.0, %v5531_v23  ;;  %v5701_v11 = vsub.f32 0.0, %v5533_v19  ;;  %v5706_v38 = vmul.f32 1.442695, %v5700_v18 }
 0xbed   :  { %v5738_v0 = vmul.f32 1.442695, %v5734_v17  ;;  %v5740_v56 = vmul.f32 1.442695, %v5735_v2  ;;  %11225 = vpow2.f32 %v5742_v16  ;;  %v5744_v15 = vmul.f32 1.442695, %v5737_v52 }
 0xbee   :  { %v5702_v40 = vmul.f32 1.442695, %v5698_v35  ;;  %11227 = vpow2.f32 %v5706_v38  ;;  %v5704_v48 = vmul.f32 1.442695, %v5699_v37  ;;  %v5708_v49 = vmul.f32 1.442695, %v5701_v11 }
 0xbef   :  { %11229 = vpow2.f32 %v5738_v0 }
 0xbf0   :  { %11231 = vpow2.f32 %v5740_v56 }
 0xbf1   :  { %11233 = vpow2.f32 %v5744_v15 }
 0xbf2   :  { %11235 = vpow2.f32 %v5702_v40  ;;  %v5600_v63 = vpop.f32.mrb[58].mxu0  ;;  %v5682_v55 = vpop.f32.mrb[58].mxu1 }
 0xbf3   :  { %11237 = vpow2.f32 %v5704_v48  ;;  %v5605_v33 = vrot.slane %v5600_v63, 6  ;;  %v5606_v39 = vrot.slane %v5600_v63, 7  ;;  %v5607_v13 = vrot.slane %v5600_v63, 1  ;;  %v9587_v41 = vpop.f32.mrb[59].mxu0  ;;  %v9602_v60 = vpop.f32.mrb[59].mxu1 }
 0xbf4   :  { %11239 = vpow2.f32 %v5708_v49  ;;  %v5614_v54 = vadd.f32 %v5600_v63, %v12769_v24  ;;  %v5687_v29 = vrot.slane %v5682_v55, 6  ;;  %v5688_v43 = vrot.slane %v5682_v55, 7 }
 0xbf5   :  { %v5612_v20 = vadd.f32 %v5605_v33, %v12763_v45  ;;  %v5613_v51 = vadd.f32 %v5606_v39, %v12759_v31  ;;  %v5615_v14 = vadd.f32 %v5607_v13, %v12767_v26  ;;  %v5689_v23 = vrot.slane %v5682_v55, 1 }
 0xbf6   :  { %11241 = vtanh.f32 %v5614_v54  ;;  %v5694_v19 = vadd.f32 %v5687_v29, %v12765_v21  ;;  %v5695_v17 = vadd.f32 %v5688_v43, %v12761_v7  ;;  %v5696_v16 = vadd.f32 %v5682_v55, %v12776_v27 }
 0xbf7   :  { %v11226_v18 = vpop.eup %11225  ;;  %11243 = vtanh.f32 %v5612_v20  ;;  %v5697_v11 = vadd.f32 %v5689_v23, %v12780_v47 }
 0xbf8   :  { %v11228_v2 = vpop.eup %11227  ;;  %v5748_v52 = vadd.f32 1.0, %v11226_v18  ;;  %11245 = vtanh.f32 %v5613_v51  ;;  %v5766_v56 = vsub.f32 0.0, %v5694_v19  ;;  %v5767_v48 = vsub.f32 0.0, %v5695_v17 }
 0xbf9   :  { %v11230_v35 = vpop.eup %11229  ;;  %v5712_v37 = vadd.f32 1.0, %v11228_v2  ;;  %11247 = vtanh.f32 %v5615_v14  ;;  %v5768_v33 = vsub.f32 0.0, %v5696_v16  ;;  %v5769_v13 = vsub.f32 0.0, %v5697_v11 }
 0xbfa   :  { %v11232_v38 = vpop.eup %11231  ;;  %v5746_v0 = vadd.f32 1.0, %v11230_v35  ;;  %11249 = vrcp.f32 %v5748_v52  ;;  %v5770_v54 = vmul.f32 1.442695, %v5766_v56  ;;  %v5772_v43 = vmul.f32 1.442695, %v5767_v48 }
 0xbfb   :  { %v11234_v15 = vpop.eup %11233  ;;  %v5747_v40 = vadd.f32 1.0, %v11232_v38  ;;  %11251 = vrcp.f32 %v5712_v37  ;;  %v5774_v51 = vmul.f32 1.442695, %v5768_v33  ;;  %v5776_v23 = vmul.f32 1.442695, %v5769_v13 }
 0xbfc   :  { %v11236_v49 = vpop.eup %11235  ;;  %v5749_v63 = vadd.f32 1.0, %v11234_v15  ;;  %11253 = vrcp.f32 %v5746_v0  ;;  %v5724_v2 = vrot.slane %v12860_v34, 7  ;;  %v5722_v56 = vrot.slane %v12858_v53, 7 }
 0xbfd   :  { %v11238_v39 = vpop.eup %11237  ;;  %11255 = vrcp.f32 %v5747_v40  ;;  %v5710_v55 = vadd.f32 1.0, %v11236_v49  ;;  %v5723_v49 = vrot.slane %v12854_v46, 7  ;;  %v5725_v34 = vrot.slane %v12863_v61, 7 }
 0xbfe   :  { %v11240_v41 = vpop.eup %11239  ;;  %11257 = vrcp.f32 %v5749_v63  ;;  %v5711_v60 = vadd.f32 1.0, %v11238_v39 }
 0xbff   :  { %v5713_v29 = vadd.f32 1.0, %v11240_v41  ;;  %11259 = vrcp.f32 %v5710_v55 }
 0xc00   :  { %v11242_v20 = vpop.eup %11241  ;;  %11261 = vrcp.f32 %v5711_v60 }
 0xc01   :  { %v11244_v14 = vpop.eup %11243  ;;  %11263 = vrcp.f32 %v5713_v29 }
 0xc02   :  { %v11246_v19 = vpop.eup %11245  ;;  %11265 = vpow2.f32 %v5770_v54 }
 0xc03   :  { %v11248_v18 = vpop.eup %11247  ;;  %11267 = vpow2.f32 %v5772_v43 }
 0xc04   :  { %v11250_v17 = vpop.eup %11249  ;;  %11269 = vpow2.f32 %v5774_v51 }
 0xc05   :  { %v11252_v52 = vpop.eup %11251  ;;  %v5760_v16 = vmul.f32 %v11250_v17, %v11242_v20  ;;  %11271 = vpow2.f32 %v5776_v23 }
 0xc06   :  { %v11254_v35 = vpop.eup %11253  ;;  %v5732_v37 = vmul.f32 %v11252_v52, %v5724_v2 }
 0xc07   :  { %v11256_v11 = vpop.eup %11255  ;;  %v5758_v38 = vmul.f32 %v11254_v35, %v11244_v14 }
 0xc08   :  { %v11258_v0 = vpop.eup %11257  ;;  %v5759_v15 = vmul.f32 %v11256_v11, %v11246_v19  ;;  %v12925_v40 = vadd.f32 %v5760_v16, %v5732_v37 }
 0xc09   :  { %v11260_v48 = vpop.eup %11259  ;;  %v5761_v63 = vmul.f32 %v11258_v0, %v11248_v18 }
 0xc0a   :  { %v11262_v33 = vpop.eup %11261  ;;  %v5730_v39 = vmul.f32 %v11260_v48, %v5722_v56  ;;  %11273 = vtanh.f32 %v12925_v40 }
 0xc0b   :  { %v11264_v55 = vpop.eup %11263  ;;  %v5731_v13 = vmul.f32 %v11262_v33, %v5723_v49 }
 0xc0c   :  { %v11266_v41 = vpop.eup %11265  ;;  %v5733_v60 = vmul.f32 %v11264_v55, %v5725_v34  ;;  %v12929_v54 = vadd.f32 %v5758_v38, %v5730_v39 }
 0xc0d   :  { %v11268_v29 = vpop.eup %11267  ;;  %v12931_v43 = vadd.f32 %v5759_v15, %v5731_v13  ;;  %v5778_v53 = vadd.f32 1.0, %v11266_v41 }
 0xc0e   :  { %v11270_v20 = vpop.eup %11269  ;;  %v12934_v51 = vadd.f32 %v5761_v63, %v5733_v60  ;;  %11275 = vtanh.f32 %v12929_v54  ;;  %v5779_v46 = vadd.f32 1.0, %v11268_v29 }
 0xc0f   :  { %v11272_v61 = vpop.eup %11271  ;;  %11277 = vtanh.f32 %v12931_v43  ;;  %v5780_v14 = vadd.f32 1.0, %v11270_v20 }
 0xc10   :  { %v5781_v23 = vadd.f32 1.0, %v11272_v61  ;;  %11279 = vrcp.f32 %v5778_v53 }
 0xc11   :  { %11281 = vrcp.f32 %v5779_v46 }
 0xc12   :  { %11283 = vrcp.f32 %v5780_v14 }
 0xc13   :  { %11285 = vrcp.f32 %v5781_v23 }
 0xc14   :  { %11287 = vtanh.f32 %v12934_v51  ;;  %v11274_v19 = vpop.eup %11273 }
 0xc18   :  { %v11276_v18 = vpop.eup %11275 }
 0xc19   :  { %v11278_v17 = vpop.eup %11277 }
 0xc1a   :  { %v11280_v2 = vpop.eup %11279 }
 0xc1b   :  { %v11282_v52 = vpop.eup %11281  ;;  %v5790_v16 = vmul.f32 %v11280_v2, %v11276_v18 }
 0xc1c   :  { %v11284_v35 = vpop.eup %11283  ;;  %v5791_v37 = vmul.f32 %v11282_v52, %v11278_v17 }
 0xc1d   :  { %v11286_v11 = vpop.eup %11285  ;;  %v5792_v38 = vmul.f32 %v11284_v35, %v11274_v19  ;;  %v5798_v0 = vrot.slane %v5790_v16, 2 }
 0xc1e   :  { %v11288_v56 = vpop.eup %11287  ;;  %v5799_v15 = vrot.slane %v5791_v37, 1 }
 0xc1f   :  { %v5793_v48 = vmul.f32 %v11288_v56, %v11286_v11 }
 0xc20   :  { %v5800_v49 = vsel %vm954_vm3, %v5799_v15, %v5798_v0 }
 0xc21   :  { %v5801_v63 = vsel %vm957_vm4, %v5792_v38, %v5800_v49  ;;  %v5802_v33 = vrot.slane %v5793_v48, 7 }
 0xc23   :  { %v5803_v34 = vsel %vm960_vm5, %v5802_v33, %v5801_v63 }
 0xc24   :  { %9616 = vmatmul.mubr.msk.f32.vlgmr.msra.gmra.mrb[60].mxu0 %vm533_vm6, %v5803_v34  ;;  %9631 = vmatmul.mubr.msk.f32.vlgmr.msra.gmra.mrb[60].mxu1 %vm533_vm6, %v5803_v34 }
 0xc25   :  { %10397 = vmatpush3.bf16.msra.mxu0 %v12669_v8  ;;  %10406 = vmatpush3.bf16.msra.mxu1 %v12671_v12 }
 0xc26   :  { %10398 = vmatprep.subr.bf16.mxu0 %v13353_v36  ;;  %10407 = vmatprep.subr.bf16.mxu1 %v13353_v36 }
 0xc27   :  { %9645 = vmatprep.mubr.msk.f32.mxu0 %vm11709_vm2, %v13354_v42  ;;  %9660 = vmatprep.mubr.msk.f32.mxu1 %vm11709_vm2, %v13354_v42 }
 0xc29   :  { %10400 = vmatpush3.bf16.msra.mxu0 %v12679_v50  ;;  %10409 = vmatpush3.bf16.msra.mxu1 %v12681_v10 }
 0xc2a   :  { %10401 = vmatprep.subr.bf16.mxu0 %v13353_v36  ;;  %10410 = vmatprep.subr.bf16.mxu1 %v13353_v36 }
 0xc2d   :  { %10403 = vmatpush3.bf16.msra.mxu0 %v12691_v25  ;;  %10412 = vmatpush3.bf16.msra.mxu1 %v12693_v32 }
 0xc2e   :  { %10413 = vmatprep.subr.bf16.mxu0 %v13353_v36  ;;  %10422 = vmatprep.subr.bf16.mxu1 %v13353_v36 }
 0xc30   :  { %9646 = vmatmul.mubr.msk.f32.vlgmr.msra.gmra.mrb[62].mxu0 %vm533_vm6, %v5803_v34  ;;  %9661 = vmatmul.mubr.msk.f32.vlgmr.msra.gmra.mrb[62].mxu1 %vm533_vm6, %v5803_v34 }
 0xc31   :  { %10415 = vmatpush3.bf16.msra.mxu0 %v12637_v58  ;;  %10424 = vmatpush3.bf16.msra.mxu1 %v12639_v5 }
 0xc32   :  { %10416 = vmatprep.subr.bf16.mxu0 %v13353_v36  ;;  %10425 = vmatprep.subr.bf16.mxu1 %v13353_v36 }
 0xc33   :  { %9675 = vmatprep.mubr.msk.f32.mxu0 %vm11709_vm2, %v13354_v42  ;;  %9690 = vmatprep.mubr.msk.f32.mxu1 %vm11709_vm2, %v13354_v42 }
 0xc35   :  { %10418 = vmatpush3.bf16.msra.mxu0 %v12647_v57  ;;  %10427 = vmatpush3.bf16.msra.mxu1 %v12649_v62 }
 0xc36   :  { %10419 = vmatprep.subr.bf16.mxu0 %v13353_v36  ;;  %10428 = vmatprep.subr.bf16.mxu1 %v13353_v36 }
 0xc39   :  { %10421 = vmatpush3.bf16.msra.mxu0 %v12661_v9  ;;  %10430 = vmatpush3.bf16.msra.mxu1 %v12663_v22 }
 0xc3a   :  { %10431 = vmatprep.subr.bf16.mxu0 %v13353_v36  ;;  %10440 = vmatprep.subr.bf16.mxu1 %v13353_v36 }
 0xcf7   :  { %v5872_v39 = vpop.f32.mrb[60].mxu0  ;;  %v5954_v55 = vpop.f32.mrb[60].mxu1 }
 0xcf8   :  { %v5877_v13 = vrot.slane %v5872_v39, 5  ;;  %v5878_v41 = vrot.slane %v5872_v39, 6  ;;  %v5879_v60 = vrot.slane %v5872_v39, 7  ;;  %v5887_v29 = vadd.f32 %v5872_v39, %v12737_v4  ;;  %v9617_v53 = vpop.f32.mrb[61].mxu0  ;;  %v9632_v20 = vpop.f32.mrb[61].mxu1 }
 0xcf9   :  { %v5959_v46 = vrot.slane %v5954_v55, 5  ;;  %v5960_v61 = vrot.slane %v5954_v55, 6  ;;  %v5961_v14 = vrot.slane %v5954_v55, 7  ;;  %v5969_v23 = vadd.f32 %v5954_v55, %v12739_v30 }
 0xcfa   :  { %v5884_v19 = vadd.f32 %v5877_v13, %v12733_v28  ;;  %v5885_v18 = vadd.f32 %v5878_v41, %v12729_v44  ;;  %v5886_v17 = vadd.f32 %v5879_v60, %v12741_v3  ;;  %v6173_v2 = vsub.f32 0.0, %v5887_v29 }
 0xcfb   :  { %v5966_v52 = vadd.f32 %v5959_v46, %v12735_v59  ;;  %v5967_v16 = vadd.f32 %v5960_v61, %v12731_v6  ;;  %v5968_v35 = vadd.f32 %v5961_v14, %v12743_v1  ;;  %v6137_v37 = vsub.f32 0.0, %v5969_v23 }
 0xcfc   :  { %v6170_v11 = vsub.f32 0.0, %v5884_v19  ;;  %v6171_v38 = vsub.f32 0.0, %v5885_v18  ;;  %v6172_v0 = vsub.f32 0.0, %v5886_v17  ;;  %v6180_v56 = vmul.f32 1.442695, %v6173_v2 }
 0xcfd   :  { %v6134_v15 = vsub.f32 0.0, %v5966_v52  ;;  %v6135_v48 = vsub.f32 0.0, %v5967_v16  ;;  %v6136_v49 = vsub.f32 0.0, %v5968_v35  ;;  %v6144_v63 = vmul.f32 1.442695, %v6137_v37 }
 0xcfe   :  { %v6174_v33 = vmul.f32 1.442695, %v6170_v11  ;;  %v6176_v34 = vmul.f32 1.442695, %v6171_v38  ;;  %v6178_v39 = vmul.f32 1.442695, %v6172_v0  ;;  %11289 = vpow2.f32 %v6180_v56 }
 0xcff   :  { %v6138_v55 = vmul.f32 1.442695, %v6134_v15  ;;  %11291 = vpow2.f32 %v6144_v63  ;;  %v6140_v13 = vmul.f32 1.442695, %v6135_v48  ;;  %v6142_v41 = vmul.f32 1.442695, %v6136_v49 }
 0xd00   :  { %11293 = vpow2.f32 %v6174_v33 }
 0xd01   :  { %11295 = vpow2.f32 %v6176_v34 }
 0xd02   :  { %11297 = vpow2.f32 %v6178_v39 }
 0xd03   :  { %11299 = vpow2.f32 %v6138_v55  ;;  %v6036_v60 = vpop.f32.mrb[62].mxu0  ;;  %v6118_v29 = vpop.f32.mrb[62].mxu1 }
 0xd04   :  { %11301 = vpow2.f32 %v6140_v13  ;;  %v6041_v53 = vrot.slane %v6036_v60, 5  ;;  %v6042_v20 = vrot.slane %v6036_v60, 6  ;;  %v6043_v46 = vrot.slane %v6036_v60, 7  ;;  %v9647_v61 = vpop.f32.mrb[63].mxu0  ;;  %v9662_v14 = vpop.f32.mrb[63].mxu1 }
 0xd05   :  { %11303 = vpow2.f32 %v6142_v41  ;;  %v6051_v23 = vadd.f32 %v6036_v60, %v12767_v26  ;;  %v6123_v19 = vrot.slane %v6118_v29, 5  ;;  %v6124_v18 = vrot.slane %v6118_v29, 6 }
 0xd06   :  { %v6048_v17 = vadd.f32 %v6041_v53, %v12763_v45  ;;  %v6049_v2 = vadd.f32 %v6042_v20, %v12759_v31  ;;  %v6050_v52 = vadd.f32 %v6043_v46, %v12769_v24  ;;  %v6125_v16 = vrot.slane %v6118_v29, 7 }
 0xd07   :  { %11305 = vtanh.f32 %v6051_v23  ;;  %v6130_v35 = vadd.f32 %v6123_v19, %v12765_v21  ;;  %v6131_v11 = vadd.f32 %v6124_v18, %v12761_v7  ;;  %v6133_v49 = vadd.f32 %v6118_v29, %v12780_v47 }
 0xd08   :  { %v11290_v37 = vpop.eup %11289  ;;  %11307 = vtanh.f32 %v6048_v17  ;;  %v6132_v56 = vadd.f32 %v6125_v16, %v12776_v27 }
 0xd09   :  { %v11292_v38 = vpop.eup %11291  ;;  %v6185_v0 = vadd.f32 1.0, %v11290_v37  ;;  %11309 = vtanh.f32 %v6049_v2  ;;  %v6202_v34 = vsub.f32 0.0, %v6130_v35  ;;  %v6203_v13 = vsub.f32 0.0, %v6131_v11 }
 0xd0a   :  { %v11294_v15 = vpop.eup %11293  ;;  %v6149_v48 = vadd.f32 1.0, %v11292_v38  ;;  %11311 = vtanh.f32 %v6050_v52  ;;  %v6204_v53 = vsub.f32 0.0, %v6132_v56  ;;  %v6205_v61 = vsub.f32 0.0, %v6133_v49 }
 0xd0b   :  { %v11296_v63 = vpop.eup %11295  ;;  %v6182_v33 = vadd.f32 1.0, %v11294_v15  ;;  %11313 = vrcp.f32 %v6185_v0  ;;  %v6206_v29 = vmul.f32 1.442695, %v6202_v34  ;;  %v6208_v18 = vmul.f32 1.442695, %v6203_v13 }
 0xd0c   :  { %v11298_v39 = vpop.eup %11297  ;;  %v6183_v55 = vadd.f32 1.0, %v11296_v63  ;;  %11315 = vrcp.f32 %v6149_v48  ;;  %v6210_v2 = vmul.f32 1.442695, %v6204_v53  ;;  %v6212_v16 = vmul.f32 1.442695, %v6205_v61 }
 0xd0d   :  { %v11300_v41 = vpop.eup %11299  ;;  %v6184_v60 = vadd.f32 1.0, %v11298_v39  ;;  %11317 = vrcp.f32 %v6182_v33  ;;  %v6161_v38 = vrot.slane %v12934_v51, 7  ;;  %v6158_v34 = vrot.slane %v12929_v54, 7 }
 0xd0e   :  { %v11302_v20 = vpop.eup %11301  ;;  %11319 = vrcp.f32 %v6183_v55  ;;  %v6146_v46 = vadd.f32 1.0, %v11300_v41  ;;  %v6159_v41 = vrot.slane %v12931_v43, 7  ;;  %v6160_v51 = vrot.slane %v12925_v40, 7 }
 0xd0f   :  { %v11304_v14 = vpop.eup %11303  ;;  %11321 = vrcp.f32 %v6184_v60  ;;  %v6147_v23 = vadd.f32 1.0, %v11302_v20 }
 0xd10   :  { %v6148_v19 = vadd.f32 1.0, %v11304_v14  ;;  %11323 = vrcp.f32 %v6146_v46 }
 0xd11   :  { %v11306_v17 = vpop.eup %11305  ;;  %11325 = vrcp.f32 %v6147_v23 }
 0xd12   :  { %v11308_v52 = vpop.eup %11307  ;;  %11327 = vrcp.f32 %v6148_v19 }
 0xd13   :  { %v11310_v35 = vpop.eup %11309  ;;  %11329 = vpow2.f32 %v6206_v29 }
 0xd14   :  { %v11312_v37 = vpop.eup %11311  ;;  %11331 = vpow2.f32 %v6208_v18 }
 0xd15   :  { %v11314_v11 = vpop.eup %11313  ;;  %11333 = vpow2.f32 %v6210_v2 }
 0xd16   :  { %v11316_v0 = vpop.eup %11315  ;;  %v6197_v56 = vmul.f32 %v11314_v11, %v11306_v17  ;;  %11335 = vpow2.f32 %v6212_v16 }
 0xd17   :  { %v11318_v15 = vpop.eup %11317  ;;  %v6169_v48 = vmul.f32 %v11316_v0, %v6161_v38 }
 0xd18   :  { %v11320_v49 = vpop.eup %11319  ;;  %v6194_v63 = vmul.f32 %v11318_v15, %v11308_v52 }
 0xd19   :  { %v11322_v33 = vpop.eup %11321  ;;  %v6195_v39 = vmul.f32 %v11320_v49, %v11310_v35  ;;  %v12996_v55 = vadd.f32 %v6197_v56, %v6169_v48 }
 0xd1a   :  { %v11324_v13 = vpop.eup %11323  ;;  %v6196_v60 = vmul.f32 %v11322_v33, %v11312_v37 }
 0xd1b   :  { %v11326_v53 = vpop.eup %11325  ;;  %v6166_v20 = vmul.f32 %v11324_v13, %v6158_v34  ;;  %11337 = vtanh.f32 %v12996_v55 }
 0xd1c   :  { %v11328_v46 = vpop.eup %11327  ;;  %v6167_v61 = vmul.f32 %v11326_v53, %v6159_v41 }
 0xd1d   :  { %v11330_v14 = vpop.eup %11329  ;;  %v6168_v23 = vmul.f32 %v11328_v46, %v6160_v51  ;;  %v13000_v29 = vadd.f32 %v6194_v63, %v6166_v20 }
 0xd1e   :  { %v11332_v19 = vpop.eup %11331  ;;  %v13002_v18 = vadd.f32 %v6195_v39, %v6167_v61  ;;  %v6214_v54 = vadd.f32 1.0, %v11330_v14 }
 0xd1f   :  { %v11334_v17 = vpop.eup %11333  ;;  %v13005_v2 = vadd.f32 %v6196_v60, %v6168_v23  ;;  %11339 = vtanh.f32 %v13000_v29  ;;  %v6215_v43 = vadd.f32 1.0, %v11332_v19 }
 0xd20   :  { %v11336_v40 = vpop.eup %11335  ;;  %11341 = vtanh.f32 %v13002_v18  ;;  %v6216_v52 = vadd.f32 1.0, %v11334_v17 }
 0xd21   :  { %11343 = vtanh.f32 %v13005_v2  ;;  %v6217_v16 = vadd.f32 1.0, %v11336_v40 }
 0xd22   :  { %11345 = vrcp.f32 %v6214_v54 }
 0xd23   :  { %11347 = vrcp.f32 %v6215_v43 }
 0xd24   :  { %11349 = vrcp.f32 %v6216_v52 }
 0xd25   :  { %11351 = vrcp.f32 %v6217_v16  ;;  %v11338_v35 = vpop.eup %11337 }
 0xd29   :  { %v11340_v37 = vpop.eup %11339 }
 0xd2a   :  { %v11342_v11 = vpop.eup %11341 }
 0xd2b   :  { %v11344_v38 = vpop.eup %11343 }
 0xd2c   :  { %v11346_v0 = vpop.eup %11345 }
 0xd2d   :  { %v11348_v56 = vpop.eup %11347  ;;  %v6226_v15 = vmul.f32 %v11346_v0, %v11340_v37 }
 0xd2e   :  { %v11350_v48 = vpop.eup %11349  ;;  %v6227_v49 = vmul.f32 %v11348_v56, %v11342_v11 }
 0xd2f   :  { %v11352_v63 = vpop.eup %11351  ;;  %v6228_v33 = vmul.f32 %v11350_v48, %v11344_v38  ;;  %v6234_v34 = vrot.slane %v6226_v15, 3 }
 0xd30   :  { %v6229_v39 = vmul.f32 %v11352_v63, %v11338_v35  ;;  %v6235_v13 = vrot.slane %v6227_v49, 2 }
 0xd31   :  { %v6237_v41 = vrot.slane %v6228_v33, 1 }
 0xd32   :  { %v6236_v60 = vsel %vm954_vm3, %v6235_v13, %v6234_v34 }
 0xd33   :  { %v6238_v53 = vsel %vm957_vm4, %v6237_v41, %v6236_v60 }
 0xd34   :  { %v6239_v51 = vsel %vm960_vm5, %v6229_v39, %v6238_v53 }
 0xd35   :  { %9676 = vmatmul.mubr.msk.f32.vlgmr.msra.gmra.mrb[64].mxu0 %vm533_vm6, %v6239_v51  ;;  %9691 = vmatmul.mubr.msk.f32.vlgmr.msra.gmra.mrb[64].mxu1 %vm533_vm6, %v6239_v51 }
 0xd36   :  { %10433 = vmatpush3.bf16.msra.mxu0 %v12669_v8  ;;  %10442 = vmatpush3.bf16.msra.mxu1 %v12671_v12 }
 0xd37   :  { %10434 = vmatprep.subr.bf16.mxu0 %v13353_v36  ;;  %10443 = vmatprep.subr.bf16.mxu1 %v13353_v36 }
 0xd38   :  { %9705 = vmatprep.mubr.msk.f32.mxu0 %vm11709_vm2, %v13354_v42  ;;  %9720 = vmatprep.mubr.msk.f32.mxu1 %vm11709_vm2, %v13354_v42 }
 0xd3a   :  { %10436 = vmatpush3.bf16.msra.mxu0 %v12679_v50  ;;  %10445 = vmatpush3.bf16.msra.mxu1 %v12681_v10 }
 0xd3b   :  { %10437 = vmatprep.subr.bf16.mxu0 %v13353_v36  ;;  %10446 = vmatprep.subr.bf16.mxu1 %v13353_v36 }
 0xd3e   :  { %10439 = vmatpush3.bf16.msra.mxu0 %v12691_v25  ;;  %10448 = vmatpush3.bf16.msra.mxu1 %v12693_v32 }
 0xd3f   :  { %10449 = vmatprep.subr.bf16.mxu0 %v13353_v36  ;;  %10458 = vmatprep.subr.bf16.mxu1 %v13353_v36 }
 0xd41   :  { %9706 = vmatmul.mubr.msk.f32.vlgmr.msra.gmra.mrb[66].mxu0 %vm533_vm6, %v6239_v51  ;;  %9721 = vmatmul.mubr.msk.f32.vlgmr.msra.gmra.mrb[66].mxu1 %vm533_vm6, %v6239_v51 }
 0xd42   :  { %10451 = vmatpush3.bf16.msra.mxu0 %v12637_v58  ;;  %10460 = vmatpush3.bf16.msra.mxu1 %v12639_v5 }
 0xd43   :  { %10452 = vmatprep.subr.bf16.mxu0 %v13353_v36  ;;  %10461 = vmatprep.subr.bf16.mxu1 %v13353_v36 }
 0xd44   :  { %9735 = vmatprep.mubr.msk.f32.mxu0 %vm11709_vm2, %v13354_v42  ;;  %9750 = vmatprep.mubr.msk.f32.mxu1 %vm11709_vm2, %v13354_v42 }
 0xd46   :  { %10454 = vmatpush3.bf16.msra.mxu0 %v12647_v57  ;;  %10463 = vmatpush3.bf16.msra.mxu1 %v12649_v62 }
 0xd47   :  { %10455 = vmatprep.subr.bf16.mxu0 %v13353_v36  ;;  %10464 = vmatprep.subr.bf16.mxu1 %v13353_v36 }
 0xd4a   :  { %10457 = vmatpush3.bf16.msra.mxu0 %v12661_v9  ;;  %10466 = vmatpush3.bf16.msra.mxu1 %v12663_v22 }
 0xd4b   :  { %10467 = vmatprep.subr.bf16.mxu0 %v13353_v36  ;;  %10476 = vmatprep.subr.bf16.mxu1 %v13353_v36 }
 0xe08   :  { %v6308_v20 = vpop.f32.mrb[64].mxu0  ;;  %v6391_v46 = vpop.f32.mrb[64].mxu1 }
 0xe09   :  { %v6313_v61 = vrot.slane %v6308_v20, 4  ;;  %v6314_v14 = vrot.slane %v6308_v20, 5  ;;  %v6315_v23 = vrot.slane %v6308_v20, 6  ;;  %v6316_v19 = vrot.slane %v6308_v20, 7  ;;  %v9677_v54 = vpop.f32.mrb[65].mxu0  ;;  %v9692_v17 = vpop.f32.mrb[65].mxu1 }
 0xe0a   :  { %v6396_v43 = vrot.slane %v6391_v46, 4  ;;  %v6397_v40 = vrot.slane %v6391_v46, 5  ;;  %v6398_v52 = vrot.slane %v6391_v46, 6  ;;  %v6399_v16 = vrot.slane %v6391_v46, 7 }
 0xe0b   :  { %v6321_v35 = vadd.f32 %v6313_v61, %v12733_v28  ;;  %v6322_v37 = vadd.f32 %v6314_v14, %v12729_v44  ;;  %v6323_v11 = vadd.f32 %v6315_v23, %v12741_v3  ;;  %v6324_v38 = vadd.f32 %v6316_v19, %v12737_v4 }
 0xe0c   :  { %v6404_v0 = vadd.f32 %v6396_v43, %v12735_v59  ;;  %v6405_v56 = vadd.f32 %v6397_v40, %v12731_v6  ;;  %v6406_v15 = vadd.f32 %v6398_v52, %v12743_v1  ;;  %v6407_v48 = vadd.f32 %v6399_v16, %v12739_v30 }
 0xe0d   :  { %v6610_v49 = vsub.f32 0.0, %v6321_v35  ;;  %v6611_v63 = vsub.f32 0.0, %v6322_v37  ;;  %v6612_v33 = vsub.f32 0.0, %v6323_v11  ;;  %v6613_v34 = vsub.f32 0.0, %v6324_v38 }
 0xe0e   :  { %v6574_v39 = vsub.f32 0.0, %v6404_v0  ;;  %v6575_v13 = vsub.f32 0.0, %v6405_v56  ;;  %v6576_v41 = vsub.f32 0.0, %v6406_v15  ;;  %v6577_v46 = vsub.f32 0.0, %v6407_v48 }
 0xe0f   :  { %v6614_v60 = vmul.f32 1.442695, %v6610_v49  ;;  %v6616_v53 = vmul.f32 1.442695, %v6611_v63  ;;  %v6618_v51 = vmul.f32 1.442695, %v6612_v33 }
 0xe10   :  { %v6620_v20 = vmul.f32 1.442695, %v6613_v34  ;;  %v6578_v61 = vmul.f32 1.442695, %v6574_v39  ;;  %v6580_v14 = vmul.f32 1.442695, %v6575_v13 }
 0xe11   :  { %11353 = vpow2.f32 %v6614_v60  ;;  %v6582_v23 = vmul.f32 1.442695, %v6576_v41  ;;  %v6584_v19 = vmul.f32 1.442695, %v6577_v46 }
 0xe12   :  { %11355 = vpow2.f32 %v6616_v53 }
 0xe13   :  { %11357 = vpow2.f32 %v6618_v51 }
 0xe14   :  { %11359 = vpow2.f32 %v6620_v20  ;;  %v6474_v54 = vpop.f32.mrb[66].mxu0  ;;  %v6557_v17 = vpop.f32.mrb[66].mxu1 }
 0xe15   :  { %11361 = vpow2.f32 %v6578_v61  ;;  %v6479_v43 = vrot.slane %v6474_v54, 4  ;;  %v6480_v40 = vrot.slane %v6474_v54, 5  ;;  %v6481_v52 = vrot.slane %v6474_v54, 6  ;;  %v9707_v16 = vpop.f32.mrb[67].mxu0  ;;  %v9722_v35 = vpop.f32.mrb[67].mxu1 }
 0xe16   :  { %11363 = vpow2.f32 %v6580_v14  ;;  %v6482_v37 = vrot.slane %v6474_v54, 7  ;;  %v6562_v11 = vrot.slane %v6557_v17, 4  ;;  %v6563_v56 = vrot.slane %v6557_v17, 5 }
 0xe17   :  { %11365 = vpow2.f32 %v6582_v23  ;;  %v6487_v38 = vadd.f32 %v6479_v43, %v12763_v45  ;;  %v6488_v0 = vadd.f32 %v6480_v40, %v12759_v31  ;;  %v6489_v15 = vadd.f32 %v6481_v52, %v12769_v24 }
 0xe18   :  { %11367 = vpow2.f32 %v6584_v19  ;;  %v6564_v48 = vrot.slane %v6557_v17, 6  ;;  %v6490_v49 = vadd.f32 %v6482_v37, %v12767_v26  ;;  %v6565_v63 = vrot.slane %v6557_v17, 7 }
 0xe19   :  { %11369 = vtanh.f32 %v6487_v38  ;;  %v6570_v33 = vadd.f32 %v6562_v11, %v12765_v21  ;;  %v6571_v39 = vadd.f32 %v6563_v56, %v12761_v7 }
 0xe1a   :  { %11371 = vtanh.f32 %v6488_v0  ;;  %v6572_v60 = vadd.f32 %v6564_v48, %v12776_v27  ;;  %v6573_v20 = vadd.f32 %v6565_v63, %v12780_v47 }
 0xe1b   :  { %v11354_v34 = vpop.eup %11353  ;;  %11373 = vtanh.f32 %v6489_v15  ;;  %v6642_v14 = vsub.f32 0.0, %v6570_v33  ;;  %v6643_v54 = vsub.f32 0.0, %v6571_v39 }
 0xe1c   :  { %v11356_v13 = vpop.eup %11355  ;;  %v6622_v41 = vadd.f32 1.0, %v11354_v34  ;;  %11375 = vtanh.f32 %v6490_v49  ;;  %v6644_v40 = vsub.f32 0.0, %v6572_v60  ;;  %v6645_v35 = vsub.f32 0.0, %v6573_v20 }
 0xe1d   :  { %v11358_v53 = vpop.eup %11357  ;;  %v6623_v51 = vadd.f32 1.0, %v11356_v13  ;;  %v6646_v38 = vmul.f32 1.442695, %v6642_v14  ;;  %v6648_v56 = vmul.f32 1.442695, %v6643_v54  ;;  %v6598_v20 = vrot.slane %v13000_v29, 7 }
 0xe1e   :  { %v11360_v46 = vpop.eup %11359  ;;  %v6624_v61 = vadd.f32 1.0, %v11358_v53  ;;  %11377 = vrcp.f32 %v6622_v41  ;;  %v6650_v48 = vmul.f32 1.442695, %v6644_v40  ;;  %v6652_v63 = vmul.f32 1.442695, %v6645_v35 }
 0xe1f   :  { %v11362_v23 = vpop.eup %11361  ;;  %v6625_v19 = vadd.f32 1.0, %v11360_v46  ;;  %11379 = vrcp.f32 %v6623_v51  ;;  %v6599_v14 = vrot.slane %v13002_v18, 7  ;;  %v6600_v54 = vrot.slane %v13005_v2, 7 }
 0xe20   :  { %v11364_v17 = vpop.eup %11363  ;;  %11381 = vrcp.f32 %v6624_v61  ;;  %v6586_v43 = vadd.f32 1.0, %v11362_v23  ;;  %v6601_v40 = vrot.slane %v12996_v55, 7 }
 0xe21   :  { %v11366_v52 = vpop.eup %11365  ;;  %11383 = vrcp.f32 %v6625_v19  ;;  %v6587_v16 = vadd.f32 1.0, %v11364_v17 }
 0xe22   :  { %v11368_v37 = vpop.eup %11367  ;;  %v6588_v11 = vadd.f32 1.0, %v11366_v52  ;;  %11385 = vrcp.f32 %v6586_v43 }
 0xe23   :  { %v6589_v0 = vadd.f32 1.0, %v11368_v37  ;;  %11387 = vrcp.f32 %v6587_v16  ;;  %v11370_v15 = vpop.eup %11369 }
 0xe24   :  { %11389 = vrcp.f32 %v6588_v11  ;;  %v11372_v49 = vpop.eup %11371 }
 0xe25   :  { %11391 = vrcp.f32 %v6589_v0  ;;  %v11374_v33 = vpop.eup %11373 }
 0xe26   :  { %11393 = vpow2.f32 %v6646_v38  ;;  %v11376_v34 = vpop.eup %11375 }
 0xe27   :  { %11395 = vpow2.f32 %v6648_v56 }
 0xe28   :  { %v11378_v39 = vpop.eup %11377  ;;  %11397 = vpow2.f32 %v6650_v48 }
 0xe29   :  { %v11380_v13 = vpop.eup %11379  ;;  %v6634_v41 = vmul.f32 %v11378_v39, %v11370_v15  ;;  %11399 = vpow2.f32 %v6652_v63 }
 0xe2a   :  { %v11382_v60 = vpop.eup %11381  ;;  %v6635_v53 = vmul.f32 %v11380_v13, %v11372_v49 }
 0xe2b   :  { %v11384_v51 = vpop.eup %11383  ;;  %v6636_v46 = vmul.f32 %v11382_v60, %v11374_v33 }
 0xe2c   :  { %v11386_v61 = vpop.eup %11385  ;;  %v6637_v23 = vmul.f32 %v11384_v51, %v11376_v34 }
 0xe2d   :  { %v11388_v19 = vpop.eup %11387  ;;  %v6606_v17 = vmul.f32 %v11386_v61, %v6598_v20 }
 0xe2e   :  { %v11390_v43 = vpop.eup %11389  ;;  %v6607_v52 = vmul.f32 %v11388_v19, %v6599_v14 }
 0xe2f   :  { %v11392_v16 = vpop.eup %11391  ;;  %v6608_v35 = vmul.f32 %v11390_v43, %v6600_v54  ;;  %v13069_v37 = vadd.f32 %v6634_v41, %v6606_v17 }
 0xe30   :  { %v11394_v11 = vpop.eup %11393  ;;  %v6609_v38 = vmul.f32 %v11392_v16, %v6601_v40  ;;  %v13071_v29 = vadd.f32 %v6635_v53, %v6607_v52 }
 0xe31   :  { %v11396_v0 = vpop.eup %11395  ;;  %v13073_v56 = vadd.f32 %v6636_v46, %v6608_v35  ;;  %11401 = vtanh.f32 %v13069_v37  ;;  %v6654_v18 = vadd.f32 1.0, %v11394_v11 }
 0xe32   :  { %v11398_v2 = vpop.eup %11397  ;;  %v13076_v15 = vadd.f32 %v6637_v23, %v6609_v38  ;;  %11403 = vtanh.f32 %v13071_v29  ;;  %v6655_v55 = vadd.f32 1.0, %v11396_v0 }
 0xe33   :  { %v11400_v48 = vpop.eup %11399  ;;  %11405 = vtanh.f32 %v13073_v56  ;;  %v6656_v49 = vadd.f32 1.0, %v11398_v2 }
 0xe34   :  { %v6657_v63 = vadd.f32 1.0, %v11400_v48  ;;  %11407 = vrcp.f32 %v6654_v18 }
 0xe35   :  { %11409 = vrcp.f32 %v6655_v55 }
 0xe36   :  { %11411 = vrcp.f32 %v6656_v49 }
 0xe37   :  { %11413 = vrcp.f32 %v6657_v63 }
 0xe38   :  { %11415 = vtanh.f32 %v13076_v15 }
 0xe3b   :  { %v11402_v33 = vpop.eup %11401 }
 0xe3c   :  { %v11404_v34 = vpop.eup %11403 }
 0xe3d   :  { %v11406_v39 = vpop.eup %11405 }
 0xe3e   :  { %v11408_v13 = vpop.eup %11407 }
 0xe3f   :  { %v11410_v41 = vpop.eup %11409  ;;  %v6666_v60 = vmul.f32 %v11408_v13, %v11402_v33 }
 0xe40   :  { %v11412_v53 = vpop.eup %11411  ;;  %v6667_v51 = vmul.f32 %v11410_v41, %v11404_v34 }
 0xe41   :  { %v11414_v20 = vpop.eup %11413  ;;  %v6668_v46 = vmul.f32 %v11412_v53, %v11406_v39  ;;  %v6674_v61 = vrot.slane %v6666_v60, 4 }
 0xe42   :  { %v11416_v14 = vpop.eup %11415  ;;  %v6675_v23 = vrot.slane %v6667_v51, 3 }
 0xe43   :  { %v6669_v19 = vmul.f32 %v11416_v14, %v11414_v20  ;;  %v6677_v54 = vrot.slane %v6668_v46, 2 }
 0xe44   :  { %v6676_v17 = vsel %vm954_vm3, %v6675_v23, %v6674_v61 }
 0xe45   :  { %v6678_v43 = vsel %vm957_vm4, %v6677_v54, %v6676_v17  ;;  %v6679_v40 = vrot.slane %v6669_v19, 1 }
 0xe47   :  { %v6680_v52 = vsel %vm960_vm5, %v6679_v40, %v6678_v43 }
 0xe48   :  { %9736 = vmatmul.mubr.msk.f32.vlgmr.msra.gmra.mrb[68].mxu0 %vm533_vm6, %v6680_v52  ;;  %9751 = vmatmul.mubr.msk.f32.vlgmr.msra.gmra.mrb[68].mxu1 %vm533_vm6, %v6680_v52 }
 0xe49   :  { %10469 = vmatpush3.bf16.msra.mxu0 %v12669_v8  ;;  %10478 = vmatpush3.bf16.msra.mxu1 %v12671_v12 }
 0xe4a   :  { %10470 = vmatprep.subr.bf16.mxu0 %v13353_v36  ;;  %10479 = vmatprep.subr.bf16.mxu1 %v13353_v36 }
 0xe4b   :  { %9765 = vmatprep.mubr.msk.f32.mxu0 %vm11709_vm2, %v13354_v42  ;;  %9780 = vmatprep.mubr.msk.f32.mxu1 %vm11709_vm2, %v13354_v42 }
 0xe4d   :  { %10472 = vmatpush3.bf16.msra.mxu0 %v12679_v50  ;;  %10481 = vmatpush3.bf16.msra.mxu1 %v12681_v10 }
 0xe4e   :  { %10473 = vmatprep.subr.bf16.mxu0 %v13353_v36  ;;  %10482 = vmatprep.subr.bf16.mxu1 %v13353_v36 }
 0xe51   :  { %10475 = vmatpush3.bf16.msra.mxu0 %v12691_v25  ;;  %10484 = vmatpush3.bf16.msra.mxu1 %v12693_v32 }
 0xe52   :  { %10485 = vmatprep.subr.bf16.mxu0 %v13353_v36  ;;  %10494 = vmatprep.subr.bf16.mxu1 %v13353_v36 }
 0xe54   :  { %9766 = vmatmul.mubr.msk.f32.vlgmr.msra.gmra.mrb[70].mxu0 %vm533_vm6, %v6680_v52  ;;  %9781 = vmatmul.mubr.msk.f32.vlgmr.msra.gmra.mrb[70].mxu1 %vm533_vm6, %v6680_v52 }
 0xe55   :  { %10487 = vmatpush3.bf16.msra.mxu0 %v12637_v58  ;;  %10496 = vmatpush3.bf16.msra.mxu1 %v12639_v5 }
 0xe56   :  { %10488 = vmatprep.subr.bf16.mxu0 %v13353_v36  ;;  %10497 = vmatprep.subr.bf16.mxu1 %v13353_v36 }
 0xe57   :  { %9795 = vmatprep.mubr.msk.f32.mxu0 %vm11709_vm2, %v13354_v42  ;;  %9810 = vmatprep.mubr.msk.f32.mxu1 %vm11709_vm2, %v13354_v42 }
 0xe59   :  { %10490 = vmatpush3.bf16.msra.mxu0 %v12647_v57  ;;  %10499 = vmatpush3.bf16.msra.mxu1 %v12649_v62 }
 0xe5a   :  { %10491 = vmatprep.subr.bf16.mxu0 %v13353_v36  ;;  %10500 = vmatprep.subr.bf16.mxu1 %v13353_v36 }
 0xe5d   :  { %10493 = vmatpush3.bf16.msra.mxu0 %v12661_v9  ;;  %10502 = vmatpush3.bf16.msra.mxu1 %v12663_v22 }
 0xe5e   :  { %10503 = vmatprep.subr.bf16.mxu0 %v13353_v36  ;;  %10512 = vmatprep.subr.bf16.mxu1 %v13353_v36 }
 0xf1b   :  { %v6749_v16 = vpop.f32.mrb[68].mxu0  ;;  %v6832_v35 = vpop.f32.mrb[68].mxu1 }
 0xf1c   :  { %v6754_v11 = vrot.slane %v6749_v16, 3  ;;  %v6755_v38 = vrot.slane %v6749_v16, 4  ;;  %v6756_v0 = vrot.slane %v6749_v16, 5  ;;  %v6757_v18 = vrot.slane %v6749_v16, 6  ;;  %v9737_v2 = vpop.f32.mrb[69].mxu0  ;;  %v9752_v55 = vpop.f32.mrb[69].mxu1 }
 0xf1d   :  { %v6837_v48 = vrot.slane %v6832_v35, 3  ;;  %v6838_v49 = vrot.slane %v6832_v35, 4  ;;  %v6839_v63 = vrot.slane %v6832_v35, 5  ;;  %v6840_v33 = vrot.slane %v6832_v35, 6 }
 0xf1e   :  { %v6762_v34 = vadd.f32 %v6754_v11, %v12733_v28  ;;  %v6763_v39 = vadd.f32 %v6755_v38, %v12729_v44  ;;  %v6764_v13 = vadd.f32 %v6756_v0, %v12741_v3  ;;  %v6765_v41 = vadd.f32 %v6757_v18, %v12737_v4 }
 0xf1f   :  { %v6845_v60 = vadd.f32 %v6837_v48, %v12735_v59  ;;  %v6846_v53 = vadd.f32 %v6838_v49, %v12731_v6  ;;  %v6847_v51 = vadd.f32 %v6839_v63, %v12743_v1  ;;  %v6848_v20 = vadd.f32 %v6840_v33, %v12739_v30 }
 0xf20   :  { %v7051_v46 = vsub.f32 0.0, %v6762_v34  ;;  %v7052_v61 = vsub.f32 0.0, %v6763_v39  ;;  %v7053_v14 = vsub.f32 0.0, %v6764_v13  ;;  %v7054_v23 = vsub.f32 0.0, %v6765_v41 }
 0xf21   :  { %v7015_v19 = vsub.f32 0.0, %v6845_v60  ;;  %v7016_v54 = vsub.f32 0.0, %v6846_v53  ;;  %v7017_v17 = vsub.f32 0.0, %v6847_v51  ;;  %v7018_v35 = vsub.f32 0.0, %v6848_v20 }
 0xf22   :  { %v7055_v43 = vmul.f32 1.442695, %v7051_v46  ;;  %v7057_v40 = vmul.f32 1.442695, %v7052_v61  ;;  %v7059_v52 = vmul.f32 1.442695, %v7053_v14 }
 0xf23   :  { %v7061_v16 = vmul.f32 1.442695, %v7054_v23  ;;  %v7019_v11 = vmul.f32 1.442695, %v7015_v19  ;;  %v7021_v38 = vmul.f32 1.442695, %v7016_v54 }
 0xf24   :  { %11417 = vpow2.f32 %v7055_v43  ;;  %v7023_v0 = vmul.f32 1.442695, %v7017_v17  ;;  %v7025_v18 = vmul.f32 1.442695, %v7018_v35 }
 0xf25   :  { %11419 = vpow2.f32 %v7057_v40 }
 0xf26   :  { %11421 = vpow2.f32 %v7059_v52 }
 0xf27   :  { %11423 = vpow2.f32 %v7061_v16  ;;  %v6915_v2 = vpop.f32.mrb[70].mxu0  ;;  %v6998_v55 = vpop.f32.mrb[70].mxu1 }
 0xf28   :  { %11425 = vpow2.f32 %v7019_v11  ;;  %v6920_v48 = vrot.slane %v6915_v2, 3  ;;  %v6921_v49 = vrot.slane %v6915_v2, 4  ;;  %v6922_v63 = vrot.slane %v6915_v2, 5  ;;  %v9767_v33 = vpop.f32.mrb[71].mxu0  ;;  %v9782_v34 = vpop.f32.mrb[71].mxu1 }
 0xf29   :  { %11427 = vpow2.f32 %v7021_v38  ;;  %v6923_v39 = vrot.slane %v6915_v2, 6  ;;  %v7003_v13 = vrot.slane %v6998_v55, 3  ;;  %v7004_v53 = vrot.slane %v6998_v55, 4 }
 0xf2a   :  { %11429 = vpow2.f32 %v7023_v0  ;;  %v6928_v41 = vadd.f32 %v6920_v48, %v12763_v45  ;;  %v6929_v60 = vadd.f32 %v6921_v49, %v12759_v31  ;;  %v6930_v51 = vadd.f32 %v6922_v63, %v12769_v24 }
 0xf2b   :  { %11431 = vpow2.f32 %v7025_v18  ;;  %v7005_v20 = vrot.slane %v6998_v55, 5  ;;  %v6931_v46 = vadd.f32 %v6923_v39, %v12767_v26  ;;  %v7006_v61 = vrot.slane %v6998_v55, 6 }
 0xf2c   :  { %11433 = vtanh.f32 %v6928_v41  ;;  %v7011_v14 = vadd.f32 %v7003_v13, %v12765_v21  ;;  %v7012_v19 = vadd.f32 %v7004_v53, %v12761_v7 }
 0xf2d   :  { %11435 = vtanh.f32 %v6929_v60  ;;  %v7013_v43 = vadd.f32 %v7005_v20, %v12776_v27  ;;  %v7014_v16 = vadd.f32 %v7006_v61, %v12780_v47 }
 0xf2e   :  { %v11418_v23 = vpop.eup %11417  ;;  %11437 = vtanh.f32 %v6930_v51  ;;  %v7083_v38 = vsub.f32 0.0, %v7011_v14  ;;  %v7084_v2 = vsub.f32 0.0, %v7012_v19 }
 0xf2f   :  { %v11420_v54 = vpop.eup %11419  ;;  %v7063_v17 = vadd.f32 1.0, %v11418_v23  ;;  %11439 = vtanh.f32 %v6931_v46  ;;  %v7085_v49 = vsub.f32 0.0, %v7013_v43  ;;  %v7086_v34 = vsub.f32 0.0, %v7014_v16 }
 0xf30   :  { %v11422_v40 = vpop.eup %11421  ;;  %v7064_v52 = vadd.f32 1.0, %v11420_v54  ;;  %v7087_v41 = vmul.f32 1.442695, %v7083_v38  ;;  %v7089_v53 = vmul.f32 1.442695, %v7084_v2  ;;  %v7039_v16 = vrot.slane %v13069_v37, 7 }
 0xf31   :  { %v11424_v35 = vpop.eup %11423  ;;  %v7065_v11 = vadd.f32 1.0, %v11422_v40  ;;  %11441 = vrcp.f32 %v7063_v17  ;;  %v7091_v20 = vmul.f32 1.442695, %v7085_v49  ;;  %v7093_v61 = vmul.f32 1.442695, %v7086_v34 }
 0xf32   :  { %v11426_v0 = vpop.eup %11425  ;;  %v7066_v18 = vadd.f32 1.0, %v11424_v35  ;;  %11443 = vrcp.f32 %v7064_v52  ;;  %v7040_v38 = vrot.slane %v13071_v29, 7  ;;  %v7041_v2 = vrot.slane %v13073_v56, 7 }
 0xf33   :  { %v11428_v55 = vpop.eup %11427  ;;  %11445 = vrcp.f32 %v7065_v11  ;;  %v7027_v48 = vadd.f32 1.0, %v11426_v0  ;;  %v7042_v49 = vrot.slane %v13076_v15, 7 }
 0xf34   :  { %v11430_v63 = vpop.eup %11429  ;;  %11447 = vrcp.f32 %v7066_v18  ;;  %v7028_v33 = vadd.f32 1.0, %v11428_v55 }
 0xf35   :  { %v11432_v39 = vpop.eup %11431  ;;  %v7029_v13 = vadd.f32 1.0, %v11430_v63  ;;  %11449 = vrcp.f32 %v7027_v48 }
 0xf36   :  { %v7030_v60 = vadd.f32 1.0, %v11432_v39  ;;  %11451 = vrcp.f32 %v7028_v33  ;;  %v11434_v51 = vpop.eup %11433 }
 0xf37   :  { %11453 = vrcp.f32 %v7029_v13  ;;  %v11436_v46 = vpop.eup %11435 }
 0xf38   :  { %11455 = vrcp.f32 %v7030_v60  ;;  %v11438_v14 = vpop.eup %11437 }
 0xf39   :  { %11457 = vpow2.f32 %v7087_v41  ;;  %v11440_v23 = vpop.eup %11439 }
 0xf3a   :  { %11459 = vpow2.f32 %v7089_v53 }
 0xf3b   :  { %v11442_v19 = vpop.eup %11441  ;;  %11461 = vpow2.f32 %v7091_v20 }
 0xf3c   :  { %v11444_v54 = vpop.eup %11443  ;;  %v7075_v17 = vmul.f32 %v11442_v19, %v11434_v51  ;;  %11463 = vpow2.f32 %v7093_v61 }
 0xf3d   :  { %v11446_v43 = vpop.eup %11445  ;;  %v7076_v40 = vmul.f32 %v11444_v54, %v11436_v46 }
 0xf3e   :  { %v11448_v52 = vpop.eup %11447  ;;  %v7077_v35 = vmul.f32 %v11446_v43, %v11438_v14 }
 0xf3f   :  { %v11450_v11 = vpop.eup %11449  ;;  %v7078_v0 = vmul.f32 %v11448_v52, %v11440_v23 }
 0xf40   :  { %v11452_v18 = vpop.eup %11451  ;;  %v7047_v55 = vmul.f32 %v11450_v11, %v7039_v16 }
 0xf41   :  { %v11454_v48 = vpop.eup %11453  ;;  %v7048_v63 = vmul.f32 %v11452_v18, %v7040_v38 }
 0xf42   :  { %v11456_v33 = vpop.eup %11455  ;;  %v7049_v34 = vmul.f32 %v11454_v48, %v7041_v2  ;;  %v13140_v39 = vadd.f32 %v7075_v17, %v7047_v55 }
 0xf43   :  { %v11458_v13 = vpop.eup %11457  ;;  %v7050_v41 = vmul.f32 %v11456_v33, %v7042_v49  ;;  %v13142_v37 = vadd.f32 %v7076_v40, %v7048_v63 }
 0xf44   :  { %v11460_v60 = vpop.eup %11459  ;;  %v13144_v53 = vadd.f32 %v7077_v35, %v7049_v34  ;;  %11465 = vtanh.f32 %v13140_v39  ;;  %v7095_v29 = vadd.f32 1.0, %v11458_v13 }
 0xf45   :  { %v11462_v56 = vpop.eup %11461  ;;  %v13147_v51 = vadd.f32 %v7078_v0, %v7050_v41  ;;  %11467 = vtanh.f32 %v13142_v37  ;;  %v7096_v15 = vadd.f32 1.0, %v11460_v60 }
 0xf46   :  { %v11464_v20 = vpop.eup %11463  ;;  %11469 = vtanh.f32 %v13144_v53  ;;  %v7097_v46 = vadd.f32 1.0, %v11462_v56 }
 0xf47   :  { %v7098_v61 = vadd.f32 1.0, %v11464_v20  ;;  %11471 = vrcp.f32 %v7095_v29 }
 0xf48   :  { %11473 = vrcp.f32 %v7096_v15 }
 0xf49   :  { %11475 = vrcp.f32 %v7097_v46 }
 0xf4a   :  { %11477 = vrcp.f32 %v7098_v61 }
 0xf4b   :  { %11479 = vtanh.f32 %v13147_v51 }
 0xf4e   :  { %v11466_v14 = vpop.eup %11465 }
 0xf4f   :  { %v11468_v23 = vpop.eup %11467 }
 0xf50   :  { %v11470_v19 = vpop.eup %11469 }
 0xf51   :  { %v11472_v54 = vpop.eup %11471 }
 0xf52   :  { %v11474_v17 = vpop.eup %11473  ;;  %v7107_v43 = vmul.f32 %v11472_v54, %v11466_v14 }
 0xf53   :  { %v11476_v40 = vpop.eup %11475  ;;  %v7108_v52 = vmul.f32 %v11474_v17, %v11468_v23 }
 0xf54   :  { %v11478_v16 = vpop.eup %11477  ;;  %v7109_v35 = vmul.f32 %v11476_v40, %v11470_v19  ;;  %v7115_v11 = vrot.slane %v7107_v43, 5 }
 0xf55   :  { %v11480_v38 = vpop.eup %11479  ;;  %v7116_v0 = vrot.slane %v7108_v52, 4 }
 0xf56   :  { %v7110_v18 = vmul.f32 %v11480_v38, %v11478_v16  ;;  %v7118_v2 = vrot.slane %v7109_v35, 3 }
 0xf57   :  { %v7117_v55 = vsel %vm954_vm3, %v7116_v0, %v7115_v11 }
 0xf58   :  { %v7119_v48 = vsel %vm957_vm4, %v7118_v2, %v7117_v55  ;;  %v7120_v49 = vrot.slane %v7110_v18, 2 }
 0xf5a   :  { %v7121_v63 = vsel %vm960_vm5, %v7120_v49, %v7119_v48 }
 0xf5b   :  { %9796 = vmatmul.mubr.msk.f32.vlgmr.msra.gmra.mrb[72].mxu0 %vm533_vm6, %v7121_v63  ;;  %9811 = vmatmul.mubr.msk.f32.vlgmr.msra.gmra.mrb[72].mxu1 %vm533_vm6, %v7121_v63 }
 0xf5c   :  { %10505 = vmatpush3.bf16.msra.mxu0 %v12669_v8  ;;  %10514 = vmatpush3.bf16.msra.mxu1 %v12671_v12 }
 0xf5d   :  { %10506 = vmatprep.subr.bf16.mxu0 %v13353_v36  ;;  %10515 = vmatprep.subr.bf16.mxu1 %v13353_v36 }
 0xf5e   :  { %9825 = vmatprep.mubr.msk.f32.mxu0 %vm11709_vm2, %v13354_v42  ;;  %9840 = vmatprep.mubr.msk.f32.mxu1 %vm11709_vm2, %v13354_v42 }
 0xf60   :  { %10508 = vmatpush3.bf16.msra.mxu0 %v12679_v50  ;;  %10517 = vmatpush3.bf16.msra.mxu1 %v12681_v10 }
 0xf61   :  { %10509 = vmatprep.subr.bf16.mxu0 %v13353_v36  ;;  %10518 = vmatprep.subr.bf16.mxu1 %v13353_v36 }
 0xf64   :  { %10511 = vmatpush3.bf16.msra.mxu0 %v12691_v25  ;;  %10520 = vmatpush3.bf16.msra.mxu1 %v12693_v32 }
 0xf65   :  { %10521 = vmatprep.subr.bf16.mxu0 %v13353_v36  ;;  %10530 = vmatprep.subr.bf16.mxu1 %v13353_v36 }
 0xf67   :  { %9826 = vmatmul.mubr.msk.f32.vlgmr.msra.gmra.mrb[74].mxu0 %vm533_vm6, %v7121_v63  ;;  %9841 = vmatmul.mubr.msk.f32.vlgmr.msra.gmra.mrb[74].mxu1 %vm533_vm6, %v7121_v63 }
 0xf68   :  { %10523 = vmatpush3.bf16.msra.mxu0 %v12637_v58  ;;  %10532 = vmatpush3.bf16.msra.mxu1 %v12639_v5 }
 0xf69   :  { %10524 = vmatprep.subr.bf16.mxu0 %v13353_v36  ;;  %10533 = vmatprep.subr.bf16.mxu1 %v13353_v36 }
 0xf6a   :  { %9855 = vmatprep.mubr.msk.f32.mxu0 %vm11709_vm2, %v13354_v42  ;;  %9870 = vmatprep.mubr.msk.f32.mxu1 %vm11709_vm2, %v13354_v42 }
 0xf6c   :  { %10526 = vmatpush3.bf16.msra.mxu0 %v12647_v57  ;;  %10535 = vmatpush3.bf16.msra.mxu1 %v12649_v62 }
 0xf6d   :  { %10527 = vmatprep.subr.bf16.mxu0 %v13353_v36  ;;  %10536 = vmatprep.subr.bf16.mxu1 %v13353_v36 }
 0xf70   :  { %10529 = vmatpush3.bf16.msra.mxu0 %v12661_v9  ;;  %10538 = vmatpush3.bf16.msra.mxu1 %v12663_v22 }
 0xf71   :  { %10539 = vmatprep.subr.bf16.mxu0 %v13353_v36  ;;  %10548 = vmatprep.subr.bf16.mxu1 %v13353_v36 }
0x102e   :  { %v7190_v58 = vpop.f32.mrb[72].mxu0  ;;  %v7273_v5 = vpop.f32.mrb[72].mxu1 }
0x102f   :  { %v7195_v33 = vrot.slane %v7190_v58, 2  ;;  %v7196_v34 = vrot.slane %v7190_v58, 3  ;;  %v7197_v13 = vrot.slane %v7190_v58, 4  ;;  %v7198_v57 = vrot.slane %v7190_v58, 5  ;;  %v9797_v41 = vpop.f32.mrb[73].mxu0  ;;  %v9812_v62 = vpop.f32.mrb[73].mxu1 }
0x1030   :  { %v7278_v60 = vrot.slane %v7273_v5, 2  ;;  %v7279_v29 = vrot.slane %v7273_v5, 3  ;;  %v7280_v56 = vrot.slane %v7273_v5, 4  ;;  %v7281_v15 = vrot.slane %v7273_v5, 5 }
0x1031   :  { %v7203_v9 = vadd.f32 %v7195_v33, %v12733_v28  ;;  %v7204_v22 = vadd.f32 %v7196_v34, %v12729_v44  ;;  %v7205_v20 = vadd.f32 %v7197_v13, %v12741_v3  ;;  %v7206_v46 = vadd.f32 %v7198_v57, %v12737_v4 }
0x1032   :  { %v7286_v61 = vadd.f32 %v7278_v60, %v12735_v59  ;;  %v7287_v14 = vadd.f32 %v7279_v29, %v12731_v6  ;;  %v7288_v23 = vadd.f32 %v7280_v56, %v12743_v1  ;;  %v7289_v19 = vadd.f32 %v7281_v15, %v12739_v30 }
0x1033   :  { %v7492_v54 = vsub.f32 0.0, %v7203_v9  ;;  %v7493_v17 = vsub.f32 0.0, %v7204_v22  ;;  %v7494_v43 = vsub.f32 0.0, %v7205_v20  ;;  %v7495_v40 = vsub.f32 0.0, %v7206_v46 }
0x1034   :  { %v7456_v52 = vsub.f32 0.0, %v7286_v61  ;;  %v7457_v16 = vsub.f32 0.0, %v7287_v14  ;;  %v7458_v35 = vsub.f32 0.0, %v7288_v23  ;;  %v7459_v2 = vsub.f32 0.0, %v7289_v19 }
0x1035   :  { %v7496_v11 = vmul.f32 1.442695, %v7492_v54  ;;  %v7498_v38 = vmul.f32 1.442695, %v7493_v17  ;;  %v7500_v0 = vmul.f32 1.442695, %v7494_v43 }
0x1036   :  { %v7502_v18 = vmul.f32 1.442695, %v7495_v40  ;;  %v7460_v55 = vmul.f32 1.442695, %v7456_v52  ;;  %v7462_v48 = vmul.f32 1.442695, %v7457_v16 }
0x1037   :  { %11481 = vpow2.f32 %v7496_v11  ;;  %v7464_v49 = vmul.f32 1.442695, %v7458_v35  ;;  %v7466_v63 = vmul.f32 1.442695, %v7459_v2 }
0x1038   :  { %11483 = vpow2.f32 %v7498_v38 }
0x1039   :  { %11485 = vpow2.f32 %v7500_v0 }
0x103a   :  { %11487 = vpow2.f32 %v7502_v18  ;;  %v7356_v58 = vpop.f32.mrb[74].mxu0  ;;  %v7439_v5 = vpop.f32.mrb[74].mxu1 }
0x103b   :  { %11489 = vpow2.f32 %v7460_v55  ;;  %v7361_v33 = vrot.slane %v7356_v58, 2  ;;  %v7362_v34 = vrot.slane %v7356_v58, 3  ;;  %v7363_v13 = vrot.slane %v7356_v58, 4  ;;  %v9827_v57 = vpop.f32.mrb[75].mxu0  ;;  %v9842_v41 = vpop.f32.mrb[75].mxu1 }
0x103c   :  { %11491 = vpow2.f32 %v7462_v48  ;;  %v7364_v62 = vrot.slane %v7356_v58, 5  ;;  %v7444_v60 = vrot.slane %v7439_v5, 2  ;;  %v7445_v15 = vrot.slane %v7439_v5, 3 }
0x103d   :  { %11493 = vpow2.f32 %v7464_v49  ;;  %v7369_v29 = vadd.f32 %v7361_v33, %v12763_v45  ;;  %v7370_v56 = vadd.f32 %v7362_v34, %v12759_v31  ;;  %v7371_v9 = vadd.f32 %v7363_v13, %v12769_v24 }
0x103e   :  { %11495 = vpow2.f32 %v7466_v63  ;;  %v7446_v22 = vrot.slane %v7439_v5, 4  ;;  %v7372_v20 = vadd.f32 %v7364_v62, %v12767_v26  ;;  %v7447_v46 = vrot.slane %v7439_v5, 5 }
0x103f   :  { %11497 = vtanh.f32 %v7369_v29  ;;  %v7452_v61 = vadd.f32 %v7444_v60, %v12765_v21  ;;  %v7453_v23 = vadd.f32 %v7445_v15, %v12761_v7 }
0x1040   :  { %11499 = vtanh.f32 %v7370_v56  ;;  %v7454_v17 = vadd.f32 %v7446_v22, %v12776_v27  ;;  %v7455_v52 = vadd.f32 %v7447_v46, %v12780_v47 }
0x1041   :  { %v11482_v14 = vpop.eup %11481  ;;  %11501 = vtanh.f32 %v7371_v9  ;;  %v7524_v11 = vsub.f32 0.0, %v7452_v61  ;;  %v7525_v18 = vsub.f32 0.0, %v7453_v23  ;;  %v7480_v23 = vrot.slane %v13140_v39, 7 }
0x1042   :  { %v11484_v19 = vpop.eup %11483  ;;  %v7504_v54 = vadd.f32 1.0, %v11482_v14  ;;  %11503 = vtanh.f32 %v7372_v20  ;;  %v7526_v48 = vsub.f32 0.0, %v7454_v17  ;;  %v7527_v58 = vsub.f32 0.0, %v7455_v52 }
0x1043   :  { %v11486_v43 = vpop.eup %11485  ;;  %v7505_v40 = vadd.f32 1.0, %v11484_v19  ;;  %v7528_v34 = vmul.f32 1.442695, %v7524_v11  ;;  %v7530_v57 = vmul.f32 1.442695, %v7525_v18  ;;  %v7481_v17 = vrot.slane %v13142_v37, 7 }
0x1044   :  { %v11488_v16 = vpop.eup %11487  ;;  %v7506_v35 = vadd.f32 1.0, %v11486_v43  ;;  %11505 = vrcp.f32 %v7504_v54  ;;  %v7532_v62 = vmul.f32 1.442695, %v7526_v48  ;;  %v7534_v29 = vmul.f32 1.442695, %v7527_v58 }
0x1045   :  { %v11490_v38 = vpop.eup %11489  ;;  %v7507_v0 = vadd.f32 1.0, %v11488_v16  ;;  %11507 = vrcp.f32 %v7505_v40  ;;  %v7482_v52 = vrot.slane %v13144_v53, 7  ;;  %v7483_v11 = vrot.slane %v13147_v51, 7 }
0x1046   :  { %v11492_v2 = vpop.eup %11491  ;;  %11509 = vrcp.f32 %v7506_v35  ;;  %v7468_v55 = vadd.f32 1.0, %v11490_v38 }
0x1047   :  { %v11494_v49 = vpop.eup %11493  ;;  %11511 = vrcp.f32 %v7507_v0  ;;  %v7469_v63 = vadd.f32 1.0, %v11492_v2 }
0x1048   :  { %v11496_v5 = vpop.eup %11495  ;;  %v7470_v33 = vadd.f32 1.0, %v11494_v49  ;;  %11513 = vrcp.f32 %v7468_v55 }
0x1049   :  { %v7471_v13 = vadd.f32 1.0, %v11496_v5  ;;  %11515 = vrcp.f32 %v7469_v63  ;;  %v11498_v41 = vpop.eup %11497 }
0x104a   :  { %11517 = vrcp.f32 %v7470_v33  ;;  %v11500_v60 = vpop.eup %11499 }
0x104b   :  { %11519 = vrcp.f32 %v7471_v13  ;;  %v11502_v56 = vpop.eup %11501 }
0x104c   :  { %11521 = vpow2.f32 %v7528_v34  ;;  %v11504_v15 = vpop.eup %11503 }
0x104d   :  { %11523 = vpow2.f32 %v7530_v57 }
0x104e   :  { %v11506_v9 = vpop.eup %11505  ;;  %11525 = vpow2.f32 %v7532_v62 }
0x104f   :  { %v11508_v22 = vpop.eup %11507  ;;  %v7516_v20 = vmul.f32 %v11506_v9, %v11498_v41  ;;  %11527 = vpow2.f32 %v7534_v29 }
0x1050   :  { %v11510_v46 = vpop.eup %11509  ;;  %v7517_v61 = vmul.f32 %v11508_v22, %v11500_v60 }
0x1051   :  { %v11512_v14 = vpop.eup %11511  ;;  %v7518_v19 = vmul.f32 %v11510_v46, %v11502_v56 }
0x1052   :  { %v11514_v54 = vpop.eup %11513  ;;  %v7519_v43 = vmul.f32 %v11512_v14, %v11504_v15 }
0x1053   :  { %v11516_v40 = vpop.eup %11515  ;;  %v7488_v16 = vmul.f32 %v11514_v54, %v7480_v23 }
0x1054   :  { %v11518_v35 = vpop.eup %11517  ;;  %v7489_v38 = vmul.f32 %v11516_v40, %v7481_v17  ;;  %v7998_v40 = vld [vmem:[%s13343_s7 + $0x28] sm:$0xff] }
0x1055   :  { %v11520_v0 = vpop.eup %11519  ;;  %v7490_v18 = vmul.f32 %v11518_v35, %v7482_v52  ;;  %v13211_v2 = vadd.f32 %v7516_v20, %v7488_v16  ;;  %v8090_v16 = vld [vmem:[%s13345_s9] sm:$0xff]  ;;  %v8091_v35 = vld [vmem:[%s13345_s9 + $0x8] sm:$0xff] }
0x1056   :  { %v11522_v55 = vpop.eup %11521  ;;  %v7491_v48 = vmul.f32 %v11520_v0, %v7483_v11  ;;  %v13213_v39 = vadd.f32 %v7517_v61, %v7489_v38  ;;  %v8092_v11 = vld [vmem:[%s13345_s9 + $0x10] sm:$0xff]  ;;  %v10567_v38 = vpack.c.bf16 %v8091_v35, %v8090_v16  ;;  %v8093_v0 = vld [vmem:[%s13345_s9 + $0x18] sm:$0xff] }
0x1057   :  { %v11524_v49 = vpop.eup %11523  ;;  %v13215_v63 = vadd.f32 %v7518_v19, %v7490_v18  ;;  %11529 = vtanh.f32 %v13211_v2  ;;  %v7536_v37 = vadd.f32 1.0, %v11522_v55  ;;  %v10570_v18 = vpack.c.bf16 %v8093_v0, %v8092_v11 }
0x1058   :  { %v11526_v53 = vpop.eup %11525  ;;  %v13218_v58 = vadd.f32 %v7519_v43, %v7491_v48  ;;  %11531 = vtanh.f32 %v13213_v39  ;;  %v7537_v51 = vadd.f32 1.0, %v11524_v49 }
0x1059   :  { %v11528_v5 = vpop.eup %11527  ;;  %11533 = vtanh.f32 %v13215_v63  ;;  %v7538_v33 = vadd.f32 1.0, %v11526_v53 }
0x105a   :  { %v7539_v34 = vadd.f32 1.0, %v11528_v5  ;;  %11535 = vrcp.f32 %v7536_v37 }
0x105b   :  { %11537 = vrcp.f32 %v7537_v51 }
0x105c   :  { %11539 = vrcp.f32 %v7538_v33 }
0x105d   :  { %11541 = vrcp.f32 %v7539_v34 }
0x105e   :  { %11543 = vtanh.f32 %v13218_v58 }
0x1061   :  { %v11530_v13 = vpop.eup %11529 }
0x1062   :  { %v11532_v57 = vpop.eup %11531 }
0x1063   :  { %v11534_v41 = vpop.eup %11533 }
0x1064   :  { %v11536_v62 = vpop.eup %11535 }
0x1065   :  { %v11538_v60 = vpop.eup %11537  ;;  %v7548_v29 = vmul.f32 %v11536_v62, %v11530_v13 }
0x1066   :  { %v11540_v56 = vpop.eup %11539  ;;  %v7549_v15 = vmul.f32 %v11538_v60, %v11532_v57 }
0x1067   :  { %v11542_v9 = vpop.eup %11541  ;;  %v7550_v22 = vmul.f32 %v11540_v56, %v11534_v41  ;;  %v7556_v20 = vrot.slane %v7548_v29, 6 }
0x1068   :  { %v11544_v46 = vpop.eup %11543  ;;  %v7557_v61 = vrot.slane %v7549_v15, 5 }
0x1069   :  { %v7551_v14 = vmul.f32 %v11544_v46, %v11542_v9  ;;  %v7559_v23 = vrot.slane %v7550_v22, 4 }
0x106a   :  { %v7558_v19 = vsel %vm954_vm3, %v7557_v61, %v7556_v20 }
0x106b   :  { %v7560_v54 = vsel %vm957_vm4, %v7559_v23, %v7558_v19  ;;  %v7561_v17 = vrot.slane %v7551_v14, 3 }
0x106d   :  { %v7562_v43 = vsel %vm960_vm5, %v7561_v17, %v7560_v54 }
0x106e   :  { %9856 = vmatmul.mubr.msk.f32.vlgmr.msra.gmra.mrb[76].mxu0 %vm533_vm6, %v7562_v43  ;;  %9871 = vmatmul.mubr.msk.f32.vlgmr.msra.gmra.mrb[76].mxu1 %vm533_vm6, %v7562_v43 }
0x106f   :  { %10541 = vmatpush3.bf16.msra.mxu0 %v12669_v8  ;;  %10550 = vmatpush3.bf16.msra.mxu1 %v12671_v12  ;;  %v7993_v8 = vld [vmem:[%s13343_s7] sm:$0xff]  ;;  %v7994_v12 = vld [vmem:[%s13343_s7 + $0x8] sm:$0xff] }
0x1070   :  { %10542 = vmatprep.subr.bf16.mxu0 %v13353_v36  ;;  %10551 = vmatprep.subr.bf16.mxu1 %v13353_v36 }
0x1071   :  { %9885 = vmatprep.mubr.msk.f32.mxu0 %vm11709_vm2, %v13354_v42  ;;  %9900 = vmatprep.mubr.msk.f32.mxu1 %vm11709_vm2, %v13354_v42 }
0x1073   :  { %10544 = vmatpush3.bf16.msra.mxu0 %v12679_v50  ;;  %10553 = vmatpush3.bf16.msra.mxu1 %v12681_v10  ;;  %v7995_v50 = vld [vmem:[%s13343_s7 + $0x10] sm:$0xff]  ;;  %v10558_v10 = vpack.c.bf16 %v7994_v12, %v7993_v8 }
0x1074   :  { %10545 = vmatprep.subr.bf16.mxu0 %v13353_v36  ;;  %10554 = vmatprep.subr.bf16.mxu1 %v13353_v36 }
0x1077   :  { %10547 = vmatpush3.bf16.msra.mxu0 %v12691_v25  ;;  %10556 = vmatpush3.bf16.msra.mxu1 %v12693_v32  ;;  %v7996_v25 = vld [vmem:[%s13343_s7 + $0x18] sm:$0xff] }
0x1078   :  { %10557 = vmatprep.subr.bf16.mxu0 %v13353_v36  ;;  %10566 = vmatprep.subr.bf16.mxu1 %v13353_v36  ;;  %v10561_v32 = vpack.c.bf16 %v7996_v25, %v7995_v50 }
0x107a   :  { %9886 = vmatmul.mubr.msk.f32.vlgmr.msra.gmra.mrb[78].mxu0 %vm533_vm6, %v7562_v43  ;;  %9901 = vmatmul.mubr.msk.f32.vlgmr.msra.gmra.mrb[78].mxu1 %vm533_vm6, %v7562_v43 }
0x107b   :  { %9915 = vmatprep.mubr.msk.f32.mxu0 %vm11709_vm2, %v13354_v42  ;;  %9930 = vmatprep.mubr.msk.f32.mxu1 %vm11709_vm2, %v13354_v42  ;;  %v7997_v42 = vld [vmem:[%s13343_s7 + $0x20] sm:$0xff] }
0x107c   :  { %10559 = vmatpush3.bf16.msra.mxu0 %v10558_v10  ;;  %v10564_v52 = vpack.c.bf16 %v7998_v40, %v7997_v42  ;;  %10568 = vmatpush3.bf16.msra.mxu1 %v10567_v38 }
0x107d   :  { %10560 = vmatprep.subr.bf16.mxu0 %v13353_v36  ;;  %10569 = vmatprep.subr.bf16.mxu1 %v13353_v36 }
0x1080   :  { %10562 = vmatpush3.bf16.msra.mxu0 %v10561_v32  ;;  %10571 = vmatpush3.bf16.msra.mxu1 %v10570_v18 }
0x1081   :  { %10563 = vmatprep.subr.bf16.mxu0 %v13353_v36  ;;  %10572 = vmatprep.subr.bf16.mxu1 %v13353_v36 }
0x1084   :  { %10565 = vmatpush3.bf16.msra.mxu0 %v10564_v52 }
0x1141   :  { %v7631_v55 = vpop.f32.mrb[76].mxu0  ;;  %v7714_v48 = vpop.f32.mrb[76].mxu1 }
0x1142   :  { %v7636_v49 = vrot.slane %v7631_v55, 1  ;;  %v7637_v37 = vrot.slane %v7631_v55, 2  ;;  %v7638_v53 = vrot.slane %v7631_v55, 3  ;;  %v7639_v51 = vrot.slane %v7631_v55, 4  ;;  %v9857_v5 = vpop.f32.mrb[77].mxu0  ;;  %v9872_v33 = vpop.f32.mrb[77].mxu1 }
0x1143   :  { %v7719_v34 = vrot.slane %v7714_v48, 1  ;;  %v7720_v13 = vrot.slane %v7714_v48, 2  ;;  %v7721_v57 = vrot.slane %v7714_v48, 3  ;;  %v7722_v41 = vrot.slane %v7714_v48, 4 }
0x1144   :  { %v7644_v62 = vadd.f32 %v7636_v49, %v12733_v28  ;;  %v7645_v60 = vadd.f32 %v7637_v37, %v12729_v44  ;;  %v7646_v29 = vadd.f32 %v7638_v53, %v12741_v3  ;;  %v7647_v36 = vadd.f32 %v7639_v51, %v12737_v4 }
0x1145   :  { %v7727_v56 = vadd.f32 %v7719_v34, %v12735_v59  ;;  %v7728_v15 = vadd.f32 %v7720_v13, %v12731_v6  ;;  %v7729_v9 = vadd.f32 %v7721_v57, %v12743_v1  ;;  %v7730_v22 = vadd.f32 %v7722_v41, %v12739_v30 }
0x1146   :  { %v7933_v20 = vsub.f32 0.0, %v7644_v62  ;;  %v7934_v46 = vsub.f32 0.0, %v7645_v60  ;;  %v7935_v61 = vsub.f32 0.0, %v7646_v29  ;;  %v7936_v14 = vsub.f32 0.0, %v7647_v36 }
0x1147   :  { %v7897_v23 = vsub.f32 0.0, %v7727_v56  ;;  %v7898_v28 = vsub.f32 0.0, %v7728_v15  ;;  %v7899_v19 = vsub.f32 0.0, %v7729_v9  ;;  %v7900_v4 = vsub.f32 0.0, %v7730_v22 }
0x1148   :  { %v7937_v44 = vmul.f32 1.442695, %v7933_v20  ;;  %v7939_v54 = vmul.f32 1.442695, %v7934_v46  ;;  %v7941_v3 = vmul.f32 1.442695, %v7935_v61 }
0x1149   :  { %v7943_v17 = vmul.f32 1.442695, %v7936_v14  ;;  %v7901_v59 = vmul.f32 1.442695, %v7897_v23  ;;  %v7903_v6 = vmul.f32 1.442695, %v7898_v28 }
0x114a   :  { %11545 = vpow2.f32 %v7937_v44  ;;  %v7905_v1 = vmul.f32 1.442695, %v7899_v19  ;;  %v7907_v30 = vmul.f32 1.442695, %v7900_v4 }
0x114b   :  { %11547 = vpow2.f32 %v7939_v54 }
0x114c   :  { %11549 = vpow2.f32 %v7941_v3 }
0x114d   :  { %11551 = vpow2.f32 %v7943_v17  ;;  %v7797_v43 = vpop.f32.mrb[78].mxu0  ;;  %v7880_v8 = vpop.f32.mrb[78].mxu1  ;;  %v7921_v17 = vrot.slane %v13211_v2, 7 }
0x114e   :  { %11553 = vpow2.f32 %v7901_v59  ;;  %v7802_v12 = vrot.slane %v7797_v43, 1  ;;  %v7803_v50 = vrot.slane %v7797_v43, 2  ;;  %v7804_v10 = vrot.slane %v7797_v43, 3  ;;  %v9887_v25 = vpop.f32.mrb[79].mxu0  ;;  %v9902_v32 = vpop.f32.mrb[79].mxu1 }
0x114f   :  { %11555 = vpow2.f32 %v7903_v6  ;;  %v7805_v42 = vrot.slane %v7797_v43, 4  ;;  %v7885_v40 = vrot.slane %v7880_v8, 1  ;;  %v7886_v35 = vrot.slane %v7880_v8, 2 }
0x1150   :  { %11557 = vpow2.f32 %v7905_v1  ;;  %v7810_v52 = vadd.f32 %v7802_v12, %v12763_v45  ;;  %v7811_v16 = vadd.f32 %v7803_v50, %v12759_v31  ;;  %v7812_v11 = vadd.f32 %v7804_v10, %v12769_v24 }
0x1151   :  { %11559 = vpow2.f32 %v7907_v30  ;;  %v7887_v38 = vrot.slane %v7880_v8, 3  ;;  %v7813_v0 = vadd.f32 %v7805_v42, %v12767_v26  ;;  %v7888_v18 = vrot.slane %v7880_v8, 4 }
0x1152   :  { %11561 = vtanh.f32 %v7810_v52  ;;  %v7893_v55 = vadd.f32 %v7885_v40, %v12765_v21  ;;  %v7894_v49 = vadd.f32 %v7886_v35, %v12761_v7  ;;  %v7922_v6 = vrot.slane %v13213_v39, 7 }
0x1153   :  { %11563 = vtanh.f32 %v7811_v16  ;;  %v7895_v31 = vadd.f32 %v7887_v38, %v12776_v27  ;;  %v7896_v24 = vadd.f32 %v7888_v18, %v12780_v47  ;;  %v7923_v43 = vrot.slane %v13215_v63, 7 }
0x1154   :  { %v11546_v48 = vpop.eup %11545  ;;  %11565 = vtanh.f32 %v7812_v11  ;;  %v7965_v33 = vsub.f32 0.0, %v7893_v55  ;;  %v7966_v13 = vsub.f32 0.0, %v7894_v49  ;;  %v7924_v50 = vrot.slane %v13218_v58, 7 }
0x1155   :  { %v11548_v37 = vpop.eup %11547  ;;  %v7945_v53 = vadd.f32 1.0, %v11546_v48  ;;  %11567 = vtanh.f32 %v7813_v0  ;;  %v7967_v41 = vsub.f32 0.0, %v7895_v31  ;;  %v7968_v60 = vsub.f32 0.0, %v7896_v24 }
0x1156   :  { %v11550_v45 = vpop.eup %11549  ;;  %v7946_v51 = vadd.f32 1.0, %v11548_v37  ;;  %v7969_v47 = vmul.f32 1.442695, %v7965_v33  ;;  %v7971_v15 = vmul.f32 1.442695, %v7966_v13 }
0x1157   :  { %v11552_v5 = vpop.eup %11551  ;;  %v7947_v26 = vadd.f32 1.0, %v11550_v45  ;;  %11569 = vrcp.f32 %v7945_v53  ;;  %v7973_v22 = vmul.f32 1.442695, %v7967_v41  ;;  %v7975_v46 = vmul.f32 1.442695, %v7968_v60  ;;  %v8095_v60 = vld [vmem:[%s13345_s9 + $0x28] sm:$0xff] }
0x1158   :  { %v11554_v34 = vpop.eup %11553  ;;  %v7948_v21 = vadd.f32 1.0, %v11552_v5  ;;  %11571 = vrcp.f32 %v7946_v51 }
0x1159   :  { %v11556_v57 = vpop.eup %11555  ;;  %11573 = vrcp.f32 %v7947_v26  ;;  %v7909_v7 = vadd.f32 1.0, %v11554_v34 }
0x115a   :  { %v11558_v62 = vpop.eup %11557  ;;  %11575 = vrcp.f32 %v7948_v21  ;;  %v7910_v27 = vadd.f32 1.0, %v11556_v57 }
0x115b   :  { %v11560_v29 = vpop.eup %11559  ;;  %v7911_v36 = vadd.f32 1.0, %v11558_v62  ;;  %11577 = vrcp.f32 %v7909_v7 }
0x115c   :  { %v7912_v56 = vadd.f32 1.0, %v11560_v29  ;;  %11579 = vrcp.f32 %v7910_v27  ;;  %v11562_v9 = vpop.eup %11561  ;;  %v8094_v27 = vld [vmem:[%s13345_s9 + $0x20] sm:$0xff]  ;;  %s11712_s9 = smov 125  }
0x115d   :  { %11581 = vrcp.f32 %v7911_v36  ;;  %v11564_v20 = vpop.eup %11563  ;;  %v10573_v29 = vpack.c.bf16 %v8095_v60, %v8094_v27  ;;  %v8313_v36 = vld [vmem:[%s13344_s8] ss:$0 sm:$0xff]  ;;  %s11675_s8 = scalar_lea.vmem %s8191_s30, 64 }
0x115e   :  { %11583 = vrcp.f32 %v7912_v56  ;;  %v11566_v61 = vpop.eup %11565  ;;  %p11676_p10 = scmp.ne.s32.totalorder %s8191_s30, %s11675_s8  ;;  %p11681_p12 = scmp.lt.s32.totalorder %s11675_s8, %s11675_s8 }
0x115f   :  { %11585 = vpow2.f32 %v7969_v47  ;;  %v11568_v14 = vpop.eup %11567  ;;  %10574 = vmatpush3.bf16.msra.mxu1 %v10573_v29 }
0x1160   :  { %11587 = vpow2.f32 %v7971_v15  ;;  %p11682_p13 = por %p11681_p12, %p11680_p11 }
0x1161   :  { %v11570_v23 = vpop.eup %11569  ;;  %11589 = vpow2.f32 %v7973_v22  ;;  %v8315_v22 = vld [vmem:[%s13346_s10] ss:$0 sm:$0xff] }
0x1162   :  { %v11572_v28 = vpop.eup %11571  ;;  %v7957_v19 = vmul.f32 %v11570_v23, %v11562_v9  ;;  %11591 = vpow2.f32 %v7975_v46  ;;  %p11683_p0 = pnand %p11682_p13, %p11676_p10 }
0x1163   :  { %v11574_v44 = vpop.eup %11573  ;;  %v7958_v54 = vmul.f32 %v11572_v28, %v11564_v20 }
0x1164   :  { %v11576_v3 = vpop.eup %11575  ;;  %v7959_v4 = vmul.f32 %v11574_v44, %v11566_v61 }
0x1165   :  { %v11578_v59 = vpop.eup %11577  ;;  %v7960_v1 = vmul.f32 %v11576_v3, %v11568_v14 }
0x1166   :  { %v11580_v30 = vpop.eup %11579  ;;  %v7929_v8 = vmul.f32 %v11578_v59, %v7921_v17 }
0x1167   :  { %v11582_v12 = vpop.eup %11581  ;;  %v7930_v10 = vmul.f32 %v11580_v30, %v7922_v6 }
0x1168   :  { %v11584_v25 = vpop.eup %11583  ;;  %v7931_v32 = vmul.f32 %v11582_v12, %v7923_v43  ;;  %v7961_v42 = vadd.f32 %v7957_v19, %v7929_v8 }
0x1169   :  { %v11586_v40 = vpop.eup %11585  ;;  %v7932_v52 = vmul.f32 %v11584_v25, %v7924_v50  ;;  %v7962_v16 = vadd.f32 %v7958_v54, %v7930_v10 }
0x116a   :  { %v11588_v2 = vpop.eup %11587  ;;  %v7963_v35 = vadd.f32 %v7959_v4, %v7931_v32  ;;  %11593 = vtanh.f32 %v7961_v42  ;;  %v7977_v11 = vadd.f32 1.0, %v11586_v40 }
0x116b   :  { %v11590_v39 = vpop.eup %11589  ;;  %v7964_v38 = vadd.f32 %v7960_v1, %v7932_v52  ;;  %11595 = vtanh.f32 %v7962_v16  ;;  %v7978_v0 = vadd.f32 1.0, %v11588_v2 }
0x116c   :  { %v11592_v63 = vpop.eup %11591  ;;  %11597 = vtanh.f32 %v7963_v35  ;;  %v7979_v18 = vadd.f32 1.0, %v11590_v39 }
0x116d   :  { %v7980_v55 = vadd.f32 1.0, %v11592_v63  ;;  %11599 = vrcp.f32 %v7977_v11 }
0x116e   :  { %11601 = vrcp.f32 %v7978_v0 }
0x116f   :  { %11603 = vrcp.f32 %v7979_v18 }
0x1170   :  { %11605 = vrcp.f32 %v7980_v55 }
0x1171   :  { %11607 = vtanh.f32 %v7964_v38 }
0x1174   :  { %v11594_v58 = vpop.eup %11593 }
0x1175   :  { %v11596_v48 = vpop.eup %11595 }
0x1176   :  { %v11598_v49 = vpop.eup %11597 }
0x1177   :  { %v11600_v37 = vpop.eup %11599 }
0x1178   :  { %v11602_v53 = vpop.eup %11601  ;;  %v7989_v31 = vmul.f32 %v11600_v37, %v11594_v58 }
0x1179   :  { %v11604_v45 = vpop.eup %11603  ;;  %v7990_v51 = vmul.f32 %v11602_v53, %v11596_v48 }
0x117a   :  { %v11606_v24 = vpop.eup %11605  ;;  %v7991_v5 = vmul.f32 %v11604_v45, %v11598_v49  ;;  %v8010_v26 = vrot.slane %v7989_v31, 7 }
0x117b   :  { %v11608_v33 = vpop.eup %11607  ;;  %v8011_v34 = vrot.slane %v7990_v51, 6 }
0x117c   :  { %v7992_v21 = vmul.f32 %v11608_v33, %v11606_v24  ;;  %v8013_v13 = vrot.slane %v7991_v5, 5 }
0x117d   :  { %v8012_v57 = vsel %vm954_vm3, %v8011_v34, %v8010_v26 }
0x117e   :  { %v8014_v7 = vsel %vm957_vm4, %v8013_v13, %v8012_v57  ;;  %v8015_v41 = vrot.slane %v7992_v21, 4 }
0x1180   :  { %v8016_v62 = vsel %vm960_vm5, %v8015_v41, %v8014_v7 }
0x1181   :  { %9916 = vmatmul.mubr.msk.f32.vlgmr.msra.gmra.mrb[80].mxu0 %vm533_vm6, %v8016_v62 }
0x1254   :  { %v8085_v47 = vpop.f32.mrb[80].mxu0 }
0x1255   :  { %v8086_v56 = vadd.f32 %v8313_v36, %v8085_v47  ;;  %v9917_v15 = vpop.f32.mrb[81].mxu0 }
0x1257   :  { %v8089_v9 = vmax.f32 %v8086_v56, 0.0 }
0x1259   :  { %9931 = vmatmul.mubr.msk.f32.vlgmr.msra.gmra.mrb[80].mxu1 %vm533_vm6, %v8089_v9 }
0x132c   :  { %v8172_v20 = vpop.f32.mrb[80].mxu1 }
0x132d   :  { %v8173_v46 = vadd.f32 %v8315_v22, %v8172_v20  ;;  %v9932_v61 = vpop.f32.mrb[81].mxu1 }
0x132f   :  { %8179 = vrot.lane.b32.xlu0 %v8173_v46, %s11712_s9  ;;  %8177 = vst.msk [vmem:[#allocation8] sm:$0xf] %vm8176_vm13, %v8173_v46 }
0x1330   :  { %11686 = shalt.err (!%p11683_p0)
}
0x1331   :  { %s11687_s10 = scalar_lea.hbm %s13347_s11, 64 }
0x1332   :  { %p11688_p1 = scmp.ne.s32.totalorder %s13347_s11, %s11687_s10  ;;  %p11691_p2 = scmp.lt.u32.totalorder %s11687_s10, %s13347_s11 }
0x1334   :  { %p11693_p3 = pnand %p11691_p2, %p11688_p1 }
0x1336   :  { %11696 = shalt.err (!%p11693_p3)
}
0x1337   :  { %8193 = dma.vmem_to_hbm [thread:$0]  %s8191_s30, 64, %s13347_s11, [#allocation4]   ;;  %vm8182_vm14 = vcmask 3072  }
0x13a1   :  { %v8180_v14 = vpop.permute.xlu0 %8179 }
0x13a2   :  { %8183 = vst.msk [vmem:[%s13348_s12] sm:$0xf] %vm8182_vm14, %v8180_v14 }
0x13a3   :  { %11701 = dma.done.wait [#allocation4], 64  }
0x13a4   :  { %11702 = vsyncadd [#allocation4], 4294967232 }
0x13a5   :  { %8201 = vsyncpa [#allocation3], 1 }
0x13a6   :  { %8202 = vsyncpa [#allocation6], 1 }
0x13a7   :  { %8203 = vsyncpa [#allocation4], 1 }

</bundles_post_ra>
